<compile_context>
chip_gen: v6e
topology: v6e:2x2x1
jax: 0.10.0
libtpu: 0.0.40
codegen_flags: <defaults>
</compile_context>

<pallas_src>
import numpy as np
import jax
import jax.numpy as jnp
from jax import lax
from jax.experimental import pallas as pl
from jax.experimental.pallas import tpu as pltpu

D_MODEL  = 512   # combined_embed_size = 256 * 2
D_PROJ_H = 512   # projector hidden
D_PROJ_O = 256   # projector output
D_FF     = 512   # dim_feedforward
N_LAYERS = 6
LAYERS_PER_STEP = 3                       # 3 encoder layers per grid step
N_STEPS  = N_LAYERS // LAYERS_PER_STEP    # -> grid = (2,)
LN_EPS   = 1e-5
CLS_PAD  = 128   # lane-dense classifier output width (logits live in cols 0, 1)
ROW_TILE = 16    # pad batch rows so the bf16 LHS fills a full (16,128) packed tile

TS_HIDDEN  = 128   # BEHRT.config.hidden_size   (small synthetic choice)
TXT_HIDDEN = 256   # BioBert.config.hidden_size (small synthetic choice)
BATCH      = 8


def _layer_norm(x, gamma, beta):
    mu = jnp.mean(x, axis=-1, keepdims=True)
    xc = x - mu
    var = jnp.mean(xc * xc, axis=-1, keepdims=True)
    return xc * lax.rsqrt(var + LN_EPS) * gamma + beta


def _mm(x, w_bf16):
    """MXU matmul: bf16 operands, f32 accumulation."""
    return jnp.dot(x.astype(jnp.bfloat16), w_bf16,
                   preferred_element_type=jnp.float32)


def mmt_kernel(ts_ref, txt_ref,
               tsw1_ref, tsw2_ref, txw1_ref, txw2_ref,
               w_ref, vec_ref, cw_ref, cb_ref,
               out_ref, x_scr):
    """Grid axis = encoder-layer *block* index (2 steps x 3 layers, sequential).

    Step 0 additionally runs the two modality projectors + concat.
    Last step additionally runs the (lane-padded) classifier head.
    x_scr (VMEM scratch) carries the (B, 512) token in f32 across steps.
    w_ref view is (LAYERS_PER_STEP, 3, 512, 512) bf16 per step:
      [Wfused^T = (Wv@Wo)^T, W1^T, W2^T] per layer (attention folded offline).
    vec_ref is the fully resident (N_LAYERS, 8, 512) f32 bias / LN tensor.
    """
    step = pl.program_id(0)

    # ---- step 0: ts / text projectors + concat into the carried token ----
    @pl.when(step == 0)
    def _project():
        out_ref[...] = jnp.zeros_like(out_ref)   # defensive init of revisited block
        ts_h = jnp.maximum(_mm(ts_ref[...], tsw1_ref[...]), 0.0)
        x_scr[:, 0:D_PROJ_O] = _mm(ts_h, tsw2_ref[...])        # torch.cat dim=1
        tx_h = jnp.maximum(_mm(txt_ref[...], txw1_ref[...]), 0.0)
        x_scr[:, D_PROJ_O:D_MODEL] = _mm(tx_h, txw2_ref[...])

    # ---- LAYERS_PER_STEP post-norm TransformerEncoderLayers (eval: dropout = id) ----
    x = x_scr[...]
    for j in range(LAYERS_PER_STEP):
        layer = step * LAYERS_PER_STEP + j
        vl = vec_ref[layer]                       # (8, 512) f32, VMEM-resident
        sab      = vl[0:1, :]                     # fused attn bias = bv@Wo^T + ob
        l1b, l2b = vl[1:2, :], vl[2:3, :]         # ffn biases
        n1g, n1b = vl[3:4, :], vl[4:5, :]         # norm1 gamma/beta
        n2g, n2b = vl[5:6, :], vl[6:7, :]         # norm2 gamma/beta

        # seq_len == 1 => softmax over one key == 1 => attn == out_proj(V);
        # Wv@Wo folded offline -> a single matmul on the critical chain.
        sa = _mm(x, w_ref[j, 0]) + sab
        x  = _layer_norm(x + sa, n1g, n1b)
        h  = jnp.maximum(_mm(x, w_ref[j, 1]) + l1b, 0.0)
        ff = _mm(h, w_ref[j, 2]) + l2b
        x  = _layer_norm(x + ff, n2g, n2b)
    x_scr[...] = x

    # ---- last step: classifier heads (col 0 = mortality, col 1 = readmission) ----
    @pl.when(step == pl.num_programs(0) - 1)
    def _classify():
        out_ref[...] = _mm(x, cw_ref[...]) + cb_ref[...]


def multimodal_transformer_forward(ts_cls, txt_cls, params):
    """ts_cls: (B, TS_HIDDEN) bf16, txt_cls: (B, TXT_HIDDEN) bf16."""
    B = ts_cls.shape[0]
    Bp = ((B + ROW_TILE - 1) // ROW_TILE) * ROW_TILE
    if Bp != B:                                   # pad rows so bf16 LHS tile is full
        ts_cls = jnp.pad(ts_cls, ((0, Bp - B), (0, 0)))
        txt_cls = jnp.pad(txt_cls, ((0, Bp - B), (0, 0)))

    def resident(arr):
        # whole array stays in VMEM across all grid iterations
        nd = arr.ndim
        return pl.BlockSpec(arr.shape, lambda l: (0,) * nd)

    # one fused 4.5 MiB bf16 weight DMA per grid step (3 layers), double-buffered
    per_step_w = pl.BlockSpec((LAYERS_PER_STEP, 3, D_MODEL, D_MODEL),
                              lambda l: (l, 0, 0, 0),
                              pipeline_mode=pl.Buffered(2))

    out = pl.pallas_call(
        mmt_kernel,
        out_shape=jax.ShapeDtypeStruct((Bp, CLS_PAD), jnp.float32),
        grid=(N_STEPS,),
        in_specs=[
            resident(ts_cls), resident(txt_cls),
            resident(params["ts_w1_t"]), resident(params["ts_w2_t"]),
            resident(params["txt_w1_t"]), resident(params["txt_w2_t"]),
            per_step_w,
            resident(params["vecs"]),                 # 96 KiB f32, one DMA total
            resident(params["cls_w_t"]), resident(params["cls_b"]),
        ],
        out_specs=pl.BlockSpec((Bp, CLS_PAD), lambda l: (0, 0)),
        scratch_shapes=[pltpu.VMEM((Bp, D_MODEL), jnp.float32)],
        compiler_params=pltpu.CompilerParams(
            dimension_semantics=("arbitrary",),       # layer axis is a carried loop
            vmem_limit_bytes=32 * 1024 * 1024),
    )(ts_cls, txt_cls,
      params["ts_w1_t"], params["ts_w2_t"],
      params["txt_w1_t"], params["txt_w2_t"],
      params["w_all"], params["vecs"],
      params["cls_w_t"], params["cls_b"])

    return out[:B, 0], out[:B, 1]   # logits_mortality, logits_readmission


# ------------------------- parameter construction -------------------------

def init_params(key):
    """Deterministic synthetic parameters following the PyTorch __init__ shapes,
    rearranged into the kernel layout (attention folded, pre-transposed, bf16)."""
    ks = iter(jax.random.split(key, 128))
    n = lambda shape, s=0.02: (s * jax.random.normal(next(ks), shape)).astype(jnp.float32)
    bf = lambda a: a.astype(jnp.bfloat16)

    # projectors: Linear(H, 512, bias=False) -> ReLU -> Linear(512, 256, bias=False)
    ts_w1  = n((D_PROJ_H, TS_HIDDEN))     # (out, in) like nn.Linear.weight
    ts_w2  = n((D_PROJ_O, D_PROJ_H))
    txt_w1 = n((D_PROJ_H, TXT_HIDDEN))
    txt_w2 = n((D_PROJ_O, D_PROJ_H))

    w_l, vec_l, ref_layers = [], [], []
    for _ in range(N_LAYERS):
        in_proj_w = n((3 * D_MODEL, D_MODEL))    # MultiheadAttention.in_proj_weight
        in_proj_b = n((3 * D_MODEL,))
        out_w = n((D_MODEL, D_MODEL)); out_b = n((D_MODEL,))
        lin1_w = n((D_FF, D_MODEL));   lin1_b = n((D_FF,))
        lin2_w = n((D_MODEL, D_FF));   lin2_b = n((D_MODEL,))
        n1g = jnp.ones((D_MODEL,), jnp.float32) + n((D_MODEL,), 0.01)
        n1b = n((D_MODEL,), 0.01)
        n2g = jnp.ones((D_MODEL,), jnp.float32) + n((D_MODEL,), 0.01)
        n2b = n((D_MODEL,), 0.01)

        wv = in_proj_w[2 * D_MODEL:, :]          # only V matters for seq_len == 1
        bv = in_proj_b[2 * D_MODEL:]
        # fold attention offline (f32 product, bf16 only at the very end):
        #   sa = x @ Wv^T @ Wo^T + (bv @ Wo^T + ob)
        w_attn_t = wv.T @ out_w.T                # (512, 512) f32
        b_attn   = bv @ out_w.T + out_b          # (512,)     f32

        w_l.append(jnp.stack([w_attn_t, lin1_w.T, lin2_w.T]))
        vec_l.append(jnp.stack([b_attn, lin1_b, lin2_b,
                                n1g, n1b, n2g, n2b,
                                jnp.zeros((D_MODEL,), jnp.float32)]))   # pad to 8 rows
        ref_layers.append(dict(wv=wv, bv=bv, wo=out_w, bo=out_b,
                               w1=lin1_w, b1=lin1_b, w2=lin2_w, b2=lin2_b,
                               n1g=n1g, n1b=n1b, n2g=n2g, n2b=n2b))

    cls_m_w = n((1, D_MODEL)); cls_m_b = n((1,))
    cls_r_w = n((1, D_MODEL)); cls_r_b = n((1,))
    cls_w = jnp.zeros((D_MODEL, CLS_PAD), jnp.float32)
    cls_w = cls_w.at[:, 0].set(cls_m_w[0]).at[:, 1].set(cls_r_w[0])
    cls_b = jnp.zeros((1, CLS_PAD), jnp.float32)
    cls_b = cls_b.at[0, 0].set(cls_m_b[0]).at[0, 1].set(cls_r_b[0])

    return dict(
        ts_w1_t=bf(ts_w1.T), ts_w2_t=bf(ts_w2.T),
        txt_w1_t=bf(txt_w1.T), txt_w2_t=bf(txt_w2.T),
        w_all=bf(jnp.stack(w_l)),          # (N_LAYERS, 3, 512, 512) bf16 (9 MiB)
        vecs=jnp.stack(vec_l),             # (N_LAYERS, 8, 512)      f32  (96 KiB)
        cls_w_t=bf(cls_w),                 # (512, 128) bf16, cols 0/1 live
        cls_b=cls_b,                       # (1, 128)   f32
        # unfused f32 originals for the PyTorch-semantics reference
        ref=dict(ts_w1=ts_w1, ts_w2=ts_w2, txt_w1=txt_w1, txt_w2=txt_w2,
                 layers=ref_layers, cls_m_w=cls_m_w, cls_m_b=cls_m_b,
                 cls_r_w=cls_r_w, cls_r_b=cls_r_b),
    )


# ----------------------------- pure-JAX references -----------------------------

def _ln_ref(x, g, b):
    return ((x - x.mean(-1, keepdims=True))
            / jnp.sqrt(x.var(-1, keepdims=True) + LN_EPS)) * g + b


def reference_forward_fused(ts_cls, txt_cls, p):
    """Same fused/bf16-weight math the kernel uses, with f32 activations."""
    f32 = lambda a: a.astype(jnp.float32)
    ts, tx = f32(ts_cls), f32(txt_cls)
    ts_p = jnp.maximum(ts @ f32(p["ts_w1_t"]), 0.0) @ f32(p["ts_w2_t"])
    tx_p = jnp.maximum(tx @ f32(p["txt_w1_t"]), 0.0) @ f32(p["txt_w2_t"])
    x = jnp.concatenate([ts_p, tx_p], axis=1)
    for l in range(N_LAYERS):
        w = f32(p["w_all"][l])
        sab, l1b, l2b, n1g, n1b, n2g, n2b = [p["vecs"][l][i] for i in range(7)]
        x = _ln_ref(x + (x @ w[0] + sab), n1g, n1b)
        ff = jnp.maximum(x @ w[1] + l1b, 0.0) @ w[2] + l2b
        x = _ln_ref(x + ff, n2g, n2b)
    out = x @ f32(p["cls_w_t"]) + p["cls_b"]
    return out[:, 0], out[:, 1]


def reference_forward_pytorch(ts_cls, txt_cls, p):
    """Unfused f32 math mirroring the PyTorch module (eval, seq_len == 1)."""
    r = p["ref"]
    f32 = lambda a: a.astype(jnp.float32)
    ts, tx = f32(ts_cls), f32(txt_cls)
    ts_p = jnp.maximum(ts @ r["ts_w1"].T, 0.0) @ r["ts_w2"].T
    tx_p = jnp.maximum(tx @ r["txt_w1"].T, 0.0) @ r["txt_w2"].T
    x = jnp.concatenate([ts_p, tx_p], axis=1)
    for lyr in r["layers"]:
        # single-token self-attention: softmax over one key == 1  =>  attn == V
        v  = x @ lyr["wv"].T + lyr["bv"]
        sa = v @ lyr["wo"].T + lyr["bo"]
        x  = _ln_ref(x + sa, lyr["n1g"], lyr["n1b"])
        h  = jnp.maximum(x @ lyr["w1"].T + lyr["b1"], 0.0)
        ff = h @ lyr["w2"].T + lyr["b2"]
        x  = _ln_ref(x + ff, lyr["n2g"], lyr["n2b"])
    lm = x @ r["cls_m_w"][0] + r["cls_m_b"][0]
    lr = x @ r["cls_r_w"][0] + r["cls_r_b"][0]
    return lm, lr


if __name__ == "__main__":
    key = jax.random.PRNGKey(0)
    k_ts, k_txt, k_par = jax.random.split(key, 3)

    # synthetic CLS embeddings standing in for BEHRT / BioBERT last_hidden_state[:, 0, :]
    ts_cls  = jax.random.normal(k_ts,  (BATCH, TS_HIDDEN),
                                dtype=jnp.float32).astype(jnp.bfloat16)
    txt_cls = jax.random.normal(k_txt, (BATCH, TXT_HIDDEN),
                                dtype=jnp.float32).astype(jnp.bfloat16)
    params  = init_params(k_par)

    logits_m, logits_r = multimodal_transformer_forward(ts_cls, txt_cls, params)
    jax.block_until_ready((logits_m, logits_r))
    assert logits_m.shape == (BATCH,) and logits_r.shape == (BATCH,)

    # kernel-mechanics check: same bf16 weights, f32 activations
    fm, fr = reference_forward_fused(ts_cls, txt_cls, params)
    np.testing.assert_allclose(np.asarray(logits_m), np.asarray(fm), rtol=2e-2, atol=2e-2)
    np.testing.assert_allclose(np.asarray(logits_r), np.asarray(fr), rtol=2e-2, atol=2e-2)

    # end-to-end semantic check against unfused pure-f32 PyTorch-style math
    # (looser tolerance covers bf16 weight quantization of the folded Wv@Wo)
    pm, pr = reference_forward_pytorch(ts_cls, txt_cls, params)
    np.testing.assert_allclose(np.asarray(logits_m), np.asarray(pm), rtol=5e-2, atol=5e-2)
    np.testing.assert_allclose(np.asarray(logits_r), np.asarray(pr), rtol=5e-2, atol=5e-2)

    print("KERNEL_OK")
</pallas_src>

<mosaic_0001>
module attributes {stable_mosaic.version = 11 : i64} {
  func.func @mmt_kernel(%arg0: i32, %arg1: memref<16x128xbf16, #tpu.memory_space<vmem>>, %arg2: memref<16x256xbf16, #tpu.memory_space<vmem>>, %arg3: memref<128x512xbf16, #tpu.memory_space<vmem>>, %arg4: memref<512x256xbf16, #tpu.memory_space<vmem>>, %arg5: memref<256x512xbf16, #tpu.memory_space<vmem>>, %arg6: memref<512x256xbf16, #tpu.memory_space<vmem>>, %arg7: memref<3x3x512x512xbf16, #tpu.memory_space<vmem>>, %arg8: memref<6x8x512xf32, #tpu.memory_space<vmem>>, %arg9: memref<512x128xbf16, #tpu.memory_space<vmem>>, %arg10: memref<1x128xf32, #tpu.memory_space<vmem>>, %arg11: memref<16x128xf32, #tpu.memory_space<vmem>>, %arg12: memref<16x512xf32, #tpu.memory_space<vmem>>) attributes {dimension_semantics = [#tpu.dimension_semantics<arbitrary>], iteration_bounds = array<i64: 2>, scalar_prefetch = 0 : i64, scratch_operands = 1 : i64, tpu.core_type = #tpu.core_type<tc>, window_params = [{pipeline_mode = #tpu.pipeline_mode<synchronous>, transform_indices = @transform_0, window_bounds = array<i64: 16, 128>}, {pipeline_mode = #tpu.pipeline_mode<synchronous>, transform_indices = @transform_1, window_bounds = array<i64: 16, 256>}, {pipeline_mode = #tpu.pipeline_mode<synchronous>, transform_indices = @transform_2, window_bounds = array<i64: 128, 512>}, {pipeline_mode = #tpu.pipeline_mode<synchronous>, transform_indices = @transform_3, window_bounds = array<i64: 512, 256>}, {pipeline_mode = #tpu.pipeline_mode<synchronous>, transform_indices = @transform_4, window_bounds = array<i64: 256, 512>}, {pipeline_mode = #tpu.pipeline_mode<synchronous>, transform_indices = @transform_5, window_bounds = array<i64: 512, 256>}, {pipeline_mode = #tpu.pipeline_mode<double_buffered>, transform_indices = @transform_6, window_bounds = array<i64: 3, 3, 512, 512>}, {pipeline_mode = #tpu.pipeline_mode<synchronous>, transform_indices = @transform_7, window_bounds = array<i64: 6, 8, 512>}, {pipeline_mode = #tpu.pipeline_mode<synchronous>, transform_indices = @transform_8, window_bounds = array<i64: 512, 128>}, {pipeline_mode = #tpu.pipeline_mode<synchronous>, transform_indices = @transform_9, window_bounds = array<i64: 1, 128>}, {pipeline_mode = #tpu.pipeline_mode<synchronous>, transform_indices = @transform_10, window_bounds = array<i64: 16, 128>}]} {
    %c0_i32 = arith.constant 0 : i32
    %0 = arith.cmpi eq, %arg0, %c0_i32 : i32
    %1 = arith.extui %0 : i1 to i32
    %c0_i32_0 = arith.constant 0 : i32
    %2 = arith.cmpi ne, %1, %c0_i32_0 : i32
    scf.if %2 {
      %cst_90 = arith.constant 0.000000e+00 : f32
      %230 = vector.broadcast %cst_90 : f32 to vector<16x128xf32>
      %c0_91 = arith.constant 0 : index
      %c0_92 = arith.constant 0 : index
      %231 = vector.load %arg11[%c0_91, %c0_92] : memref<16x128xf32, #tpu.memory_space<vmem>>, vector<16x128xf32>
      tpu.vector_store %arg11[%c0_91, %c0_92], %230 {strides = array<i32>} : memref<16x128xf32, #tpu.memory_space<vmem>>, vector<16x128xf32>,
      %c0_93 = arith.constant 0 : index
      %c0_94 = arith.constant 0 : index
      %232 = vector.load %arg1[%c0_93, %c0_94] : memref<16x128xbf16, #tpu.memory_space<vmem>>, vector<16x128xbf16>
      %c0_95 = arith.constant 0 : index
      %c0_96 = arith.constant 0 : index
      %233 = vector.load %arg3[%c0_95, %c0_96] : memref<128x512xbf16, #tpu.memory_space<vmem>>, vector<128x512xbf16>
      %cst_97 = arith.constant dense<0.000000e+00> : vector<16x512xf32>
      %234 = tpu.matmul %232, %233, %cst_97 {dimension_numbers = #tpu.dot_dimension_numbers<[1], [0], [0], [1], [0, 0, 1, 1], [], []>} : vector<16x128xbf16>, vector<128x512xbf16>, vector<16x512xf32> -> vector<16x512xf32>
      %cst_98 = arith.constant 0.000000e+00 : f32
      %235 = vector.broadcast %cst_98 : f32 to vector<16x512xf32>
      %236 = arith.maximumf %234, %235 : vector<16x512xf32>
      %c0_99 = arith.constant 0 : index
      %c0_100 = arith.constant 0 : index
      %237 = vector.load %arg4[%c0_99, %c0_100] : memref<512x256xbf16, #tpu.memory_space<vmem>>, vector<512x256xbf16>
      %238 = arith.truncf %236 : vector<16x512xf32> to vector<16x512xbf16>
      %cst_101 = arith.constant dense<0.000000e+00> : vector<16x256xf32>
      %239 = tpu.matmul %238, %237, %cst_101 {dimension_numbers = #tpu.dot_dimension_numbers<[1], [0], [0], [1], [0, 0, 1, 1], [], []>} : vector<16x512xbf16>, vector<512x256xbf16>, vector<16x256xf32> -> vector<16x256xf32>
      %c0_102 = arith.constant 0 : index
      %c0_103 = arith.constant 0 : index
      %240 = vector.load %arg12[%c0_102, %c0_103] : memref<16x512xf32, #tpu.memory_space<vmem>>, vector<16x256xf32>
      tpu.vector_store %arg12[%c0_102, %c0_103], %239 {strides = array<i32>} : memref<16x512xf32, #tpu.memory_space<vmem>>, vector<16x256xf32>,
      %c0_104 = arith.constant 0 : index
      %c0_105 = arith.constant 0 : index
      %241 = vector.load %arg2[%c0_104, %c0_105] : memref<16x256xbf16, #tpu.memory_space<vmem>>, vector<16x256xbf16>
      %c0_106 = arith.constant 0 : index
      %c0_107 = arith.constant 0 : index
      %242 = vector.load %arg5[%c0_106, %c0_107] : memref<256x512xbf16, #tpu.memory_space<vmem>>, vector<256x512xbf16>
      %cst_108 = arith.constant dense<0.000000e+00> : vector<16x512xf32>
      %243 = tpu.matmul %241, %242, %cst_108 {dimension_numbers = #tpu.dot_dimension_numbers<[1], [0], [0], [1], [0, 0, 1, 1], [], []>} : vector<16x256xbf16>, vector<256x512xbf16>, vector<16x512xf32> -> vector<16x512xf32>
      %cst_109 = arith.constant 0.000000e+00 : f32
      %244 = vector.broadcast %cst_109 : f32 to vector<16x512xf32>
      %245 = arith.maximumf %243, %244 : vector<16x512xf32>
      %c0_110 = arith.constant 0 : index
      %c0_111 = arith.constant 0 : index
      %246 = vector.load %arg6[%c0_110, %c0_111] : memref<512x256xbf16, #tpu.memory_space<vmem>>, vector<512x256xbf16>
      %247 = arith.truncf %245 : vector<16x512xf32> to vector<16x512xbf16>
      %cst_112 = arith.constant dense<0.000000e+00> : vector<16x256xf32>
      %248 = tpu.matmul %247, %246, %cst_112 {dimension_numbers = #tpu.dot_dimension_numbers<[1], [0], [0], [1], [0, 0, 1, 1], [], []>} : vector<16x512xbf16>, vector<512x256xbf16>, vector<16x256xf32> -> vector<16x256xf32>
      %c0_113 = arith.constant 0 : index
      %c256 = arith.constant 256 : index
      %249 = vector.load %arg12[%c0_113, %c256] : memref<16x512xf32, #tpu.memory_space<vmem>>, vector<16x256xf32>
      tpu.vector_store %arg12[%c0_113, %c256], %248 {strides = array<i32>} : memref<16x512xf32, #tpu.memory_space<vmem>>, vector<16x256xf32>,
    } else {
    }
    %c0 = arith.constant 0 : index
    %c0_1 = arith.constant 0 : index
    %3 = vector.load %arg12[%c0, %c0_1] : memref<16x512xf32, #tpu.memory_space<vmem>>, vector<16x512xf32>
    %c3_i32 = arith.constant 3 : i32
    %4 = arith.muli %arg0, %c3_i32 : i32
    %c0_i32_2 = arith.constant 0 : i32
    %5 = arith.addi %4, %c0_i32_2 : i32
    %6 = arith.index_cast %5 : i32 to index
    %c0_3 = arith.constant 0 : index
    %c0_4 = arith.constant 0 : index
    %7 = vector.load %arg8[%6, %c0_3, %c0_4] : memref<6x8x512xf32, #tpu.memory_space<vmem>>, vector<1x8x512xf32>
    %8 = vector.shape_cast %7 : vector<1x8x512xf32> to vector<8x512xf32>
    %9 = vector.extract_strided_slice %8 {offsets = [0, 0], sizes = [1, 512], strides = [1, 1]} : vector<8x512xf32> to vector<1x512xf32>
    %10 = vector.extract_strided_slice %8 {offsets = [1, 0], sizes = [1, 512], strides = [1, 1]} : vector<8x512xf32> to vector<1x512xf32>
    %11 = vector.extract_strided_slice %8 {offsets = [2, 0], sizes = [1, 512], strides = [1, 1]} : vector<8x512xf32> to vector<1x512xf32>
    %12 = vector.extract_strided_slice %8 {offsets = [3, 0], sizes = [1, 512], strides = [1, 1]} : vector<8x512xf32> to vector<1x512xf32>
    %13 = vector.extract_strided_slice %8 {offsets = [4, 0], sizes = [1, 512], strides = [1, 1]} : vector<8x512xf32> to vector<1x512xf32>
    %14 = vector.extract_strided_slice %8 {offsets = [5, 0], sizes = [1, 512], strides = [1, 1]} : vector<8x512xf32> to vector<1x512xf32>
    %15 = vector.extract_strided_slice %8 {offsets = [6, 0], sizes = [1, 512], strides = [1, 1]} : vector<8x512xf32> to vector<1x512xf32>
    %c0_5 = arith.constant 0 : index
    %c0_6 = arith.constant 0 : index
    %c0_7 = arith.constant 0 : index
    %c0_8 = arith.constant 0 : index
    %16 = vector.load %arg7[%c0_5, %c0_6, %c0_7, %c0_8] : memref<3x3x512x512xbf16, #tpu.memory_space<vmem>>, vector<1x1x512x512xbf16>
    %17 = vector.shape_cast %16 : vector<1x1x512x512xbf16> to vector<512x512xbf16>
    %18 = arith.truncf %3 : vector<16x512xf32> to vector<16x512xbf16>
    %cst = arith.constant dense<0.000000e+00> : vector<16x512xf32>
    %19 = tpu.matmul %18, %17, %cst {dimension_numbers = #tpu.dot_dimension_numbers<[1], [0], [0], [1], [0, 0, 1, 1], [], []>} : vector<16x512xbf16>, vector<512x512xbf16>, vector<16x512xf32> -> vector<16x512xf32>
    %20 = vector.broadcast %9 : vector<1x512xf32> to vector<16x512xf32>
    %21 = arith.addf %19, %20 : vector<16x512xf32>
    %22 = arith.addf %3, %21 : vector<16x512xf32>
    %cst_9 = arith.constant dense<0.000000e+00> : vector<16xf32>
    %23 = vector.multi_reduction <add>, %22, %cst_9 [1] : vector<16x512xf32> to vector<16xf32>
    %24 = vector.shape_cast %23 : vector<16xf32> to vector<16x1xf32>
    %cst_10 = arith.constant 5.120000e+02 : f32
    %25 = vector.broadcast %cst_10 : f32 to vector<16x1xf32>
    %26 = arith.divf %24, %25 : vector<16x1xf32>
    %27 = vector.broadcast %26 : vector<16x1xf32> to vector<16x512xf32>
    %28 = arith.subf %22, %27 : vector<16x512xf32>
    %29 = arith.mulf %28, %28 : vector<16x512xf32>
    %cst_11 = arith.constant dense<0.000000e+00> : vector<16xf32>
    %30 = vector.multi_reduction <add>, %29, %cst_11 [1] : vector<16x512xf32> to vector<16xf32>
    %31 = vector.shape_cast %30 : vector<16xf32> to vector<16x1xf32>
    %cst_12 = arith.constant 5.120000e+02 : f32
    %32 = vector.broadcast %cst_12 : f32 to vector<16x1xf32>
    %33 = arith.divf %31, %32 : vector<16x1xf32>
    %cst_13 = arith.constant 9.99999974E-6 : f32
    %34 = vector.broadcast %cst_13 : f32 to vector<16x1xf32>
    %35 = arith.addf %33, %34 : vector<16x1xf32>
    %36 = math.rsqrt %35 : vector<16x1xf32>
    %37 = vector.broadcast %36 : vector<16x1xf32> to vector<16x512xf32>
    %38 = arith.mulf %28, %37 : vector<16x512xf32>
    %39 = vector.broadcast %12 : vector<1x512xf32> to vector<16x512xf32>
    %40 = arith.mulf %38, %39 : vector<16x512xf32>
    %41 = vector.broadcast %13 : vector<1x512xf32> to vector<16x512xf32>
    %42 = arith.addf %40, %41 : vector<16x512xf32>
    %c0_14 = arith.constant 0 : index
    %c1 = arith.constant 1 : index
    %c0_15 = arith.constant 0 : index
    %c0_16 = arith.constant 0 : index
    %43 = vector.load %arg7[%c0_14, %c1, %c0_15, %c0_16] : memref<3x3x512x512xbf16, #tpu.memory_space<vmem>>, vector<1x1x512x512xbf16>
    %44 = vector.shape_cast %43 : vector<1x1x512x512xbf16> to vector<512x512xbf16>
    %45 = arith.truncf %42 : vector<16x512xf32> to vector<16x512xbf16>
    %cst_17 = arith.constant dense<0.000000e+00> : vector<16x512xf32>
    %46 = tpu.matmul %45, %44, %cst_17 {dimension_numbers = #tpu.dot_dimension_numbers<[1], [0], [0], [1], [0, 0, 1, 1], [], []>} : vector<16x512xbf16>, vector<512x512xbf16>, vector<16x512xf32> -> vector<16x512xf32>
    %47 = vector.broadcast %10 : vector<1x512xf32> to vector<16x512xf32>
    %48 = arith.addf %46, %47 : vector<16x512xf32>
    %cst_18 = arith.constant 0.000000e+00 : f32
    %49 = vector.broadcast %cst_18 : f32 to vector<16x512xf32>
    %50 = arith.maximumf %48, %49 : vector<16x512xf32>
    %c0_19 = arith.constant 0 : index
    %c2 = arith.constant 2 : index
    %c0_20 = arith.constant 0 : index
    %c0_21 = arith.constant 0 : index
    %51 = vector.load %arg7[%c0_19, %c2, %c0_20, %c0_21] : memref<3x3x512x512xbf16, #tpu.memory_space<vmem>>, vector<1x1x512x512xbf16>
    %52 = vector.shape_cast %51 : vector<1x1x512x512xbf16> to vector<512x512xbf16>
    %53 = arith.truncf %50 : vector<16x512xf32> to vector<16x512xbf16>
    %cst_22 = arith.constant dense<0.000000e+00> : vector<16x512xf32>
    %54 = tpu.matmul %53, %52, %cst_22 {dimension_numbers = #tpu.dot_dimension_numbers<[1], [0], [0], [1], [0, 0, 1, 1], [], []>} : vector<16x512xbf16>, vector<512x512xbf16>, vector<16x512xf32> -> vector<16x512xf32>
    %55 = vector.broadcast %11 : vector<1x512xf32> to vector<16x512xf32>
    %56 = arith.addf %54, %55 : vector<16x512xf32>
    %57 = arith.addf %42, %56 : vector<16x512xf32>
    %cst_23 = arith.constant dense<0.000000e+00> : vector<16xf32>
    %58 = vector.multi_reduction <add>, %57, %cst_23 [1] : vector<16x512xf32> to vector<16xf32>
    %59 = vector.shape_cast %58 : vector<16xf32> to vector<16x1xf32>
    %cst_24 = arith.constant 5.120000e+02 : f32
    %60 = vector.broadcast %cst_24 : f32 to vector<16x1xf32>
    %61 = arith.divf %59, %60 : vector<16x1xf32>
    %62 = vector.broadcast %61 : vector<16x1xf32> to vector<16x512xf32>
    %63 = arith.subf %57, %62 : vector<16x512xf32>
    %64 = arith.mulf %63, %63 : vector<16x512xf32>
    %cst_25 = arith.constant dense<0.000000e+00> : vector<16xf32>
    %65 = vector.multi_reduction <add>, %64, %cst_25 [1] : vector<16x512xf32> to vector<16xf32>
    %66 = vector.shape_cast %65 : vector<16xf32> to vector<16x1xf32>
    %cst_26 = arith.constant 5.120000e+02 : f32
    %67 = vector.broadcast %cst_26 : f32 to vector<16x1xf32>
    %68 = arith.divf %66, %67 : vector<16x1xf32>
    %cst_27 = arith.constant 9.99999974E-6 : f32
    %69 = vector.broadcast %cst_27 : f32 to vector<16x1xf32>
    %70 = arith.addf %68, %69 : vector<16x1xf32>
    %71 = math.rsqrt %70 : vector<16x1xf32>
    %72 = vector.broadcast %71 : vector<16x1xf32> to vector<16x512xf32>
    %73 = arith.mulf %63, %72 : vector<16x512xf32>
    %74 = vector.broadcast %14 : vector<1x512xf32> to vector<16x512xf32>
    %75 = arith.mulf %73, %74 : vector<16x512xf32>
    %76 = vector.broadcast %15 : vector<1x512xf32> to vector<16x512xf32>
    %77 = arith.addf %75, %76 : vector<16x512xf32>
    %c3_i32_28 = arith.constant 3 : i32
    %78 = arith.muli %arg0, %c3_i32_28 : i32
    %c1_i32 = arith.constant 1 : i32
    %79 = arith.addi %78, %c1_i32 : i32
    %80 = arith.index_cast %79 : i32 to index
    %c0_29 = arith.constant 0 : index
    %c0_30 = arith.constant 0 : index
    %81 = vector.load %arg8[%80, %c0_29, %c0_30] : memref<6x8x512xf32, #tpu.memory_space<vmem>>, vector<1x8x512xf32>
    %82 = vector.shape_cast %81 : vector<1x8x512xf32> to vector<8x512xf32>
    %83 = vector.extract_strided_slice %82 {offsets = [0, 0], sizes = [1, 512], strides = [1, 1]} : vector<8x512xf32> to vector<1x512xf32>
    %84 = vector.extract_strided_slice %82 {offsets = [1, 0], sizes = [1, 512], strides = [1, 1]} : vector<8x512xf32> to vector<1x512xf32>
    %85 = vector.extract_strided_slice %82 {offsets = [2, 0], sizes = [1, 512], strides = [1, 1]} : vector<8x512xf32> to vector<1x512xf32>
    %86 = vector.extract_strided_slice %82 {offsets = [3, 0], sizes = [1, 512], strides = [1, 1]} : vector<8x512xf32> to vector<1x512xf32>
    %87 = vector.extract_strided_slice %82 {offsets = [4, 0], sizes = [1, 512], strides = [1, 1]} : vector<8x512xf32> to vector<1x512xf32>
    %88 = vector.extract_strided_slice %82 {offsets = [5, 0], sizes = [1, 512], strides = [1, 1]} : vector<8x512xf32> to vector<1x512xf32>
    %89 = vector.extract_strided_slice %82 {offsets = [6, 0], sizes = [1, 512], strides = [1, 1]} : vector<8x512xf32> to vector<1x512xf32>
    %c1_31 = arith.constant 1 : index
    %c0_32 = arith.constant 0 : index
    %c0_33 = arith.constant 0 : index
    %c0_34 = arith.constant 0 : index
    %90 = vector.load %arg7[%c1_31, %c0_32, %c0_33, %c0_34] : memref<3x3x512x512xbf16, #tpu.memory_space<vmem>>, vector<1x1x512x512xbf16>
    %91 = vector.shape_cast %90 : vector<1x1x512x512xbf16> to vector<512x512xbf16>
    %92 = arith.truncf %77 : vector<16x512xf32> to vector<16x512xbf16>
    %cst_35 = arith.constant dense<0.000000e+00> : vector<16x512xf32>
    %93 = tpu.matmul %92, %91, %cst_35 {dimension_numbers = #tpu.dot_dimension_numbers<[1], [0], [0], [1], [0, 0, 1, 1], [], []>} : vector<16x512xbf16>, vector<512x512xbf16>, vector<16x512xf32> -> vector<16x512xf32>
    %94 = vector.broadcast %83 : vector<1x512xf32> to vector<16x512xf32>
    %95 = arith.addf %93, %94 : vector<16x512xf32>
    %96 = arith.addf %77, %95 : vector<16x512xf32>
    %cst_36 = arith.constant dense<0.000000e+00> : vector<16xf32>
    %97 = vector.multi_reduction <add>, %96, %cst_36 [1] : vector<16x512xf32> to vector<16xf32>
    %98 = vector.shape_cast %97 : vector<16xf32> to vector<16x1xf32>
    %cst_37 = arith.constant 5.120000e+02 : f32
    %99 = vector.broadcast %cst_37 : f32 to vector<16x1xf32>
    %100 = arith.divf %98, %99 : vector<16x1xf32>
    %101 = vector.broadcast %100 : vector<16x1xf32> to vector<16x512xf32>
    %102 = arith.subf %96, %101 : vector<16x512xf32>
    %103 = arith.mulf %102, %102 : vector<16x512xf32>
    %cst_38 = arith.constant dense<0.000000e+00> : vector<16xf32>
    %104 = vector.multi_reduction <add>, %103, %cst_38 [1] : vector<16x512xf32> to vector<16xf32>
    %105 = vector.shape_cast %104 : vector<16xf32> to vector<16x1xf32>
    %cst_39 = arith.constant 5.120000e+02 : f32
    %106 = vector.broadcast %cst_39 : f32 to vector<16x1xf32>
    %107 = arith.divf %105, %106 : vector<16x1xf32>
    %cst_40 = arith.constant 9.99999974E-6 : f32
    %108 = vector.broadcast %cst_40 : f32 to vector<16x1xf32>
    %109 = arith.addf %107, %108 : vector<16x1xf32>
    %110 = math.rsqrt %109 : vector<16x1xf32>
    %111 = vector.broadcast %110 : vector<16x1xf32> to vector<16x512xf32>
    %112 = arith.mulf %102, %111 : vector<16x512xf32>
    %113 = vector.broadcast %86 : vector<1x512xf32> to vector<16x512xf32>
    %114 = arith.mulf %112, %113 : vector<16x512xf32>
    %115 = vector.broadcast %87 : vector<1x512xf32> to vector<16x512xf32>
    %116 = arith.addf %114, %115 : vector<16x512xf32>
    %c1_41 = arith.constant 1 : index
    %c1_42 = arith.constant 1 : index
    %c0_43 = arith.constant 0 : index
    %c0_44 = arith.constant 0 : index
    %117 = vector.load %arg7[%c1_41, %c1_42, %c0_43, %c0_44] : memref<3x3x512x512xbf16, #tpu.memory_space<vmem>>, vector<1x1x512x512xbf16>
    %118 = vector.shape_cast %117 : vector<1x1x512x512xbf16> to vector<512x512xbf16>
    %119 = arith.truncf %116 : vector<16x512xf32> to vector<16x512xbf16>
    %cst_45 = arith.constant dense<0.000000e+00> : vector<16x512xf32>
    %120 = tpu.matmul %119, %118, %cst_45 {dimension_numbers = #tpu.dot_dimension_numbers<[1], [0], [0], [1], [0, 0, 1, 1], [], []>} : vector<16x512xbf16>, vector<512x512xbf16>, vector<16x512xf32> -> vector<16x512xf32>
    %121 = vector.broadcast %84 : vector<1x512xf32> to vector<16x512xf32>
    %122 = arith.addf %120, %121 : vector<16x512xf32>
    %cst_46 = arith.constant 0.000000e+00 : f32
    %123 = vector.broadcast %cst_46 : f32 to vector<16x512xf32>
    %124 = arith.maximumf %122, %123 : vector<16x512xf32>
    %c1_47 = arith.constant 1 : index
    %c2_48 = arith.constant 2 : index
    %c0_49 = arith.constant 0 : index
    %c0_50 = arith.constant 0 : index
    %125 = vector.load %arg7[%c1_47, %c2_48, %c0_49, %c0_50] : memref<3x3x512x512xbf16, #tpu.memory_space<vmem>>, vector<1x1x512x512xbf16>
    %126 = vector.shape_cast %125 : vector<1x1x512x512xbf16> to vector<512x512xbf16>
    %127 = arith.truncf %124 : vector<16x512xf32> to vector<16x512xbf16>
    %cst_51 = arith.constant dense<0.000000e+00> : vector<16x512xf32>
    %128 = tpu.matmul %127, %126, %cst_51 {dimension_numbers = #tpu.dot_dimension_numbers<[1], [0], [0], [1], [0, 0, 1, 1], [], []>} : vector<16x512xbf16>, vector<512x512xbf16>, vector<16x512xf32> -> vector<16x512xf32>
    %129 = vector.broadcast %85 : vector<1x512xf32> to vector<16x512xf32>
    %130 = arith.addf %128, %129 : vector<16x512xf32>
    %131 = arith.addf %116, %130 : vector<16x512xf32>
    %cst_52 = arith.constant dense<0.000000e+00> : vector<16xf32>
    %132 = vector.multi_reduction <add>, %131, %cst_52 [1] : vector<16x512xf32> to vector<16xf32>
    %133 = vector.shape_cast %132 : vector<16xf32> to vector<16x1xf32>
    %cst_53 = arith.constant 5.120000e+02 : f32
    %134 = vector.broadcast %cst_53 : f32 to vector<16x1xf32>
    %135 = arith.divf %133, %134 : vector<16x1xf32>
    %136 = vector.broadcast %135 : vector<16x1xf32> to vector<16x512xf32>
    %137 = arith.subf %131, %136 : vector<16x512xf32>
    %138 = arith.mulf %137, %137 : vector<16x512xf32>
    %cst_54 = arith.constant dense<0.000000e+00> : vector<16xf32>
    %139 = vector.multi_reduction <add>, %138, %cst_54 [1] : vector<16x512xf32> to vector<16xf32>
    %140 = vector.shape_cast %139 : vector<16xf32> to vector<16x1xf32>
    %cst_55 = arith.constant 5.120000e+02 : f32
    %141 = vector.broadcast %cst_55 : f32 to vector<16x1xf32>
    %142 = arith.divf %140, %141 : vector<16x1xf32>
    %cst_56 = arith.constant 9.99999974E-6 : f32
    %143 = vector.broadcast %cst_56 : f32 to vector<16x1xf32>
    %144 = arith.addf %142, %143 : vector<16x1xf32>
    %145 = math.rsqrt %144 : vector<16x1xf32>
    %146 = vector.broadcast %145 : vector<16x1xf32> to vector<16x512xf32>
    %147 = arith.mulf %137, %146 : vector<16x512xf32>
    %148 = vector.broadcast %88 : vector<1x512xf32> to vector<16x512xf32>
    %149 = arith.mulf %147, %148 : vector<16x512xf32>
    %150 = vector.broadcast %89 : vector<1x512xf32> to vector<16x512xf32>
    %151 = arith.addf %149, %150 : vector<16x512xf32>
    %c3_i32_57 = arith.constant 3 : i32
    %152 = arith.muli %arg0, %c3_i32_57 : i32
    %c2_i32 = arith.constant 2 : i32
    %153 = arith.addi %152, %c2_i32 : i32
    %154 = arith.index_cast %153 : i32 to index
    %c0_58 = arith.constant 0 : index
    %c0_59 = arith.constant 0 : index
    %155 = vector.load %arg8[%154, %c0_58, %c0_59] : memref<6x8x512xf32, #tpu.memory_space<vmem>>, vector<1x8x512xf32>
    %156 = vector.shape_cast %155 : vector<1x8x512xf32> to vector<8x512xf32>
    %157 = vector.extract_strided_slice %156 {offsets = [0, 0], sizes = [1, 512], strides = [1, 1]} : vector<8x512xf32> to vector<1x512xf32>
    %158 = vector.extract_strided_slice %156 {offsets = [1, 0], sizes = [1, 512], strides = [1, 1]} : vector<8x512xf32> to vector<1x512xf32>
    %159 = vector.extract_strided_slice %156 {offsets = [2, 0], sizes = [1, 512], strides = [1, 1]} : vector<8x512xf32> to vector<1x512xf32>
    %160 = vector.extract_strided_slice %156 {offsets = [3, 0], sizes = [1, 512], strides = [1, 1]} : vector<8x512xf32> to vector<1x512xf32>
    %161 = vector.extract_strided_slice %156 {offsets = [4, 0], sizes = [1, 512], strides = [1, 1]} : vector<8x512xf32> to vector<1x512xf32>
    %162 = vector.extract_strided_slice %156 {offsets = [5, 0], sizes = [1, 512], strides = [1, 1]} : vector<8x512xf32> to vector<1x512xf32>
    %163 = vector.extract_strided_slice %156 {offsets = [6, 0], sizes = [1, 512], strides = [1, 1]} : vector<8x512xf32> to vector<1x512xf32>
    %c2_60 = arith.constant 2 : index
    %c0_61 = arith.constant 0 : index
    %c0_62 = arith.constant 0 : index
    %c0_63 = arith.constant 0 : index
    %164 = vector.load %arg7[%c2_60, %c0_61, %c0_62, %c0_63] : memref<3x3x512x512xbf16, #tpu.memory_space<vmem>>, vector<1x1x512x512xbf16>
    %165 = vector.shape_cast %164 : vector<1x1x512x512xbf16> to vector<512x512xbf16>
    %166 = arith.truncf %151 : vector<16x512xf32> to vector<16x512xbf16>
    %cst_64 = arith.constant dense<0.000000e+00> : vector<16x512xf32>
    %167 = tpu.matmul %166, %165, %cst_64 {dimension_numbers = #tpu.dot_dimension_numbers<[1], [0], [0], [1], [0, 0, 1, 1], [], []>} : vector<16x512xbf16>, vector<512x512xbf16>, vector<16x512xf32> -> vector<16x512xf32>
    %168 = vector.broadcast %157 : vector<1x512xf32> to vector<16x512xf32>
    %169 = arith.addf %167, %168 : vector<16x512xf32>
    %170 = arith.addf %151, %169 : vector<16x512xf32>
    %cst_65 = arith.constant dense<0.000000e+00> : vector<16xf32>
    %171 = vector.multi_reduction <add>, %170, %cst_65 [1] : vector<16x512xf32> to vector<16xf32>
    %172 = vector.shape_cast %171 : vector<16xf32> to vector<16x1xf32>
    %cst_66 = arith.constant 5.120000e+02 : f32
    %173 = vector.broadcast %cst_66 : f32 to vector<16x1xf32>
    %174 = arith.divf %172, %173 : vector<16x1xf32>
    %175 = vector.broadcast %174 : vector<16x1xf32> to vector<16x512xf32>
    %176 = arith.subf %170, %175 : vector<16x512xf32>
    %177 = arith.mulf %176, %176 : vector<16x512xf32>
    %cst_67 = arith.constant dense<0.000000e+00> : vector<16xf32>
    %178 = vector.multi_reduction <add>, %177, %cst_67 [1] : vector<16x512xf32> to vector<16xf32>
    %179 = vector.shape_cast %178 : vector<16xf32> to vector<16x1xf32>
    %cst_68 = arith.constant 5.120000e+02 : f32
    %180 = vector.broadcast %cst_68 : f32 to vector<16x1xf32>
    %181 = arith.divf %179, %180 : vector<16x1xf32>
    %cst_69 = arith.constant 9.99999974E-6 : f32
    %182 = vector.broadcast %cst_69 : f32 to vector<16x1xf32>
    %183 = arith.addf %181, %182 : vector<16x1xf32>
    %184 = math.rsqrt %183 : vector<16x1xf32>
    %185 = vector.broadcast %184 : vector<16x1xf32> to vector<16x512xf32>
    %186 = arith.mulf %176, %185 : vector<16x512xf32>
    %187 = vector.broadcast %160 : vector<1x512xf32> to vector<16x512xf32>
    %188 = arith.mulf %186, %187 : vector<16x512xf32>
    %189 = vector.broadcast %161 : vector<1x512xf32> to vector<16x512xf32>
    %190 = arith.addf %188, %189 : vector<16x512xf32>
    %c2_70 = arith.constant 2 : index
    %c1_71 = arith.constant 1 : index
    %c0_72 = arith.constant 0 : index
    %c0_73 = arith.constant 0 : index
    %191 = vector.load %arg7[%c2_70, %c1_71, %c0_72, %c0_73] : memref<3x3x512x512xbf16, #tpu.memory_space<vmem>>, vector<1x1x512x512xbf16>
    %192 = vector.shape_cast %191 : vector<1x1x512x512xbf16> to vector<512x512xbf16>
    %193 = arith.truncf %190 : vector<16x512xf32> to vector<16x512xbf16>
    %cst_74 = arith.constant dense<0.000000e+00> : vector<16x512xf32>
    %194 = tpu.matmul %193, %192, %cst_74 {dimension_numbers = #tpu.dot_dimension_numbers<[1], [0], [0], [1], [0, 0, 1, 1], [], []>} : vector<16x512xbf16>, vector<512x512xbf16>, vector<16x512xf32> -> vector<16x512xf32>
    %195 = vector.broadcast %158 : vector<1x512xf32> to vector<16x512xf32>
    %196 = arith.addf %194, %195 : vector<16x512xf32>
    %cst_75 = arith.constant 0.000000e+00 : f32
    %197 = vector.broadcast %cst_75 : f32 to vector<16x512xf32>
    %198 = arith.maximumf %196, %197 : vector<16x512xf32>
    %c2_76 = arith.constant 2 : index
    %c2_77 = arith.constant 2 : index
    %c0_78 = arith.constant 0 : index
    %c0_79 = arith.constant 0 : index
    %199 = vector.load %arg7[%c2_76, %c2_77, %c0_78, %c0_79] : memref<3x3x512x512xbf16, #tpu.memory_space<vmem>>, vector<1x1x512x512xbf16>
    %200 = vector.shape_cast %199 : vector<1x1x512x512xbf16> to vector<512x512xbf16>
    %201 = arith.truncf %198 : vector<16x512xf32> to vector<16x512xbf16>
    %cst_80 = arith.constant dense<0.000000e+00> : vector<16x512xf32>
    %202 = tpu.matmul %201, %200, %cst_80 {dimension_numbers = #tpu.dot_dimension_numbers<[1], [0], [0], [1], [0, 0, 1, 1], [], []>} : vector<16x512xbf16>, vector<512x512xbf16>, vector<16x512xf32> -> vector<16x512xf32>
    %203 = vector.broadcast %159 : vector<1x512xf32> to vector<16x512xf32>
    %204 = arith.addf %202, %203 : vector<16x512xf32>
    %205 = arith.addf %190, %204 : vector<16x512xf32>
    %cst_81 = arith.constant dense<0.000000e+00> : vector<16xf32>
    %206 = vector.multi_reduction <add>, %205, %cst_81 [1] : vector<16x512xf32> to vector<16xf32>
    %207 = vector.shape_cast %206 : vector<16xf32> to vector<16x1xf32>
    %cst_82 = arith.constant 5.120000e+02 : f32
    %208 = vector.broadcast %cst_82 : f32 to vector<16x1xf32>
    %209 = arith.divf %207, %208 : vector<16x1xf32>
    %210 = vector.broadcast %209 : vector<16x1xf32> to vector<16x512xf32>
    %211 = arith.subf %205, %210 : vector<16x512xf32>
    %212 = arith.mulf %211, %211 : vector<16x512xf32>
    %cst_83 = arith.constant dense<0.000000e+00> : vector<16xf32>
    %213 = vector.multi_reduction <add>, %212, %cst_83 [1] : vector<16x512xf32> to vector<16xf32>
    %214 = vector.shape_cast %213 : vector<16xf32> to vector<16x1xf32>
    %cst_84 = arith.constant 5.120000e+02 : f32
    %215 = vector.broadcast %cst_84 : f32 to vector<16x1xf32>
    %216 = arith.divf %214, %215 : vector<16x1xf32>
    %cst_85 = arith.constant 9.99999974E-6 : f32
    %217 = vector.broadcast %cst_85 : f32 to vector<16x1xf32>
    %218 = arith.addf %216, %217 : vector<16x1xf32>
    %219 = math.rsqrt %218 : vector<16x1xf32>
    %220 = vector.broadcast %219 : vector<16x1xf32> to vector<16x512xf32>
    %221 = arith.mulf %211, %220 : vector<16x512xf32>
    %222 = vector.broadcast %162 : vector<1x512xf32> to vector<16x512xf32>
    %223 = arith.mulf %221, %222 : vector<16x512xf32>
    %224 = vector.broadcast %163 : vector<1x512xf32> to vector<16x512xf32>
    %225 = arith.addf %223, %224 : vector<16x512xf32>
    %c0_86 = arith.constant 0 : index
    %c0_87 = arith.constant 0 : index
    %226 = vector.load %arg12[%c0_86, %c0_87] : memref<16x512xf32, #tpu.memory_space<vmem>>, vector<16x512xf32>
    tpu.vector_store %arg12[%c0_86, %c0_87], %225 {strides = array<i32>} : memref<16x512xf32, #tpu.memory_space<vmem>>, vector<16x512xf32>,
    %c1_i32_88 = arith.constant 1 : i32
    %227 = arith.cmpi eq, %arg0, %c1_i32_88 : i32
    %228 = arith.extui %227 : i1 to i32
    %c0_i32_89 = arith.constant 0 : i32
    %229 = arith.cmpi ne, %228, %c0_i32_89 : i32
    scf.if %229 {
      %c0_90 = arith.constant 0 : index
      %c0_91 = arith.constant 0 : index
      %230 = vector.load %arg9[%c0_90, %c0_91] : memref<512x128xbf16, #tpu.memory_space<vmem>>, vector<512x128xbf16>
      %231 = arith.truncf %225 : vector<16x512xf32> to vector<16x512xbf16>
      %cst_92 = arith.constant dense<0.000000e+00> : vector<16x128xf32>
      %232 = tpu.matmul %231, %230, %cst_92 {dimension_numbers = #tpu.dot_dimension_numbers<[1], [0], [0], [1], [0, 0, 1, 1], [], []>} : vector<16x512xbf16>, vector<512x128xbf16>, vector<16x128xf32> -> vector<16x128xf32>
      %c0_93 = arith.constant 0 : index
      %c0_94 = arith.constant 0 : index
      %233 = vector.load %arg10[%c0_93, %c0_94] : memref<1x128xf32, #tpu.memory_space<vmem>>, vector<1x128xf32>
      %234 = vector.broadcast %233 : vector<1x128xf32> to vector<16x128xf32>
      %235 = arith.addf %232, %234 : vector<16x128xf32>
      %c0_95 = arith.constant 0 : index
      %c0_96 = arith.constant 0 : index
      %236 = vector.load %arg11[%c0_95, %c0_96] : memref<16x128xf32, #tpu.memory_space<vmem>>, vector<16x128xf32>
      tpu.vector_store %arg11[%c0_95, %c0_96], %235 {strides = array<i32>} : memref<16x128xf32, #tpu.memory_space<vmem>>, vector<16x128xf32>,
    } else {
    }
    return
  }
  func.func @transform_0(%arg0: i32) -> (i32, i32) {
    %c0_i32 = arith.constant 0 : i32
    %c0_i32_0 = arith.constant 0 : i32
    %c0_i32_1 = arith.constant 0 : i32
    return %c0_i32, %c0_i32_0 : i32, i32
  }
  func.func @transform_1(%arg0: i32) -> (i32, i32) {
    %c0_i32 = arith.constant 0 : i32
    %c0_i32_0 = arith.constant 0 : i32
    %c0_i32_1 = arith.constant 0 : i32
    return %c0_i32, %c0_i32_0 : i32, i32
  }
  func.func @transform_2(%arg0: i32) -> (i32, i32) {
    %c0_i32 = arith.constant 0 : i32
    %c0_i32_0 = arith.constant 0 : i32
    %c0_i32_1 = arith.constant 0 : i32
    return %c0_i32, %c0_i32_0 : i32, i32
  }
  func.func @transform_3(%arg0: i32) -> (i32, i32) {
    %c0_i32 = arith.constant 0 : i32
    %c0_i32_0 = arith.constant 0 : i32
    %c0_i32_1 = arith.constant 0 : i32
    return %c0_i32, %c0_i32_0 : i32, i32
  }
  func.func @transform_4(%arg0: i32) -> (i32, i32) {
    %c0_i32 = arith.constant 0 : i32
    %c0_i32_0 = arith.constant 0 : i32
    %c0_i32_1 = arith.constant 0 : i32
    return %c0_i32, %c0_i32_0 : i32, i32
  }
  func.func @transform_5(%arg0: i32) -> (i32, i32) {
    %c0_i32 = arith.constant 0 : i32
    %c0_i32_0 = arith.constant 0 : i32
    %c0_i32_1 = arith.constant 0 : i32
    return %c0_i32, %c0_i32_0 : i32, i32
  }
  func.func @transform_6(%arg0: i32) -> (i32, i32, i32, i32) {
    %c0_i32 = arith.constant 0 : i32
    %c0_i32_0 = arith.constant 0 : i32
    %c0_i32_1 = arith.constant 0 : i32
    %c0_i32_2 = arith.constant 0 : i32
    return %arg0, %c0_i32, %c0_i32_0, %c0_i32_1 : i32, i32, i32, i32
  }
  func.func @transform_7(%arg0: i32) -> (i32, i32, i32) {
    %c0_i32 = arith.constant 0 : i32
    %c0_i32_0 = arith.constant 0 : i32
    %c0_i32_1 = arith.constant 0 : i32
    %c0_i32_2 = arith.constant 0 : i32
    return %c0_i32, %c0_i32_0, %c0_i32_1 : i32, i32, i32
  }
  func.func @transform_8(%arg0: i32) -> (i32, i32) {
    %c0_i32 = arith.constant 0 : i32
    %c0_i32_0 = arith.constant 0 : i32
    %c0_i32_1 = arith.constant 0 : i32
    return %c0_i32, %c0_i32_0 : i32, i32
  }
  func.func @transform_9(%arg0: i32) -> (i32, i32) {
    %c0_i32 = arith.constant 0 : i32
    %c0_i32_0 = arith.constant 0 : i32
    %c0_i32_1 = arith.constant 0 : i32
    return %c0_i32, %c0_i32_0 : i32, i32
  }
  func.func @transform_10(%arg0: i32) -> (i32, i32) {
    %c0_i32 = arith.constant 0 : i32
    %c0_i32_0 = arith.constant 0 : i32
    %c0_i32_1 = arith.constant 0 : i32
    return %c0_i32, %c0_i32_0 : i32, i32
  }
}

</mosaic_0001>

<bundles_post_ra>
// kernel: tpu_custom_call.1
= control target key start
LH: loop header
LB: loop body
LE: loop exit
PB: predicated region body
PF: predicated region fallthrough
CT: control target
= control target key end

     0   :  { %15 = vsyncpa [#allocation4], 0  ;;  %s19642_s0 = inlined_call_operand.hbm [shape: bf16[16,128], index: 0, kind: input, shape index: {}]   ;;  %s19643_s1 = inlined_call_operand.hbm [shape: bf16[16,256], index: 1, kind: input, shape index: {}]   ;;  %s19644_s2 = inlined_call_operand.hbm [shape: bf16[128,512], index: 2, kind: input, shape index: {}]   ;;  %s19645_s3 = inlined_call_operand.hbm [shape: bf16[512,256], index: 3, kind: input, shape index: {}]   ;;  %s19646_s4 = inlined_call_operand.hbm [shape: bf16[256,512], index: 4, kind: input, shape index: {}]   ;;  %s19647_s5 = inlined_call_operand.hbm [shape: bf16[512,256], index: 5, kind: input, shape index: {}]   ;;  %s19648_s6 = inlined_call_operand.hbm [shape: bf16[6,3,512,512], index: 6, kind: input, shape index: {}]   ;;  %s19649_s7 = inlined_call_operand.hbm [shape: f32[6,8,512], index: 7, kind: input, shape index: {}]   ;;  %s19650_s8 = inlined_call_operand.hbm [shape: bf16[512,128], index: 8, kind: input, shape index: {}]   ;;  %s19651_s9 = inlined_call_operand.hbm [shape: f32[1,128], index: 9, kind: input, shape index: {}]   ;;  %s19652_s10 = inlined_call_operand.hbm [shape: f32[16,128], index: 10, kind: output, shape index: {}]  }
   0x1   :  { %16 = vsyncpa [#allocation7], 0 }
   0x2   :  { %17 = vsyncpa [#allocation10], 0 }
   0x3   :  { %18 = vsyncpa [#allocation13], 0 }
   0x4   :  { %19 = vsyncpa [#allocation5], 0  ;;  %s17364_s13 = smov 0   ;;  %s17366_s14 = smov 0  }
   0x5   :  { %s17368_s15 = smov 0   ;;  %s17370_s16 = smov 0  }
   0x6 LB: > { %s17286_s17 = smov [#allocation6]   ;;  %s17385_s19 = sadd.s32 4294967295, %s17284_s16   ;;  %s17284_s16 = sphi %s17370_s16, %s19688_s16   ;;  %s17280_s15 = sphi %s17368_s15, %s19687_s15   ;;  %s17276_s14 = sphi %s17366_s14, %s19686_s14   ;;  %s17272_s13 = sphi %s17364_s13, %s19685_s13  }
   0x7   : > { %s291_s18 = sshll.u32 %s17286_s17, 4  ;;  %p12110_p0 = scmp.ge.s32.totalorder %s17284_s16, 1  ;;  %s292_s18 = int_to_ptr.vmem [resolvable:$true] %s291_s18 }
   0x8   : > { %p19657_p1 = scmp.eq.s32.totalorder %s17385_s19, 0  ;;  %p266_p2 = scmp.lt.s32.totalorder %s17284_s16, 3 }
   0x9   : > { %s17287_s22 = smov [#allocation9]   ;;  %s17288_s24 = smov [#allocation3]  }
   0xa   : > { %p17391_p4 = pnand %p12110_p0, %p266_p2  ;;  %s317_s23 = sshll.u32 %s17287_s22, 4  ;;  %s17403_s23 = int_to_ptr.vmem [resolvable:$true] %s317_s23 }
   0xb   : > { %s278_s25 = sshll.u32 %s17288_s24, 4  ;;  %s16943_s27 = scalar_lea.vmem %s292_s18, 256  ;;  %s17405_s25 = int_to_ptr.vmem [resolvable:$true] %s278_s25 }
   0xc   : > { %s19660_s20 = scalar_select %p17391_p4, 1, 0 }
   0xd   : > { %p14676_p5 = pneg %p17391_p4  ;;  %p16944_p8 = scmp.ne.s32.totalorder %s292_s18, %s16943_s27 }
   0xe   : > { %p16951_p11 = scmp.lt.s32.totalorder %s292_s18, %s292_s18  ;;  %p16952_p12 = scmp.lt.s32.totalorder %s16943_s27, %s16943_s27 }
   0xf   : > { %p17399_p6 = pnand %p14676_p5, %p19657_p1 }
  0x10   : > { %p16953_p13 = por %p16952_p12, %p16951_p11 }
  0x11   : > { %p17409_p7 = pneg %p17399_p6 }
  0x13   : > { %p16946_p9 = pnand %p16944_p8, %p17409_p7 }
  0x15   : > { %p16947_p10 = pneg %p16946_p9 }
  0x17   : > { %p16954_p0 = pnand %p16953_p13, %p16947_p10 }
  0x19   : > { %16957 = shalt.err (!%p16954_p0)
}
  0x1a   : > { %s17289_s28 = smov 128   ;;  %s17290_s29 = smov 8  }
  0x1b   : > { %14682 = dma.hbm_to_vmem [thread:$0]  (!%p17399_p6), %s19643_s1, 256, %s292_s18, [#allocation7], %s17289_s28, %s17289_s28, %s17290_s29  }
  0x1c   : > { %s16969_s12 = scalar_lea.vmem %s17403_s23, 8192  ;;  %p16977_p9 = scmp.lt.s32.totalorder %s17403_s23, %s17403_s23 }
  0x1d   : > { %p16970_p2 = scmp.ne.s32.totalorder %s17403_s23, %s16969_s12  ;;  %p16978_p10 = scmp.lt.s32.totalorder %s16969_s12, %s16969_s12 }
  0x1f   : > { %p16972_p5 = pnand %p16970_p2, %p17409_p7  ;;  %p16979_p11 = por %p16978_p10, %p16977_p9 }
  0x21   : > { %p16973_p8 = pneg %p16972_p5 }
  0x23   : > { %p16980_p12 = pnand %p16979_p11, %p16973_p8 }
  0x25   : > { %16983 = shalt.err (!%p16980_p12)
}
  0x26   : > { %14688 = dma.hbm_to_vmem [thread:$0]  (!%p17399_p6), %s19645_s3, 8192, %s17403_s23, [#allocation10], %s17289_s28, %s17289_s28, %s17290_s29  }
  0x27   : > { %s16995_s18 = scalar_lea.vmem %s17405_s25, 128  ;;  %p17003_p5 = scmp.lt.s32.totalorder %s17405_s25, %s17405_s25 }
  0x28   : > { %p16996_p13 = scmp.ne.s32.totalorder %s17405_s25, %s16995_s18  ;;  %p17004_p8 = scmp.lt.s32.totalorder %s16995_s18, %s16995_s18 }
  0x2a   : > { %p16998_p0 = pnand %p16996_p13, %p17409_p7  ;;  %p17005_p9 = por %p17004_p8, %p17003_p5 }
  0x2c   : > { %p16999_p2 = pneg %p16998_p0 }
  0x2e   : > { %p17006_p10 = pnand %p17005_p9, %p16999_p2 }
  0x30   : > { %17009 = shalt.err (!%p17006_p10)
}
  0x31   : > { %s19653_s24 = smov 64   ;;  %s19654_s27 = smov 4  }
  0x32   : > { %14679 = dma.hbm_to_vmem [thread:$0]  (!%p17399_p6), %s19642_s0, 128, %s17405_s25, [#allocation4], %s19653_s24, %s19653_s24, %s19654_s27  }
  0x33   : > { %s17293_s11 = smov [#allocation8]  }
  0x34   : > { %s304_s12 = sshll.u32 %s17293_s11, 4  ;;  %s305_s12 = int_to_ptr.vmem [resolvable:$true] %s304_s12 }
  0x35   : > { %s17021_s17 = scalar_lea.vmem %s305_s12, 4096  ;;  %p17029_p0 = scmp.lt.s32.totalorder %s305_s12, %s305_s12 }
  0x36   : > { %p17022_p11 = scmp.ne.s32.totalorder %s305_s12, %s17021_s17  ;;  %p17030_p2 = scmp.lt.s32.totalorder %s17021_s17, %s17021_s17 }
  0x38   : > { %p17024_p12 = pnand %p17022_p11, %p17409_p7  ;;  %p17031_p5 = por %p17030_p2, %p17029_p0 }
  0x3a   : > { %p17025_p13 = pneg %p17024_p12 }
  0x3c   : > { %p17032_p8 = pnand %p17031_p5, %p17025_p13 }
  0x3e   : > { %17035 = shalt.err (!%p17032_p8)
}
  0x3f   : > { %s19655_s22 = smov 256   ;;  %s19656_s18 = smov 16  }
  0x40   : > { %14685 = dma.hbm_to_vmem [thread:$0]  (!%p17399_p6), %s19644_s2, 4096, %s305_s12, [#allocation7], %s19655_s22, %s19655_s22, %s19656_s18  }
  0x41   : > { %s17296_s30 = smov [#allocation11]   ;;  %s17297_s24 = smov [#allocation12]  }
  0x42   : > { %s330_s11 = sshll.u32 %s17296_s30, 4  ;;  %s343_s17 = sshll.u32 %s17297_s24, 4  ;;  %s331_s11 = int_to_ptr.vmem [resolvable:$true] %s330_s11  ;;  %s344_s17 = int_to_ptr.vmem [resolvable:$true] %s343_s17 }
  0x43   : > { %s17047_s27 = scalar_lea.vmem %s331_s11, 8192  ;;  %p17055_p12 = scmp.lt.s32.totalorder %s331_s11, %s331_s11 }
  0x44   : > { %p17048_p9 = scmp.ne.s32.totalorder %s331_s11, %s17047_s27  ;;  %p17056_p13 = scmp.lt.s32.totalorder %s17047_s27, %s17047_s27 }
  0x46   : > { %p17050_p10 = pnand %p17048_p9, %p17409_p7  ;;  %p17057_p0 = por %p17056_p13, %p17055_p12 }
  0x48   : > { %p17051_p11 = pneg %p17050_p10 }
  0x4a   : > { %p17058_p2 = pnand %p17057_p0, %p17051_p11 }
  0x4c   : > { %17061 = shalt.err (!%p17058_p2)
}
  0x4d   : > { %14691 = dma.hbm_to_vmem [thread:$0]  (!%p17399_p6), %s19646_s4, 8192, %s331_s11, [#allocation10], %s19655_s22, %s19655_s22, %s19656_s18  }
  0x4e   : > { %s17073_s24 = scalar_lea.vmem %s344_s17, 8192  ;;  %p17081_p10 = scmp.lt.s32.totalorder %s344_s17, %s344_s17 }
  0x4f   : > { %p17074_p5 = scmp.ne.s32.totalorder %s344_s17, %s17073_s24  ;;  %p17082_p12 = scmp.lt.s32.totalorder %s17073_s24, %s17073_s24 }
  0x51   : > { %p17076_p8 = pnand %p17074_p5, %p17409_p7  ;;  %p17083_p11 = por %p17082_p12, %p17081_p10 }
  0x53   : > { %p17077_p9 = pneg %p17076_p8 }
  0x55   : > { %p17084_p13 = pnand %p17083_p11, %p17077_p9 }
  0x57   : > { %17087 = shalt.err (!%p17084_p13)
}
  0x58   : > { %14694 = dma.hbm_to_vmem [thread:$0]  (!%p17399_p6), %s19647_s5, 8192, %s344_s17, [#allocation13], %s17289_s28, %s17289_s28, %s17290_s29  }
  0x59   : > { %s17298_s30 = smov [#allocation15]  }
  0x5a   : > { %s356_s11 = sshll.u32 %s17298_s30, 4  ;;  %s357_s11 = int_to_ptr.vmem [resolvable:$true] %s356_s11 }
  0x5b   : > { %s17099_s12 = scalar_lea.vmem %s357_s11, 3072  ;;  %p17107_p8 = scmp.lt.s32.totalorder %s357_s11, %s357_s11 }
  0x5c   : > { %p17100_p0 = scmp.ne.s32.totalorder %s357_s11, %s17099_s12  ;;  %p17108_p9 = scmp.lt.s32.totalorder %s17099_s12, %s17099_s12 }
  0x5e   : > { %p17102_p2 = pnand %p17100_p0, %p17409_p7  ;;  %p17109_p10 = por %p17108_p9, %p17107_p8 }
  0x60   : > { %p17103_p5 = pneg %p17102_p2 }
  0x62   : > { %p17110_p12 = pnand %p17109_p10, %p17103_p5 }
  0x64   : > { %17113 = shalt.err (!%p17110_p12)
}
  0x65   : > { %s17299_s25 = smov 512   ;;  %s17300_s24 = smov 32  }
  0x66   : > { %14697 = dma.hbm_to_vmem [thread:$0]  (!%p17399_p6), %s19649_s7, 3072, %s357_s11, [#allocation7], %s17299_s25, %s17299_s25, %s17300_s24  }
  0x67   : > { %s17301_s29 = smov [#allocation16]   ;;  %s17302_s23 = smov [#allocation17]  }
  0x68   : > { %s369_s17 = sshll.u32 %s17301_s29, 4  ;;  %s383_s30 = sshll.u32 %s17302_s23, 4  ;;  %s370_s17 = int_to_ptr.vmem [resolvable:$true] %s369_s17  ;;  %s384_s30 = int_to_ptr.vmem [resolvable:$true] %s383_s30 }
  0x69   : > { %s17125_s22 = scalar_lea.vmem %s370_s17, 4096  ;;  %p17133_p2 = scmp.lt.s32.totalorder %s370_s17, %s370_s17 }
  0x6a   : > { %p17126_p11 = scmp.ne.s32.totalorder %s370_s17, %s17125_s22  ;;  %p17134_p5 = scmp.lt.s32.totalorder %s17125_s22, %s17125_s22 }
  0x6c   : > { %p17128_p13 = pnand %p17126_p11, %p17409_p7  ;;  %p17135_p8 = por %p17134_p5, %p17133_p2 }
  0x6e   : > { %p17129_p0 = pneg %p17128_p13 }
  0x70   : > { %p17136_p9 = pnand %p17135_p8, %p17129_p0 }
  0x72   : > { %17139 = shalt.err (!%p17136_p9)
}
  0x73   : > { %s19663_s12 = smov 4   ;;  %s19664_s11 = smov 64  }
  0x74   : > { %14700 = dma.hbm_to_vmem [thread:$0]  (!%p17399_p6), %s19650_s8, 4096, %s370_s17, [#allocation10], %s19664_s11, %s19664_s11, %s19663_s12  }
  0x75   : > { %s17151_s27 = scalar_lea.vmem %s384_s30, 16  ;;  %s17158_s28 = scalar_lea.vmem %s384_s30, 32 }
  0x76   : > { %p17152_p10 = scmp.ne.s32.totalorder %s384_s30, %s17151_s27  ;;  %p17159_p13 = scmp.lt.s32.totalorder %s384_s30, %s384_s30 }
  0x77   : > { %p17160_p2 = scmp.lt.s32.totalorder %s17158_s28, %s17151_s27 }
  0x78   : > { %p17154_p12 = pnand %p17152_p10, %p17409_p7 }
  0x79   : > { %p17161_p0 = por %p17160_p2, %p17159_p13 }
  0x7a   : > { %p17155_p11 = pneg %p17154_p12 }
  0x7c   : > { %p17162_p5 = pnand %p17161_p0, %p17155_p11 }
  0x7e   : > { %17165 = shalt.err (!%p17162_p5)
}
  0x7f   : > { %14703 = dma.hbm_to_vmem [thread:$0]  (!%p17399_p6), %s19651_s9, 16, %s384_s30, [#allocation13]  }
  0x80   : > { %s17508_s26 = sadd.s32 1, %s17284_s16   ;;  %s158_s21 = sadd.s32 1, %s17280_s15 }
  0x81   : > { %s155_s17 = ssub.s32 %s17284_s16, %s17508_s26  ;;  %p165_p7 = scmp.ne.s32.totalorder %s17280_s15, %s17276_s14 }
  0x82   : > { %p156_p8 = scmp.eq.s32.totalorder %s155_s17, 0  ;;  %p166_p9 = scmp.eq.s32.totalorder %s17284_s16, 0 }
  0x83   : > { %p171_p10 = scmp.ne.s32.totalorder %s17276_s14, %s17272_s13  ;;  %p14717_p12 = scmp.lt.s32.totalorder %s17284_s16, 2 }
  0x84   : > { %s17520_s23 = scalar_select %p156_p8, %s17280_s15, %s158_s21  }
  0x85   : > { %p167_p11 = por %p166_p9, %p165_p7  ;;  %p17524_p13 = por %p19657_p1, %p171_p10 }
  0x86   : > { %s394_s11 = sand.u32 1, %s17284_s16   ;;  %s396_s30 = sand.u32 1, %s17280_s15  }
  0x87   : > { %s19665_s12 = scalar_select %p17524_p13, 1, 0 }
  0x88   : > { %s14631_s25 = smul.u32 9216, %s396_s30  ;;  %p17531_p6 = pnand %p14717_p12, %p167_p11 }
  0x89   : > { %s14718_s24 = smul.u32 147456, %s17284_s16  ;;  %s17542_s17 = scalar_lea.sflag [#allocation4], %s394_s11 }
  0x8a   : > { %s398_s29 = scalar_lea.vmem [#allocation14], %s14631_s25  ;;  %p17168_p0 = pneg %p17531_p6 }
  0x8b   : > { %s17538_s13 = scalar_lea.hbm %s19648_s6, %s14718_s24  ;;  %s406_s21 = sshll.u32 %s398_s29, 4  ;;  %s17540_s21 = int_to_ptr.vmem [resolvable:$true] %s406_s21 }
  0x8c   : > { %s17166_s16 = scalar_lea.hbm %s17538_s13, 147456  ;;  %s17171_s24 = scalar_lea.hbm %s19648_s6, 294912 }
  0x8d   : > { %p17167_p2 = scmp.ne.s32.totalorder %s17538_s13, %s17166_s16  ;;  %p17172_p8 = scmp.lt.s32.totalorder %s17538_s13, %s19648_s6 }
  0x8e   : > { %p17173_p9 = scmp.lt.s32.totalorder %s17171_s24, %s17166_s16 }
  0x8f   : > { %p17169_p5 = pnand %p17168_p0, %p17167_p2 }
  0x90   : > { %p17174_p10 = por %p17173_p9, %p17172_p8 }
  0x91   : > { %p17170_p7 = pneg %p17169_p5 }
  0x93   : > { %p17175_p12 = pnand %p17174_p10, %p17170_p7 }
  0x95   : > { %17178 = shalt.err (!%p17175_p12)
}
  0x96   : > { %s17179_s11 = scalar_lea.vmem %s17540_s21, 147456  ;;  %s17303_s25 = smov [#allocation14]  }
  0x97   : > { %p17180_p11 = scmp.ne.s32.totalorder %s17540_s21, %s17179_s11  ;;  %s17184_s29 = sshll.u32 %s17303_s25, 4  ;;  %s17185_s29 = int_to_ptr.vmem [resolvable:$false] %s17184_s29 }
  0x98   : > { %s17186_s30 = scalar_lea.vmem %s17185_s29, 294912  ;;  %p17187_p5 = scmp.lt.s32.totalorder %s17540_s21, %s17185_s29 }
  0x99   : > { %p17182_p3 = pnand %p17180_p11, %p17168_p0  ;;  %p17188_p1 = scmp.lt.s32.totalorder %s17186_s30, %s17179_s11 }
  0x9b   : > { %p17183_p2 = pneg %p17182_p3  ;;  %p17189_p13 = por %p17188_p1, %p17187_p5 }
  0x9d   : > { %p17190_p4 = pnand %p17189_p13, %p17183_p2 }
  0x9f   : > { %17193 = shalt.err (!%p17190_p4)
}
  0xa0   : > { %s19667_s18 = smov 16   ;;  %s19668_s16 = smov 256  }
  0xa1   : > { %14707 = dma.hbm_to_vmem [thread:$0]  (!%p17531_p6), %s17538_s13, 147456, %s17540_s21, %s17542_s17, %s19668_s16, %s19668_s16, %s19667_s18  }
  0xa2   : > { %p19669_p3 = scmp.ne.s32.totalorder %s19660_s20, 0 }
  0xa3   : > { %p19670_p0 = scmp.eq.s32.totalorder (!%p19669_p3), %s17385_s19, 0 }
  0xa4   : > { %418 = sbr.rel (%p19669_p3) target bundleno = 5555 (0x15b3), region = 60 }
  0xa9   : > { %17235 = dma.done.wait (%p19670_p0), [#allocation4], 128   ;;  %p19671_p7 = pmov %p19670_p0 }
  0xaa   : > { %p19672_p1 = pmov %p19670_p0 }
  0xab   : > { %17237 = vsyncadd (%p19671_p7), [#allocation4], 4294967168 }
  0xac   : > { %17239 = dma.done.wait (%p19672_p1), [#allocation7], 4352   ;;  %p19673_p4 = pmov %p19670_p0 }
  0xad   : > { %p19674_p13 = pmov %p19670_p0 }
  0xae   : > { %17241 = vsyncadd (%p19673_p4), [#allocation7], 4294962944 }
  0xaf   : > { %17243 = dma.done.wait (%p19674_p13), [#allocation10], 16384   ;;  %p19675_p6 = pmov %p19670_p0 }
  0xb0   : > { %p19676_p8 = pmov %p19670_p0 }
  0xb1   : > { %17245 = vsyncadd (%p19675_p6), [#allocation10], 4294950912 }
  0xb2   : > { %17247 = dma.done.wait (%p19676_p8), [#allocation13], 8192   ;;  %p19677_p9 = pmov %p19670_p0 }
  0xb3   : > { %s444_s20 = sand.u32 1, %s17385_s19   ;;  %s446_s27 = sand.u32 1, %s17276_s14  }
  0xb4   : > { %17249 = vsyncadd (%p19677_p9), [#allocation13], 4294959104  ;;  %s14633_s13 = smul.u32 9216, %s446_s27  ;;  %s445_s21 = scalar_lea.sflag [#allocation4], %s444_s20 }
  0xb5   : > { %p19678_p10 = scmp.ne.s32.totalorder %s19665_s12, 0 }
  0xb6   : > { %s17586_s17 = scalar_lea.vmem [#allocation14], %s14633_s13 }
  0xb7   : > { %17251 = dma.done.wait (%p19678_p10), %s445_s21, 147456  }
  0xb8   : > { %17253 = vsyncadd (%p19678_p10), %s445_s21, 4294819840  ;;  %p19679_p12 = pmov %p19670_p0 }
  0xb9   : > { %p19680_p11 = pmov %p19670_p0 }
  0xba   : > { %17255 = dma.done.wait (%p19679_p12), [#allocation7], 3072  }
  0xbb   : > { %17257 = vsyncadd (%p19680_p11), [#allocation7], 4294964224  ;;  %p19681_p2 = pmov %p19670_p0 }
  0xbc   : > { %p19682_p5 = pmov %p19670_p0 }
  0xbd   : > { %17259 = dma.done.wait (%p19681_p2), [#allocation10], 4096  }
  0xbe   : > { %17261 = vsyncadd (%p19682_p5), [#allocation10], 4294963200  ;;  %p19683_p3 = pmov %p19670_p0 }
  0xc0   : > { %17263 = dma.done.wait (%p19683_p3), [#allocation13], 16  }
  0xc1   : > { %17265 = vsyncadd (%p19670_p0), [#allocation13], 4294967280  ;;  %p19684_p7 = scmp.ne.s32.totalorder %s17385_s19, 0 }
  0xc3   : > { %497 = sbr.rel (%p19684_p7) target bundleno = 908 (0x38c), region = 104 }
  0xc8   : > { %v14784_v0 = vld [vmem:[#allocation8 + $0xe4] ss:$16 sps:$4 sm:$0xff]   ;;  %v17304_v1 = vmov 0.0   ;;  %v14786_v2 = vld [vmem:[#allocation8 + $0xec] ss:$16 sps:$4 sm:$0xff]   ;;  %v17305_v3 = vmov 0  }
  0xc9   : > { %498 = vst [vmem:[#allocation18] sm:$0xff] %v17304_v1  ;;  %499 = vst [vmem:[#allocation18 + $0x8] sm:$0xff] %v17304_v1  ;;  %732 = vmatprep.mubr.bf16.mxu0 %v17305_v3  ;;  %775 = vmatprep.mubr.bf16.mxu1 %v17305_v3  ;;  %v14788_v4 = vld [vmem:[#allocation8 + $0xe0] ss:$16 sps:$4 sm:$0xff]   ;;  %v14789_v5 = vld [vmem:[#allocation8 + $0xe8] ss:$16 sps:$4 sm:$0xff]  }
  0xca   : > { %700 = vmatprep.subr.bf16.mxu0 %v14784_v0  ;;  %743 = vmatprep.subr.bf16.mxu1 %v14786_v2  ;;  %v14790_v6 = vld [vmem:[#allocation8 + $0xc4] ss:$16 sps:$4 sm:$0xff]   ;;  %v14792_v7 = vld [vmem:[#allocation8 + $0xcc] ss:$16 sps:$4 sm:$0xff]   ;;  %v14794_v8 = vld [vmem:[#allocation8 + $0xc0] ss:$16 sps:$4 sm:$0xff]  }
  0xcb   : > { %701 = vmatpush1.bf16.msra.mxu0 %v14788_v4  ;;  %744 = vmatpush1.bf16.msra.mxu1 %v14789_v5  ;;  %v14795_v9 = vld [vmem:[#allocation8 + $0xc8] ss:$16 sps:$4 sm:$0xff]   ;;  %v14796_v10 = vld [vmem:[#allocation8 + $0xa4] ss:$16 sps:$4 sm:$0xff]   ;;  %v14798_v11 = vld [vmem:[#allocation8 + $0xac] ss:$16 sps:$4 sm:$0xff]  }
  0xcc   : > { %702 = vmatprep.subr.bf16.mxu0 %v14790_v6  ;;  %745 = vmatprep.subr.bf16.mxu1 %v14792_v7  ;;  %v14800_v12 = vld [vmem:[#allocation8 + $0xa0] ss:$16 sps:$4 sm:$0xff]   ;;  %v14801_v13 = vld [vmem:[#allocation8 + $0xa8] ss:$16 sps:$4 sm:$0xff]   ;;  %v14802_v14 = vld [vmem:[#allocation8 + $0x84] ss:$16 sps:$4 sm:$0xff]  }
  0xcd   : > { %v14804_v15 = vld [vmem:[#allocation8 + $0x8c] ss:$16 sps:$4 sm:$0xff]   ;;  %v14806_v16 = vld [vmem:[#allocation8 + $0x80] ss:$16 sps:$4 sm:$0xff]   ;;  %v14807_v17 = vld [vmem:[#allocation8 + $0x88] ss:$16 sps:$4 sm:$0xff]  }
  0xce   : > { %v14808_v18 = vld [vmem:[#allocation8 + $0x64] ss:$16 sps:$4 sm:$0xff]   ;;  %v14810_v19 = vld [vmem:[#allocation8 + $0x6c] ss:$16 sps:$4 sm:$0xff]   ;;  %v14812_v20 = vld [vmem:[#allocation8 + $0x60] ss:$16 sps:$4 sm:$0xff]  }
  0xcf   : > { %703 = vmatpush1.bf16.msra.mxu0 %v14794_v8  ;;  %746 = vmatpush1.bf16.msra.mxu1 %v14795_v9  ;;  %v14813_v21 = vld [vmem:[#allocation8 + $0x68] ss:$16 sps:$4 sm:$0xff]   ;;  %v14814_v22 = vld [vmem:[#allocation8 + $0x44] ss:$16 sps:$4 sm:$0xff]   ;;  %v14816_v23 = vld [vmem:[#allocation8 + $0x4c] ss:$16 sps:$4 sm:$0xff]  }
  0xd0   : > { %704 = vmatprep.subr.bf16.mxu0 %v14796_v10  ;;  %747 = vmatprep.subr.bf16.mxu1 %v14798_v11  ;;  %v14818_v24 = vld [vmem:[#allocation8 + $0x40] ss:$16 sps:$4 sm:$0xff]   ;;  %v14819_v25 = vld [vmem:[#allocation8 + $0x48] ss:$16 sps:$4 sm:$0xff]   ;;  %v14820_v26 = vld [vmem:[#allocation8 + $0x24] ss:$16 sps:$4 sm:$0xff]  }
  0xd1   : > { %v14822_v27 = vld [vmem:[#allocation8 + $0x2c] ss:$16 sps:$4 sm:$0xff]   ;;  %v14824_v28 = vld [vmem:[#allocation8 + $0x20] ss:$16 sps:$4 sm:$0xff]   ;;  %v14825_v29 = vld [vmem:[#allocation8 + $0x28] ss:$16 sps:$4 sm:$0xff]  }
  0xd2   : > { %v14826_v30 = vld [vmem:[#allocation8 + $0x4] ss:$16 sps:$4 sm:$0xff]   ;;  %v14828_v31 = vld [vmem:[#allocation8 + $0xc] ss:$16 sps:$4 sm:$0xff]   ;;  %v14830_v32 = vld [vmem:[#allocation8] ss:$16 sps:$4 sm:$0xff]  }
  0xd3   : > { %705 = vmatpush1.bf16.msra.mxu0 %v14800_v12  ;;  %748 = vmatpush1.bf16.msra.mxu1 %v14801_v13  ;;  %v14831_v33 = vld [vmem:[#allocation8 + $0x8] ss:$16 sps:$4 sm:$0xff]   ;;  %v14835_v34 = vld [vmem:[#allocation9 + $0x74] ss:$8 sps:$4 sm:$0xff]   ;;  %v14841_v39 = vld [vmem:[#allocation9 + $0x64] ss:$8 sps:$4 sm:$0xff]  }
  0xd4   : > { %706 = vmatprep.subr.bf16.mxu0 %v14802_v14  ;;  %749 = vmatprep.subr.bf16.mxu1 %v14804_v15  ;;  %v14838_v35 = vld [vmem:[#allocation9 + $0x174] ss:$8 sps:$4 sm:$0xff]   ;;  %v14832_v36 = vld [vmem:[#allocation3] sm:$0xff]   ;;  %v14833_v37 = vld [vmem:[#allocation9 + $0x70] ss:$8 sps:$4 sm:$0xff]  }
  0xd5   : > { %v14836_v38 = vld [vmem:[#allocation9 + $0x170] ss:$8 sps:$4 sm:$0xff]   ;;  %v14844_v40 = vld [vmem:[#allocation9 + $0x164] ss:$8 sps:$4 sm:$0xff]   ;;  %v14839_v41 = vld [vmem:[#allocation9 + $0x60] ss:$8 sps:$4 sm:$0xff]  }
  0xd6   : > { %v14842_v42 = vld [vmem:[#allocation9 + $0x160] ss:$8 sps:$4 sm:$0xff]   ;;  %v14847_v43 = vld [vmem:[#allocation9 + $0x54] ss:$8 sps:$4 sm:$0xff]   ;;  %v14845_v45 = vld [vmem:[#allocation9 + $0x50] ss:$8 sps:$4 sm:$0xff]  }
  0xd7   : > { %707 = vmatpush1.bf16.msra.mxu0 %v14806_v16  ;;  %750 = vmatpush1.bf16.msra.mxu1 %v14807_v17  ;;  %v14850_v44 = vld [vmem:[#allocation9 + $0x154] ss:$8 sps:$4 sm:$0xff]   ;;  %v14848_v46 = vld [vmem:[#allocation9 + $0x150] ss:$8 sps:$4 sm:$0xff]   ;;  %v14853_v47 = vld [vmem:[#allocation9 + $0x44] ss:$8 sps:$4 sm:$0xff]  }
  0xd8   : > { %708 = vmatprep.subr.bf16.mxu0 %v14808_v18  ;;  %751 = vmatprep.subr.bf16.mxu1 %v14810_v19  ;;  %v14856_v48 = vld [vmem:[#allocation9 + $0x144] ss:$8 sps:$4 sm:$0xff]   ;;  %v14851_v49 = vld [vmem:[#allocation9 + $0x40] ss:$8 sps:$4 sm:$0xff]   ;;  %v14859_v51 = vld [vmem:[#allocation9 + $0x34] ss:$8 sps:$4 sm:$0xff]  }
  0xd9   : > { %v14854_v50 = vld [vmem:[#allocation9 + $0x140] ss:$8 sps:$4 sm:$0xff]   ;;  %v14862_v52 = vld [vmem:[#allocation9 + $0x134] ss:$8 sps:$4 sm:$0xff]   ;;  %v14857_v53 = vld [vmem:[#allocation9 + $0x30] ss:$8 sps:$4 sm:$0xff]  }
  0xda   : > { %v14860_v54 = vld [vmem:[#allocation9 + $0x130] ss:$8 sps:$4 sm:$0xff]   ;;  %v14865_v55 = vld [vmem:[#allocation9 + $0x24] ss:$8 sps:$4 sm:$0xff]   ;;  %v14863_v57 = vld [vmem:[#allocation9 + $0x20] ss:$8 sps:$4 sm:$0xff]  }
  0xdb   : > { %709 = vmatpush1.bf16.msra.mxu0 %v14812_v20  ;;  %752 = vmatpush1.bf16.msra.mxu1 %v14813_v21  ;;  %v14868_v56 = vld [vmem:[#allocation9 + $0x124] ss:$8 sps:$4 sm:$0xff]   ;;  %v14866_v58 = vld [vmem:[#allocation9 + $0x120] ss:$8 sps:$4 sm:$0xff]   ;;  %v14871_v59 = vld [vmem:[#allocation9 + $0x14] ss:$8 sps:$4 sm:$0xff]  }
  0xdc   : > { %710 = vmatprep.subr.bf16.mxu0 %v14814_v22  ;;  %753 = vmatprep.subr.bf16.mxu1 %v14816_v23  ;;  %v14874_v60 = vld [vmem:[#allocation9 + $0x114] ss:$8 sps:$4 sm:$0xff]   ;;  %v14869_v61 = vld [vmem:[#allocation9 + $0x10] ss:$8 sps:$4 sm:$0xff]   ;;  %v14877_v63 = vld [vmem:[#allocation9 + $0x4] ss:$8 sps:$4 sm:$0xff]  }
  0xdd   : > { %v14872_v62 = vld [vmem:[#allocation9 + $0x110] ss:$8 sps:$4 sm:$0xff]   ;;  %v14880_v0 = vld [vmem:[#allocation9 + $0x104] ss:$8 sps:$4 sm:$0xff]   ;;  %v14875_v1 = vld [vmem:[#allocation9] ss:$8 sps:$4 sm:$0xff]  }
  0xde   : > { %v14878_v2 = vld [vmem:[#allocation9 + $0x100] ss:$8 sps:$4 sm:$0xff]   ;;  %v14883_v3 = vld [vmem:[#allocation9 + $0xf4] ss:$8 sps:$4 sm:$0xff]   ;;  %v14881_v5 = vld [vmem:[#allocation9 + $0xf0] ss:$8 sps:$4 sm:$0xff]  }
  0xdf   : > { %711 = vmatpush1.bf16.msra.mxu0 %v14818_v24  ;;  %754 = vmatpush1.bf16.msra.mxu1 %v14819_v25  ;;  %v14886_v4 = vld [vmem:[#allocation9 + $0x1f4] ss:$8 sps:$4 sm:$0xff]   ;;  %v14884_v6 = vld [vmem:[#allocation9 + $0x1f0] ss:$8 sps:$4 sm:$0xff]   ;;  %v14889_v7 = vld [vmem:[#allocation9 + $0xe4] ss:$8 sps:$4 sm:$0xff]  }
  0xe0   : > { %712 = vmatprep.subr.bf16.mxu0 %v14820_v26  ;;  %755 = vmatprep.subr.bf16.mxu1 %v14822_v27  ;;  %v14892_v8 = vld [vmem:[#allocation9 + $0x1e4] ss:$8 sps:$4 sm:$0xff]   ;;  %v14887_v9 = vld [vmem:[#allocation9 + $0xe0] ss:$8 sps:$4 sm:$0xff]   ;;  %v14895_v11 = vld [vmem:[#allocation9 + $0xd4] ss:$8 sps:$4 sm:$0xff]  }
  0xe1   : > { %v14890_v10 = vld [vmem:[#allocation9 + $0x1e0] ss:$8 sps:$4 sm:$0xff]   ;;  %v14898_v12 = vld [vmem:[#allocation9 + $0x1d4] ss:$8 sps:$4 sm:$0xff]   ;;  %v14893_v13 = vld [vmem:[#allocation9 + $0xd0] ss:$8 sps:$4 sm:$0xff]  }
  0xe2   : > { %v14896_v14 = vld [vmem:[#allocation9 + $0x1d0] ss:$8 sps:$4 sm:$0xff]   ;;  %v14901_v15 = vld [vmem:[#allocation9 + $0xc4] ss:$8 sps:$4 sm:$0xff]   ;;  %v14899_v17 = vld [vmem:[#allocation9 + $0xc0] ss:$8 sps:$4 sm:$0xff]  }
  0xe3   : > { %713 = vmatpush1.bf16.msra.mxu0 %v14824_v28  ;;  %756 = vmatpush1.bf16.msra.mxu1 %v14825_v29  ;;  %v14904_v16 = vld [vmem:[#allocation9 + $0x1c4] ss:$8 sps:$4 sm:$0xff]   ;;  %v14902_v18 = vld [vmem:[#allocation9 + $0x1c0] ss:$8 sps:$4 sm:$0xff]   ;;  %v14907_v19 = vld [vmem:[#allocation9 + $0xb4] ss:$8 sps:$4 sm:$0xff]  }
  0xe4   : > { %714 = vmatprep.subr.bf16.mxu0 %v14826_v30  ;;  %757 = vmatprep.subr.bf16.mxu1 %v14828_v31  ;;  %v14910_v20 = vld [vmem:[#allocation9 + $0x1b4] ss:$8 sps:$4 sm:$0xff]   ;;  %v14905_v21 = vld [vmem:[#allocation9 + $0xb0] ss:$8 sps:$4 sm:$0xff]   ;;  %v14913_v23 = vld [vmem:[#allocation9 + $0xa4] ss:$8 sps:$4 sm:$0xff]  }
  0xe5   : > { %v14908_v22 = vld [vmem:[#allocation9 + $0x1b0] ss:$8 sps:$4 sm:$0xff]   ;;  %v14916_v24 = vld [vmem:[#allocation9 + $0x1a4] ss:$8 sps:$4 sm:$0xff]   ;;  %v14911_v25 = vld [vmem:[#allocation9 + $0xa0] ss:$8 sps:$4 sm:$0xff]  }
  0xe6   : > { %v14914_v26 = vld [vmem:[#allocation9 + $0x1a0] ss:$8 sps:$4 sm:$0xff]   ;;  %v14919_v27 = vld [vmem:[#allocation9 + $0x94] ss:$8 sps:$4 sm:$0xff]   ;;  %v14917_v29 = vld [vmem:[#allocation9 + $0x90] ss:$8 sps:$4 sm:$0xff]  }
  0xe7   : > { %715 = vmatpush1.bf16.msra.mxu0 %v14830_v32  ;;  %758 = vmatpush1.bf16.msra.mxu1 %v14831_v33  ;;  %v14922_v28 = vld [vmem:[#allocation9 + $0x194] ss:$8 sps:$4 sm:$0xff]   ;;  %v14920_v30 = vld [vmem:[#allocation9 + $0x190] ss:$8 sps:$4 sm:$0xff]   ;;  %v14925_v31 = vld [vmem:[#allocation9 + $0x84] ss:$8 sps:$4 sm:$0xff]  }
  0xe8   : > { %1182 = vmatprep.subr.bf16.mxu0 %v14835_v34  ;;  %1225 = vmatprep.subr.bf16.mxu1 %v14838_v35  ;;  %v14928_v32 = vld [vmem:[#allocation9 + $0x184] ss:$8 sps:$4 sm:$0xff]   ;;  %v14923_v33 = vld [vmem:[#allocation9 + $0x80] ss:$8 sps:$4 sm:$0xff]  }
  0xe9   : > { %v14926_v34 = vld [vmem:[#allocation9 + $0x180] ss:$8 sps:$4 sm:$0xff]   ;;  %v14931_v35 = vld [vmem:[#allocation11 + $0xe4] ss:$16 sps:$4 sm:$0xff]  }
  0xea   : > { %733 = vmatmul.mubr.bf16.vlgmr.msra.gmra.mxu0 %v14832_v36  ;;  %776 = vmatmul.mubr.bf16.vlgmr.msra.gmra.mxu1 %v14832_v36  ;;  %v14934_v36 = vld [vmem:[#allocation11 + $0xec] ss:$16 sps:$4 sm:$0xff]  }
  0xeb   : > { %1183 = vmatpush1.bf16.msra.mxu0 %v14833_v37  ;;  %1226 = vmatpush1.bf16.msra.mxu1 %v14836_v38 }
  0xec   : > { %1184 = vmatprep.subr.bf16.mxu0 %v14841_v39  ;;  %1227 = vmatprep.subr.bf16.mxu1 %v14844_v40 }
  0xef   : > { %1185 = vmatpush1.bf16.msra.mxu0 %v14839_v41  ;;  %1228 = vmatpush1.bf16.msra.mxu1 %v14842_v42 }
  0xf0   : > { %1186 = vmatprep.subr.bf16.mxu0 %v14847_v43  ;;  %1229 = vmatprep.subr.bf16.mxu1 %v14850_v44 }
  0xf3   : > { %1187 = vmatpush1.bf16.msra.mxu0 %v14845_v45  ;;  %1230 = vmatpush1.bf16.msra.mxu1 %v14848_v46 }
  0xf4   : > { %1188 = vmatprep.subr.bf16.mxu0 %v14853_v47  ;;  %1231 = vmatprep.subr.bf16.mxu1 %v14856_v48 }
  0xf7   : > { %1189 = vmatpush1.bf16.msra.mxu0 %v14851_v49  ;;  %1232 = vmatpush1.bf16.msra.mxu1 %v14854_v50 }
  0xf8   : > { %1190 = vmatprep.subr.bf16.mxu0 %v14859_v51  ;;  %1233 = vmatprep.subr.bf16.mxu1 %v14862_v52 }
  0xfb   : > { %1191 = vmatpush1.bf16.msra.mxu0 %v14857_v53  ;;  %1234 = vmatpush1.bf16.msra.mxu1 %v14860_v54 }
  0xfc   : > { %1192 = vmatprep.subr.bf16.mxu0 %v14865_v55  ;;  %1235 = vmatprep.subr.bf16.mxu1 %v14868_v56  ;;  %v14929_v55 = vld [vmem:[#allocation11 + $0xe0] ss:$16 sps:$4 sm:$0xff]   ;;  %v14932_v56 = vld [vmem:[#allocation11 + $0xe8] ss:$16 sps:$4 sm:$0xff]  }
  0xff   : > { %1193 = vmatpush1.bf16.msra.mxu0 %v14863_v57  ;;  %1236 = vmatpush1.bf16.msra.mxu1 %v14866_v58 }
 0x100   : > { %1194 = vmatprep.subr.bf16.mxu0 %v14871_v59  ;;  %1237 = vmatprep.subr.bf16.mxu1 %v14874_v60  ;;  %v14937_v59 = vld [vmem:[#allocation11 + $0xc4] ss:$16 sps:$4 sm:$0xff]   ;;  %v14940_v60 = vld [vmem:[#allocation11 + $0xcc] ss:$16 sps:$4 sm:$0xff]  }
 0x103   : > { %1195 = vmatpush1.bf16.msra.mxu0 %v14869_v61  ;;  %1238 = vmatpush1.bf16.msra.mxu1 %v14872_v62  ;;  %v15027_v61 = vld [vmem:[#allocation6 + $0x4] ss:$8 sps:$4 sm:$0xff]   ;;  %v14935_v62 = vld [vmem:[#allocation11 + $0xc0] ss:$16 sps:$4 sm:$0xff]  }
 0x104   : > { %1196 = vmatprep.subr.bf16.mxu0 %v14877_v63  ;;  %1239 = vmatprep.subr.bf16.mxu1 %v14880_v0  ;;  %v14938_v63 = vld [vmem:[#allocation11 + $0xc8] ss:$16 sps:$4 sm:$0xff]   ;;  %v14943_v0 = vld [vmem:[#allocation11 + $0xa4] ss:$16 sps:$4 sm:$0xff]  }
 0x107   : > { %1197 = vmatpush1.bf16.msra.mxu0 %v14875_v1  ;;  %1240 = vmatpush1.bf16.msra.mxu1 %v14878_v2  ;;  %v14946_v1 = vld [vmem:[#allocation11 + $0xac] ss:$16 sps:$4 sm:$0xff]   ;;  %v14941_v2 = vld [vmem:[#allocation11 + $0xa0] ss:$16 sps:$4 sm:$0xff]  }
 0x108   : > { %1198 = vmatprep.subr.bf16.mxu0 %v14883_v3  ;;  %1241 = vmatprep.subr.bf16.mxu1 %v14886_v4  ;;  %v14944_v3 = vld [vmem:[#allocation11 + $0xa8] ss:$16 sps:$4 sm:$0xff]   ;;  %v14949_v4 = vld [vmem:[#allocation11 + $0x84] ss:$16 sps:$4 sm:$0xff]  }
 0x10b   : > { %1199 = vmatpush2.bf16.msra.mxu0 %v14881_v5  ;;  %1242 = vmatpush2.bf16.msra.mxu1 %v14884_v6  ;;  %v14952_v5 = vld [vmem:[#allocation11 + $0x8c] ss:$16 sps:$4 sm:$0xff]   ;;  %v14947_v6 = vld [vmem:[#allocation11 + $0x80] ss:$16 sps:$4 sm:$0xff]  }
 0x10c   : > { %1200 = vmatprep.subr.bf16.mxu0 %v14889_v7  ;;  %1243 = vmatprep.subr.bf16.mxu1 %v14892_v8  ;;  %v14950_v7 = vld [vmem:[#allocation11 + $0x88] ss:$16 sps:$4 sm:$0xff]   ;;  %v14955_v8 = vld [vmem:[#allocation11 + $0x64] ss:$16 sps:$4 sm:$0xff]  }
 0x10f   : > { %1201 = vmatpush2.bf16.msra.mxu0 %v14887_v9  ;;  %1244 = vmatpush2.bf16.msra.mxu1 %v14890_v10  ;;  %v14958_v9 = vld [vmem:[#allocation11 + $0x6c] ss:$16 sps:$4 sm:$0xff]   ;;  %v14953_v10 = vld [vmem:[#allocation11 + $0x60] ss:$16 sps:$4 sm:$0xff]  }
 0x110   : > { %1202 = vmatprep.subr.bf16.mxu0 %v14895_v11  ;;  %1245 = vmatprep.subr.bf16.mxu1 %v14898_v12  ;;  %v14956_v11 = vld [vmem:[#allocation11 + $0x68] ss:$16 sps:$4 sm:$0xff]   ;;  %v14961_v12 = vld [vmem:[#allocation11 + $0x44] ss:$16 sps:$4 sm:$0xff]  }
 0x113   : > { %1203 = vmatpush2.bf16.msra.mxu0 %v14893_v13  ;;  %1246 = vmatpush2.bf16.msra.mxu1 %v14896_v14  ;;  %v14964_v13 = vld [vmem:[#allocation11 + $0x4c] ss:$16 sps:$4 sm:$0xff]   ;;  %v14959_v14 = vld [vmem:[#allocation11 + $0x40] ss:$16 sps:$4 sm:$0xff]  }
 0x114   : > { %1204 = vmatprep.subr.bf16.mxu0 %v14901_v15  ;;  %1247 = vmatprep.subr.bf16.mxu1 %v14904_v16  ;;  %v14962_v15 = vld [vmem:[#allocation11 + $0x48] ss:$16 sps:$4 sm:$0xff]   ;;  %v14967_v16 = vld [vmem:[#allocation11 + $0x24] ss:$16 sps:$4 sm:$0xff]  }
 0x117   : > { %1205 = vmatpush2.bf16.msra.mxu0 %v14899_v17  ;;  %1248 = vmatpush2.bf16.msra.mxu1 %v14902_v18  ;;  %v14970_v17 = vld [vmem:[#allocation11 + $0x2c] ss:$16 sps:$4 sm:$0xff]   ;;  %v14965_v18 = vld [vmem:[#allocation11 + $0x20] ss:$16 sps:$4 sm:$0xff]  }
 0x118   : > { %1206 = vmatprep.subr.bf16.mxu0 %v14907_v19  ;;  %1249 = vmatprep.subr.bf16.mxu1 %v14910_v20  ;;  %v14968_v19 = vld [vmem:[#allocation11 + $0x28] ss:$16 sps:$4 sm:$0xff]   ;;  %v14973_v20 = vld [vmem:[#allocation11 + $0x4] ss:$16 sps:$4 sm:$0xff]  }
 0x11b   : > { %1207 = vmatpush2.bf16.msra.mxu0 %v14905_v21  ;;  %1250 = vmatpush2.bf16.msra.mxu1 %v14908_v22  ;;  %v14976_v21 = vld [vmem:[#allocation11 + $0xc] ss:$16 sps:$4 sm:$0xff]   ;;  %v14971_v22 = vld [vmem:[#allocation11] ss:$16 sps:$4 sm:$0xff]  }
 0x11c   : > { %1208 = vmatprep.subr.bf16.mxu0 %v14913_v23  ;;  %1251 = vmatprep.subr.bf16.mxu1 %v14916_v24  ;;  %v14974_v23 = vld [vmem:[#allocation11 + $0x8] ss:$16 sps:$4 sm:$0xff]   ;;  %v14979_v24 = vld [vmem:[#allocation11 + $0x1e4] ss:$16 sps:$4 sm:$0xff]  }
 0x11f   : > { %1209 = vmatpush2.bf16.msra.mxu0 %v14911_v25  ;;  %1252 = vmatpush2.bf16.msra.mxu1 %v14914_v26  ;;  %v14982_v25 = vld [vmem:[#allocation11 + $0x1ec] ss:$16 sps:$4 sm:$0xff]   ;;  %v14977_v26 = vld [vmem:[#allocation11 + $0x1e0] ss:$16 sps:$4 sm:$0xff]  }
 0x120   : > { %1210 = vmatprep.subr.bf16.mxu0 %v14919_v27  ;;  %1253 = vmatprep.subr.bf16.mxu1 %v14922_v28  ;;  %v14980_v27 = vld [vmem:[#allocation11 + $0x1e8] ss:$16 sps:$4 sm:$0xff]   ;;  %v14985_v28 = vld [vmem:[#allocation11 + $0x1c4] ss:$16 sps:$4 sm:$0xff]  }
 0x123   : > { %1211 = vmatpush2.bf16.msra.mxu0 %v14917_v29  ;;  %1254 = vmatpush2.bf16.msra.mxu1 %v14920_v30  ;;  %v14988_v29 = vld [vmem:[#allocation11 + $0x1cc] ss:$16 sps:$4 sm:$0xff]   ;;  %v14983_v30 = vld [vmem:[#allocation11 + $0x1c0] ss:$16 sps:$4 sm:$0xff]  }
 0x124   : > { %1212 = vmatprep.subr.bf16.mxu0 %v14925_v31  ;;  %1255 = vmatprep.subr.bf16.mxu1 %v14928_v32  ;;  %v14986_v31 = vld [vmem:[#allocation11 + $0x1c8] ss:$16 sps:$4 sm:$0xff]   ;;  %v14991_v32 = vld [vmem:[#allocation11 + $0x1a4] ss:$16 sps:$4 sm:$0xff]  }
 0x127   : > { %1213 = vmatpush2.bf16.msra.mxu0 %v14923_v33  ;;  %1256 = vmatpush2.bf16.msra.mxu1 %v14926_v34  ;;  %v14994_v33 = vld [vmem:[#allocation11 + $0x1ac] ss:$16 sps:$4 sm:$0xff]   ;;  %v14989_v34 = vld [vmem:[#allocation11 + $0x1a0] ss:$16 sps:$4 sm:$0xff]  }
 0x128   : > { %1668 = vmatprep.subr.bf16.mxu0 %v14931_v35  ;;  %1711 = vmatprep.subr.bf16.mxu1 %v14934_v36  ;;  %v14992_v35 = vld [vmem:[#allocation11 + $0x1a8] ss:$16 sps:$4 sm:$0xff]   ;;  %v14997_v36 = vld [vmem:[#allocation11 + $0x184] ss:$16 sps:$4 sm:$0xff]  }
 0x1aa   : > { %v734_v37 = vpop.f32.mrf.mxu0  ;;  %v777_v38 = vpop.f32.mrf.mxu1 }
 0x1ab   : > { %v786_v51 = vmax.f32 %v734_v37, 0.0  ;;  %v788_v52 = vmax.f32 %v777_v38, 0.0  ;;  %v15000_v37 = vld [vmem:[#allocation11 + $0x18c] ss:$16 sps:$4 sm:$0xff]   ;;  %v14995_v38 = vld [vmem:[#allocation11 + $0x180] ss:$16 sps:$4 sm:$0xff]  }
 0x1ac   : > { %v736_v39 = vpop.f32.mrf.mxu0  ;;  %v779_v40 = vpop.f32.mrf.mxu1 }
 0x1ad   : > { %v787_v47 = vmax.f32 %v736_v39, 0.0  ;;  %v789_v48 = vmax.f32 %v779_v40, 0.0  ;;  %v14998_v39 = vld [vmem:[#allocation11 + $0x188] ss:$16 sps:$4 sm:$0xff]   ;;  %v15003_v40 = vld [vmem:[#allocation11 + $0x164] ss:$16 sps:$4 sm:$0xff]  }
 0x1ae   : > { %v738_v41 = vpop.f32.mrf.mxu0  ;;  %v781_v42 = vpop.f32.mrf.mxu1 }
 0x1af   : > { %v790_v43 = vmax.f32 %v738_v41, 0.0  ;;  %v792_v44 = vmax.f32 %v781_v42, 0.0  ;;  %v15006_v41 = vld [vmem:[#allocation11 + $0x16c] ss:$16 sps:$4 sm:$0xff]   ;;  %v15001_v42 = vld [vmem:[#allocation11 + $0x160] ss:$16 sps:$4 sm:$0xff]  }
 0x1b0   : > { %v740_v45 = vpop.f32.mrf.mxu0  ;;  %v783_v46 = vpop.f32.mrf.mxu1 }
 0x1b1   : > { %v791_v49 = vmax.f32 %v740_v45, 0.0  ;;  %v793_v50 = vmax.f32 %v783_v46, 0.0  ;;  %v858_v57 = vpack.c.bf16 %v790_v43, %v786_v51  ;;  %v860_v58 = vpack.c.bf16 %v792_v44, %v788_v52  ;;  %v15004_v43 = vld [vmem:[#allocation11 + $0x168] ss:$16 sps:$4 sm:$0xff]   ;;  %v15009_v44 = vld [vmem:[#allocation11 + $0x144] ss:$16 sps:$4 sm:$0xff]  }
 0x1b2   : > { %v15012_v45 = vld [vmem:[#allocation11 + $0x14c] ss:$16 sps:$4 sm:$0xff]   ;;  %v15007_v46 = vld [vmem:[#allocation11 + $0x140] ss:$16 sps:$4 sm:$0xff]   ;;  %v15016_v51 = vld [vmem:[#allocation11 + $0x128] ss:$16 sps:$4 sm:$0xff]  }
 0x1b3   : > { %v859_v53 = vpack.c.bf16 %v791_v49, %v787_v47  ;;  %v861_v54 = vpack.c.bf16 %v793_v50, %v789_v48  ;;  %v15010_v47 = vld [vmem:[#allocation11 + $0x148] ss:$16 sps:$4 sm:$0xff]   ;;  %v15015_v48 = vld [vmem:[#allocation11 + $0x124] ss:$16 sps:$4 sm:$0xff]   ;;  %v15018_v49 = vld [vmem:[#allocation11 + $0x12c] ss:$16 sps:$4 sm:$0xff]  }
 0x1b4   : > { %v15013_v50 = vld [vmem:[#allocation11 + $0x120] ss:$16 sps:$4 sm:$0xff]   ;;  %v15021_v52 = vld [vmem:[#allocation11 + $0x104] ss:$16 sps:$4 sm:$0xff]  }
 0x1b5   : > { %1214 = vmatprep.mubr.bf16.mxu0 %v859_v53  ;;  %1257 = vmatprep.mubr.bf16.mxu1 %v861_v54  ;;  %v15024_v53 = vld [vmem:[#allocation11 + $0x10c] ss:$16 sps:$4 sm:$0xff]   ;;  %v15019_v54 = vld [vmem:[#allocation11 + $0x100] ss:$16 sps:$4 sm:$0xff]  }
 0x1b6   : > { %1215 = vmatmul.mubr.bf16.vlgmr.msra.gmra.mxu0 %v858_v57  ;;  %1258 = vmatmul.mubr.bf16.vlgmr.msra.gmra.mxu1 %v860_v58  ;;  %v15028_v57 = vld [vmem:[#allocation12 + $0x70] ss:$8 sps:$4 sm:$0xff]   ;;  %v15030_v58 = vld [vmem:[#allocation12 + $0x74] ss:$8 sps:$4 sm:$0xff]  }
 0x1b7   : > { %1669 = vmatpush1.bf16.msra.mxu0 %v14929_v55  ;;  %1712 = vmatpush1.bf16.msra.mxu1 %v14932_v56  ;;  %v15022_v55 = vld [vmem:[#allocation11 + $0x108] ss:$16 sps:$4 sm:$0xff]  }
 0x1b8   : > { %1670 = vmatprep.subr.bf16.mxu0 %v14937_v59  ;;  %1713 = vmatprep.subr.bf16.mxu1 %v14940_v60  ;;  %v15025_v56 = vld [vmem:[#allocation6] ss:$8 sps:$4 sm:$0xff]   ;;  %v15033_v60 = vld [vmem:[#allocation12 + $0x174] ss:$8 sps:$4 sm:$0xff]  }
 0x1b9   : > { %1700 = vmatprep.mubr.bf16.mxu0 %v15027_v61  ;;  %1743 = vmatprep.mubr.bf16.mxu1 %v15027_v61  ;;  %v15031_v59 = vld [vmem:[#allocation12 + $0x170] ss:$8 sps:$4 sm:$0xff]   ;;  %v15036_v61 = vld [vmem:[#allocation12 + $0x64] ss:$8 sps:$4 sm:$0xff]  }
 0x1bb   : > { %1671 = vmatpush1.bf16.msra.mxu0 %v14935_v62  ;;  %1714 = vmatpush1.bf16.msra.mxu1 %v14938_v63  ;;  %v15039_v62 = vld [vmem:[#allocation12 + $0x164] ss:$8 sps:$4 sm:$0xff]   ;;  %v15034_v63 = vld [vmem:[#allocation12 + $0x60] ss:$8 sps:$4 sm:$0xff]  }
 0x1bc   : > { %1672 = vmatprep.subr.bf16.mxu0 %v14943_v0  ;;  %1715 = vmatprep.subr.bf16.mxu1 %v14946_v1  ;;  %v15037_v0 = vld [vmem:[#allocation12 + $0x160] ss:$8 sps:$4 sm:$0xff]   ;;  %v15042_v1 = vld [vmem:[#allocation12 + $0x54] ss:$8 sps:$4 sm:$0xff]  }
 0x1bf   : > { %1673 = vmatpush1.bf16.msra.mxu0 %v14941_v2  ;;  %1716 = vmatpush1.bf16.msra.mxu1 %v14944_v3  ;;  %v15045_v2 = vld [vmem:[#allocation12 + $0x154] ss:$8 sps:$4 sm:$0xff]   ;;  %v15040_v3 = vld [vmem:[#allocation12 + $0x50] ss:$8 sps:$4 sm:$0xff]  }
 0x1c0   : > { %1674 = vmatprep.subr.bf16.mxu0 %v14949_v4  ;;  %1717 = vmatprep.subr.bf16.mxu1 %v14952_v5  ;;  %v15043_v4 = vld [vmem:[#allocation12 + $0x150] ss:$8 sps:$4 sm:$0xff]   ;;  %v15048_v5 = vld [vmem:[#allocation12 + $0x44] ss:$8 sps:$4 sm:$0xff]  }
 0x1c3   : > { %1675 = vmatpush1.bf16.msra.mxu0 %v14947_v6  ;;  %1718 = vmatpush1.bf16.msra.mxu1 %v14950_v7  ;;  %v15051_v6 = vld [vmem:[#allocation12 + $0x144] ss:$8 sps:$4 sm:$0xff]   ;;  %v15046_v7 = vld [vmem:[#allocation12 + $0x40] ss:$8 sps:$4 sm:$0xff]  }
 0x1c4   : > { %1676 = vmatprep.subr.bf16.mxu0 %v14955_v8  ;;  %1719 = vmatprep.subr.bf16.mxu1 %v14958_v9  ;;  %v15049_v8 = vld [vmem:[#allocation12 + $0x140] ss:$8 sps:$4 sm:$0xff]   ;;  %v15054_v9 = vld [vmem:[#allocation12 + $0x34] ss:$8 sps:$4 sm:$0xff]  }
 0x1c7   : > { %1677 = vmatpush1.bf16.msra.mxu0 %v14953_v10  ;;  %1720 = vmatpush1.bf16.msra.mxu1 %v14956_v11  ;;  %v15057_v10 = vld [vmem:[#allocation12 + $0x134] ss:$8 sps:$4 sm:$0xff]   ;;  %v15052_v11 = vld [vmem:[#allocation12 + $0x30] ss:$8 sps:$4 sm:$0xff]  }
 0x1c8   : > { %1678 = vmatprep.subr.bf16.mxu0 %v14961_v12  ;;  %1721 = vmatprep.subr.bf16.mxu1 %v14964_v13  ;;  %v15055_v12 = vld [vmem:[#allocation12 + $0x130] ss:$8 sps:$4 sm:$0xff]   ;;  %v15060_v13 = vld [vmem:[#allocation12 + $0x24] ss:$8 sps:$4 sm:$0xff]  }
 0x1cb   : > { %1679 = vmatpush1.bf16.msra.mxu0 %v14959_v14  ;;  %1722 = vmatpush1.bf16.msra.mxu1 %v14962_v15  ;;  %v15063_v14 = vld [vmem:[#allocation12 + $0x124] ss:$8 sps:$4 sm:$0xff]   ;;  %v15058_v15 = vld [vmem:[#allocation12 + $0x20] ss:$8 sps:$4 sm:$0xff]  }
 0x1cc   : > { %1680 = vmatprep.subr.bf16.mxu0 %v14967_v16  ;;  %1723 = vmatprep.subr.bf16.mxu1 %v14970_v17  ;;  %v15061_v16 = vld [vmem:[#allocation12 + $0x120] ss:$8 sps:$4 sm:$0xff]   ;;  %v15066_v17 = vld [vmem:[#allocation12 + $0x14] ss:$8 sps:$4 sm:$0xff]  }
 0x1cf   : > { %1681 = vmatpush1.bf16.msra.mxu0 %v14965_v18  ;;  %1724 = vmatpush1.bf16.msra.mxu1 %v14968_v19  ;;  %v15069_v18 = vld [vmem:[#allocation12 + $0x114] ss:$8 sps:$4 sm:$0xff]   ;;  %v15064_v19 = vld [vmem:[#allocation12 + $0x10] ss:$8 sps:$4 sm:$0xff]  }
 0x1d0   : > { %1682 = vmatprep.subr.bf16.mxu0 %v14973_v20  ;;  %1725 = vmatprep.subr.bf16.mxu1 %v14976_v21  ;;  %v15067_v20 = vld [vmem:[#allocation12 + $0x110] ss:$8 sps:$4 sm:$0xff]   ;;  %v15072_v21 = vld [vmem:[#allocation12 + $0x4] ss:$8 sps:$4 sm:$0xff]  }
 0x1d3   : > { %1683 = vmatpush1.bf16.msra.mxu0 %v14971_v22  ;;  %1726 = vmatpush1.bf16.msra.mxu1 %v14974_v23  ;;  %v15075_v22 = vld [vmem:[#allocation12 + $0x104] ss:$8 sps:$4 sm:$0xff]   ;;  %v15070_v23 = vld [vmem:[#allocation12] ss:$8 sps:$4 sm:$0xff]  }
 0x1d4   : > { %1684 = vmatprep.subr.bf16.mxu0 %v14979_v24  ;;  %1727 = vmatprep.subr.bf16.mxu1 %v14982_v25  ;;  %v15073_v24 = vld [vmem:[#allocation12 + $0x100] ss:$8 sps:$4 sm:$0xff]   ;;  %v15078_v25 = vld [vmem:[#allocation12 + $0xf4] ss:$8 sps:$4 sm:$0xff]  }
 0x1d7   : > { %1685 = vmatpush2.bf16.msra.mxu0 %v14977_v26  ;;  %1728 = vmatpush2.bf16.msra.mxu1 %v14980_v27  ;;  %v15081_v26 = vld [vmem:[#allocation12 + $0x1f4] ss:$8 sps:$4 sm:$0xff]   ;;  %v15076_v27 = vld [vmem:[#allocation12 + $0xf0] ss:$8 sps:$4 sm:$0xff]  }
 0x1d8   : > { %1686 = vmatprep.subr.bf16.mxu0 %v14985_v28  ;;  %1729 = vmatprep.subr.bf16.mxu1 %v14988_v29  ;;  %v15079_v28 = vld [vmem:[#allocation12 + $0x1f0] ss:$8 sps:$4 sm:$0xff]   ;;  %v15084_v29 = vld [vmem:[#allocation12 + $0xe4] ss:$8 sps:$4 sm:$0xff]  }
 0x1db   : > { %1687 = vmatpush2.bf16.msra.mxu0 %v14983_v30  ;;  %1730 = vmatpush2.bf16.msra.mxu1 %v14986_v31  ;;  %v15087_v30 = vld [vmem:[#allocation12 + $0x1e4] ss:$8 sps:$4 sm:$0xff]   ;;  %v15082_v31 = vld [vmem:[#allocation12 + $0xe0] ss:$8 sps:$4 sm:$0xff]  }
 0x1dc   : > { %1688 = vmatprep.subr.bf16.mxu0 %v14991_v32  ;;  %1731 = vmatprep.subr.bf16.mxu1 %v14994_v33  ;;  %v15085_v32 = vld [vmem:[#allocation12 + $0x1e0] ss:$8 sps:$4 sm:$0xff]   ;;  %v15090_v33 = vld [vmem:[#allocation12 + $0xd4] ss:$8 sps:$4 sm:$0xff]  }
 0x1df   : > { %1689 = vmatpush2.bf16.msra.mxu0 %v14989_v34  ;;  %1732 = vmatpush2.bf16.msra.mxu1 %v14992_v35  ;;  %v15093_v34 = vld [vmem:[#allocation12 + $0x1d4] ss:$8 sps:$4 sm:$0xff]   ;;  %v15088_v35 = vld [vmem:[#allocation12 + $0xd0] ss:$8 sps:$4 sm:$0xff]  }
 0x1e0   : > { %1690 = vmatprep.subr.bf16.mxu0 %v14997_v36  ;;  %1733 = vmatprep.subr.bf16.mxu1 %v15000_v37  ;;  %v15091_v36 = vld [vmem:[#allocation12 + $0x1d0] ss:$8 sps:$4 sm:$0xff]   ;;  %v15096_v37 = vld [vmem:[#allocation12 + $0xc4] ss:$8 sps:$4 sm:$0xff]  }
 0x1e3   : > { %1691 = vmatpush2.bf16.msra.mxu0 %v14995_v38  ;;  %1734 = vmatpush2.bf16.msra.mxu1 %v14998_v39  ;;  %v15099_v38 = vld [vmem:[#allocation12 + $0x1c4] ss:$8 sps:$4 sm:$0xff]   ;;  %v15094_v39 = vld [vmem:[#allocation12 + $0xc0] ss:$8 sps:$4 sm:$0xff]  }
 0x1e4   : > { %1692 = vmatprep.subr.bf16.mxu0 %v15003_v40  ;;  %1735 = vmatprep.subr.bf16.mxu1 %v15006_v41  ;;  %v15097_v40 = vld [vmem:[#allocation12 + $0x1c0] ss:$8 sps:$4 sm:$0xff]   ;;  %v15102_v41 = vld [vmem:[#allocation12 + $0xb4] ss:$8 sps:$4 sm:$0xff]  }
 0x1e7   : > { %1693 = vmatpush2.bf16.msra.mxu0 %v15001_v42  ;;  %1736 = vmatpush2.bf16.msra.mxu1 %v15004_v43  ;;  %v15105_v42 = vld [vmem:[#allocation12 + $0x1b4] ss:$8 sps:$4 sm:$0xff]   ;;  %v15100_v43 = vld [vmem:[#allocation12 + $0xb0] ss:$8 sps:$4 sm:$0xff]  }
 0x1e8   : > { %1694 = vmatprep.subr.bf16.mxu0 %v15009_v44  ;;  %1737 = vmatprep.subr.bf16.mxu1 %v15012_v45  ;;  %v15103_v44 = vld [vmem:[#allocation12 + $0x1b0] ss:$8 sps:$4 sm:$0xff]   ;;  %v15108_v45 = vld [vmem:[#allocation12 + $0xa4] ss:$8 sps:$4 sm:$0xff]  }
 0x1eb   : > { %1695 = vmatpush2.bf16.msra.mxu0 %v15007_v46  ;;  %1738 = vmatpush2.bf16.msra.mxu1 %v15010_v47  ;;  %v15111_v46 = vld [vmem:[#allocation12 + $0x1a4] ss:$8 sps:$4 sm:$0xff]   ;;  %v15106_v47 = vld [vmem:[#allocation12 + $0xa0] ss:$8 sps:$4 sm:$0xff]  }
 0x1ec   : > { %1696 = vmatprep.subr.bf16.mxu0 %v15015_v48  ;;  %1739 = vmatprep.subr.bf16.mxu1 %v15018_v49  ;;  %v15109_v48 = vld [vmem:[#allocation12 + $0x1a0] ss:$8 sps:$4 sm:$0xff]   ;;  %v15114_v49 = vld [vmem:[#allocation12 + $0x94] ss:$8 sps:$4 sm:$0xff]  }
 0x1ef   : > { %1697 = vmatpush2.bf16.msra.mxu0 %v15013_v50  ;;  %1740 = vmatpush2.bf16.msra.mxu1 %v15016_v51  ;;  %v15117_v50 = vld [vmem:[#allocation12 + $0x194] ss:$8 sps:$4 sm:$0xff]   ;;  %v15112_v51 = vld [vmem:[#allocation12 + $0x90] ss:$8 sps:$4 sm:$0xff]  }
 0x1f0   : > { %1698 = vmatprep.subr.bf16.mxu0 %v15021_v52  ;;  %1741 = vmatprep.subr.bf16.mxu1 %v15024_v53  ;;  %v15115_v52 = vld [vmem:[#allocation12 + $0x190] ss:$8 sps:$4 sm:$0xff]   ;;  %v15120_v53 = vld [vmem:[#allocation12 + $0x84] ss:$8 sps:$4 sm:$0xff]  }
 0x1f3   : > { %1699 = vmatpush2.bf16.msra.mxu0 %v15019_v54  ;;  %1742 = vmatpush2.bf16.msra.mxu1 %v15022_v55  ;;  %v15123_v54 = vld [vmem:[#allocation12 + $0x184] ss:$8 sps:$4 sm:$0xff]   ;;  %v15118_v55 = vld [vmem:[#allocation12 + $0x80] ss:$8 sps:$4 sm:$0xff]  }
 0x1f4   : > { %2150 = vmatprep.subr.bf16.mxu0 %v15030_v58  ;;  %2193 = vmatprep.subr.bf16.mxu1 %v15033_v60 }
 0x1f6   : > { %1701 = vmatmul.mubr.bf16.vlgmr.msra.gmra.mxu0 %v15025_v56  ;;  %1744 = vmatmul.mubr.bf16.vlgmr.msra.gmra.mxu1 %v15025_v56  ;;  %v15121_v56 = vld [vmem:[#allocation12 + $0x180] ss:$8 sps:$4 sm:$0xff]  }
 0x1f7   : > { %2151 = vmatpush1.bf16.msra.mxu0 %v15028_v57  ;;  %2194 = vmatpush1.bf16.msra.mxu1 %v15031_v59 }
 0x1f8   : > { %2152 = vmatprep.subr.bf16.mxu0 %v15036_v61  ;;  %2195 = vmatprep.subr.bf16.mxu1 %v15039_v62 }
 0x1fb   : > { %2153 = vmatpush1.bf16.msra.mxu0 %v15034_v63  ;;  %2196 = vmatpush1.bf16.msra.mxu1 %v15037_v0 }
 0x1fc   : > { %2154 = vmatprep.subr.bf16.mxu0 %v15042_v1  ;;  %2197 = vmatprep.subr.bf16.mxu1 %v15045_v2 }
 0x1ff   : > { %2155 = vmatpush1.bf16.msra.mxu0 %v15040_v3  ;;  %2198 = vmatpush1.bf16.msra.mxu1 %v15043_v4 }
 0x200   : > { %2156 = vmatprep.subr.bf16.mxu0 %v15048_v5  ;;  %2199 = vmatprep.subr.bf16.mxu1 %v15051_v6 }
 0x203   : > { %2157 = vmatpush1.bf16.msra.mxu0 %v15046_v7  ;;  %2200 = vmatpush1.bf16.msra.mxu1 %v15049_v8 }
 0x204   : > { %2158 = vmatprep.subr.bf16.mxu0 %v15054_v9  ;;  %2201 = vmatprep.subr.bf16.mxu1 %v15057_v10 }
 0x207   : > { %2159 = vmatpush1.bf16.msra.mxu0 %v15052_v11  ;;  %2202 = vmatpush1.bf16.msra.mxu1 %v15055_v12 }
 0x208   : > { %2160 = vmatprep.subr.bf16.mxu0 %v15060_v13  ;;  %2203 = vmatprep.subr.bf16.mxu1 %v15063_v14 }
 0x20b   : > { %2161 = vmatpush1.bf16.msra.mxu0 %v15058_v15  ;;  %2204 = vmatpush1.bf16.msra.mxu1 %v15061_v16 }
 0x20c   : > { %2162 = vmatprep.subr.bf16.mxu0 %v15066_v17  ;;  %2205 = vmatprep.subr.bf16.mxu1 %v15069_v18 }
 0x20f   : > { %2163 = vmatpush1.bf16.msra.mxu0 %v15064_v19  ;;  %2206 = vmatpush1.bf16.msra.mxu1 %v15067_v20 }
 0x210   : > { %2164 = vmatprep.subr.bf16.mxu0 %v15072_v21  ;;  %2207 = vmatprep.subr.bf16.mxu1 %v15075_v22 }
 0x213   : > { %2165 = vmatpush1.bf16.msra.mxu0 %v15070_v23  ;;  %2208 = vmatpush1.bf16.msra.mxu1 %v15073_v24 }
 0x214   : > { %2166 = vmatprep.subr.bf16.mxu0 %v15078_v25  ;;  %2209 = vmatprep.subr.bf16.mxu1 %v15081_v26 }
 0x217   : > { %2167 = vmatpush2.bf16.msra.mxu0 %v15076_v27  ;;  %2210 = vmatpush2.bf16.msra.mxu1 %v15079_v28 }
 0x218   : > { %2168 = vmatprep.subr.bf16.mxu0 %v15084_v29  ;;  %2211 = vmatprep.subr.bf16.mxu1 %v15087_v30 }
 0x21b   : > { %2169 = vmatpush2.bf16.msra.mxu0 %v15082_v31  ;;  %2212 = vmatpush2.bf16.msra.mxu1 %v15085_v32 }
 0x21c   : > { %2170 = vmatprep.subr.bf16.mxu0 %v15090_v33  ;;  %2213 = vmatprep.subr.bf16.mxu1 %v15093_v34 }
 0x21f   : > { %2171 = vmatpush2.bf16.msra.mxu0 %v15088_v35  ;;  %2214 = vmatpush2.bf16.msra.mxu1 %v15091_v36 }
 0x220   : > { %2172 = vmatprep.subr.bf16.mxu0 %v15096_v37  ;;  %2215 = vmatprep.subr.bf16.mxu1 %v15099_v38 }
 0x223   : > { %2173 = vmatpush2.bf16.msra.mxu0 %v15094_v39  ;;  %2216 = vmatpush2.bf16.msra.mxu1 %v15097_v40 }
 0x224   : > { %2174 = vmatprep.subr.bf16.mxu0 %v15102_v41  ;;  %2217 = vmatprep.subr.bf16.mxu1 %v15105_v42 }
 0x227   : > { %2175 = vmatpush2.bf16.msra.mxu0 %v15100_v43  ;;  %2218 = vmatpush2.bf16.msra.mxu1 %v15103_v44 }
 0x228   : > { %2176 = vmatprep.subr.bf16.mxu0 %v15108_v45  ;;  %2219 = vmatprep.subr.bf16.mxu1 %v15111_v46 }
 0x22b   : > { %2177 = vmatpush2.bf16.msra.mxu0 %v15106_v47  ;;  %2220 = vmatpush2.bf16.msra.mxu1 %v15109_v48 }
 0x22c   : > { %2178 = vmatprep.subr.bf16.mxu0 %v15114_v49  ;;  %2221 = vmatprep.subr.bf16.mxu1 %v15117_v50 }
 0x22f   : > { %2179 = vmatpush2.bf16.msra.mxu0 %v15112_v51  ;;  %2222 = vmatpush2.bf16.msra.mxu1 %v15115_v52 }
 0x230   : > { %2180 = vmatprep.subr.bf16.mxu0 %v15120_v53  ;;  %2223 = vmatprep.subr.bf16.mxu1 %v15123_v54 }
 0x233   : > { %2181 = vmatpush2.bf16.msra.mxu0 %v15118_v55  ;;  %2224 = vmatpush2.bf16.msra.mxu1 %v15121_v56 }
 0x276   : > { %v1216_v57 = vpop.f32.mrf.mxu0  ;;  %v1259_v58 = vpop.f32.mrf.mxu1 }
 0x277   : > { %v1260_v59 = vadd.f32 %v1259_v58, %v1216_v57 }
 0x278   : > { %v1218_v60 = vpop.f32.mrf.mxu0  ;;  %v1261_v61 = vpop.f32.mrf.mxu1 }
 0x279   : > { %1268 = vst [vmem:[#allocation2 + $0x30] sm:$0xff] %v1260_v59  ;;  %v1262_v62 = vadd.f32 %v1261_v61, %v1218_v60 }
 0x27a   : > { %v1220_v63 = vpop.f32.mrf.mxu0  ;;  %v1263_v0 = vpop.f32.mrf.mxu1 }
 0x27b   : > { %1269 = vst [vmem:[#allocation2] sm:$0xff] %v1262_v62  ;;  %v1264_v1 = vadd.f32 %v1263_v0, %v1220_v63 }
 0x27c   : > { %v1222_v2 = vpop.f32.mrf.mxu0  ;;  %v1265_v3 = vpop.f32.mrf.mxu1 }
 0x27d   : > { %1270 = vst [vmem:[#allocation2 + $0x28] sm:$0xff] %v1264_v1  ;;  %v1266_v4 = vadd.f32 %v1265_v3, %v1222_v2 }
 0x27f   : > { %1271 = vst [vmem:[#allocation2 + $0x20] sm:$0xff] %v1266_v4 }
 0x2b6   : > { %v1702_v5 = vpop.f32.mrf.mxu0  ;;  %v1745_v6 = vpop.f32.mrf.mxu1 }
 0x2b7   : > { %v1754_v19 = vmax.f32 %v1702_v5, 0.0  ;;  %v1756_v20 = vmax.f32 %v1745_v6, 0.0 }
 0x2b8   : > { %v1704_v7 = vpop.f32.mrf.mxu0  ;;  %v1747_v8 = vpop.f32.mrf.mxu1 }
 0x2b9   : > { %v1755_v15 = vmax.f32 %v1704_v7, 0.0  ;;  %v1757_v16 = vmax.f32 %v1747_v8, 0.0 }
 0x2ba   : > { %v1706_v9 = vpop.f32.mrf.mxu0  ;;  %v1749_v10 = vpop.f32.mrf.mxu1 }
 0x2bb   : > { %v1758_v11 = vmax.f32 %v1706_v9, 0.0  ;;  %v1760_v12 = vmax.f32 %v1749_v10, 0.0 }
 0x2bc   : > { %v1708_v13 = vpop.f32.mrf.mxu0  ;;  %v1751_v14 = vpop.f32.mrf.mxu1 }
 0x2bd   : > { %v1759_v17 = vmax.f32 %v1708_v13, 0.0  ;;  %v1761_v18 = vmax.f32 %v1751_v14, 0.0  ;;  %v1826_v23 = vpack.c.bf16 %v1758_v11, %v1754_v19  ;;  %v1828_v24 = vpack.c.bf16 %v1760_v12, %v1756_v20 }
 0x2bf   : > { %v1827_v21 = vpack.c.bf16 %v1759_v17, %v1755_v15  ;;  %v1829_v22 = vpack.c.bf16 %v1761_v18, %v1757_v16 }
 0x2c1   : > { %2182 = vmatprep.mubr.bf16.mxu0 %v1827_v21  ;;  %2225 = vmatprep.mubr.bf16.mxu1 %v1829_v22 }
 0x2c2   : > { %2183 = vmatmul.mubr.bf16.vlgmr.msra.gmra.mxu0 %v1826_v23  ;;  %2226 = vmatmul.mubr.bf16.vlgmr.msra.gmra.mxu1 %v1828_v24 }
 0x382   : > { %v2184_v25 = vpop.f32.mrf.mxu0  ;;  %v2227_v26 = vpop.f32.mrf.mxu1 }
 0x383   : > { %v2228_v27 = vadd.f32 %v2227_v26, %v2184_v25 }
 0x384   : > { %v2186_v28 = vpop.f32.mrf.mxu0  ;;  %v2229_v29 = vpop.f32.mrf.mxu1 }
 0x385   : > { %2236 = vst [vmem:[#allocation2 + $0x8] sm:$0xff] %v2228_v27  ;;  %v2230_v30 = vadd.f32 %v2229_v29, %v2186_v28 }
 0x386   : > { %v2188_v31 = vpop.f32.mrf.mxu0  ;;  %v2231_v32 = vpop.f32.mrf.mxu1 }
 0x387   : > { %2237 = vst [vmem:[#allocation2 + $0x10] sm:$0xff] %v2230_v30  ;;  %v2232_v33 = vadd.f32 %v2231_v32, %v2188_v31 }
 0x388   : > { %v2190_v34 = vpop.f32.mrf.mxu0  ;;  %v2233_v35 = vpop.f32.mrf.mxu1 }
 0x389   : > { %2238 = vst [vmem:[#allocation2 + $0x18] sm:$0xff] %v2232_v33  ;;  %v2234_v36 = vadd.f32 %v2233_v35, %v2190_v34 }
 0x38b   : > { %2239 = vst [vmem:[#allocation2 + $0x38] sm:$0xff] %v2234_v36 }
 0x38c PF: > { %v15124_v37 = vld [vmem:[%s17586_s17 + $0xe4] ss:$16 sps:$4 sm:$0xff]   ;;  %v15128_v39 = vld [vmem:[%s17586_s17 + $0xe0] ss:$16 sps:$4 sm:$0xff]   ;;  %v2241_v19 = vld [vmem:[#allocation2] sm:$0xff]  ;;  %s14586_s12 = smul.u32 96, %s17385_s19 }
 0x38d   : > { %v15126_v38 = vld [vmem:[%s17586_s17 + $0x2e4] ss:$16 sps:$4 sm:$0xff]   ;;  %3044 = vmatprep.subr.bf16.mxu0 %v15124_v37  ;;  %v15129_v40 = vld [vmem:[%s17586_s17 + $0x2e0] ss:$16 sps:$4 sm:$0xff]   ;;  %v2245_v20 = vld [vmem:[#allocation2 + $0x20] sm:$0xff]  ;;  %p14548_p1 = scmp.ne.s32.totalorder %s17385_s19, 1 }
 0x38e   : > { %3087 = vmatprep.subr.bf16.mxu1 %v15126_v38  ;;  %v15130_v41 = vld [vmem:[%s17586_s17 + $0xc4] ss:$16 sps:$4 sm:$0xff]   ;;  %3045 = vmatpush1.bf16.msra.mxu0 %v15128_v39  ;;  %v15134_v43 = vld [vmem:[%s17586_s17 + $0xc0] ss:$16 sps:$4 sm:$0xff]   ;;  %v2243_v21 = vld [vmem:[#allocation2 + $0x10] sm:$0xff]  ;;  %v2385_v26 = vpack.c.bf16 %v2245_v20, %v2241_v19  ;;  %s17745_s28 = scalar_lea.vmem [#allocation15], %s14586_s12 }
 0x38f   : > { %3088 = vmatpush1.bf16.msra.mxu1 %v15129_v40  ;;  %v15132_v42 = vld [vmem:[%s17586_s17 + $0x2c4] ss:$16 sps:$4 sm:$0xff]   ;;  %3046 = vmatprep.subr.bf16.mxu0 %v15130_v41  ;;  %v15135_v44 = vld [vmem:[%s17586_s17 + $0x2c0] ss:$16 sps:$4 sm:$0xff]   ;;  %v15268_v19 = vld [vmem:[%s17586_s17 + $0x1e8] ss:$16 sps:$4 sm:$0xff]  }
 0x390   : > { %3089 = vmatprep.subr.bf16.mxu1 %v15132_v42  ;;  %v15136_v45 = vld [vmem:[%s17586_s17 + $0xa4] ss:$16 sps:$4 sm:$0xff]   ;;  %v15140_v47 = vld [vmem:[%s17586_s17 + $0xa0] ss:$16 sps:$4 sm:$0xff]   ;;  %3076 = vmatprep.mubr.bf16.mxu0 %v2385_v26  ;;  %v15271_v20 = vld [vmem:[%s17586_s17 + $0x3e8] ss:$16 sps:$4 sm:$0xff]  }
 0x391   : > { %v15138_v46 = vld [vmem:[%s17586_s17 + $0x2a4] ss:$16 sps:$4 sm:$0xff]   ;;  %v15141_v48 = vld [vmem:[%s17586_s17 + $0x2a0] ss:$16 sps:$4 sm:$0xff]  }
 0x392   : > { %3047 = vmatpush1.bf16.msra.mxu0 %v15134_v43  ;;  %v15142_v49 = vld [vmem:[%s17586_s17 + $0x84] ss:$16 sps:$4 sm:$0xff]   ;;  %v15146_v51 = vld [vmem:[%s17586_s17 + $0x80] ss:$16 sps:$4 sm:$0xff]   ;;  %v2240_v43 = vld [vmem:[#allocation2 + $0x30] sm:$0xff] }
 0x393   : > { %3090 = vmatpush1.bf16.msra.mxu1 %v15135_v44  ;;  %3048 = vmatprep.subr.bf16.mxu0 %v15136_v45  ;;  %v15144_v50 = vld [vmem:[%s17586_s17 + $0x284] ss:$16 sps:$4 sm:$0xff]   ;;  %v15147_v52 = vld [vmem:[%s17586_s17 + $0x280] ss:$16 sps:$4 sm:$0xff]  }
 0x394   : > { %3091 = vmatprep.subr.bf16.mxu1 %v15138_v46  ;;  %v15148_v53 = vld [vmem:[%s17586_s17 + $0x64] ss:$16 sps:$4 sm:$0xff]   ;;  %v15152_v55 = vld [vmem:[%s17586_s17 + $0x60] ss:$16 sps:$4 sm:$0xff]  }
 0x395   : > { %v15150_v54 = vld [vmem:[%s17586_s17 + $0x264] ss:$16 sps:$4 sm:$0xff]   ;;  %v15153_v56 = vld [vmem:[%s17586_s17 + $0x260] ss:$16 sps:$4 sm:$0xff]  }
 0x396   : > { %3049 = vmatpush1.bf16.msra.mxu0 %v15140_v47  ;;  %v15154_v57 = vld [vmem:[%s17586_s17 + $0x44] ss:$16 sps:$4 sm:$0xff]   ;;  %v15158_v59 = vld [vmem:[%s17586_s17 + $0x40] ss:$16 sps:$4 sm:$0xff]   ;;  %v15222_v47 = vld [vmem:[%s17586_s17 + $0xec] ss:$16 sps:$4 sm:$0xff]  }
 0x397   : > { %3092 = vmatpush1.bf16.msra.mxu1 %v15141_v48  ;;  %3050 = vmatprep.subr.bf16.mxu0 %v15142_v49  ;;  %v15156_v58 = vld [vmem:[%s17586_s17 + $0x244] ss:$16 sps:$4 sm:$0xff]   ;;  %v15159_v60 = vld [vmem:[%s17586_s17 + $0x240] ss:$16 sps:$4 sm:$0xff]   ;;  %v15225_v48 = vld [vmem:[%s17586_s17 + $0x2ec] ss:$16 sps:$4 sm:$0xff]  }
 0x398   : > { %3093 = vmatprep.subr.bf16.mxu1 %v15144_v50  ;;  %v15160_v61 = vld [vmem:[%s17586_s17 + $0x24] ss:$16 sps:$4 sm:$0xff]   ;;  %v15164_v63 = vld [vmem:[%s17586_s17 + $0x20] ss:$16 sps:$4 sm:$0xff]  }
 0x399   : > { %v15162_v62 = vld [vmem:[%s17586_s17 + $0x224] ss:$16 sps:$4 sm:$0xff]   ;;  %v15165_v0 = vld [vmem:[%s17586_s17 + $0x220] ss:$16 sps:$4 sm:$0xff]  }
 0x39a   : > { %3051 = vmatpush1.bf16.msra.mxu0 %v15146_v51  ;;  %v15166_v1 = vld [vmem:[%s17586_s17 + $0x4] ss:$16 sps:$4 sm:$0xff]   ;;  %v15170_v3 = vld [vmem:[%s17586_s17] ss:$16 sps:$4 sm:$0xff]   ;;  %v15220_v51 = vld [vmem:[%s17586_s17 + $0xe8] ss:$16 sps:$4 sm:$0xff]  }
 0x39b   : > { %3094 = vmatpush1.bf16.msra.mxu1 %v15147_v52  ;;  %3052 = vmatprep.subr.bf16.mxu0 %v15148_v53  ;;  %v15168_v2 = vld [vmem:[%s17586_s17 + $0x204] ss:$16 sps:$4 sm:$0xff]   ;;  %v15171_v4 = vld [vmem:[%s17586_s17 + $0x200] ss:$16 sps:$4 sm:$0xff]   ;;  %v15223_v52 = vld [vmem:[%s17586_s17 + $0x2e8] ss:$16 sps:$4 sm:$0xff]  }
 0x39c   : > { %3095 = vmatprep.subr.bf16.mxu1 %v15150_v54  ;;  %v15172_v5 = vld [vmem:[%s17586_s17 + $0x1e4] ss:$16 sps:$4 sm:$0xff]   ;;  %v15176_v7 = vld [vmem:[%s17586_s17 + $0x1e0] ss:$16 sps:$4 sm:$0xff]   ;;  %v15228_v53 = vld [vmem:[%s17586_s17 + $0xcc] ss:$16 sps:$4 sm:$0xff]  }
 0x39d   : > { %v15174_v6 = vld [vmem:[%s17586_s17 + $0x3e4] ss:$16 sps:$4 sm:$0xff]   ;;  %v15177_v8 = vld [vmem:[%s17586_s17 + $0x3e0] ss:$16 sps:$4 sm:$0xff]   ;;  %v15231_v54 = vld [vmem:[%s17586_s17 + $0x2cc] ss:$16 sps:$4 sm:$0xff]  }
 0x39e   : > { %3053 = vmatpush1.bf16.msra.mxu0 %v15152_v55  ;;  %v15178_v9 = vld [vmem:[%s17586_s17 + $0x1c4] ss:$16 sps:$4 sm:$0xff]   ;;  %v15182_v11 = vld [vmem:[%s17586_s17 + $0x1c0] ss:$16 sps:$4 sm:$0xff]   ;;  %v15226_v55 = vld [vmem:[%s17586_s17 + $0xc8] ss:$16 sps:$4 sm:$0xff]  }
 0x39f   : > { %3096 = vmatpush1.bf16.msra.mxu1 %v15153_v56  ;;  %3054 = vmatprep.subr.bf16.mxu0 %v15154_v57  ;;  %v15180_v10 = vld [vmem:[%s17586_s17 + $0x3c4] ss:$16 sps:$4 sm:$0xff]   ;;  %v15183_v12 = vld [vmem:[%s17586_s17 + $0x3c0] ss:$16 sps:$4 sm:$0xff]   ;;  %v15229_v56 = vld [vmem:[%s17586_s17 + $0x2c8] ss:$16 sps:$4 sm:$0xff]  }
 0x3a0   : > { %3097 = vmatprep.subr.bf16.mxu1 %v15156_v58  ;;  %v15184_v13 = vld [vmem:[%s17586_s17 + $0x1a4] ss:$16 sps:$4 sm:$0xff]   ;;  %v15188_v15 = vld [vmem:[%s17586_s17 + $0x1a0] ss:$16 sps:$4 sm:$0xff]   ;;  %v15234_v57 = vld [vmem:[%s17586_s17 + $0xac] ss:$16 sps:$4 sm:$0xff]  }
 0x3a1   : > { %v15186_v14 = vld [vmem:[%s17586_s17 + $0x3a4] ss:$16 sps:$4 sm:$0xff]   ;;  %v15189_v16 = vld [vmem:[%s17586_s17 + $0x3a0] ss:$16 sps:$4 sm:$0xff]   ;;  %v15237_v58 = vld [vmem:[%s17586_s17 + $0x2ac] ss:$16 sps:$4 sm:$0xff]  }
 0x3a2   : > { %3055 = vmatpush1.bf16.msra.mxu0 %v15158_v59  ;;  %v15190_v17 = vld [vmem:[%s17586_s17 + $0x184] ss:$16 sps:$4 sm:$0xff]   ;;  %v15194_v23 = vld [vmem:[%s17586_s17 + $0x180] ss:$16 sps:$4 sm:$0xff]   ;;  %v15232_v59 = vld [vmem:[%s17586_s17 + $0xa8] ss:$16 sps:$4 sm:$0xff]  }
 0x3a3   : > { %3098 = vmatpush1.bf16.msra.mxu1 %v15159_v60  ;;  %3056 = vmatprep.subr.bf16.mxu0 %v15160_v61  ;;  %v15192_v18 = vld [vmem:[%s17586_s17 + $0x384] ss:$16 sps:$4 sm:$0xff]   ;;  %v15195_v24 = vld [vmem:[%s17586_s17 + $0x380] ss:$16 sps:$4 sm:$0xff]   ;;  %v15235_v60 = vld [vmem:[%s17586_s17 + $0x2a8] ss:$16 sps:$4 sm:$0xff]  }
 0x3a4   : > { %3099 = vmatprep.subr.bf16.mxu1 %v15162_v62  ;;  %v2247_v22 = vld [vmem:[#allocation2 + $0x38] sm:$0xff]  ;;  %v2244_v44 = vld [vmem:[#allocation2 + $0x28] sm:$0xff]  ;;  %v15240_v61 = vld [vmem:[%s17586_s17 + $0x8c] ss:$16 sps:$4 sm:$0xff]  }
 0x3a5   : > { %v15196_v25 = vld [vmem:[%s17586_s17 + $0x164] ss:$16 sps:$4 sm:$0xff]   ;;  %v2387_v27 = vpack.c.bf16 %v2247_v22, %v2243_v21  ;;  %v15200_v29 = vld [vmem:[%s17586_s17 + $0x160] ss:$16 sps:$4 sm:$0xff]   ;;  %v17672_v49 = vpack.c.bf16 %v2244_v44, %v2240_v43  ;;  %v15243_v62 = vld [vmem:[%s17586_s17 + $0x28c] ss:$16 sps:$4 sm:$0xff]  }
 0x3a6   : > { %3057 = vmatpush1.bf16.msra.mxu0 %v15164_v63  ;;  %v15198_v28 = vld [vmem:[%s17586_s17 + $0x364] ss:$16 sps:$4 sm:$0xff]   ;;  %v15201_v30 = vld [vmem:[%s17586_s17 + $0x360] ss:$16 sps:$4 sm:$0xff]   ;;  %v15238_v63 = vld [vmem:[%s17586_s17 + $0x88] ss:$16 sps:$4 sm:$0xff]  }
 0x3a7   : > { %3100 = vmatpush1.bf16.msra.mxu1 %v15165_v0  ;;  %3058 = vmatprep.subr.bf16.mxu0 %v15166_v1  ;;  %v15202_v31 = vld [vmem:[%s17586_s17 + $0x144] ss:$16 sps:$4 sm:$0xff]   ;;  %v15206_v33 = vld [vmem:[%s17586_s17 + $0x140] ss:$16 sps:$4 sm:$0xff]   ;;  %v15241_v0 = vld [vmem:[%s17586_s17 + $0x288] ss:$16 sps:$4 sm:$0xff]  }
 0x3a8   : > { %3101 = vmatprep.subr.bf16.mxu1 %v15168_v2  ;;  %3119 = vmatprep.mubr.bf16.mxu1 %v2387_v27  ;;  %v15204_v32 = vld [vmem:[%s17586_s17 + $0x344] ss:$16 sps:$4 sm:$0xff]   ;;  %v15207_v34 = vld [vmem:[%s17586_s17 + $0x340] ss:$16 sps:$4 sm:$0xff]   ;;  %v15246_v1 = vld [vmem:[%s17586_s17 + $0x6c] ss:$16 sps:$4 sm:$0xff]  }
 0x3a9   : > { %v15208_v35 = vld [vmem:[%s17586_s17 + $0x124] ss:$16 sps:$4 sm:$0xff]   ;;  %v15212_v37 = vld [vmem:[%s17586_s17 + $0x120] ss:$16 sps:$4 sm:$0xff]   ;;  %v15249_v2 = vld [vmem:[%s17586_s17 + $0x26c] ss:$16 sps:$4 sm:$0xff]  }
 0x3aa   : > { %3059 = vmatpush1.bf16.msra.mxu0 %v15170_v3  ;;  %v15210_v36 = vld [vmem:[%s17586_s17 + $0x324] ss:$16 sps:$4 sm:$0xff]   ;;  %v15213_v38 = vld [vmem:[%s17586_s17 + $0x320] ss:$16 sps:$4 sm:$0xff]   ;;  %v15244_v3 = vld [vmem:[%s17586_s17 + $0x68] ss:$16 sps:$4 sm:$0xff]  }
 0x3ab   : > { %3102 = vmatpush1.bf16.msra.mxu1 %v15171_v4  ;;  %3060 = vmatprep.subr.bf16.mxu0 %v15172_v5  ;;  %v15214_v39 = vld [vmem:[%s17586_s17 + $0x104] ss:$16 sps:$4 sm:$0xff]   ;;  %v15218_v41 = vld [vmem:[%s17586_s17 + $0x100] ss:$16 sps:$4 sm:$0xff]   ;;  %v15247_v4 = vld [vmem:[%s17586_s17 + $0x268] ss:$16 sps:$4 sm:$0xff]  }
 0x3ac   : > { %3103 = vmatprep.subr.bf16.mxu1 %v15174_v6  ;;  %v15216_v40 = vld [vmem:[%s17586_s17 + $0x304] ss:$16 sps:$4 sm:$0xff]   ;;  %v15219_v42 = vld [vmem:[%s17586_s17 + $0x300] ss:$16 sps:$4 sm:$0xff]   ;;  %v15252_v5 = vld [vmem:[%s17586_s17 + $0x4c] ss:$16 sps:$4 sm:$0xff]  }
 0x3ad   : > { %v2242_v45 = vld [vmem:[#allocation2 + $0x8] sm:$0xff]  ;;  %v2246_v46 = vld [vmem:[#allocation2 + $0x18] sm:$0xff]  ;;  %v15255_v6 = vld [vmem:[%s17586_s17 + $0x24c] ss:$16 sps:$4 sm:$0xff]  }
 0x3ae   : > { %3061 = vmatpush2.bf16.msra.mxu0 %v15176_v7  ;;  %v17674_v50 = vpack.c.bf16 %v2246_v46, %v2242_v45  ;;  %v15250_v7 = vld [vmem:[%s17586_s17 + $0x48] ss:$16 sps:$4 sm:$0xff]   ;;  %v15276_v21 = vld [vmem:[%s17586_s17 + $0x1cc] ss:$16 sps:$4 sm:$0xff]  }
 0x3af   : > { %3104 = vmatpush2.bf16.msra.mxu1 %v15177_v8  ;;  %3062 = vmatprep.subr.bf16.mxu0 %v15178_v9  ;;  %v15253_v8 = vld [vmem:[%s17586_s17 + $0x248] ss:$16 sps:$4 sm:$0xff]   ;;  %v15258_v9 = vld [vmem:[%s17586_s17 + $0x2c] ss:$16 sps:$4 sm:$0xff]  }
 0x3b0   : > { %3105 = vmatprep.subr.bf16.mxu1 %v15180_v10  ;;  %v15261_v10 = vld [vmem:[%s17586_s17 + $0x22c] ss:$16 sps:$4 sm:$0xff]   ;;  %v15304_v43 = vld [vmem:[%s17586_s17 + $0x128] ss:$16 sps:$4 sm:$0xff]  }
 0x3b1   : > { %v15279_v22 = vld [vmem:[%s17586_s17 + $0x3cc] ss:$16 sps:$4 sm:$0xff]   ;;  %v15307_v44 = vld [vmem:[%s17586_s17 + $0x328] ss:$16 sps:$4 sm:$0xff]  }
 0x3b2   : > { %3063 = vmatpush2.bf16.msra.mxu0 %v15182_v11  ;;  %v15256_v11 = vld [vmem:[%s17586_s17 + $0x28] ss:$16 sps:$4 sm:$0xff]   ;;  %v15312_v45 = vld [vmem:[%s17586_s17 + $0x10c] ss:$16 sps:$4 sm:$0xff]  }
 0x3b3   : > { %3106 = vmatpush2.bf16.msra.mxu1 %v15183_v12  ;;  %3064 = vmatprep.subr.bf16.mxu0 %v15184_v13  ;;  %v15259_v12 = vld [vmem:[%s17586_s17 + $0x228] ss:$16 sps:$4 sm:$0xff]   ;;  %v15264_v13 = vld [vmem:[%s17586_s17 + $0xc] ss:$16 sps:$4 sm:$0xff]  }
 0x3b4   : > { %3107 = vmatprep.subr.bf16.mxu1 %v15186_v14  ;;  %v15267_v14 = vld [vmem:[%s17586_s17 + $0x20c] ss:$16 sps:$4 sm:$0xff]  }
 0x3b5   : > { %v15315_v46 = vld [vmem:[%s17586_s17 + $0x30c] ss:$16 sps:$4 sm:$0xff]  }
 0x3b6   : > { %3065 = vmatpush2.bf16.msra.mxu0 %v15188_v15  ;;  %v15262_v15 = vld [vmem:[%s17586_s17 + $0x8] ss:$16 sps:$4 sm:$0xff]  }
 0x3b7   : > { %3108 = vmatpush2.bf16.msra.mxu1 %v15189_v16  ;;  %3066 = vmatprep.subr.bf16.mxu0 %v15190_v17  ;;  %v15265_v16 = vld [vmem:[%s17586_s17 + $0x208] ss:$16 sps:$4 sm:$0xff]   ;;  %v15270_v17 = vld [vmem:[%s17586_s17 + $0x1ec] ss:$16 sps:$4 sm:$0xff]  }
 0x3b8   : > { %3109 = vmatprep.subr.bf16.mxu1 %v15192_v18  ;;  %v15273_v18 = vld [vmem:[%s17586_s17 + $0x3ec] ss:$16 sps:$4 sm:$0xff]  }
 0x3ba   : > { %3067 = vmatpush2.bf16.msra.mxu0 %v15194_v23  ;;  %v15274_v23 = vld [vmem:[%s17586_s17 + $0x1c8] ss:$16 sps:$4 sm:$0xff]  }
 0x3bb   : > { %3110 = vmatpush2.bf16.msra.mxu1 %v15195_v24  ;;  %3068 = vmatprep.subr.bf16.mxu0 %v15196_v25  ;;  %v15277_v24 = vld [vmem:[%s17586_s17 + $0x3c8] ss:$16 sps:$4 sm:$0xff]   ;;  %v15282_v25 = vld [vmem:[%s17586_s17 + $0x1ac] ss:$16 sps:$4 sm:$0xff]  }
 0x3bc   : > { %3111 = vmatprep.subr.bf16.mxu1 %v15198_v28  ;;  %v15283_v28 = vld [vmem:[%s17586_s17 + $0x3a8] ss:$16 sps:$4 sm:$0xff]  }
 0x3be   : > { %3069 = vmatpush2.bf16.msra.mxu0 %v15200_v29  ;;  %v15288_v29 = vld [vmem:[%s17586_s17 + $0x18c] ss:$16 sps:$4 sm:$0xff]  }
 0x3bf   : > { %3112 = vmatpush2.bf16.msra.mxu1 %v15201_v30  ;;  %3070 = vmatprep.subr.bf16.mxu0 %v15202_v31  ;;  %v15291_v30 = vld [vmem:[%s17586_s17 + $0x38c] ss:$16 sps:$4 sm:$0xff]   ;;  %v15286_v31 = vld [vmem:[%s17586_s17 + $0x188] ss:$16 sps:$4 sm:$0xff]  }
 0x3c0   : > { %3113 = vmatprep.subr.bf16.mxu1 %v15204_v32  ;;  %v15289_v32 = vld [vmem:[%s17586_s17 + $0x388] ss:$16 sps:$4 sm:$0xff]  }
 0x3c2   : > { %3071 = vmatpush2.bf16.msra.mxu0 %v15206_v33  ;;  %v15294_v33 = vld [vmem:[%s17586_s17 + $0x16c] ss:$16 sps:$4 sm:$0xff]  }
 0x3c3   : > { %3114 = vmatpush2.bf16.msra.mxu1 %v15207_v34  ;;  %3072 = vmatprep.subr.bf16.mxu0 %v15208_v35  ;;  %v15297_v34 = vld [vmem:[%s17586_s17 + $0x36c] ss:$16 sps:$4 sm:$0xff]   ;;  %v15292_v35 = vld [vmem:[%s17586_s17 + $0x168] ss:$16 sps:$4 sm:$0xff]  }
 0x3c4   : > { %3115 = vmatprep.subr.bf16.mxu1 %v15210_v36  ;;  %v15295_v36 = vld [vmem:[%s17586_s17 + $0x368] ss:$16 sps:$4 sm:$0xff]  }
 0x3c6   : > { %3073 = vmatpush2.bf16.msra.mxu0 %v15212_v37  ;;  %v15300_v37 = vld [vmem:[%s17586_s17 + $0x14c] ss:$16 sps:$4 sm:$0xff]  }
 0x3c7   : > { %3116 = vmatpush2.bf16.msra.mxu1 %v15213_v38  ;;  %3074 = vmatprep.subr.bf16.mxu0 %v15214_v39  ;;  %v15303_v38 = vld [vmem:[%s17586_s17 + $0x34c] ss:$16 sps:$4 sm:$0xff]   ;;  %v15298_v39 = vld [vmem:[%s17586_s17 + $0x148] ss:$16 sps:$4 sm:$0xff]  }
 0x3c8   : > { %3117 = vmatprep.subr.bf16.mxu1 %v15216_v40  ;;  %v15301_v40 = vld [vmem:[%s17586_s17 + $0x348] ss:$16 sps:$4 sm:$0xff]  }
 0x3ca   : > { %3075 = vmatpush2.bf16.msra.mxu0 %v15218_v41  ;;  %v15306_v41 = vld [vmem:[%s17586_s17 + $0x12c] ss:$16 sps:$4 sm:$0xff]  }
 0x3cb   : > { %3118 = vmatpush2.bf16.msra.mxu1 %v15219_v42  ;;  %3130 = vmatprep.subr.bf16.mxu0 %v15222_v47  ;;  %v15309_v42 = vld [vmem:[%s17586_s17 + $0x32c] ss:$16 sps:$4 sm:$0xff]   ;;  %v15310_v47 = vld [vmem:[%s17586_s17 + $0x108] ss:$16 sps:$4 sm:$0xff]  }
 0x3cc   : > { %3173 = vmatprep.subr.bf16.mxu1 %v15225_v48  ;;  %v15313_v48 = vld [vmem:[%s17586_s17 + $0x308] ss:$16 sps:$4 sm:$0xff]  }
 0x3cd   : > { %3077 = vmatmul.mubr.bf16.vlgmr.msra.gmra.mxu0 %v17672_v49 }
 0x3ce   : > { %3120 = vmatmul.mubr.bf16.vlgmr.msra.gmra.mxu1 %v17674_v50  ;;  %3131 = vmatpush1.bf16.msra.mxu0 %v15220_v51  ;;  %v2388_v51 = vlaneseq }
 0x3cf   : > { %3174 = vmatpush1.bf16.msra.mxu1 %v15223_v52  ;;  %3132 = vmatprep.subr.bf16.mxu0 %v15228_v53 }
 0x3d0   : > { %3175 = vmatprep.subr.bf16.mxu1 %v15231_v54  ;;  %3162 = vmatprep.mubr.bf16.mxu0 %v2385_v26  ;;  %v15285_v26 = vld [vmem:[%s17586_s17 + $0x3ac] ss:$16 sps:$4 sm:$0xff]   ;;  %v17743_v52 = vshrl.u32 %v2388_v51, 7 }
 0x3d1   : > { %3205 = vmatprep.mubr.bf16.mxu1 %v2387_v27  ;;  %v15280_v27 = vld [vmem:[%s17586_s17 + $0x1a8] ss:$16 sps:$4 sm:$0xff]  }
 0x3d2   : > { %3133 = vmatpush1.bf16.msra.mxu0 %v15226_v55  ;;  %v2252_v54 = vld [vmem:[%s17745_s28] sm:$0xff]  ;;  %v2253_v55 = vld [vmem:[%s17745_s28 + $0x8] sm:$0xff] }
 0x3d3   : > { %3176 = vmatpush1.bf16.msra.mxu1 %v15229_v56  ;;  %3134 = vmatprep.subr.bf16.mxu0 %v15234_v57  ;;  %v17750_v56 = vsub.s32 0, %v17743_v52 }
 0x3d4   : > { %3177 = vmatprep.subr.bf16.mxu1 %v15237_v58 }
 0x3d5   : > { %v2395_v58 = vrot.slane %v2253_v55, %v17750_v56  ;;  %v15319_v55 = vld [vmem:[%s17586_s17 + $0x6e0] ss:$16 sps:$4 sm:$0xff]  }
 0x3d6   : > { %3135 = vmatpush1.bf16.msra.mxu0 %v15232_v59 }
 0x3d7   : > { %3178 = vmatpush1.bf16.msra.mxu1 %v15235_v60  ;;  %3136 = vmatprep.subr.bf16.mxu0 %v15240_v61 }
 0x3d8   : > { %3179 = vmatprep.subr.bf16.mxu1 %v15243_v62 }
 0x3da   : > { %3137 = vmatpush1.bf16.msra.mxu0 %v15238_v63  ;;  %v2254_v63 = vld [vmem:[%s17745_s28 + $0x10] sm:$0xff] }
 0x3db   : > { %3180 = vmatpush1.bf16.msra.mxu1 %v15241_v0  ;;  %3138 = vmatprep.subr.bf16.mxu0 %v15246_v1 }
 0x3dc   : > { %3181 = vmatprep.subr.bf16.mxu1 %v15249_v2  ;;  %v2255_v2 = vld [vmem:[%s17745_s28 + $0x18] sm:$0xff] }
 0x3de   : > { %3139 = vmatpush1.bf16.msra.mxu0 %v15244_v3 }
 0x3df   : > { %3182 = vmatpush1.bf16.msra.mxu1 %v15247_v4  ;;  %3140 = vmatprep.subr.bf16.mxu0 %v15252_v5 }
 0x3e0   : > { %3183 = vmatprep.subr.bf16.mxu1 %v15255_v6  ;;  %v2399_v6 = vrot.slane %v2254_v63, %v17750_v56  ;;  %v15331_v63 = vld [vmem:[%s17586_s17 + $0x6a0] ss:$16 sps:$4 sm:$0xff]  }
 0x3e2   : > { %3141 = vmatpush1.bf16.msra.mxu0 %v15250_v7 }
 0x3e3   : > { %3184 = vmatpush1.bf16.msra.mxu1 %v15253_v8  ;;  %3142 = vmatprep.subr.bf16.mxu0 %v15258_v9  ;;  %v2403_v9 = vrot.slane %v2255_v2, %v17750_v56  ;;  %v15334_v2 = vld [vmem:[%s17586_s17 + $0x480] ss:$16 sps:$4 sm:$0xff]  }
 0x3e4   : > { %3185 = vmatprep.subr.bf16.mxu1 %v15261_v10  ;;  %v16876_v10 = vld [vmem:[#allocation2 + $0x30] sm:$0xff] }
 0x3e6   : > { %3143 = vmatpush1.bf16.msra.mxu0 %v15256_v11 }
 0x3e7   : > { %3186 = vmatpush1.bf16.msra.mxu1 %v15259_v12  ;;  %3144 = vmatprep.subr.bf16.mxu0 %v15264_v13  ;;  %v16877_v12 = vld [vmem:[#allocation2] sm:$0xff] }
 0x3e8   : > { %3187 = vmatprep.subr.bf16.mxu1 %v15267_v14 }
 0x3ea   : > { %3145 = vmatpush1.bf16.msra.mxu0 %v15262_v15 }
 0x3eb   : > { %3188 = vmatpush1.bf16.msra.mxu1 %v15265_v16  ;;  %3146 = vmatprep.subr.bf16.mxu0 %v15270_v17 }
 0x3ec   : > { %3189 = vmatprep.subr.bf16.mxu1 %v15273_v18 }
 0x3ee   : > { %3147 = vmatpush2.bf16.msra.mxu0 %v15268_v19 }
 0x3ef   : > { %3190 = vmatpush2.bf16.msra.mxu1 %v15271_v20  ;;  %3148 = vmatprep.subr.bf16.mxu0 %v15276_v21 }
 0x3f0   : > { %3191 = vmatprep.subr.bf16.mxu1 %v15279_v22 }
 0x3f2   : > { %3149 = vmatpush2.bf16.msra.mxu0 %v15274_v23 }
 0x3f3   : > { %3192 = vmatpush2.bf16.msra.mxu1 %v15277_v24  ;;  %3150 = vmatprep.subr.bf16.mxu0 %v15282_v25 }
 0x3f4   : > { %3193 = vmatprep.subr.bf16.mxu1 %v15285_v26  ;;  %v16878_v26 = vld [vmem:[#allocation2 + $0x20] sm:$0xff] }
 0x3f6   : > { %3151 = vmatpush2.bf16.msra.mxu0 %v15280_v27 }
 0x3f7   : > { %3194 = vmatpush2.bf16.msra.mxu1 %v15283_v28  ;;  %3152 = vmatprep.subr.bf16.mxu0 %v15288_v29  ;;  %v16879_v28 = vld [vmem:[#allocation2 + $0x8] sm:$0xff] }
 0x3f8   : > { %3195 = vmatprep.subr.bf16.mxu1 %v15291_v30 }
 0x3fa   : > { %3153 = vmatpush2.bf16.msra.mxu0 %v15286_v31 }
 0x3fb   : > { %3196 = vmatpush2.bf16.msra.mxu1 %v15289_v32  ;;  %3154 = vmatprep.subr.bf16.mxu0 %v15294_v33  ;;  %v16880_v32 = vld [vmem:[#allocation2 + $0x28] sm:$0xff] }
 0x3fc   : > { %3197 = vmatprep.subr.bf16.mxu1 %v15297_v34 }
 0x3fe   : > { %3155 = vmatpush2.bf16.msra.mxu0 %v15292_v35 }
 0x3ff   : > { %3198 = vmatpush2.bf16.msra.mxu1 %v15295_v36  ;;  %3156 = vmatprep.subr.bf16.mxu0 %v15300_v37  ;;  %v16881_v37 = vld [vmem:[#allocation2 + $0x10] sm:$0xff] }
 0x400   : > { %3199 = vmatprep.subr.bf16.mxu1 %v15303_v38 }
 0x402   : > { %3157 = vmatpush2.bf16.msra.mxu0 %v15298_v39 }
 0x403   : > { %3200 = vmatpush2.bf16.msra.mxu1 %v15301_v40  ;;  %3158 = vmatprep.subr.bf16.mxu0 %v15306_v41 }
 0x404   : > { %3201 = vmatprep.subr.bf16.mxu1 %v15309_v42  ;;  %v16882_v42 = vld [vmem:[#allocation2 + $0x18] sm:$0xff] }
 0x406   : > { %3159 = vmatpush2.bf16.msra.mxu0 %v15304_v43 }
 0x407   : > { %3202 = vmatpush2.bf16.msra.mxu1 %v15307_v44  ;;  %3160 = vmatprep.subr.bf16.mxu0 %v15312_v45 }
 0x408   : > { %3203 = vmatprep.subr.bf16.mxu1 %v15315_v46  ;;  %v16883_v46 = vld [vmem:[#allocation2 + $0x38] sm:$0xff] }
 0x40a   : > { %3161 = vmatpush2.bf16.msra.mxu0 %v15310_v47 }
 0x40b   : > { %3204 = vmatpush2.bf16.msra.mxu1 %v15313_v48 }
 0x40d   : > { %3163 = vmatmul.mubr.bf16.vlgmr.msra.gmra.mxu0 %v17672_v49 }
 0x40e   : > { %3206 = vmatmul.mubr.bf16.vlgmr.msra.gmra.mxu1 %v17674_v50  ;;  %v2391_v50 = vrot.slane %v2252_v54, %v17750_v56  ;;  %v15318_v54 = vld [vmem:[%s17586_s17 + $0x4e4] ss:$16 sps:$4 sm:$0xff]  }
 0x40f   : > { %4114 = vmatprep.subr.bf16.mxu0 %v15318_v54  ;;  %v15375_v54 = vld [vmem:[%s17586_s17 + $0x7c4] ss:$16 sps:$4 sm:$0xff]  }
 0x48d   : > { %v3078_v53 = vpop.f32.mrf.mxu0 }
 0x48e   : > { %v3121_v57 = vpop.f32.mrf.mxu1  ;;  %v3079_v61 = vadd.f32 %v3078_v53, %v2391_v50  ;;  %v15316_v53 = vld [vmem:[%s17586_s17 + $0x4e0] ss:$16 sps:$4 sm:$0xff]  }
 0x48f   : > { %v3080_v49 = vpop.f32.mrf.mxu0  ;;  %4115 = vmatpush1.bf16.msra.mxu0 %v15316_v53  ;;  %v15372_v53 = vld [vmem:[%s17586_s17 + $0x5c4] ss:$16 sps:$4 sm:$0xff]  }
 0x490   : > { %v3123_v59 = vpop.f32.mrf.mxu1  ;;  %v3081_v62 = vadd.f32 %v3080_v49, %v2395_v58  ;;  %v3122_v3 = vadd.f32 %v3121_v57, %v3079_v61  ;;  %v15321_v57 = vld [vmem:[%s17586_s17 + $0x6e4] ss:$16 sps:$4 sm:$0xff]  }
 0x491   : > { %v3082_v60 = vpop.f32.mrf.mxu0  ;;  %v15324_v49 = vld [vmem:[%s17586_s17 + $0x4c4] ss:$16 sps:$4 sm:$0xff]   ;;  %4157 = vmatprep.subr.bf16.mxu1 %v15321_v57  ;;  %v15373_v57 = vld [vmem:[%s17586_s17 + $0x7c0] ss:$16 sps:$4 sm:$0xff]  }
 0x492   : > { %v3125_v0 = vpop.f32.mrf.mxu1  ;;  %v3124_v4 = vadd.f32 %v3123_v59, %v3081_v62  ;;  %v3083_v7 = vadd.f32 %v3082_v60, %v2391_v50  ;;  %v17758_v11 = vadd.f32 %v16876_v10, %v3122_v3  ;;  %v15327_v50 = vld [vmem:[%s17586_s17 + $0x6c4] ss:$16 sps:$4 sm:$0xff]   ;;  %4158 = vmatpush1.bf16.msra.mxu1 %v15319_v55  ;;  %4116 = vmatprep.subr.bf16.mxu0 %v15324_v49  ;;  %v15325_v59 = vld [vmem:[%s17586_s17 + $0x6c0] ss:$16 sps:$4 sm:$0xff]  }
 0x493   : > { %v3084_v1 = vpop.f32.mrf.mxu0  ;;  %v15330_v60 = vld [vmem:[%s17586_s17 + $0x4a4] ss:$16 sps:$4 sm:$0xff]   ;;  %4159 = vmatprep.subr.bf16.mxu1 %v15327_v50  ;;  %v15328_v62 = vld [vmem:[%s17586_s17 + $0x4a0] ss:$16 sps:$4 sm:$0xff]  }
 0x494   : > { %v3085_v5 = vadd.f32 %v3084_v1, %v2395_v58  ;;  %v3127_v8 = vpop.f32.mrf.mxu1  ;;  %v17760_v13 = vadd.f32 %v16877_v12, %v3124_v4  ;;  %v3126_v18 = vadd.f32 %v3125_v0, %v3083_v7  ;;  %v15322_v58 = vld [vmem:[%s17586_s17 + $0x4c0] ss:$16 sps:$4 sm:$0xff]   ;;  %v15333_v61 = vld [vmem:[%s17586_s17 + $0x6a4] ss:$16 sps:$4 sm:$0xff]  }
 0x495   : > { %4117 = vmatpush1.bf16.msra.mxu0 %v15322_v58  ;;  %v15336_v0 = vld [vmem:[%s17586_s17 + $0x484] ss:$16 sps:$4 sm:$0xff]   ;;  %v15337_v3 = vld [vmem:[%s17586_s17 + $0x680] ss:$16 sps:$4 sm:$0xff]  }
 0x496   : > { %v3128_v16 = vadd.f32 %v3127_v8, %v3085_v5  ;;  %v3224_v25 = vadd.f32 %v17760_v13, %v17758_v11  ;;  %v17768_v33 = vadd.f32 %v16880_v32, %v3126_v18  ;;  %4160 = vmatpush1.bf16.msra.mxu1 %v15325_v59  ;;  %4118 = vmatprep.subr.bf16.mxu0 %v15330_v60  ;;  %v15339_v1 = vld [vmem:[%s17586_s17 + $0x684] ss:$16 sps:$4 sm:$0xff]   ;;  %v15343_v7 = vld [vmem:[%s17586_s17 + $0x660] ss:$16 sps:$4 sm:$0xff]  }
 0x497   : > { %4161 = vmatprep.subr.bf16.mxu1 %v15333_v61  ;;  %v15342_v4 = vld [vmem:[%s17586_s17 + $0x464] ss:$16 sps:$4 sm:$0xff]   ;;  %v15346_v10 = vld [vmem:[%s17586_s17 + $0x440] ss:$16 sps:$4 sm:$0xff]  }
 0x498   : > { %v17764_v27 = vadd.f32 %v16878_v26, %v3128_v16  ;;  %v15345_v5 = vld [vmem:[%s17586_s17 + $0x664] ss:$16 sps:$4 sm:$0xff]   ;;  %v15349_v12 = vld [vmem:[%s17586_s17 + $0x640] ss:$16 sps:$4 sm:$0xff]  }
 0x499   : > { %4119 = vmatpush1.bf16.msra.mxu0 %v15328_v62  ;;  %v15348_v8 = vld [vmem:[%s17586_s17 + $0x444] ss:$16 sps:$4 sm:$0xff]   ;;  %v15352_v16 = vld [vmem:[%s17586_s17 + $0x420] ss:$16 sps:$4 sm:$0xff]  }
 0x49a   : > { %v3229_v41 = vadd.f32 %v17764_v27, %v17768_v33  ;;  %4162 = vmatpush1.bf16.msra.mxu1 %v15331_v63  ;;  %4120 = vmatprep.subr.bf16.mxu0 %v15336_v0  ;;  %v15360_v18 = vld [vmem:[%s17586_s17 + $0x404] ss:$16 sps:$4 sm:$0xff]   ;;  %v15370_v55 = vld [vmem:[%s17586_s17 + $0x5c0] ss:$16 sps:$4 sm:$0xff]  }
 0x49b   : > { %4163 = vmatprep.subr.bf16.mxu1 %v15339_v1  ;;  %v15378_v49 = vld [vmem:[%s17586_s17 + $0x5a4] ss:$16 sps:$4 sm:$0xff]   ;;  %v15376_v58 = vld [vmem:[%s17586_s17 + $0x5a0] ss:$16 sps:$4 sm:$0xff]  }
 0x49c   : > { %v15381_v50 = vld [vmem:[%s17586_s17 + $0x7a4] ss:$16 sps:$4 sm:$0xff]   ;;  %v15379_v59 = vld [vmem:[%s17586_s17 + $0x7a0] ss:$16 sps:$4 sm:$0xff]  }
 0x49d   : > { %4121 = vmatpush1.bf16.msra.mxu0 %v15334_v2  ;;  %v15382_v60 = vld [vmem:[%s17586_s17 + $0x580] ss:$16 sps:$4 sm:$0xff]   ;;  %v15384_v61 = vld [vmem:[%s17586_s17 + $0x584] ss:$16 sps:$4 sm:$0xff]  }
 0x49e   : > { %4164 = vmatpush1.bf16.msra.mxu1 %v15337_v3  ;;  %4122 = vmatprep.subr.bf16.mxu0 %v15342_v4  ;;  %v15385_v62 = vld [vmem:[%s17586_s17 + $0x780] ss:$16 sps:$4 sm:$0xff]   ;;  %v15387_v63 = vld [vmem:[%s17586_s17 + $0x784] ss:$16 sps:$4 sm:$0xff]  }
 0x49f   : > { %4165 = vmatprep.subr.bf16.mxu1 %v15345_v5  ;;  %v15390_v0 = vld [vmem:[%s17586_s17 + $0x564] ss:$16 sps:$4 sm:$0xff]   ;;  %v15388_v2 = vld [vmem:[%s17586_s17 + $0x560] ss:$16 sps:$4 sm:$0xff]  }
 0x4a0   : > { %v15393_v1 = vld [vmem:[%s17586_s17 + $0x764] ss:$16 sps:$4 sm:$0xff]   ;;  %v15391_v3 = vld [vmem:[%s17586_s17 + $0x760] ss:$16 sps:$4 sm:$0xff]  }
 0x4a1   : > { %v15396_v4 = vld [vmem:[%s17586_s17 + $0x544] ss:$16 sps:$4 sm:$0xff]  }
 0x4a2   : > { %4166 = vmatpush1.bf16.msra.mxu1 %v15343_v7  ;;  %v15399_v5 = vld [vmem:[%s17586_s17 + $0x744] ss:$16 sps:$4 sm:$0xff]   ;;  %v15397_v7 = vld [vmem:[%s17586_s17 + $0x740] ss:$16 sps:$4 sm:$0xff]  }
 0x4cd   : > { %v3164_v14 = vpop.f32.mrf.mxu0 }
 0x4ce   : > { %v3207_v15 = vpop.f32.mrf.mxu1  ;;  %v3165_v17 = vadd.f32 %v3164_v14, %v2399_v6  ;;  %v15354_v14 = vld [vmem:[%s17586_s17 + $0x424] ss:$16 sps:$4 sm:$0xff]  }
 0x4cf   : > { %v3166_v19 = vpop.f32.mrf.mxu0 }
 0x4d0   : > { %v3209_v20 = vpop.f32.mrf.mxu1  ;;  %v3208_v21 = vadd.f32 %v3207_v15, %v3165_v17  ;;  %v3167_v22 = vadd.f32 %v3166_v19, %v2403_v9  ;;  %v15357_v15 = vld [vmem:[%s17586_s17 + $0x624] ss:$16 sps:$4 sm:$0xff]   ;;  %v15355_v17 = vld [vmem:[%s17586_s17 + $0x620] ss:$16 sps:$4 sm:$0xff]  }
 0x4d1   : > { %v3168_v23 = vpop.f32.mrf.mxu0  ;;  %v15363_v19 = vld [vmem:[%s17586_s17 + $0x604] ss:$16 sps:$4 sm:$0xff]  }
 0x4d2   : > { %v3211_v24 = vpop.f32.mrf.mxu1  ;;  %v17766_v29 = vadd.f32 %v16879_v28, %v3208_v21  ;;  %v3210_v30 = vadd.f32 %v3209_v20, %v3167_v22  ;;  %v3169_v31 = vadd.f32 %v3168_v23, %v2399_v6  ;;  %v15340_v6 = vld [vmem:[%s17586_s17 + $0x460] ss:$16 sps:$4 sm:$0xff]   ;;  %v15366_v22 = vld [vmem:[%s17586_s17 + $0x5e4] ss:$16 sps:$4 sm:$0xff]  }
 0x4d3   : > { %v3170_v34 = vpop.f32.mrf.mxu0  ;;  %4123 = vmatpush1.bf16.msra.mxu0 %v15340_v6  ;;  %v15358_v20 = vld [vmem:[%s17586_s17 + $0x400] ss:$16 sps:$4 sm:$0xff]   ;;  %v15369_v23 = vld [vmem:[%s17586_s17 + $0x7e4] ss:$16 sps:$4 sm:$0xff]  }
 0x4d4   : > { %v3212_v35 = vadd.f32 %v3211_v24, %v3169_v31  ;;  %v3171_v36 = vadd.f32 %v3170_v34, %v2403_v9  ;;  %v17770_v38 = vadd.f32 %v16881_v37, %v3210_v30  ;;  %v3225_v39 = vadd.f32 %v3224_v25, %v17766_v29  ;;  %v3213_v40 = vpop.f32.mrf.mxu1  ;;  %v15351_v9 = vld [vmem:[%s17586_s17 + $0x644] ss:$16 sps:$4 sm:$0xff]   ;;  %4124 = vmatprep.subr.bf16.mxu0 %v15348_v8  ;;  %v15361_v21 = vld [vmem:[%s17586_s17 + $0x600] ss:$16 sps:$4 sm:$0xff]  }
 0x4d5   : > { %4167 = vmatprep.subr.bf16.mxu1 %v15351_v9  ;;  %v15364_v24 = vld [vmem:[%s17586_s17 + $0x5e0] ss:$16 sps:$4 sm:$0xff]   ;;  %v15402_v8 = vld [vmem:[%s17586_s17 + $0x524] ss:$16 sps:$4 sm:$0xff]  }
 0x4d6   : > { %v17775_v43 = vadd.f32 %v16882_v42, %v3212_v35  ;;  %v3214_v44 = vadd.f32 %v3213_v40, %v3171_v36  ;;  %v3226_v45 = vadd.f32 %v3225_v39, %v17770_v38  ;;  %4168 = vmatpush1.bf16.msra.mxu1 %v15349_v12  ;;  %v15367_v25 = vld [vmem:[%s17586_s17 + $0x7e0] ss:$16 sps:$4 sm:$0xff]   ;;  %v15405_v9 = vld [vmem:[%s17586_s17 + $0x724] ss:$16 sps:$4 sm:$0xff]  }
 0x4d7   : > { %4125 = vmatpush1.bf16.msra.mxu0 %v15346_v10  ;;  %4169 = vmatprep.subr.bf16.mxu1 %v15357_v15  ;;  %v15394_v6 = vld [vmem:[%s17586_s17 + $0x540] ss:$16 sps:$4 sm:$0xff]   ;;  %v15411_v15 = vld [vmem:[%s17586_s17 + $0x704] ss:$16 sps:$4 sm:$0xff]  }
 0x4d8   : > { %v17778_v47 = vadd.f32 %v16883_v46, %v3214_v44  ;;  %3227 = vadd.xlane.f32.xlu0 %v3226_v45  ;;  %v3230_v48 = vadd.f32 %v3229_v41, %v17775_v43  ;;  %4126 = vmatprep.subr.bf16.mxu0 %v15354_v14  ;;  %v15400_v10 = vld [vmem:[%s17586_s17 + $0x520] ss:$16 sps:$4 sm:$0xff]   ;;  %v15408_v14 = vld [vmem:[%s17586_s17 + $0x504] ss:$16 sps:$4 sm:$0xff]  }
 0x4d9   : > { %v15403_v12 = vld [vmem:[%s17586_s17 + $0x720] ss:$16 sps:$4 sm:$0xff]  }
 0x4da   : > { %v3231_v51 = vadd.f32 %v3230_v48, %v17778_v47  ;;  %4170 = vmatpush1.bf16.msra.mxu1 %v15355_v17  ;;  %v15409_v17 = vld [vmem:[%s17586_s17 + $0x700] ss:$16 sps:$4 sm:$0xff]  }
 0x4db   : > { %4127 = vmatpush1.bf16.msra.mxu0 %v15352_v16  ;;  %4171 = vmatprep.subr.bf16.mxu1 %v15363_v19  ;;  %v15406_v16 = vld [vmem:[%s17586_s17 + $0x500] ss:$16 sps:$4 sm:$0xff]   ;;  %v15417_v19 = vld [vmem:[%s17586_s17 + $0x6ec] ss:$16 sps:$4 sm:$0xff]  }
 0x4dc   : > { %3232 = vadd.xlane.f32.xlu0 %v3231_v51  ;;  %4128 = vmatprep.subr.bf16.mxu0 %v15360_v18  ;;  %v15414_v18 = vld [vmem:[%s17586_s17 + $0x4ec] ss:$16 sps:$4 sm:$0xff]  }
 0x4de   : > { %4172 = vmatpush1.bf16.msra.mxu1 %v15361_v21 }
 0x4df   : > { %4129 = vmatpush1.bf16.msra.mxu0 %v15358_v20  ;;  %4173 = vmatprep.subr.bf16.mxu1 %v15369_v23 }
 0x4e0   : > { %4130 = vmatprep.subr.bf16.mxu0 %v15366_v22 }
 0x4e2   : > { %4174 = vmatpush2.bf16.msra.mxu1 %v15367_v25 }
 0x4e3   : > { %4131 = vmatpush2.bf16.msra.mxu0 %v15364_v24  ;;  %4175 = vmatprep.subr.bf16.mxu1 %v15375_v54 }
 0x4e4   : > { %4132 = vmatprep.subr.bf16.mxu0 %v15372_v53 }
 0x4e6   : > { %4176 = vmatpush2.bf16.msra.mxu1 %v15373_v57 }
 0x4e7   : > { %4133 = vmatpush2.bf16.msra.mxu0 %v15370_v55  ;;  %4177 = vmatprep.subr.bf16.mxu1 %v15381_v50 }
 0x4e8   : > { %4134 = vmatprep.subr.bf16.mxu0 %v15378_v49 }
 0x4ea   : > { %4178 = vmatpush2.bf16.msra.mxu1 %v15379_v59 }
 0x4eb   : > { %4135 = vmatpush2.bf16.msra.mxu0 %v15376_v58  ;;  %4179 = vmatprep.subr.bf16.mxu1 %v15387_v63 }
 0x4ec   : > { %4136 = vmatprep.subr.bf16.mxu0 %v15384_v61 }
 0x4ee   : > { %4180 = vmatpush2.bf16.msra.mxu1 %v15385_v62 }
 0x4ef   : > { %4137 = vmatpush2.bf16.msra.mxu0 %v15382_v60  ;;  %4181 = vmatprep.subr.bf16.mxu1 %v15393_v1 }
 0x4f0   : > { %4138 = vmatprep.subr.bf16.mxu0 %v15390_v0 }
 0x4f2   : > { %4182 = vmatpush2.bf16.msra.mxu1 %v15391_v3 }
 0x4f3   : > { %4139 = vmatpush2.bf16.msra.mxu0 %v15388_v2  ;;  %4183 = vmatprep.subr.bf16.mxu1 %v15399_v5  ;;  %v15415_v5 = vld [vmem:[%s17586_s17 + $0x6e8] ss:$16 sps:$4 sm:$0xff]  }
 0x4f4   : > { %4140 = vmatprep.subr.bf16.mxu0 %v15396_v4  ;;  %v15412_v4 = vld [vmem:[%s17586_s17 + $0x4e8] ss:$16 sps:$4 sm:$0xff]  }
 0x4f6   : > { %4184 = vmatpush2.bf16.msra.mxu1 %v15397_v7 }
 0x4f7   : > { %4141 = vmatpush2.bf16.msra.mxu0 %v15394_v6  ;;  %4185 = vmatprep.subr.bf16.mxu1 %v15405_v9  ;;  %v15423_v9 = vld [vmem:[%s17586_s17 + $0x6cc] ss:$16 sps:$4 sm:$0xff]  }
 0x4f8   : > { %4142 = vmatprep.subr.bf16.mxu0 %v15402_v8  ;;  %v15420_v8 = vld [vmem:[%s17586_s17 + $0x4cc] ss:$16 sps:$4 sm:$0xff]  }
 0x4fa   : > { %4186 = vmatpush2.bf16.msra.mxu1 %v15403_v12  ;;  %v15421_v12 = vld [vmem:[%s17586_s17 + $0x6c8] ss:$16 sps:$4 sm:$0xff]  }
 0x4fb   : > { %4143 = vmatpush2.bf16.msra.mxu0 %v15400_v10  ;;  %4187 = vmatprep.subr.bf16.mxu1 %v15411_v15  ;;  %v15418_v10 = vld [vmem:[%s17586_s17 + $0x4c8] ss:$16 sps:$4 sm:$0xff]   ;;  %v15429_v15 = vld [vmem:[%s17586_s17 + $0x6ac] ss:$16 sps:$4 sm:$0xff]  }
 0x4fc   : > { %4144 = vmatprep.subr.bf16.mxu0 %v15408_v14  ;;  %v15426_v14 = vld [vmem:[%s17586_s17 + $0x4ac] ss:$16 sps:$4 sm:$0xff]  }
 0x4fe   : > { %4188 = vmatpush2.bf16.msra.mxu1 %v15409_v17  ;;  %v15427_v17 = vld [vmem:[%s17586_s17 + $0x6a8] ss:$16 sps:$4 sm:$0xff]  }
 0x4ff   : > { %4145 = vmatpush2.bf16.msra.mxu0 %v15406_v16  ;;  %4243 = vmatprep.subr.bf16.mxu1 %v15417_v19  ;;  %v15424_v16 = vld [vmem:[%s17586_s17 + $0x4a8] ss:$16 sps:$4 sm:$0xff]   ;;  %v15435_v19 = vld [vmem:[%s17586_s17 + $0x68c] ss:$16 sps:$4 sm:$0xff]  }
 0x500   : > { %4200 = vmatprep.subr.bf16.mxu0 %v15414_v18  ;;  %v15432_v18 = vld [vmem:[%s17586_s17 + $0x48c] ss:$16 sps:$4 sm:$0xff]  }
 0x561   : > { %v3228_v26 = vpop.xlane.xlu0 %3227 }
 0x562   : > { %v3235_v28 = vmul.f32 0.001953125, %v3228_v26  ;;  %v17889_v26 = vsub.s32 3, %v17743_v52 }
 0x564   : > { %v17819_v30 = vsub.f32 %v17758_v11, %v3235_v28  ;;  %v17822_v31 = vsub.f32 %v17760_v13, %v3235_v28  ;;  %v17825_v32 = vsub.f32 %v17766_v29, %v3235_v28  ;;  %v17828_v35 = vsub.f32 %v17770_v38, %v3235_v28 }
 0x565   : > { %v3233_v34 = vpop.xlane.xlu0 %3232 }
 0x566   : > { %v3236_v36 = vmul.f32 0.001953125, %v3233_v34  ;;  %v3245_v37 = vmul.f32 %v17819_v30, %v17819_v30  ;;  %v3246_v39 = vmul.f32 %v17822_v31, %v17822_v31  ;;  %v3247_v11 = vmul.f32 %v17825_v32, %v17825_v32 }
 0x567   : > { %v3248_v41 = vmul.f32 %v17828_v35, %v17828_v35  ;;  %v17892_v34 = vsub.s32 4, %v17743_v52 }
 0x568   : > { %v17837_v13 = vsub.f32 %v17768_v33, %v3236_v36  ;;  %v17840_v29 = vsub.f32 %v17764_v27, %v3236_v36  ;;  %v3253_v40 = vadd.f32 %v3246_v39, %v3245_v37  ;;  %v17843_v38 = vsub.f32 %v17775_v43, %v3236_v36  ;;  %v17896_v37 = vld [vmem:[%s17745_s28 + $0x8] sm:$0xff] }
 0x569   : > { %v17848_v44 = vsub.f32 %v17778_v47, %v3236_v36  ;;  %v3284_v39 = vrot.slane %v17896_v37, %v17889_v26 }
 0x56a   : > { %v3254_v42 = vadd.f32 %v3253_v40, %v3247_v11  ;;  %v3249_v33 = vmul.f32 %v17837_v13, %v17837_v13  ;;  %v3250_v27 = vmul.f32 %v17840_v29, %v17840_v29  ;;  %v3251_v43 = vmul.f32 %v17843_v38, %v17843_v38  ;;  %v17902_v40 = vld [vmem:[%s17745_s28 + $0x18] sm:$0xff] }
 0x56b   : > { %v3252_v47 = vmul.f32 %v17848_v44, %v17848_v44 }
 0x56c   : > { %v3255_v45 = vadd.f32 %v3254_v42, %v3248_v41  ;;  %v3258_v46 = vadd.f32 %v3250_v27, %v3249_v33  ;;  %v3292_v41 = vrot.slane %v17902_v40, %v17889_v26  ;;  %v17908_v33 = vld [vmem:[%s17745_s28] sm:$0xff] }
 0x56d   : > { %v3280_v27 = vrot.slane %v17908_v33, %v17889_v26 }
 0x56e   : > { %3256 = vadd.xlane.f32.xlu1 %v3255_v45  ;;  %v3259_v48 = vadd.f32 %v3258_v46, %v3251_v43  ;;  %v17914_v45 = vld [vmem:[%s17745_s28 + $0x10] sm:$0xff]  ;;  %v3308_v46 = vrot.slane %v17896_v37, %v17892_v34 }
 0x56f   : > { %v3288_v43 = vrot.slane %v17914_v45, %v17889_v26 }
 0x570   : > { %v3260_v51 = vadd.f32 %v3259_v48, %v3252_v47  ;;  %v3316_v47 = vrot.slane %v17902_v40, %v17892_v34  ;;  %v3312_v48 = vrot.slane %v17914_v45, %v17892_v34 }
 0x572   : > { %3261 = vadd.xlane.f32.xlu1 %v3260_v51 }
 0x5f7   : > { %v3257_v20 = vpop.xlane.xlu1 %3256 }
 0x5f8   : > { %v3263_v21 = vmul.f32 0.001953125, %v3257_v20  ;;  %v15430_v20 = vld [vmem:[%s17586_s17 + $0x488] ss:$16 sps:$4 sm:$0xff]  }
 0x5fa   : > { %v3265_v22 = vadd.f32 1e-05, %v3263_v21  ;;  %v15433_v21 = vld [vmem:[%s17586_s17 + $0x688] ss:$16 sps:$4 sm:$0xff]  }
 0x5fb   : > { %v3262_v23 = vpop.xlane.xlu1 %3261 }
 0x5fc   : > { %16852 = vrsqrt.f32 %v3265_v22  ;;  %v3264_v24 = vmul.f32 0.001953125, %v3262_v23  ;;  %v15438_v22 = vld [vmem:[%s17586_s17 + $0x46c] ss:$16 sps:$4 sm:$0xff]  }
 0x5fd   : > { %v15441_v23 = vld [vmem:[%s17586_s17 + $0x66c] ss:$16 sps:$4 sm:$0xff]  }
 0x5fe   : > { %v3266_v25 = vadd.f32 1e-05, %v3264_v24  ;;  %v15436_v24 = vld [vmem:[%s17586_s17 + $0x468] ss:$16 sps:$4 sm:$0xff]  }
 0x600   : > { %16854 = vrsqrt.f32 %v3266_v25  ;;  %v15439_v25 = vld [vmem:[%s17586_s17 + $0x668] ss:$16 sps:$4 sm:$0xff]  }
 0x609   : > { %v16853_v28 = vpop.eup %16852 }
 0x60a   : > { %v3270_v36 = vmul.f32 %v16853_v28, %v17822_v31  ;;  %v3272_v11 = vmul.f32 %v16853_v28, %v17828_v35  ;;  %v3269_v42 = vmul.f32 %v16853_v28, %v17819_v30  ;;  %v3271_v31 = vmul.f32 %v16853_v28, %v17825_v32  ;;  %v15444_v28 = vld [vmem:[%s17586_s17 + $0x44c] ss:$16 sps:$4 sm:$0xff]  }
 0x60b   : > { %v3304_v30 = vrot.slane %v17908_v33, %v17892_v34 }
 0x60c   : > { %v3294_v51 = vmul.f32 %v3284_v39, %v3270_v36  ;;  %v3296_v54 = vmul.f32 %v3292_v41, %v3272_v11  ;;  %v3293_v57 = vmul.f32 %v3280_v27, %v3269_v42  ;;  %v3295_v50 = vmul.f32 %v3288_v43, %v3271_v31  ;;  %v15447_v36 = vld [vmem:[%s17586_s17 + $0x64c] ss:$16 sps:$4 sm:$0xff]   ;;  %v15445_v11 = vld [vmem:[%s17586_s17 + $0x648] ss:$16 sps:$4 sm:$0xff]  }
 0x60d   : > { %v16855_v35 = vpop.eup %16854  ;;  %v15453_v42 = vld [vmem:[%s17586_s17 + $0x62c] ss:$16 sps:$4 sm:$0xff]   ;;  %v15451_v31 = vld [vmem:[%s17586_s17 + $0x628] ss:$16 sps:$4 sm:$0xff]  }
 0x60e   : > { %v3274_v32 = vmul.f32 %v16855_v35, %v17840_v29  ;;  %v3276_v53 = vmul.f32 %v16855_v35, %v17848_v44  ;;  %v3273_v55 = vmul.f32 %v16855_v35, %v17837_v13  ;;  %v3275_v49 = vmul.f32 %v16855_v35, %v17843_v38  ;;  %v15459_v35 = vld [vmem:[%s17586_s17 + $0x60c] ss:$16 sps:$4 sm:$0xff]  }
 0x60f   : > { %v17930_v62 = vadd.f32 %v3308_v46, %v3294_v51  ;;  %v17934_v44 = vadd.f32 %v3316_v47, %v3296_v54  ;;  %v17938_v13 = vadd.f32 %v3304_v30, %v3293_v57  ;;  %v17942_v0 = vadd.f32 %v3312_v48, %v3295_v50  ;;  %v15463_v51 = vld [vmem:[%s17586_s17 + $0x7e8] ss:$16 sps:$4 sm:$0xff]   ;;  %v15471_v54 = vld [vmem:[%s17586_s17 + $0x7cc] ss:$16 sps:$4 sm:$0xff]  }
 0x610   : > { %v3298_v58 = vmul.f32 %v3284_v39, %v3274_v32  ;;  %v3300_v59 = vmul.f32 %v3292_v41, %v3276_v53  ;;  %v3297_v60 = vmul.f32 %v3280_v27, %v3273_v55  ;;  %v3299_v61 = vmul.f32 %v3288_v43, %v3275_v49  ;;  %v15442_v39 = vld [vmem:[%s17586_s17 + $0x448] ss:$16 sps:$4 sm:$0xff]   ;;  %v15450_v41 = vld [vmem:[%s17586_s17 + $0x42c] ss:$16 sps:$4 sm:$0xff]  }
 0x611   : > { %v15448_v27 = vld [vmem:[%s17586_s17 + $0x428] ss:$16 sps:$4 sm:$0xff]   ;;  %v15456_v43 = vld [vmem:[%s17586_s17 + $0x40c] ss:$16 sps:$4 sm:$0xff]  }
 0x612   : > { %v17932_v29 = vadd.f32 %v3308_v46, %v3298_v58  ;;  %v17936_v63 = vadd.f32 %v3316_v47, %v3300_v59  ;;  %v17940_v38 = vadd.f32 %v3304_v30, %v3297_v60  ;;  %v17944_v1 = vadd.f32 %v3312_v48, %v3299_v61  ;;  %v15454_v46 = vld [vmem:[%s17586_s17 + $0x408] ss:$16 sps:$4 sm:$0xff]   ;;  %v15462_v30 = vld [vmem:[%s17586_s17 + $0x5ec] ss:$16 sps:$4 sm:$0xff]  }
 0x613   : > { %v15457_v47 = vld [vmem:[%s17586_s17 + $0x608] ss:$16 sps:$4 sm:$0xff]   ;;  %v15465_v48 = vld [vmem:[%s17586_s17 + $0x7ec] ss:$16 sps:$4 sm:$0xff]  }
 0x614   : > { %v3455_v2 = vpack.c.bf16 %v17932_v29, %v17930_v62  ;;  %v3457_v3 = vpack.c.bf16 %v17936_v63, %v17934_v44  ;;  %v17954_v6 = vpack.c.bf16 %v17940_v38, %v17938_v13  ;;  %v17958_v7 = vpack.c.bf16 %v17944_v1, %v17942_v0  ;;  %v15460_v32 = vld [vmem:[%s17586_s17 + $0x5e8] ss:$16 sps:$4 sm:$0xff]   ;;  %v15468_v53 = vld [vmem:[%s17586_s17 + $0x5cc] ss:$16 sps:$4 sm:$0xff]  }
 0x615   : > { %v15466_v55 = vld [vmem:[%s17586_s17 + $0x5c8] ss:$16 sps:$4 sm:$0xff]   ;;  %v15474_v49 = vld [vmem:[%s17586_s17 + $0x5ac] ss:$16 sps:$4 sm:$0xff]  }
 0x616   : > { %4146 = vmatprep.mubr.bf16.mxu0 %v3455_v2  ;;  %4189 = vmatprep.mubr.bf16.mxu1 %v3457_v3  ;;  %v15469_v57 = vld [vmem:[%s17586_s17 + $0x7c8] ss:$16 sps:$4 sm:$0xff]   ;;  %v15477_v50 = vld [vmem:[%s17586_s17 + $0x7ac] ss:$16 sps:$4 sm:$0xff]  }
 0x617   : > { %4147 = vmatmul.mubr.bf16.vlgmr.msra.gmra.mxu0 %v17954_v6  ;;  %4190 = vmatmul.mubr.bf16.vlgmr.msra.gmra.mxu1 %v17958_v7  ;;  %v15472_v58 = vld [vmem:[%s17586_s17 + $0x5a8] ss:$16 sps:$4 sm:$0xff]   ;;  %v15480_v60 = vld [vmem:[%s17586_s17 + $0x58c] ss:$16 sps:$4 sm:$0xff]  }
 0x618   : > { %4201 = vmatpush1.bf16.msra.mxu0 %v15412_v4  ;;  %4244 = vmatpush1.bf16.msra.mxu1 %v15415_v5  ;;  %v15475_v59 = vld [vmem:[%s17586_s17 + $0x7a8] ss:$16 sps:$4 sm:$0xff]   ;;  %v15483_v61 = vld [vmem:[%s17586_s17 + $0x78c] ss:$16 sps:$4 sm:$0xff]  }
 0x619   : > { %4232 = vmatprep.mubr.bf16.mxu0 %v3455_v2  ;;  %4275 = vmatprep.mubr.bf16.mxu1 %v3457_v3  ;;  %v15478_v2 = vld [vmem:[%s17586_s17 + $0x588] ss:$16 sps:$4 sm:$0xff]   ;;  %v15486_v4 = vld [vmem:[%s17586_s17 + $0x56c] ss:$16 sps:$4 sm:$0xff]  }
 0x61a   : > { %4202 = vmatprep.subr.bf16.mxu0 %v15420_v8  ;;  %4245 = vmatprep.subr.bf16.mxu1 %v15423_v9  ;;  %v15481_v3 = vld [vmem:[%s17586_s17 + $0x788] ss:$16 sps:$4 sm:$0xff]   ;;  %v15489_v5 = vld [vmem:[%s17586_s17 + $0x76c] ss:$16 sps:$4 sm:$0xff]  }
 0x61b   : > { %v15484_v8 = vld [vmem:[%s17586_s17 + $0x568] ss:$16 sps:$4 sm:$0xff]  }
 0x61c   : > { %4203 = vmatpush1.bf16.msra.mxu0 %v15418_v10  ;;  %4246 = vmatpush1.bf16.msra.mxu1 %v15421_v12  ;;  %v15487_v9 = vld [vmem:[%s17586_s17 + $0x768] ss:$16 sps:$4 sm:$0xff]   ;;  %v15492_v10 = vld [vmem:[%s17586_s17 + $0x54c] ss:$16 sps:$4 sm:$0xff]  }
 0x61d   : > { %4204 = vmatprep.subr.bf16.mxu0 %v15426_v14  ;;  %4247 = vmatprep.subr.bf16.mxu1 %v15429_v15  ;;  %v15495_v12 = vld [vmem:[%s17586_s17 + $0x74c] ss:$16 sps:$4 sm:$0xff]   ;;  %v15490_v14 = vld [vmem:[%s17586_s17 + $0x548] ss:$16 sps:$4 sm:$0xff]  }
 0x61e   : > { %v15493_v15 = vld [vmem:[%s17586_s17 + $0x748] ss:$16 sps:$4 sm:$0xff]  }
 0x620   : > { %4205 = vmatpush1.bf16.msra.mxu0 %v15424_v16  ;;  %4248 = vmatpush1.bf16.msra.mxu1 %v15427_v17  ;;  %v15498_v16 = vld [vmem:[%s17586_s17 + $0x52c] ss:$16 sps:$4 sm:$0xff]  }
 0x621   : > { %4206 = vmatprep.subr.bf16.mxu0 %v15432_v18  ;;  %4249 = vmatprep.subr.bf16.mxu1 %v15435_v19  ;;  %v15501_v17 = vld [vmem:[%s17586_s17 + $0x72c] ss:$16 sps:$4 sm:$0xff]   ;;  %v15496_v18 = vld [vmem:[%s17586_s17 + $0x528] ss:$16 sps:$4 sm:$0xff]  }
 0x622   : > { %v15499_v19 = vld [vmem:[%s17586_s17 + $0x728] ss:$16 sps:$4 sm:$0xff]  }
 0x624   : > { %4207 = vmatpush1.bf16.msra.mxu0 %v15430_v20  ;;  %4250 = vmatpush1.bf16.msra.mxu1 %v15433_v21  ;;  %v15504_v20 = vld [vmem:[%s17586_s17 + $0x50c] ss:$16 sps:$4 sm:$0xff]  }
 0x625   : > { %4208 = vmatprep.subr.bf16.mxu0 %v15438_v22  ;;  %4251 = vmatprep.subr.bf16.mxu1 %v15441_v23  ;;  %v15507_v21 = vld [vmem:[%s17586_s17 + $0x70c] ss:$16 sps:$4 sm:$0xff]   ;;  %v15502_v22 = vld [vmem:[%s17586_s17 + $0x508] ss:$16 sps:$4 sm:$0xff]  }
 0x626   : > { %v15505_v23 = vld [vmem:[%s17586_s17 + $0x708] ss:$16 sps:$4 sm:$0xff]  }
 0x628   : > { %4209 = vmatpush1.bf16.msra.mxu0 %v15436_v24  ;;  %4252 = vmatpush1.bf16.msra.mxu1 %v15439_v25  ;;  %v15510_v24 = vld [vmem:[%s17586_s17 + $0x8e4] ss:$16 sps:$4 sm:$0xff]   ;;  %v15508_v25 = vld [vmem:[%s17586_s17 + $0x8e0] ss:$16 sps:$4 sm:$0xff]  }
 0x629   : > { %4210 = vmatprep.subr.bf16.mxu0 %v15444_v28  ;;  %4253 = vmatprep.subr.bf16.mxu1 %v15447_v36  ;;  %v15513_v28 = vld [vmem:[%s17586_s17 + $0x8c4] ss:$16 sps:$4 sm:$0xff]   ;;  %v15511_v36 = vld [vmem:[%s17586_s17 + $0x8c0] ss:$16 sps:$4 sm:$0xff]  }
 0x62c   : > { %4211 = vmatpush1.bf16.msra.mxu0 %v15442_v39  ;;  %4254 = vmatpush1.bf16.msra.mxu1 %v15445_v11  ;;  %v15516_v39 = vld [vmem:[%s17586_s17 + $0x8a4] ss:$16 sps:$4 sm:$0xff]   ;;  %v15514_v11 = vld [vmem:[%s17586_s17 + $0x8a0] ss:$16 sps:$4 sm:$0xff]  }
 0x62d   : > { %4212 = vmatprep.subr.bf16.mxu0 %v15450_v41  ;;  %4255 = vmatprep.subr.bf16.mxu1 %v15453_v42  ;;  %v15519_v41 = vld [vmem:[%s17586_s17 + $0x884] ss:$16 sps:$4 sm:$0xff]   ;;  %v15517_v42 = vld [vmem:[%s17586_s17 + $0x880] ss:$16 sps:$4 sm:$0xff]  }
 0x630   : > { %4213 = vmatpush1.bf16.msra.mxu0 %v15448_v27  ;;  %4256 = vmatpush1.bf16.msra.mxu1 %v15451_v31  ;;  %v15556_v27 = vld [vmem:[%s17586_s17 + $0xae0] ss:$16 sps:$4 sm:$0xff]   ;;  %v15558_v31 = vld [vmem:[%s17586_s17 + $0xae4] ss:$16 sps:$4 sm:$0xff]  }
 0x631   : > { %4214 = vmatprep.subr.bf16.mxu0 %v15456_v43  ;;  %4257 = vmatprep.subr.bf16.mxu1 %v15459_v35  ;;  %v15525_v43 = vld [vmem:[%s17586_s17 + $0x844] ss:$16 sps:$4 sm:$0xff]   ;;  %v15523_v35 = vld [vmem:[%s17586_s17 + $0x840] ss:$16 sps:$4 sm:$0xff]  }
 0x634   : > { %4215 = vmatpush1.bf16.msra.mxu0 %v15454_v46  ;;  %4258 = vmatpush1.bf16.msra.mxu1 %v15457_v47  ;;  %v15562_v46 = vld [vmem:[%s17586_s17 + $0xac0] ss:$16 sps:$4 sm:$0xff]   ;;  %v15564_v47 = vld [vmem:[%s17586_s17 + $0xac4] ss:$16 sps:$4 sm:$0xff]  }
 0x635   : > { %4216 = vmatprep.subr.bf16.mxu0 %v15462_v30  ;;  %4259 = vmatprep.subr.bf16.mxu1 %v15465_v48  ;;  %v15528_v30 = vld [vmem:[%s17586_s17 + $0x824] ss:$16 sps:$4 sm:$0xff]   ;;  %v15526_v48 = vld [vmem:[%s17586_s17 + $0x820] ss:$16 sps:$4 sm:$0xff]  }
 0x638   : > { %4217 = vmatpush2.bf16.msra.mxu0 %v15460_v32  ;;  %4260 = vmatpush2.bf16.msra.mxu1 %v15463_v51  ;;  %v15568_v32 = vld [vmem:[%s17586_s17 + $0xaa0] ss:$16 sps:$4 sm:$0xff]   ;;  %v15570_v51 = vld [vmem:[%s17586_s17 + $0xaa4] ss:$16 sps:$4 sm:$0xff]  }
 0x639   : > { %4218 = vmatprep.subr.bf16.mxu0 %v15468_v53  ;;  %4261 = vmatprep.subr.bf16.mxu1 %v15471_v54  ;;  %v15531_v53 = vld [vmem:[%s17586_s17 + $0x804] ss:$16 sps:$4 sm:$0xff]   ;;  %v15529_v54 = vld [vmem:[%s17586_s17 + $0x800] ss:$16 sps:$4 sm:$0xff]  }
 0x63c   : > { %4219 = vmatpush2.bf16.msra.mxu0 %v15466_v55  ;;  %4262 = vmatpush2.bf16.msra.mxu1 %v15469_v57  ;;  %v15574_v55 = vld [vmem:[%s17586_s17 + $0xa80] ss:$16 sps:$4 sm:$0xff]   ;;  %v15576_v57 = vld [vmem:[%s17586_s17 + $0xa84] ss:$16 sps:$4 sm:$0xff]  }
 0x63d   : > { %4220 = vmatprep.subr.bf16.mxu0 %v15474_v49  ;;  %4263 = vmatprep.subr.bf16.mxu1 %v15477_v50  ;;  %v15534_v49 = vld [vmem:[%s17586_s17 + $0x9e4] ss:$16 sps:$4 sm:$0xff]   ;;  %v15532_v50 = vld [vmem:[%s17586_s17 + $0x9e0] ss:$16 sps:$4 sm:$0xff]  }
 0x640   : > { %4221 = vmatpush2.bf16.msra.mxu0 %v15472_v58  ;;  %4264 = vmatpush2.bf16.msra.mxu1 %v15475_v59  ;;  %v15580_v58 = vld [vmem:[%s17586_s17 + $0xa60] ss:$16 sps:$4 sm:$0xff]   ;;  %v15582_v59 = vld [vmem:[%s17586_s17 + $0xa64] ss:$16 sps:$4 sm:$0xff]  }
 0x641   : > { %4222 = vmatprep.subr.bf16.mxu0 %v15480_v60  ;;  %4265 = vmatprep.subr.bf16.mxu1 %v15483_v61  ;;  %v15537_v60 = vld [vmem:[%s17586_s17 + $0x9c4] ss:$16 sps:$4 sm:$0xff]   ;;  %v15535_v61 = vld [vmem:[%s17586_s17 + $0x9c0] ss:$16 sps:$4 sm:$0xff]  }
 0x644   : > { %4223 = vmatpush2.bf16.msra.mxu0 %v15478_v2  ;;  %4266 = vmatpush2.bf16.msra.mxu1 %v15481_v3  ;;  %v15586_v2 = vld [vmem:[%s17586_s17 + $0xa40] ss:$16 sps:$4 sm:$0xff]   ;;  %v15588_v3 = vld [vmem:[%s17586_s17 + $0xa44] ss:$16 sps:$4 sm:$0xff]  }
 0x645   : > { %4224 = vmatprep.subr.bf16.mxu0 %v15486_v4  ;;  %4267 = vmatprep.subr.bf16.mxu1 %v15489_v5  ;;  %v15540_v4 = vld [vmem:[%s17586_s17 + $0x9a4] ss:$16 sps:$4 sm:$0xff]   ;;  %v15538_v5 = vld [vmem:[%s17586_s17 + $0x9a0] ss:$16 sps:$4 sm:$0xff]  }
 0x648   : > { %4225 = vmatpush2.bf16.msra.mxu0 %v15484_v8  ;;  %4268 = vmatpush2.bf16.msra.mxu1 %v15487_v9  ;;  %v15592_v8 = vld [vmem:[%s17586_s17 + $0xa20] ss:$16 sps:$4 sm:$0xff]   ;;  %v15594_v9 = vld [vmem:[%s17586_s17 + $0xa24] ss:$16 sps:$4 sm:$0xff]  }
 0x649   : > { %4226 = vmatprep.subr.bf16.mxu0 %v15492_v10  ;;  %4269 = vmatprep.subr.bf16.mxu1 %v15495_v12  ;;  %v15543_v10 = vld [vmem:[%s17586_s17 + $0x984] ss:$16 sps:$4 sm:$0xff]   ;;  %v15541_v12 = vld [vmem:[%s17586_s17 + $0x980] ss:$16 sps:$4 sm:$0xff]  }
 0x64c   : > { %4227 = vmatpush2.bf16.msra.mxu0 %v15490_v14  ;;  %4270 = vmatpush2.bf16.msra.mxu1 %v15493_v15  ;;  %v15598_v14 = vld [vmem:[%s17586_s17 + $0xa00] ss:$16 sps:$4 sm:$0xff]   ;;  %v15600_v15 = vld [vmem:[%s17586_s17 + $0xa04] ss:$16 sps:$4 sm:$0xff]  }
 0x64d   : > { %4228 = vmatprep.subr.bf16.mxu0 %v15498_v16  ;;  %4271 = vmatprep.subr.bf16.mxu1 %v15501_v17  ;;  %v15546_v16 = vld [vmem:[%s17586_s17 + $0x964] ss:$16 sps:$4 sm:$0xff]   ;;  %v15544_v17 = vld [vmem:[%s17586_s17 + $0x960] ss:$16 sps:$4 sm:$0xff]  }
 0x650   : > { %4229 = vmatpush2.bf16.msra.mxu0 %v15496_v18  ;;  %4272 = vmatpush2.bf16.msra.mxu1 %v15499_v19  ;;  %v15604_v18 = vld [vmem:[%s17586_s17 + $0xbe0] ss:$16 sps:$4 sm:$0xff]   ;;  %v15606_v19 = vld [vmem:[%s17586_s17 + $0xbe4] ss:$16 sps:$4 sm:$0xff]  }
 0x651   : > { %4230 = vmatprep.subr.bf16.mxu0 %v15504_v20  ;;  %4273 = vmatprep.subr.bf16.mxu1 %v15507_v21  ;;  %v15549_v20 = vld [vmem:[%s17586_s17 + $0x944] ss:$16 sps:$4 sm:$0xff]   ;;  %v15547_v21 = vld [vmem:[%s17586_s17 + $0x940] ss:$16 sps:$4 sm:$0xff]  }
 0x654   : > { %4231 = vmatpush2.bf16.msra.mxu0 %v15502_v22  ;;  %4274 = vmatpush2.bf16.msra.mxu1 %v15505_v23  ;;  %v15610_v22 = vld [vmem:[%s17586_s17 + $0xbc0] ss:$16 sps:$4 sm:$0xff]   ;;  %v15612_v23 = vld [vmem:[%s17586_s17 + $0xbc4] ss:$16 sps:$4 sm:$0xff]  }
 0x655   : > { %5083 = vmatprep.subr.bf16.mxu0 %v15510_v24  ;;  %5126 = vmatprep.subr.bf16.mxu1 %v15558_v31  ;;  %v15552_v24 = vld [vmem:[%s17586_s17 + $0x924] ss:$16 sps:$4 sm:$0xff]  }
 0x656   : > { %v15636_v31 = vld [vmem:[%s17586_s17 + $0xb44] ss:$16 sps:$4 sm:$0xff]  }
 0x657   : > { %4233 = vmatmul.mubr.bf16.vlgmr.msra.gmra.mxu0 %v17954_v6  ;;  %4276 = vmatmul.mubr.bf16.vlgmr.msra.gmra.mxu1 %v17958_v7  ;;  %v15522_v6 = vld [vmem:[%s17586_s17 + $0x864] ss:$16 sps:$4 sm:$0xff]   ;;  %v15520_v7 = vld [vmem:[%s17586_s17 + $0x860] ss:$16 sps:$4 sm:$0xff]  }
 0x658   : > { %5084 = vmatpush1.bf16.msra.mxu0 %v15508_v25  ;;  %5127 = vmatpush1.bf16.msra.mxu1 %v15556_v27  ;;  %v15550_v25 = vld [vmem:[%s17586_s17 + $0x920] ss:$16 sps:$4 sm:$0xff]   ;;  %v15630_v27 = vld [vmem:[%s17586_s17 + $0xb64] ss:$16 sps:$4 sm:$0xff]  }
 0x659   : > { %5085 = vmatprep.subr.bf16.mxu0 %v15513_v28  ;;  %5128 = vmatprep.subr.bf16.mxu1 %v15564_v47  ;;  %v15616_v28 = vld [vmem:[%s17586_s17 + $0xba0] ss:$16 sps:$4 sm:$0xff]   ;;  %v15648_v47 = vld [vmem:[%s17586_s17 + $0xb04] ss:$16 sps:$4 sm:$0xff]  }
 0x65c   : > { %5086 = vmatpush1.bf16.msra.mxu0 %v15511_v36  ;;  %5129 = vmatpush1.bf16.msra.mxu1 %v15562_v46  ;;  %v15618_v36 = vld [vmem:[%s17586_s17 + $0xba4] ss:$16 sps:$4 sm:$0xff]   ;;  %v15640_v46 = vld [vmem:[%s17586_s17 + $0xb20] ss:$16 sps:$4 sm:$0xff]  }
 0x65d   : > { %5087 = vmatprep.subr.bf16.mxu0 %v15516_v39  ;;  %5130 = vmatprep.subr.bf16.mxu1 %v15570_v51  ;;  %v15555_v39 = vld [vmem:[%s17586_s17 + $0x904] ss:$16 sps:$4 sm:$0xff]  }
 0x660   : > { %5088 = vmatpush1.bf16.msra.mxu0 %v15514_v11  ;;  %5131 = vmatpush1.bf16.msra.mxu1 %v15568_v32  ;;  %v15553_v11 = vld [vmem:[%s17586_s17 + $0x900] ss:$16 sps:$4 sm:$0xff]   ;;  %v18091_v32 = vsub.s32 1, %v17743_v52 }
 0x661   : > { %5089 = vmatprep.subr.bf16.mxu0 %v15519_v41  ;;  %5132 = vmatprep.subr.bf16.mxu1 %v15576_v57  ;;  %v15622_v41 = vld [vmem:[%s17586_s17 + $0xb80] ss:$16 sps:$4 sm:$0xff]  }
 0x662   : > { %v3465_v51 = vrot.slane %v17896_v37, %v18091_v32 }
 0x664   : > { %5090 = vmatpush1.bf16.msra.mxu0 %v15517_v42  ;;  %5133 = vmatpush1.bf16.msra.mxu1 %v15574_v55  ;;  %v15624_v42 = vld [vmem:[%s17586_s17 + $0xb84] ss:$16 sps:$4 sm:$0xff]  }
 0x665   : > { %5091 = vmatprep.subr.bf16.mxu0 %v15522_v6  ;;  %5134 = vmatprep.subr.bf16.mxu1 %v15582_v59  ;;  %v15561_v6 = vld [vmem:[%s17586_s17 + $0x8ec] ss:$16 sps:$4 sm:$0xff]  }
 0x668   : > { %5092 = vmatpush1.bf16.msra.mxu0 %v15520_v7  ;;  %5135 = vmatpush1.bf16.msra.mxu1 %v15580_v58  ;;  %v15628_v7 = vld [vmem:[%s17586_s17 + $0xb60] ss:$16 sps:$4 sm:$0xff]  }
 0x669   : > { %5093 = vmatprep.subr.bf16.mxu0 %v15525_v43  ;;  %5136 = vmatprep.subr.bf16.mxu1 %v15588_v3  ;;  %v15634_v43 = vld [vmem:[%s17586_s17 + $0xb40] ss:$16 sps:$4 sm:$0xff]  }
 0x66c   : > { %5094 = vmatpush1.bf16.msra.mxu0 %v15523_v35  ;;  %5137 = vmatpush1.bf16.msra.mxu1 %v15586_v2  ;;  %v15642_v35 = vld [vmem:[%s17586_s17 + $0xb24] ss:$16 sps:$4 sm:$0xff]  }
 0x66d   : > { %5095 = vmatprep.subr.bf16.mxu0 %v15528_v30  ;;  %5138 = vmatprep.subr.bf16.mxu1 %v15594_v9  ;;  %v15646_v30 = vld [vmem:[%s17586_s17 + $0xb00] ss:$16 sps:$4 sm:$0xff]  }
 0x670   : > { %5096 = vmatpush1.bf16.msra.mxu0 %v15526_v48  ;;  %5139 = vmatpush1.bf16.msra.mxu1 %v15592_v8  ;;  %v15654_v48 = vld [vmem:[%s17586_s17 + $0xaec] ss:$16 sps:$4 sm:$0xff]  }
 0x671   : > { %5097 = vmatprep.subr.bf16.mxu0 %v15531_v53  ;;  %5140 = vmatprep.subr.bf16.mxu1 %v15600_v15  ;;  %v3461_v53 = vrot.slane %v17908_v33, %v18091_v32 }
 0x674   : > { %5098 = vmatpush1.bf16.msra.mxu0 %v15529_v54  ;;  %5141 = vmatpush1.bf16.msra.mxu1 %v15598_v14 }
 0x675   : > { %5099 = vmatprep.subr.bf16.mxu0 %v15534_v49  ;;  %5142 = vmatprep.subr.bf16.mxu1 %v15606_v19 }
 0x678   : > { %5100 = vmatpush2.bf16.msra.mxu0 %v15532_v50  ;;  %5143 = vmatpush2.bf16.msra.mxu1 %v15604_v18  ;;  %v15559_v18 = vld [vmem:[%s17586_s17 + $0x8e8] ss:$16 sps:$4 sm:$0xff]  }
 0x679   : > { %5101 = vmatprep.subr.bf16.mxu0 %v15537_v60  ;;  %5144 = vmatprep.subr.bf16.mxu1 %v15612_v23  ;;  %v15571_v23 = vld [vmem:[%s17586_s17 + $0x8a8] ss:$16 sps:$4 sm:$0xff]  }
 0x67c   : > { %5102 = vmatpush2.bf16.msra.mxu0 %v15535_v61  ;;  %5145 = vmatpush2.bf16.msra.mxu1 %v15610_v22  ;;  %v15573_v22 = vld [vmem:[%s17586_s17 + $0x8ac] ss:$16 sps:$4 sm:$0xff]  }
 0x67d   : > { %5103 = vmatprep.subr.bf16.mxu0 %v15540_v4  ;;  %5146 = vmatprep.subr.bf16.mxu1 %v15618_v36  ;;  %v15583_v36 = vld [vmem:[%s17586_s17 + $0x868] ss:$16 sps:$4 sm:$0xff]  }
 0x680   : > { %5104 = vmatpush2.bf16.msra.mxu0 %v15538_v5  ;;  %5147 = vmatpush2.bf16.msra.mxu1 %v15616_v28  ;;  %v15585_v28 = vld [vmem:[%s17586_s17 + $0x86c] ss:$16 sps:$4 sm:$0xff]  }
 0x681   : > { %5105 = vmatprep.subr.bf16.mxu0 %v15543_v10  ;;  %5148 = vmatprep.subr.bf16.mxu1 %v15624_v42  ;;  %v15595_v42 = vld [vmem:[%s17586_s17 + $0x828] ss:$16 sps:$4 sm:$0xff]  }
 0x684   : > { %5106 = vmatpush2.bf16.msra.mxu0 %v15541_v12  ;;  %5149 = vmatpush2.bf16.msra.mxu1 %v15622_v41  ;;  %v15597_v41 = vld [vmem:[%s17586_s17 + $0x82c] ss:$16 sps:$4 sm:$0xff]  }
 0x685   : > { %5107 = vmatprep.subr.bf16.mxu0 %v15546_v16  ;;  %5150 = vmatprep.subr.bf16.mxu1 %v15630_v27  ;;  %v15609_v27 = vld [vmem:[%s17586_s17 + $0x9ec] ss:$16 sps:$4 sm:$0xff]  }
 0x688   : > { %5108 = vmatpush2.bf16.msra.mxu0 %v15544_v17  ;;  %5151 = vmatpush2.bf16.msra.mxu1 %v15628_v7  ;;  %v15601_v7 = vld [vmem:[%s17586_s17 + $0x808] ss:$16 sps:$4 sm:$0xff]  }
 0x689   : > { %5109 = vmatprep.subr.bf16.mxu0 %v15549_v20  ;;  %5152 = vmatprep.subr.bf16.mxu1 %v15636_v31  ;;  %v15567_v20 = vld [vmem:[%s17586_s17 + $0x8cc] ss:$16 sps:$4 sm:$0xff]   ;;  %v15607_v31 = vld [vmem:[%s17586_s17 + $0x9e8] ss:$16 sps:$4 sm:$0xff]  }
 0x68c   : > { %5110 = vmatpush2.bf16.msra.mxu0 %v15547_v21  ;;  %5153 = vmatpush2.bf16.msra.mxu1 %v15634_v43  ;;  %v15565_v21 = vld [vmem:[%s17586_s17 + $0x8c8] ss:$16 sps:$4 sm:$0xff]   ;;  %v15615_v43 = vld [vmem:[%s17586_s17 + $0x9cc] ss:$16 sps:$4 sm:$0xff]  }
 0x68d   : > { %5111 = vmatprep.subr.bf16.mxu0 %v15552_v24  ;;  %5154 = vmatprep.subr.bf16.mxu1 %v15642_v35  ;;  %v15579_v24 = vld [vmem:[%s17586_s17 + $0x88c] ss:$16 sps:$4 sm:$0xff]   ;;  %v15613_v35 = vld [vmem:[%s17586_s17 + $0x9c8] ss:$16 sps:$4 sm:$0xff]  }
 0x690   : > { %5112 = vmatpush2.bf16.msra.mxu0 %v15550_v25  ;;  %5155 = vmatpush2.bf16.msra.mxu1 %v15640_v46  ;;  %v15577_v25 = vld [vmem:[%s17586_s17 + $0x888] ss:$16 sps:$4 sm:$0xff]   ;;  %v15621_v46 = vld [vmem:[%s17586_s17 + $0x9ac] ss:$16 sps:$4 sm:$0xff]  }
 0x691   : > { %5113 = vmatprep.subr.bf16.mxu0 %v15555_v39  ;;  %5156 = vmatprep.subr.bf16.mxu1 %v15648_v47  ;;  %v15591_v39 = vld [vmem:[%s17586_s17 + $0x84c] ss:$16 sps:$4 sm:$0xff]   ;;  %v15619_v47 = vld [vmem:[%s17586_s17 + $0x9a8] ss:$16 sps:$4 sm:$0xff]  }
 0x694   : > { %5114 = vmatpush2.bf16.msra.mxu0 %v15553_v11  ;;  %5157 = vmatpush2.bf16.msra.mxu1 %v15646_v30  ;;  %v15589_v11 = vld [vmem:[%s17586_s17 + $0x848] ss:$16 sps:$4 sm:$0xff]   ;;  %v15627_v30 = vld [vmem:[%s17586_s17 + $0x98c] ss:$16 sps:$4 sm:$0xff]  }
 0x695   : > { %5169 = vmatprep.subr.bf16.mxu0 %v15561_v6  ;;  %5212 = vmatprep.subr.bf16.mxu1 %v15654_v48  ;;  %v15603_v6 = vld [vmem:[%s17586_s17 + $0x80c] ss:$16 sps:$4 sm:$0xff]   ;;  %v15625_v48 = vld [vmem:[%s17586_s17 + $0x988] ss:$16 sps:$4 sm:$0xff]  }
 0x6d7   : > { %v4148_v54 = vpop.f32.mrf.mxu0  ;;  %v4191_v55 = vpop.f32.mrf.mxu1 }
 0x6d8   : > { %v4149_v58 = vadd.f32 %v4148_v54, %v3461_v53  ;;  %v15639_v54 = vld [vmem:[%s17586_s17 + $0x94c] ss:$16 sps:$4 sm:$0xff]  }
 0x6d9   : > { %v4150_v57 = vpop.f32.mrf.mxu0  ;;  %v4193_v49 = vpop.f32.mrf.mxu1 }
 0x6da   : > { %v4151_v50 = vadd.f32 %v4150_v57, %v3465_v51  ;;  %v4192_v8 = vadd.f32 %v4191_v55, %v4149_v58  ;;  %v3473_v55 = vrot.slane %v17902_v40, %v18091_v32  ;;  %v3469_v57 = vrot.slane %v17914_v45, %v18091_v32  ;;  %v15637_v58 = vld [vmem:[%s17586_s17 + $0x948] ss:$16 sps:$4 sm:$0xff]  }
 0x6db   : > { %v4152_v59 = vpop.f32.mrf.mxu0  ;;  %v4195_v60 = vpop.f32.mrf.mxu1 }
 0x6dc   : > { %v4153_v61 = vadd.f32 %v4152_v59, %v3461_v53  ;;  %v4194_v3 = vadd.f32 %v4193_v49, %v4151_v50  ;;  %v4286_v16 = vmax.f32 %v4192_v8, 0.0  ;;  %v15631_v53 = vld [vmem:[%s17586_s17 + $0x968] ss:$16 sps:$4 sm:$0xff]  }
 0x6dd   : > { %v4154_v2 = vpop.f32.mrf.mxu0  ;;  %v4197_v9 = vpop.f32.mrf.mxu1 }
 0x6de   : > { %v4196_v4 = vadd.f32 %v4195_v60, %v4153_v61  ;;  %v4155_v5 = vadd.f32 %v4154_v2, %v3465_v51  ;;  %v4287_v14 = vmax.f32 %v4194_v3, 0.0  ;;  %v15633_v51 = vld [vmem:[%s17586_s17 + $0x96c] ss:$16 sps:$4 sm:$0xff]  }
 0x6df   : > { %v15645_v61 = vld [vmem:[%s17586_s17 + $0x92c] ss:$16 sps:$4 sm:$0xff]  }
 0x6e0   : > { %v4198_v10 = vadd.f32 %v4197_v9, %v4155_v5  ;;  %v4290_v12 = vmax.f32 %v4196_v4, 0.0  ;;  %v15643_v9 = vld [vmem:[%s17586_s17 + $0x928] ss:$16 sps:$4 sm:$0xff]  }
 0x6e2   : > { %v4291_v15 = vmax.f32 %v4198_v10, 0.0  ;;  %v18098_v19 = vpack.c.bf16 %v4290_v12, %v4286_v16  ;;  %v15651_v12 = vld [vmem:[%s17586_s17 + $0x90c] ss:$16 sps:$4 sm:$0xff]  }
 0x6e4   : > { %v4424_v17 = vpack.c.bf16 %v4291_v15, %v4287_v14 }
 0x6e6   : > { %5115 = vmatprep.mubr.bf16.mxu0 %v4424_v17 }
 0x6e7   : > { %5116 = vmatmul.mubr.bf16.vlgmr.msra.gmra.mxu0 %v18098_v19 }
 0x6e8   : > { %5170 = vmatpush1.bf16.msra.mxu0 %v15559_v18  ;;  %5201 = vmatprep.mubr.bf16.mxu0 %v4424_v17 }
 0x6e9   : > { %5171 = vmatprep.subr.bf16.mxu0 %v15567_v20 }
 0x6ec   : > { %5172 = vmatpush1.bf16.msra.mxu0 %v15565_v21  ;;  %v15649_v21 = vld [vmem:[%s17586_s17 + $0x908] ss:$16 sps:$4 sm:$0xff]  }
 0x6ed   : > { %5173 = vmatprep.subr.bf16.mxu0 %v15573_v22 }
 0x6f0   : > { %5174 = vmatpush1.bf16.msra.mxu0 %v15571_v23 }
 0x6f1   : > { %5175 = vmatprep.subr.bf16.mxu0 %v15579_v24 }
 0x6f4   : > { %5176 = vmatpush1.bf16.msra.mxu0 %v15577_v25 }
 0x6f5   : > { %5177 = vmatprep.subr.bf16.mxu0 %v15585_v28 }
 0x6f8   : > { %5178 = vmatpush1.bf16.msra.mxu0 %v15583_v36  ;;  %v15652_v36 = vld [vmem:[%s17586_s17 + $0xae8] ss:$16 sps:$4 sm:$0xff]  }
 0x6f9   : > { %5179 = vmatprep.subr.bf16.mxu0 %v15591_v39 }
 0x6fc   : > { %5180 = vmatpush1.bf16.msra.mxu0 %v15589_v11  ;;  %v15657_v11 = vld [vmem:[%s17586_s17 + $0xacc] ss:$16 sps:$4 sm:$0xff]  }
 0x6fd   : > { %5181 = vmatprep.subr.bf16.mxu0 %v15597_v41  ;;  %v15655_v41 = vld [vmem:[%s17586_s17 + $0xac8] ss:$16 sps:$4 sm:$0xff]  }
 0x700   : > { %5182 = vmatpush1.bf16.msra.mxu0 %v15595_v42  ;;  %v15660_v42 = vld [vmem:[%s17586_s17 + $0xaac] ss:$16 sps:$4 sm:$0xff]  }
 0x701   : > { %5183 = vmatprep.subr.bf16.mxu0 %v15603_v6  ;;  %v15658_v6 = vld [vmem:[%s17586_s17 + $0xaa8] ss:$16 sps:$4 sm:$0xff]  }
 0x704   : > { %5184 = vmatpush1.bf16.msra.mxu0 %v15601_v7  ;;  %v15663_v7 = vld [vmem:[%s17586_s17 + $0xa8c] ss:$16 sps:$4 sm:$0xff]  }
 0x705   : > { %5185 = vmatprep.subr.bf16.mxu0 %v15609_v27  ;;  %v15661_v27 = vld [vmem:[%s17586_s17 + $0xa88] ss:$16 sps:$4 sm:$0xff]  }
 0x708   : > { %5186 = vmatpush2.bf16.msra.mxu0 %v15607_v31  ;;  %v15666_v31 = vld [vmem:[%s17586_s17 + $0xa6c] ss:$16 sps:$4 sm:$0xff]  }
 0x709   : > { %5187 = vmatprep.subr.bf16.mxu0 %v15615_v43  ;;  %v15669_v43 = vld [vmem:[%s17586_s17 + $0xa4c] ss:$16 sps:$4 sm:$0xff]  }
 0x70c   : > { %5188 = vmatpush2.bf16.msra.mxu0 %v15613_v35  ;;  %v15667_v35 = vld [vmem:[%s17586_s17 + $0xa48] ss:$16 sps:$4 sm:$0xff]  }
 0x70d   : > { %5189 = vmatprep.subr.bf16.mxu0 %v15621_v46  ;;  %v15672_v46 = vld [vmem:[%s17586_s17 + $0xa2c] ss:$16 sps:$4 sm:$0xff]  }
 0x710   : > { %5190 = vmatpush2.bf16.msra.mxu0 %v15619_v47  ;;  %v15670_v47 = vld [vmem:[%s17586_s17 + $0xa28] ss:$16 sps:$4 sm:$0xff]  }
 0x711   : > { %5191 = vmatprep.subr.bf16.mxu0 %v15627_v30  ;;  %v15675_v30 = vld [vmem:[%s17586_s17 + $0xa0c] ss:$16 sps:$4 sm:$0xff]  }
 0x714   : > { %5192 = vmatpush2.bf16.msra.mxu0 %v15625_v48  ;;  %v15673_v48 = vld [vmem:[%s17586_s17 + $0xa08] ss:$16 sps:$4 sm:$0xff]  }
 0x715   : > { %5193 = vmatprep.subr.bf16.mxu0 %v15633_v51  ;;  %v15678_v51 = vld [vmem:[%s17586_s17 + $0xbec] ss:$16 sps:$4 sm:$0xff]  }
 0x717   : > { %v4234_v49 = vpop.f32.mrf.mxu0  ;;  %v4277_v50 = vpop.f32.mrf.mxu1 }
 0x718   : > { %5194 = vmatpush2.bf16.msra.mxu0 %v15631_v53  ;;  %v4235_v3 = vadd.f32 %v4234_v49, %v3469_v57  ;;  %v15676_v53 = vld [vmem:[%s17586_s17 + $0xbe8] ss:$16 sps:$4 sm:$0xff]  }
 0x719   : > { %v4236_v59 = vpop.f32.mrf.mxu0  ;;  %v4279_v60 = vpop.f32.mrf.mxu1  ;;  %5195 = vmatprep.subr.bf16.mxu0 %v15639_v54  ;;  %v15681_v54 = vld [vmem:[%s17586_s17 + $0xbcc] ss:$16 sps:$4 sm:$0xff]   ;;  %v15682_v49 = vld [vmem:[%s17586_s17 + $0xba8] ss:$16 sps:$4 sm:$0xff]  }
 0x71a   : > { %v4237_v2 = vadd.f32 %v4236_v59, %v3473_v55  ;;  %v4278_v17 = vadd.f32 %v4277_v50, %v4235_v3  ;;  %v15687_v50 = vld [vmem:[%s17586_s17 + $0xb8c] ss:$16 sps:$4 sm:$0xff]  }
 0x71b   : > { %v4238_v4 = vpop.f32.mrf.mxu0  ;;  %v4281_v5 = vpop.f32.mrf.mxu1  ;;  %v15690_v59 = vld [vmem:[%s17586_s17 + $0xb6c] ss:$16 sps:$4 sm:$0xff]  }
 0x71c   : > { %v4239_v8 = vadd.f32 %v4238_v4, %v3469_v57  ;;  %5196 = vmatpush2.bf16.msra.mxu0 %v15637_v58  ;;  %v4280_v14 = vadd.f32 %v4279_v60, %v4237_v2  ;;  %v4288_v25 = vmax.f32 %v4278_v17, 0.0  ;;  %v15684_v57 = vld [vmem:[%s17586_s17 + $0xbac] ss:$16 sps:$4 sm:$0xff]   ;;  %v15685_v58 = vld [vmem:[%s17586_s17 + $0xb88] ss:$16 sps:$4 sm:$0xff]  }
 0x71d   : > { %v4240_v10 = vpop.f32.mrf.mxu0  ;;  %5197 = vmatprep.subr.bf16.mxu0 %v15645_v61  ;;  %v4283_v18 = vpop.f32.mrf.mxu1  ;;  %v15688_v60 = vld [vmem:[%s17586_s17 + $0xb68] ss:$16 sps:$4 sm:$0xff]   ;;  %v15693_v61 = vld [vmem:[%s17586_s17 + $0xb4c] ss:$16 sps:$4 sm:$0xff]  }
 0x71e   : > { %v4282_v15 = vadd.f32 %v4281_v5, %v4239_v8  ;;  %v4241_v16 = vadd.f32 %v4240_v10, %v3473_v55  ;;  %v4289_v23 = vmax.f32 %v4280_v14, 0.0  ;;  %v15679_v55 = vld [vmem:[%s17586_s17 + $0xbc8] ss:$16 sps:$4 sm:$0xff]   ;;  %v15696_v3 = vld [vmem:[%s17586_s17 + $0xb2c] ss:$16 sps:$4 sm:$0xff]  }
 0x71f   : > { %v15691_v2 = vld [vmem:[%s17586_s17 + $0xb48] ss:$16 sps:$4 sm:$0xff]   ;;  %v15699_v5 = vld [vmem:[%s17586_s17 + $0xb0c] ss:$16 sps:$4 sm:$0xff]  }
 0x720   : > { %v4284_v20 = vadd.f32 %v4283_v18, %v4241_v16  ;;  %5198 = vmatpush2.bf16.msra.mxu0 %v15643_v9  ;;  %v4292_v22 = vmax.f32 %v4282_v15, 0.0  ;;  %v15694_v4 = vld [vmem:[%s17586_s17 + $0xb28] ss:$16 sps:$4 sm:$0xff]   ;;  %v18172_v15 = vsub.s32 2, %v17743_v52 }
 0x721   : > { %5199 = vmatprep.subr.bf16.mxu0 %v15651_v12  ;;  %v15697_v8 = vld [vmem:[%s17586_s17 + $0xb08] ss:$16 sps:$4 sm:$0xff]  }
 0x722   : > { %v4293_v24 = vmax.f32 %v4284_v20, 0.0  ;;  %v18136_v39 = vpack.c.bf16 %v4292_v22, %v4288_v25  ;;  %v4434_v18 = vrot.slane %v17896_v37, %v18172_v15 }
 0x724   : > { %v4426_v28 = vpack.c.bf16 %v4293_v24, %v4289_v23  ;;  %5200 = vmatpush2.bf16.msra.mxu0 %v15649_v21  ;;  %v4430_v21 = vrot.slane %v17908_v33, %v18172_v15 }
 0x726   : > { %5158 = vmatprep.mubr.bf16.mxu1 %v4426_v28 }
 0x727   : > { %5159 = vmatmul.mubr.bf16.vlgmr.msra.gmra.mxu1 %v18136_v39  ;;  %5202 = vmatmul.mubr.bf16.vlgmr.msra.gmra.mxu0 %v18098_v19  ;;  %v15664_v19 = vld [vmem:[%s17586_s17 + $0xa68] ss:$16 sps:$4 sm:$0xff]  }
 0x728   : > { %5213 = vmatpush1.bf16.msra.mxu1 %v15652_v36  ;;  %5244 = vmatprep.mubr.bf16.mxu1 %v4426_v28  ;;  %v4438_v28 = vrot.slane %v17914_v45, %v18172_v15 }
 0x729   : > { %5214 = vmatprep.subr.bf16.mxu1 %v15657_v11 }
 0x72c   : > { %5215 = vmatpush1.bf16.msra.mxu1 %v15655_v41 }
 0x72d   : > { %5216 = vmatprep.subr.bf16.mxu1 %v15660_v42  ;;  %v4442_v42 = vrot.slane %v17902_v40, %v18172_v15 }
 0x730   : > { %5217 = vmatpush1.bf16.msra.mxu1 %v15658_v6 }
 0x731   : > { %5218 = vmatprep.subr.bf16.mxu1 %v15663_v7 }
 0x734   : > { %5219 = vmatpush1.bf16.msra.mxu1 %v15661_v27 }
 0x735   : > { %5220 = vmatprep.subr.bf16.mxu1 %v15666_v31 }
 0x738   : > { %5221 = vmatpush1.bf16.msra.mxu1 %v15664_v19 }
 0x739   : > { %5222 = vmatprep.subr.bf16.mxu1 %v15669_v43 }
 0x73c   : > { %5223 = vmatpush1.bf16.msra.mxu1 %v15667_v35 }
 0x73d   : > { %5224 = vmatprep.subr.bf16.mxu1 %v15672_v46 }
 0x740   : > { %5225 = vmatpush1.bf16.msra.mxu1 %v15670_v47 }
 0x741   : > { %5226 = vmatprep.subr.bf16.mxu1 %v15675_v30 }
 0x744   : > { %5227 = vmatpush1.bf16.msra.mxu1 %v15673_v48 }
 0x745   : > { %5228 = vmatprep.subr.bf16.mxu1 %v15678_v51 }
 0x748   : > { %5229 = vmatpush2.bf16.msra.mxu1 %v15676_v53 }
 0x749   : > { %5230 = vmatprep.subr.bf16.mxu1 %v15681_v54 }
 0x74c   : > { %5231 = vmatpush2.bf16.msra.mxu1 %v15679_v55 }
 0x74d   : > { %5232 = vmatprep.subr.bf16.mxu1 %v15684_v57 }
 0x750   : > { %5233 = vmatpush2.bf16.msra.mxu1 %v15682_v49 }
 0x751   : > { %5234 = vmatprep.subr.bf16.mxu1 %v15687_v50 }
 0x754   : > { %5235 = vmatpush2.bf16.msra.mxu1 %v15685_v58 }
 0x755   : > { %5236 = vmatprep.subr.bf16.mxu1 %v15690_v59 }
 0x758   : > { %5237 = vmatpush2.bf16.msra.mxu1 %v15688_v60 }
 0x759   : > { %5238 = vmatprep.subr.bf16.mxu1 %v15693_v61  ;;  %v15700_v61 = vld [vmem:[%s17586_s17 + $0xce0] ss:$16 sps:$4 sm:$0xff]  }
 0x75c   : > { %5239 = vmatpush2.bf16.msra.mxu1 %v15691_v2  ;;  %v15702_v2 = vld [vmem:[%s17586_s17 + $0xce4] ss:$16 sps:$4 sm:$0xff]  }
 0x75d   : > { %5240 = vmatprep.subr.bf16.mxu1 %v15696_v3  ;;  %v15705_v3 = vld [vmem:[%s17586_s17 + $0xee4] ss:$16 sps:$4 sm:$0xff]   ;;  %6160 = vmatprep.subr.bf16.mxu0 %v15702_v2 }
 0x75e   : > { %6161 = vmatpush1.bf16.msra.mxu0 %v15700_v61 }
 0x760   : > { %5241 = vmatpush2.bf16.msra.mxu1 %v15694_v4  ;;  %v15708_v4 = vld [vmem:[%s17586_s17 + $0xcc4] ss:$16 sps:$4 sm:$0xff]  }
 0x761   : > { %5242 = vmatprep.subr.bf16.mxu1 %v15699_v5  ;;  %v15706_v5 = vld [vmem:[%s17586_s17 + $0xcc0] ss:$16 sps:$4 sm:$0xff]   ;;  %6162 = vmatprep.subr.bf16.mxu0 %v15708_v4  ;;  %v15756_v4 = vld [vmem:[%s17586_s17 + $0xdc4] ss:$16 sps:$4 sm:$0xff]  }
 0x762   : > { %6163 = vmatpush1.bf16.msra.mxu0 %v15706_v5  ;;  %v15754_v5 = vld [vmem:[%s17586_s17 + $0xdc0] ss:$16 sps:$4 sm:$0xff]  }
 0x764   : > { %5243 = vmatpush2.bf16.msra.mxu1 %v15697_v8  ;;  %v15709_v8 = vld [vmem:[%s17586_s17 + $0xec0] ss:$16 sps:$4 sm:$0xff]  }
 0x765   : > { %6203 = vmatprep.subr.bf16.mxu1 %v15705_v3 }
 0x767   : > { %5245 = vmatmul.mubr.bf16.vlgmr.msra.gmra.mxu1 %v18136_v39 }
 0x7a7   : > { %v5117_v9 = vpop.f32.mrf.mxu0 }
 0x7a8   : > { %v5118_v25 = vadd.f32 %v5117_v9, %v4430_v21  ;;  %v15714_v9 = vld [vmem:[%s17586_s17 + $0xca4] ss:$16 sps:$4 sm:$0xff]  }
 0x7a9   : > { %v5119_v10 = vpop.f32.mrf.mxu0  ;;  %6164 = vmatprep.subr.bf16.mxu0 %v15714_v9  ;;  %v15762_v9 = vld [vmem:[%s17586_s17 + $0xda4] ss:$16 sps:$4 sm:$0xff]  }
 0x7aa   : > { %v5120_v23 = vadd.f32 %v5119_v10, %v4434_v18  ;;  %v15717_v10 = vld [vmem:[%s17586_s17 + $0xea4] ss:$16 sps:$4 sm:$0xff]  }
 0x7ab   : > { %v5121_v12 = vpop.f32.mrf.mxu0 }
 0x7ac   : > { %v5122_v6 = vadd.f32 %v5121_v12, %v4430_v21  ;;  %v15712_v12 = vld [vmem:[%s17586_s17 + $0xca0] ss:$16 sps:$4 sm:$0xff]   ;;  %v15726_v21 = vld [vmem:[%s17586_s17 + $0xc64] ss:$16 sps:$4 sm:$0xff]  }
 0x7ad   : > { %v5123_v16 = vpop.f32.mrf.mxu0  ;;  %6165 = vmatpush1.bf16.msra.mxu0 %v15712_v12  ;;  %v15760_v12 = vld [vmem:[%s17586_s17 + $0xda0] ss:$16 sps:$4 sm:$0xff]  }
 0x7ae   : > { %v5124_v11 = vadd.f32 %v5123_v16, %v4434_v18  ;;  %v15720_v16 = vld [vmem:[%s17586_s17 + $0xc84] ss:$16 sps:$4 sm:$0xff]   ;;  %v15718_v18 = vld [vmem:[%s17586_s17 + $0xc80] ss:$16 sps:$4 sm:$0xff]  }
 0x7af   : > { %6166 = vmatprep.subr.bf16.mxu0 %v15720_v16  ;;  %v15766_v16 = vld [vmem:[%s17586_s17 + $0xd80] ss:$16 sps:$4 sm:$0xff]  }
 0x7b1   : > { %6167 = vmatpush1.bf16.msra.mxu0 %v15718_v18  ;;  %v15769_v18 = vld [vmem:[%s17586_s17 + $0xf80] ss:$16 sps:$4 sm:$0xff]  }
 0x7b2   : > { %6168 = vmatprep.subr.bf16.mxu0 %v15726_v21  ;;  %v15774_v21 = vld [vmem:[%s17586_s17 + $0xd64] ss:$16 sps:$4 sm:$0xff]  }
 0x7e7   : > { %v5160_v14 = vpop.f32.mrf.mxu1  ;;  %v5203_v20 = vpop.f32.mrf.mxu0 }
 0x7e8   : > { %v5161_v41 = vadd.f32 %v5160_v14, %v5118_v25  ;;  %v5204_v7 = vadd.f32 %v5203_v20, %v4438_v28  ;;  %v15715_v14 = vld [vmem:[%s17586_s17 + $0xea0] ss:$16 sps:$4 sm:$0xff]   ;;  %v15732_v25 = vld [vmem:[%s17586_s17 + $0xc44] ss:$16 sps:$4 sm:$0xff]  }
 0x7e9   : > { %v5162_v17 = vpop.f32.mrf.mxu1  ;;  %v5205_v24 = vpop.f32.mrf.mxu0  ;;  %v15721_v20 = vld [vmem:[%s17586_s17 + $0xe80] ss:$16 sps:$4 sm:$0xff]  }
 0x7ea   : > { %v5163_v36 = vadd.f32 %v5162_v17, %v5120_v23  ;;  %v18186_v43 = vadd.f32 %v5161_v41, %v17938_v13  ;;  %v5206_v45 = vadd.f32 %v5205_v24, %v4442_v42  ;;  %v15723_v17 = vld [vmem:[%s17586_s17 + $0xe84] ss:$16 sps:$4 sm:$0xff]   ;;  %v15724_v23 = vld [vmem:[%s17586_s17 + $0xc60] ss:$16 sps:$4 sm:$0xff]  }
 0x7eb   : > { %v5164_v22 = vpop.f32.mrf.mxu1  ;;  %v5207_v37 = vpop.f32.mrf.mxu0  ;;  %v15727_v24 = vld [vmem:[%s17586_s17 + $0xe60] ss:$16 sps:$4 sm:$0xff]   ;;  %6169 = vmatpush1.bf16.msra.mxu0 %v15724_v23  ;;  %v15741_v41 = vld [vmem:[%s17586_s17 + $0xe24] ss:$16 sps:$4 sm:$0xff]  }
 0x7ec   : > { %v18183_v27 = vadd.f32 %v5163_v36, %v17930_v62  ;;  %v5165_v31 = vadd.f32 %v5164_v22, %v5122_v6  ;;  %v5208_v46 = vadd.f32 %v5207_v37, %v4438_v28  ;;  %v15729_v22 = vld [vmem:[%s17586_s17 + $0xe64] ss:$16 sps:$4 sm:$0xff]   ;;  %v15730_v36 = vld [vmem:[%s17586_s17 + $0xc40] ss:$16 sps:$4 sm:$0xff]   ;;  %6170 = vmatprep.subr.bf16.mxu0 %v15732_v25 }
 0x7ed   : > { %v5166_v39 = vpop.f32.mrf.mxu1  ;;  %v5209_v47 = vpop.f32.mrf.mxu0  ;;  %v15735_v28 = vld [vmem:[%s17586_s17 + $0xe44] ss:$16 sps:$4 sm:$0xff]   ;;  %v15739_v6 = vld [vmem:[%s17586_s17 + $0xe20] ss:$16 sps:$4 sm:$0xff]  }
 0x7ee   : > { %v5167_v33 = vadd.f32 %v5166_v39, %v5124_v11  ;;  %v5263_v40 = vadd.f32 %v18183_v27, %v18186_v43  ;;  %v18197_v53 = vadd.f32 %v5165_v31, %v17940_v38  ;;  %v5210_v54 = vadd.f32 %v5209_v47, %v4442_v42  ;;  %v15733_v39 = vld [vmem:[%s17586_s17 + $0xe40] ss:$16 sps:$4 sm:$0xff]   ;;  %v15738_v11 = vld [vmem:[%s17586_s17 + $0xc24] ss:$16 sps:$4 sm:$0xff]  }
 0x7ef   : > { %6171 = vmatpush1.bf16.msra.mxu0 %v15730_v36  ;;  %v15736_v42 = vld [vmem:[%s17586_s17 + $0xc20] ss:$16 sps:$4 sm:$0xff]   ;;  %v15744_v37 = vld [vmem:[%s17586_s17 + $0xc04] ss:$16 sps:$4 sm:$0xff]  }
 0x7f0   : > { %v18191_v48 = vadd.f32 %v5167_v33, %v17932_v29  ;;  %6172 = vmatprep.subr.bf16.mxu0 %v15738_v11  ;;  %v15742_v33 = vld [vmem:[%s17586_s17 + $0xc00] ss:$16 sps:$4 sm:$0xff]   ;;  %v15780_v25 = vld [vmem:[%s17586_s17 + $0xd44] ss:$16 sps:$4 sm:$0xff]  }
 0x7f1   : > { %v15745_v31 = vld [vmem:[%s17586_s17 + $0xe00] ss:$16 sps:$4 sm:$0xff]   ;;  %v15786_v11 = vld [vmem:[%s17586_s17 + $0xd24] ss:$16 sps:$4 sm:$0xff]  }
 0x7f2   : > { %v15772_v23 = vld [vmem:[%s17586_s17 + $0xd60] ss:$16 sps:$4 sm:$0xff]  }
 0x7f3   : > { %6173 = vmatpush1.bf16.msra.mxu0 %v15736_v42  ;;  %v15778_v36 = vld [vmem:[%s17586_s17 + $0xd40] ss:$16 sps:$4 sm:$0xff]  }
 0x7f4   : > { %6174 = vmatprep.subr.bf16.mxu0 %v15744_v37  ;;  %v15784_v42 = vld [vmem:[%s17586_s17 + $0xd20] ss:$16 sps:$4 sm:$0xff]   ;;  %v15792_v37 = vld [vmem:[%s17586_s17 + $0xd04] ss:$16 sps:$4 sm:$0xff]  }
 0x7f7   : > { %6175 = vmatpush1.bf16.msra.mxu0 %v15742_v33  ;;  %v15790_v33 = vld [vmem:[%s17586_s17 + $0xd00] ss:$16 sps:$4 sm:$0xff]  }
 0x827   : > { %v5246_v19 = vpop.f32.mrf.mxu1 }
 0x828   : > { %v5247_v35 = vadd.f32 %v5246_v19, %v5204_v7  ;;  %v15747_v7 = vld [vmem:[%s17586_s17 + $0xe04] ss:$16 sps:$4 sm:$0xff]  }
 0x829   : > { %v5248_v30 = vpop.f32.mrf.mxu1  ;;  %v15750_v19 = vld [vmem:[%s17586_s17 + $0xde4] ss:$16 sps:$4 sm:$0xff]  }
 0x82a   : > { %v18194_v62 = vadd.f32 %v5247_v35, %v17942_v0  ;;  %v5249_v51 = vadd.f32 %v5248_v30, %v5206_v45  ;;  %v5268_v0 = vadd.f32 %v18191_v48, %v18197_v53  ;;  %v15753_v45 = vld [vmem:[%s17586_s17 + $0xfe4] ss:$16 sps:$4 sm:$0xff]   ;;  %v15748_v35 = vld [vmem:[%s17586_s17 + $0xde0] ss:$16 sps:$4 sm:$0xff]   ;;  %6176 = vmatprep.subr.bf16.mxu0 %v15750_v19  ;;  %v15798_v19 = vld [vmem:[%s17586_s17 + $0xcec] ss:$16 sps:$4 sm:$0xff]  }
 0x82b   : > { %v5250_v13 = vpop.f32.mrf.mxu1  ;;  %6177 = vmatpush2.bf16.msra.mxu0 %v15748_v35 }
 0x82c   : > { %v18200_v55 = vadd.f32 %v5249_v51, %v17934_v44  ;;  %v5251_v57 = vadd.f32 %v5250_v13, %v5208_v46  ;;  %v5264_v29 = vadd.f32 %v5263_v40, %v18194_v62  ;;  %v15751_v46 = vld [vmem:[%s17586_s17 + $0xfe0] ss:$16 sps:$4 sm:$0xff]   ;;  %6178 = vmatprep.subr.bf16.mxu0 %v15756_v4 }
 0x82d   : > { %v5252_v49 = vpop.f32.mrf.mxu1 }
 0x82e   : > { %v18206_v38 = vadd.f32 %v5251_v57, %v17944_v1  ;;  %v5253_v50 = vadd.f32 %v5252_v49, %v5210_v54  ;;  %v5265_v58 = vadd.f32 %v5264_v29, %v18200_v55  ;;  %v15703_v1 = vld [vmem:[%s17586_s17 + $0xee0] ss:$16 sps:$4 sm:$0xff]  }
 0x82f   : > { %6204 = vmatpush1.bf16.msra.mxu1 %v15703_v1  ;;  %6179 = vmatpush2.bf16.msra.mxu0 %v15754_v5 }
 0x830   : > { %v18210_v44 = vadd.f32 %v5253_v50, %v17936_v63  ;;  %5266 = vadd.xlane.f32.xlu0 %v5265_v58  ;;  %v5269_v59 = vadd.f32 %v5268_v0, %v18206_v38  ;;  %v15711_v63 = vld [vmem:[%s17586_s17 + $0xec4] ss:$16 sps:$4 sm:$0xff]   ;;  %6180 = vmatprep.subr.bf16.mxu0 %v15762_v9 }
 0x831   : > { %6205 = vmatprep.subr.bf16.mxu1 %v15711_v63  ;;  %v15759_v63 = vld [vmem:[%s17586_s17 + $0xfc4] ss:$16 sps:$4 sm:$0xff]  }
 0x832   : > { %v5270_v60 = vadd.f32 %v5269_v59, %v18210_v44 }
 0x833   : > { %6206 = vmatpush1.bf16.msra.mxu1 %v15709_v8  ;;  %v15757_v8 = vld [vmem:[%s17586_s17 + $0xfc0] ss:$16 sps:$4 sm:$0xff]   ;;  %6181 = vmatpush2.bf16.msra.mxu0 %v15760_v12 }
 0x834   : > { %5271 = vadd.xlane.f32.xlu1 %v5270_v60  ;;  %6207 = vmatprep.subr.bf16.mxu1 %v15717_v10  ;;  %v15765_v10 = vld [vmem:[%s17586_s17 + $0xfa4] ss:$16 sps:$4 sm:$0xff]  }
 0x837   : > { %6208 = vmatpush1.bf16.msra.mxu1 %v15715_v14  ;;  %v15763_v14 = vld [vmem:[%s17586_s17 + $0xfa0] ss:$16 sps:$4 sm:$0xff]  }
 0x838   : > { %6209 = vmatprep.subr.bf16.mxu1 %v15723_v17  ;;  %v15768_v17 = vld [vmem:[%s17586_s17 + $0xd84] ss:$16 sps:$4 sm:$0xff]  }
 0x839   : > { %6182 = vmatprep.subr.bf16.mxu0 %v15768_v17 }
 0x83a   : > { %6183 = vmatpush2.bf16.msra.mxu0 %v15766_v16 }
 0x83b   : > { %6210 = vmatpush1.bf16.msra.mxu1 %v15721_v20  ;;  %v15771_v20 = vld [vmem:[%s17586_s17 + $0xf84] ss:$16 sps:$4 sm:$0xff]   ;;  %6184 = vmatprep.subr.bf16.mxu0 %v15774_v21 }
 0x83c   : > { %6211 = vmatprep.subr.bf16.mxu1 %v15729_v22  ;;  %v15777_v22 = vld [vmem:[%s17586_s17 + $0xf64] ss:$16 sps:$4 sm:$0xff]  }
 0x83e   : > { %6185 = vmatpush2.bf16.msra.mxu0 %v15772_v23 }
 0x83f   : > { %6212 = vmatpush1.bf16.msra.mxu1 %v15727_v24  ;;  %v15775_v24 = vld [vmem:[%s17586_s17 + $0xf60] ss:$16 sps:$4 sm:$0xff]   ;;  %6186 = vmatprep.subr.bf16.mxu0 %v15780_v25 }
 0x840   : > { %6213 = vmatprep.subr.bf16.mxu1 %v15735_v28  ;;  %v15783_v28 = vld [vmem:[%s17586_s17 + $0xf44] ss:$16 sps:$4 sm:$0xff]  }
 0x842   : > { %6187 = vmatpush2.bf16.msra.mxu0 %v15778_v36 }
 0x843   : > { %6214 = vmatpush1.bf16.msra.mxu1 %v15733_v39  ;;  %v15781_v39 = vld [vmem:[%s17586_s17 + $0xf40] ss:$16 sps:$4 sm:$0xff]   ;;  %6188 = vmatprep.subr.bf16.mxu0 %v15786_v11  ;;  %v15799_v11 = vld [vmem:[%s17586_s17 + $0xee8] ss:$16 sps:$4 sm:$0xff]  }
 0x844   : > { %6215 = vmatprep.subr.bf16.mxu1 %v15741_v41  ;;  %v15789_v41 = vld [vmem:[%s17586_s17 + $0xf24] ss:$16 sps:$4 sm:$0xff]  }
 0x846   : > { %6189 = vmatpush2.bf16.msra.mxu0 %v15784_v42 }
 0x847   : > { %6216 = vmatpush1.bf16.msra.mxu1 %v15739_v6  ;;  %v15787_v6 = vld [vmem:[%s17586_s17 + $0xf20] ss:$16 sps:$4 sm:$0xff]   ;;  %6190 = vmatprep.subr.bf16.mxu0 %v15792_v37  ;;  %v15807_v37 = vld [vmem:[%s17586_s17 + $0xecc] ss:$16 sps:$4 sm:$0xff]  }
 0x848   : > { %6217 = vmatprep.subr.bf16.mxu1 %v15747_v7  ;;  %v15795_v7 = vld [vmem:[%s17586_s17 + $0xf04] ss:$16 sps:$4 sm:$0xff]  }
 0x84a   : > { %6191 = vmatpush2.bf16.msra.mxu0 %v15790_v33  ;;  %v15805_v33 = vld [vmem:[%s17586_s17 + $0xec8] ss:$16 sps:$4 sm:$0xff]  }
 0x84b   : > { %6218 = vmatpush1.bf16.msra.mxu1 %v15745_v31  ;;  %v15793_v31 = vld [vmem:[%s17586_s17 + $0xf00] ss:$16 sps:$4 sm:$0xff]   ;;  %6246 = vmatprep.subr.bf16.mxu0 %v15798_v19  ;;  %v15813_v19 = vld [vmem:[%s17586_s17 + $0xeac] ss:$16 sps:$4 sm:$0xff]  }
 0x84c   : > { %6219 = vmatprep.subr.bf16.mxu1 %v15753_v45  ;;  %v15801_v45 = vld [vmem:[%s17586_s17 + $0xeec] ss:$16 sps:$4 sm:$0xff]  }
 0x84f   : > { %6220 = vmatpush2.bf16.msra.mxu1 %v15751_v46 }
 0x850   : > { %6221 = vmatprep.subr.bf16.mxu1 %v15759_v63 }
 0x853   : > { %6222 = vmatpush2.bf16.msra.mxu1 %v15757_v8 }
 0x854   : > { %6223 = vmatprep.subr.bf16.mxu1 %v15765_v10 }
 0x857   : > { %6224 = vmatpush2.bf16.msra.mxu1 %v15763_v14 }
 0x858   : > { %6225 = vmatprep.subr.bf16.mxu1 %v15771_v20 }
 0x85b   : > { %6226 = vmatpush2.bf16.msra.mxu1 %v15769_v18 }
 0x85c   : > { %6227 = vmatprep.subr.bf16.mxu1 %v15777_v22 }
 0x85f   : > { %6228 = vmatpush2.bf16.msra.mxu1 %v15775_v24 }
 0x860   : > { %6229 = vmatprep.subr.bf16.mxu1 %v15783_v28 }
 0x863   : > { %6230 = vmatpush2.bf16.msra.mxu1 %v15781_v39  ;;  %v15796_v39 = vld [vmem:[%s17586_s17 + $0xce8] ss:$16 sps:$4 sm:$0xff]  }
 0x864   : > { %6231 = vmatprep.subr.bf16.mxu1 %v15789_v41 }
 0x867   : > { %6232 = vmatpush2.bf16.msra.mxu1 %v15787_v6  ;;  %v15804_v6 = vld [vmem:[%s17586_s17 + $0xccc] ss:$16 sps:$4 sm:$0xff]  }
 0x868   : > { %6233 = vmatprep.subr.bf16.mxu1 %v15795_v7  ;;  %v15802_v7 = vld [vmem:[%s17586_s17 + $0xcc8] ss:$16 sps:$4 sm:$0xff]  }
 0x86b   : > { %6234 = vmatpush2.bf16.msra.mxu1 %v15793_v31  ;;  %v15810_v31 = vld [vmem:[%s17586_s17 + $0xcac] ss:$16 sps:$4 sm:$0xff]  }
 0x86c   : > { %6289 = vmatprep.subr.bf16.mxu1 %v15801_v45  ;;  %v15808_v45 = vld [vmem:[%s17586_s17 + $0xca8] ss:$16 sps:$4 sm:$0xff]  }
 0x8b9   : > { %v5267_v47 = vpop.xlane.xlu0 %5266 }
 0x8ba   : > { %v5273_v30 = vmul.f32 0.001953125, %v5267_v47 }
 0x8bc   : > { %v18251_v40 = vsub.f32 %v18186_v43, %v5273_v30  ;;  %v18254_v51 = vsub.f32 %v18183_v27, %v5273_v30  ;;  %v18257_v13 = vsub.f32 %v18194_v62, %v5273_v30  ;;  %v18260_v57 = vsub.f32 %v18200_v55, %v5273_v30 }
 0x8bd   : > { %v5272_v54 = vpop.xlane.xlu1 %5271 }
 0x8be   : > { %v5274_v29 = vmul.f32 0.001953125, %v5272_v54  ;;  %v5283_v49 = vmul.f32 %v18251_v40, %v18251_v40  ;;  %v5284_v0 = vmul.f32 %v18254_v51, %v18254_v51  ;;  %v5285_v43 = vmul.f32 %v18257_v13, %v18257_v13 }
 0x8bf   : > { %v5286_v58 = vmul.f32 %v18260_v57, %v18260_v57 }
 0x8c0   : > { %v18269_v27 = vsub.f32 %v18197_v53, %v5274_v29  ;;  %v18272_v62 = vsub.f32 %v18191_v48, %v5274_v29  ;;  %v5291_v50 = vadd.f32 %v5284_v0, %v5283_v49  ;;  %v18275_v55 = vsub.f32 %v18206_v38, %v5274_v29 }
 0x8c1   : > { %v18280_v60 = vsub.f32 %v18210_v44, %v5274_v29  ;;  %v18321_v49 = vsub.s32 5, %v17743_v52 }
 0x8c2   : > { %v5292_v59 = vadd.f32 %v5291_v50, %v5285_v43  ;;  %v5287_v53 = vmul.f32 %v18269_v27, %v18269_v27  ;;  %v5288_v48 = vmul.f32 %v18272_v62, %v18272_v62  ;;  %v5289_v38 = vmul.f32 %v18275_v55, %v18275_v55 }
 0x8c3   : > { %v5290_v44 = vmul.f32 %v18280_v60, %v18280_v60  ;;  %v18324_v43 = vsub.s32 6, %v17743_v52 }
 0x8c4   : > { %v5293_v61 = vadd.f32 %v5292_v59, %v5286_v58  ;;  %v5296_v2 = vadd.f32 %v5288_v48, %v5287_v53  ;;  %v16888_v58 = vld [vmem:[%s17745_s28 + $0x8] sm:$0xff]  ;;  %v16889_v48 = vld [vmem:[%s17745_s28 + $0x18] sm:$0xff] }
 0x8c5   : > { %v5322_v59 = vrot.slane %v16888_v58, %v18321_v49  ;;  %v5354_v63 = vrot.slane %v16889_v48, %v18324_v43 }
 0x8c6   : > { %5294 = vadd.xlane.f32.xlu0 %v5293_v61  ;;  %v5297_v1 = vadd.f32 %v5296_v2, %v5289_v38  ;;  %v5330_v61 = vrot.slane %v16889_v48, %v18321_v49  ;;  %v16890_v2 = vld [vmem:[%s17745_s28] sm:$0xff] }
 0x8c7   : > { %v15826_v48 = vld [vmem:[%s17586_s17 + $0xc48] ss:$16 sps:$4 sm:$0xff]  }
 0x8c8   : > { %v5298_v3 = vadd.f32 %v5297_v1, %v5290_v44  ;;  %v5318_v44 = vrot.slane %v16890_v2, %v18321_v49 }
 0x8ca   : > { %5299 = vadd.xlane.f32.xlu1 %v5298_v3  ;;  %v16891_v3 = vld [vmem:[%s17745_s28 + $0x10] sm:$0xff] }
 0x8cb   : > { %v5326_v52 = vrot.slane %v16891_v3, %v18321_v49  ;;  %v5350_v5 = vrot.slane %v16891_v3, %v18324_v43  ;;  %v15840_v3 = vld [vmem:[%s17586_s17 + $0xc0c] ss:$16 sps:$4 sm:$0xff]  }
 0x94f   : > { %v5295_v35 = vpop.xlane.xlu0 %5294 }
 0x950   : > { %v5301_v46 = vmul.f32 0.001953125, %v5295_v35  ;;  %v15811_v35 = vld [vmem:[%s17586_s17 + $0xea8] ss:$16 sps:$4 sm:$0xff]  }
 0x952   : > { %v5303_v47 = vadd.f32 1e-05, %v5301_v46  ;;  %v15816_v46 = vld [vmem:[%s17586_s17 + $0xc8c] ss:$16 sps:$4 sm:$0xff]  }
 0x953   : > { %v5300_v30 = vpop.xlane.xlu1 %5299 }
 0x954   : > { %16856 = vrsqrt.f32 %v5303_v47  ;;  %v5302_v54 = vmul.f32 0.001953125, %v5300_v30  ;;  %v15819_v47 = vld [vmem:[%s17586_s17 + $0xe8c] ss:$16 sps:$4 sm:$0xff]   ;;  %v15814_v30 = vld [vmem:[%s17586_s17 + $0xc88] ss:$16 sps:$4 sm:$0xff]  }
 0x956   : > { %v5304_v29 = vadd.f32 1e-05, %v5302_v54  ;;  %v15817_v54 = vld [vmem:[%s17586_s17 + $0xe88] ss:$16 sps:$4 sm:$0xff]  }
 0x958   : > { %16858 = vrsqrt.f32 %v5304_v29  ;;  %v15822_v29 = vld [vmem:[%s17586_s17 + $0xc6c] ss:$16 sps:$4 sm:$0xff]  }
 0x961   : > { %v16857_v0 = vpop.eup %16856 }
 0x962   : > { %v5308_v50 = vmul.f32 %v16857_v0, %v18254_v51  ;;  %v5310_v53 = vmul.f32 %v16857_v0, %v18260_v57  ;;  %v5307_v38 = vmul.f32 %v16857_v0, %v18251_v40  ;;  %v5309_v1 = vmul.f32 %v16857_v0, %v18257_v13  ;;  %v15825_v0 = vld [vmem:[%s17586_s17 + $0xe6c] ss:$16 sps:$4 sm:$0xff]  }
 0x963   : > { %v5346_v51 = vrot.slane %v16888_v58, %v18324_v43  ;;  %v5342_v57 = vrot.slane %v16890_v2, %v18324_v43  ;;  %v15823_v58 = vld [vmem:[%s17586_s17 + $0xe68] ss:$16 sps:$4 sm:$0xff]   ;;  %v15837_v2 = vld [vmem:[%s17586_s17 + $0xe2c] ss:$16 sps:$4 sm:$0xff]  }
 0x964   : > { %v5332_v40 = vmul.f32 %v5322_v59, %v5308_v50  ;;  %v5334_v10 = vmul.f32 %v5330_v61, %v5310_v53  ;;  %v5331_v12 = vmul.f32 %v5318_v44, %v5307_v38  ;;  %v5333_v16 = vmul.f32 %v5326_v52, %v5309_v1  ;;  %v15820_v50 = vld [vmem:[%s17586_s17 + $0xc68] ss:$16 sps:$4 sm:$0xff]   ;;  %v15831_v53 = vld [vmem:[%s17586_s17 + $0xe4c] ss:$16 sps:$4 sm:$0xff]  }
 0x965   : > { %v16859_v4 = vpop.eup %16858  ;;  %v15834_v38 = vld [vmem:[%s17586_s17 + $0xc2c] ss:$16 sps:$4 sm:$0xff]   ;;  %v15835_v1 = vld [vmem:[%s17586_s17 + $0xe28] ss:$16 sps:$4 sm:$0xff]  }
 0x966   : > { %v5312_v8 = vmul.f32 %v16859_v4, %v18272_v62  ;;  %v5314_v9 = vmul.f32 %v16859_v4, %v18280_v60  ;;  %v5311_v13 = vmul.f32 %v16859_v4, %v18269_v27  ;;  %v5313_v14 = vmul.f32 %v16859_v4, %v18275_v55  ;;  %v15838_v4 = vld [vmem:[%s17586_s17 + $0xc08] ss:$16 sps:$4 sm:$0xff]  }
 0x967   : > { %v18346_v22 = vadd.f32 %v5346_v51, %v5332_v40  ;;  %v18350_v60 = vadd.f32 %v5354_v63, %v5334_v10  ;;  %v18354_v27 = vadd.f32 %v5342_v57, %v5331_v12  ;;  %v18358_v24 = vadd.f32 %v5350_v5, %v5333_v16  ;;  %v15852_v40 = vld [vmem:[%s17586_s17 + $0xdcc] ss:$16 sps:$4 sm:$0xff]   ;;  %v15850_v10 = vld [vmem:[%s17586_s17 + $0xdc8] ss:$16 sps:$4 sm:$0xff]  }
 0x968   : > { %v5336_v17 = vmul.f32 %v5322_v59, %v5312_v8  ;;  %v5338_v18 = vmul.f32 %v5330_v61, %v5314_v9  ;;  %v5335_v20 = vmul.f32 %v5318_v44, %v5311_v13  ;;  %v5337_v21 = vmul.f32 %v5326_v52, %v5313_v14  ;;  %v15828_v59 = vld [vmem:[%s17586_s17 + $0xc4c] ss:$16 sps:$4 sm:$0xff]   ;;  %v15829_v61 = vld [vmem:[%s17586_s17 + $0xe48] ss:$16 sps:$4 sm:$0xff]  }
 0x969   : > { %v15832_v44 = vld [vmem:[%s17586_s17 + $0xc28] ss:$16 sps:$4 sm:$0xff]   ;;  %v15843_v52 = vld [vmem:[%s17586_s17 + $0xe0c] ss:$16 sps:$4 sm:$0xff]  }
 0x96a   : > { %v18348_v62 = vadd.f32 %v5346_v51, %v5336_v17  ;;  %v18352_v23 = vadd.f32 %v5354_v63, %v5338_v18  ;;  %v18356_v55 = vadd.f32 %v5342_v57, %v5335_v20  ;;  %v18360_v25 = vadd.f32 %v5350_v5, %v5337_v21  ;;  %v15841_v51 = vld [vmem:[%s17586_s17 + $0xe08] ss:$16 sps:$4 sm:$0xff]   ;;  %v15846_v63 = vld [vmem:[%s17586_s17 + $0xdec] ss:$16 sps:$4 sm:$0xff]  }
 0x96b   : > { %v15849_v57 = vld [vmem:[%s17586_s17 + $0xfec] ss:$16 sps:$4 sm:$0xff]   ;;  %v15844_v5 = vld [vmem:[%s17586_s17 + $0xde8] ss:$16 sps:$4 sm:$0xff]  }
 0x96c   : > { %v5501_v28 = vpack.c.bf16 %v18348_v62, %v18346_v22  ;;  %v5503_v36 = vpack.c.bf16 %v18352_v23, %v18350_v60  ;;  %v18370_v41 = vpack.c.bf16 %v18356_v55, %v18354_v27  ;;  %v18374_v42 = vpack.c.bf16 %v18360_v25, %v18358_v24  ;;  %v15847_v8 = vld [vmem:[%s17586_s17 + $0xfe8] ss:$16 sps:$4 sm:$0xff]   ;;  %v15855_v9 = vld [vmem:[%s17586_s17 + $0xfcc] ss:$16 sps:$4 sm:$0xff]  }
 0x96d   : > { %v15853_v13 = vld [vmem:[%s17586_s17 + $0xfc8] ss:$16 sps:$4 sm:$0xff]   ;;  %v15858_v12 = vld [vmem:[%s17586_s17 + $0xdac] ss:$16 sps:$4 sm:$0xff]  }
 0x96e   : > { %6192 = vmatprep.mubr.bf16.mxu0 %v5501_v28  ;;  %6235 = vmatprep.mubr.bf16.mxu1 %v5503_v36  ;;  %v15861_v14 = vld [vmem:[%s17586_s17 + $0xfac] ss:$16 sps:$4 sm:$0xff]   ;;  %v15856_v16 = vld [vmem:[%s17586_s17 + $0xda8] ss:$16 sps:$4 sm:$0xff]  }
 0x96f   : > { %6193 = vmatmul.mubr.bf16.vlgmr.msra.gmra.mxu0 %v18370_v41  ;;  %6236 = vmatmul.mubr.bf16.vlgmr.msra.gmra.mxu1 %v18374_v42  ;;  %v15859_v17 = vld [vmem:[%s17586_s17 + $0xfa8] ss:$16 sps:$4 sm:$0xff]   ;;  %v15864_v18 = vld [vmem:[%s17586_s17 + $0xd8c] ss:$16 sps:$4 sm:$0xff]  }
 0x970   : > { %6247 = vmatpush1.bf16.msra.mxu0 %v15796_v39  ;;  %6290 = vmatpush1.bf16.msra.mxu1 %v15799_v11  ;;  %v15867_v20 = vld [vmem:[%s17586_s17 + $0xf8c] ss:$16 sps:$4 sm:$0xff]   ;;  %v15862_v21 = vld [vmem:[%s17586_s17 + $0xd88] ss:$16 sps:$4 sm:$0xff]  }
 0x971   : > { %6278 = vmatprep.mubr.bf16.mxu0 %v5501_v28  ;;  %6321 = vmatprep.mubr.bf16.mxu1 %v5503_v36  ;;  %v15865_v28 = vld [vmem:[%s17586_s17 + $0xf88] ss:$16 sps:$4 sm:$0xff]   ;;  %v15870_v36 = vld [vmem:[%s17586_s17 + $0xd6c] ss:$16 sps:$4 sm:$0xff]  }
 0x972   : > { %6248 = vmatprep.subr.bf16.mxu0 %v15804_v6  ;;  %6291 = vmatprep.subr.bf16.mxu1 %v15807_v37  ;;  %v15873_v39 = vld [vmem:[%s17586_s17 + $0xf6c] ss:$16 sps:$4 sm:$0xff]   ;;  %v15868_v11 = vld [vmem:[%s17586_s17 + $0xd68] ss:$16 sps:$4 sm:$0xff]  }
 0x973   : > { %v15871_v6 = vld [vmem:[%s17586_s17 + $0xf68] ss:$16 sps:$4 sm:$0xff]   ;;  %v15876_v37 = vld [vmem:[%s17586_s17 + $0xd4c] ss:$16 sps:$4 sm:$0xff]  }
 0x974   : > { %6249 = vmatpush1.bf16.msra.mxu0 %v15802_v7  ;;  %6292 = vmatpush1.bf16.msra.mxu1 %v15805_v33  ;;  %v15879_v7 = vld [vmem:[%s17586_s17 + $0xf4c] ss:$16 sps:$4 sm:$0xff]   ;;  %v15874_v33 = vld [vmem:[%s17586_s17 + $0xd48] ss:$16 sps:$4 sm:$0xff]  }
 0x975   : > { %6250 = vmatprep.subr.bf16.mxu0 %v15810_v31  ;;  %6293 = vmatprep.subr.bf16.mxu1 %v15813_v19  ;;  %v15877_v31 = vld [vmem:[%s17586_s17 + $0xf48] ss:$16 sps:$4 sm:$0xff]   ;;  %v15882_v19 = vld [vmem:[%s17586_s17 + $0xd2c] ss:$16 sps:$4 sm:$0xff]  }
 0x978   : > { %6251 = vmatpush1.bf16.msra.mxu0 %v15808_v45  ;;  %6294 = vmatpush1.bf16.msra.mxu1 %v15811_v35  ;;  %v15885_v45 = vld [vmem:[%s17586_s17 + $0xf2c] ss:$16 sps:$4 sm:$0xff]   ;;  %v15880_v35 = vld [vmem:[%s17586_s17 + $0xd28] ss:$16 sps:$4 sm:$0xff]  }
 0x979   : > { %6252 = vmatprep.subr.bf16.mxu0 %v15816_v46  ;;  %6295 = vmatprep.subr.bf16.mxu1 %v15819_v47  ;;  %v15883_v46 = vld [vmem:[%s17586_s17 + $0xf28] ss:$16 sps:$4 sm:$0xff]   ;;  %v15888_v47 = vld [vmem:[%s17586_s17 + $0xd0c] ss:$16 sps:$4 sm:$0xff]  }
 0x97c   : > { %6253 = vmatpush1.bf16.msra.mxu0 %v15814_v30  ;;  %6296 = vmatpush1.bf16.msra.mxu1 %v15817_v54  ;;  %v15891_v30 = vld [vmem:[%s17586_s17 + $0xf0c] ss:$16 sps:$4 sm:$0xff]   ;;  %v15886_v54 = vld [vmem:[%s17586_s17 + $0xd08] ss:$16 sps:$4 sm:$0xff]  }
 0x97d   : > { %6254 = vmatprep.subr.bf16.mxu0 %v15822_v29  ;;  %6297 = vmatprep.subr.bf16.mxu1 %v15825_v0  ;;  %v15889_v29 = vld [vmem:[%s17586_s17 + $0xf08] ss:$16 sps:$4 sm:$0xff]  }
 0x980   : > { %6255 = vmatpush1.bf16.msra.mxu0 %v15820_v50  ;;  %6298 = vmatpush1.bf16.msra.mxu1 %v15823_v58  ;;  %v18441_v50 = vld [vmem:[%s17745_s28 + $0x28] sm:$0xff] }
 0x981   : > { %6256 = vmatprep.subr.bf16.mxu0 %v15828_v59  ;;  %6299 = vmatprep.subr.bf16.mxu1 %v15831_v53  ;;  %v18444_v53 = vld [vmem:[%s17745_s28 + $0x20] sm:$0xff] }
 0x984   : > { %6257 = vmatpush1.bf16.msra.mxu0 %v15826_v48  ;;  %6300 = vmatpush1.bf16.msra.mxu1 %v15829_v61  ;;  %v5511_v48 = vrot.slane %v18441_v50, %v17750_v56  ;;  %v5507_v61 = vrot.slane %v18444_v53, %v17750_v56 }
 0x985   : > { %6258 = vmatprep.subr.bf16.mxu0 %v15834_v38  ;;  %6301 = vmatprep.subr.bf16.mxu1 %v15837_v2 }
 0x988   : > { %6259 = vmatpush1.bf16.msra.mxu0 %v15832_v44  ;;  %6302 = vmatpush1.bf16.msra.mxu1 %v15835_v1 }
 0x989   : > { %6260 = vmatprep.subr.bf16.mxu0 %v15840_v3  ;;  %6303 = vmatprep.subr.bf16.mxu1 %v15843_v52  ;;  %v18451_v3 = vld [vmem:[%s17745_s28 + $0x30] sm:$0xff] }
 0x98c   : > { %6261 = vmatpush1.bf16.msra.mxu0 %v15838_v4  ;;  %6304 = vmatpush1.bf16.msra.mxu1 %v15841_v51  ;;  %v18454_v4 = vld [vmem:[%s17745_s28 + $0x38] sm:$0xff] }
 0x98d   : > { %6262 = vmatprep.subr.bf16.mxu0 %v15846_v63  ;;  %6305 = vmatprep.subr.bf16.mxu1 %v15849_v57  ;;  %v5515_v63 = vrot.slane %v18451_v3, %v17750_v56 }
 0x990   : > { %6263 = vmatpush2.bf16.msra.mxu0 %v15844_v5  ;;  %6306 = vmatpush2.bf16.msra.mxu1 %v15847_v8 }
 0x991   : > { %6264 = vmatprep.subr.bf16.mxu0 %v15852_v40  ;;  %6307 = vmatprep.subr.bf16.mxu1 %v15855_v9  ;;  %v5519_v40 = vrot.slane %v18454_v4, %v17750_v56 }
 0x994   : > { %6265 = vmatpush2.bf16.msra.mxu0 %v15850_v10  ;;  %6308 = vmatpush2.bf16.msra.mxu1 %v15853_v13 }
 0x995   : > { %6266 = vmatprep.subr.bf16.mxu0 %v15858_v12  ;;  %6309 = vmatprep.subr.bf16.mxu1 %v15861_v14 }
 0x998   : > { %6267 = vmatpush2.bf16.msra.mxu0 %v15856_v16  ;;  %6310 = vmatpush2.bf16.msra.mxu1 %v15859_v17 }
 0x999   : > { %6268 = vmatprep.subr.bf16.mxu0 %v15864_v18  ;;  %6311 = vmatprep.subr.bf16.mxu1 %v15867_v20 }
 0x99c   : > { %6269 = vmatpush2.bf16.msra.mxu0 %v15862_v21  ;;  %6312 = vmatpush2.bf16.msra.mxu1 %v15865_v28 }
 0x99d   : > { %6270 = vmatprep.subr.bf16.mxu0 %v15870_v36  ;;  %6313 = vmatprep.subr.bf16.mxu1 %v15873_v39 }
 0x9a0   : > { %6271 = vmatpush2.bf16.msra.mxu0 %v15868_v11  ;;  %6314 = vmatpush2.bf16.msra.mxu1 %v15871_v6 }
 0x9a1   : > { %6272 = vmatprep.subr.bf16.mxu0 %v15876_v37  ;;  %6315 = vmatprep.subr.bf16.mxu1 %v15879_v7 }
 0x9a4   : > { %6273 = vmatpush2.bf16.msra.mxu0 %v15874_v33  ;;  %6316 = vmatpush2.bf16.msra.mxu1 %v15877_v31 }
 0x9a5   : > { %6274 = vmatprep.subr.bf16.mxu0 %v15882_v19  ;;  %6317 = vmatprep.subr.bf16.mxu1 %v15885_v45 }
 0x9a8   : > { %6275 = vmatpush2.bf16.msra.mxu0 %v15880_v35  ;;  %6318 = vmatpush2.bf16.msra.mxu1 %v15883_v46 }
 0x9a9   : > { %6276 = vmatprep.subr.bf16.mxu0 %v15888_v47  ;;  %6319 = vmatprep.subr.bf16.mxu1 %v15891_v30 }
 0x9ac   : > { %6277 = vmatpush2.bf16.msra.mxu0 %v15886_v54  ;;  %6320 = vmatpush2.bf16.msra.mxu1 %v15889_v29  ;;  %v15892_v29 = vld [vmem:[%s17586_s17 + $0x10e0] ss:$16 sps:$4 sm:$0xff]  }
 0x9af   : > { %6279 = vmatmul.mubr.bf16.vlgmr.msra.gmra.mxu0 %v18370_v41  ;;  %6322 = vmatmul.mubr.bf16.vlgmr.msra.gmra.mxu1 %v18374_v42 }
 0xa2f   : > { %v6194_v0 = vpop.f32.mrf.mxu0  ;;  %v6237_v58 = vpop.f32.mrf.mxu1 }
 0xa30   : > { %v6195_v41 = vadd.f32 %v6194_v0, %v5507_v61  ;;  %v15894_v0 = vld [vmem:[%s17586_s17 + $0x10e4] ss:$16 sps:$4 sm:$0xff]  }
 0xa31   : > { %v6196_v59 = vpop.f32.mrf.mxu0  ;;  %v6239_v38 = vpop.f32.mrf.mxu1  ;;  %7229 = vmatprep.subr.bf16.mxu0 %v15894_v0 }
 0xa32   : > { %v6197_v44 = vadd.f32 %v6196_v59, %v5511_v48  ;;  %v6238_v57 = vadd.f32 %v6237_v58, %v6195_v41  ;;  %v15897_v58 = vld [vmem:[%s17586_s17 + $0x12e4] ss:$16 sps:$4 sm:$0xff]   ;;  %7230 = vmatpush1.bf16.msra.mxu0 %v15892_v29  ;;  %v15907_v41 = vld [vmem:[%s17586_s17 + $0x12a0] ss:$16 sps:$4 sm:$0xff]  }
 0xa33   : > { %v6198_v2 = vpop.f32.mrf.mxu0  ;;  %v6241_v1 = vpop.f32.mrf.mxu1  ;;  %v15900_v59 = vld [vmem:[%s17586_s17 + $0x10c4] ss:$16 sps:$4 sm:$0xff]   ;;  %7272 = vmatprep.subr.bf16.mxu1 %v15897_v58 }
 0xa34   : > { %v6240_v52 = vadd.f32 %v6239_v38, %v6197_v44  ;;  %v6199_v5 = vadd.f32 %v6198_v2, %v5507_v61  ;;  %v18464_v16 = vadd.f32 %v6238_v57, %v18354_v27  ;;  %7231 = vmatprep.subr.bf16.mxu0 %v15900_v59  ;;  %v15901_v61 = vld [vmem:[%s17586_s17 + $0x12c0] ss:$16 sps:$4 sm:$0xff]   ;;  %v15906_v38 = vld [vmem:[%s17586_s17 + $0x10a4] ss:$16 sps:$4 sm:$0xff]  }
 0xa35   : > { %v6200_v42 = vpop.f32.mrf.mxu0  ;;  %v6243_v8 = vpop.f32.mrf.mxu1  ;;  %v15909_v2 = vld [vmem:[%s17586_s17 + $0x12a4] ss:$16 sps:$4 sm:$0xff]   ;;  %v15904_v44 = vld [vmem:[%s17586_s17 + $0x10a0] ss:$16 sps:$4 sm:$0xff]  }
 0xa36   : > { %v6201_v51 = vadd.f32 %v6200_v42, %v5511_v48  ;;  %v18461_v9 = vadd.f32 %v6240_v52, %v18346_v22  ;;  %v6242_v17 = vadd.f32 %v6241_v1, %v6199_v5  ;;  %v15898_v48 = vld [vmem:[%s17586_s17 + $0x10c0] ss:$16 sps:$4 sm:$0xff]   ;;  %v15912_v1 = vld [vmem:[%s17586_s17 + $0x1084] ss:$16 sps:$4 sm:$0xff]  }
 0xa37   : > { %7232 = vmatpush1.bf16.msra.mxu0 %v15898_v48  ;;  %v15915_v42 = vld [vmem:[%s17586_s17 + $0x1284] ss:$16 sps:$4 sm:$0xff]   ;;  %v15910_v52 = vld [vmem:[%s17586_s17 + $0x1080] ss:$16 sps:$4 sm:$0xff]  }
 0xa38   : > { %v6244_v12 = vadd.f32 %v6243_v8, %v6201_v51  ;;  %v6340_v36 = vadd.f32 %v18461_v9, %v18464_v16  ;;  %v18475_v27 = vadd.f32 %v6242_v17, %v18356_v55  ;;  %7233 = vmatprep.subr.bf16.mxu0 %v15906_v38  ;;  %v15913_v51 = vld [vmem:[%s17586_s17 + $0x1280] ss:$16 sps:$4 sm:$0xff]   ;;  %v15921_v57 = vld [vmem:[%s17586_s17 + $0x1264] ss:$16 sps:$4 sm:$0xff]  }
 0xa39   : > { %v15916_v5 = vld [vmem:[%s17586_s17 + $0x1060] ss:$16 sps:$4 sm:$0xff]   ;;  %v15933_v17 = vld [vmem:[%s17586_s17 + $0x1224] ss:$16 sps:$4 sm:$0xff]  }
 0xa3a   : > { %v18469_v22 = vadd.f32 %v6244_v12, %v18348_v62  ;;  %v15919_v8 = vld [vmem:[%s17586_s17 + $0x1260] ss:$16 sps:$4 sm:$0xff]  }
 0xa3b   : > { %7234 = vmatpush1.bf16.msra.mxu0 %v15904_v44  ;;  %v15925_v12 = vld [vmem:[%s17586_s17 + $0x1240] ss:$16 sps:$4 sm:$0xff]   ;;  %v15951_v44 = vld [vmem:[%s17586_s17 + $0x13c4] ss:$16 sps:$4 sm:$0xff]  }
 0xa3c   : > { %v6345_v35 = vadd.f32 %v18469_v22, %v18475_v27  ;;  %7235 = vmatprep.subr.bf16.mxu0 %v15912_v1  ;;  %v15949_v1 = vld [vmem:[%s17586_s17 + $0x13c0] ss:$16 sps:$4 sm:$0xff]  }
 0xa3f   : > { %7236 = vmatpush1.bf16.msra.mxu0 %v15910_v52  ;;  %v15957_v52 = vld [vmem:[%s17586_s17 + $0x13a4] ss:$16 sps:$4 sm:$0xff]  }
 0xa6f   : > { %v6280_v10 = vpop.f32.mrf.mxu0  ;;  %v6323_v13 = vpop.f32.mrf.mxu1 }
 0xa70   : > { %v6281_v14 = vadd.f32 %v6280_v10, %v5515_v63  ;;  %v15927_v10 = vld [vmem:[%s17586_s17 + $0x1244] ss:$16 sps:$4 sm:$0xff]  }
 0xa71   : > { %v6282_v18 = vpop.f32.mrf.mxu0  ;;  %v6325_v20 = vpop.f32.mrf.mxu1 }
 0xa72   : > { %v6324_v21 = vadd.f32 %v6323_v13, %v6281_v14  ;;  %v6283_v28 = vadd.f32 %v6282_v18, %v5519_v40  ;;  %v15922_v13 = vld [vmem:[%s17586_s17 + $0x1040] ss:$16 sps:$4 sm:$0xff]   ;;  %v15930_v14 = vld [vmem:[%s17586_s17 + $0x1024] ss:$16 sps:$4 sm:$0xff]  }
 0xa73   : > { %v6284_v39 = vpop.f32.mrf.mxu0  ;;  %v6327_v11 = vpop.f32.mrf.mxu1  ;;  %v15928_v18 = vld [vmem:[%s17586_s17 + $0x1020] ss:$16 sps:$4 sm:$0xff]  }
 0xa74   : > { %v18472_v6 = vadd.f32 %v6324_v21, %v18358_v24  ;;  %v6326_v37 = vadd.f32 %v6325_v20, %v6283_v28  ;;  %v6285_v7 = vadd.f32 %v6284_v39, %v5515_v63  ;;  %v15918_v63 = vld [vmem:[%s17586_s17 + $0x1064] ss:$16 sps:$4 sm:$0xff]   ;;  %v15931_v20 = vld [vmem:[%s17586_s17 + $0x1220] ss:$16 sps:$4 sm:$0xff]  }
 0xa75   : > { %v6286_v33 = vpop.f32.mrf.mxu0  ;;  %v6329_v24 = vpop.f32.mrf.mxu1  ;;  %7237 = vmatprep.subr.bf16.mxu0 %v15918_v63  ;;  %v15936_v21 = vld [vmem:[%s17586_s17 + $0x1004] ss:$16 sps:$4 sm:$0xff]   ;;  %v15937_v39 = vld [vmem:[%s17586_s17 + $0x1200] ss:$16 sps:$4 sm:$0xff]  }
 0xa76   : > { %v18478_v31 = vadd.f32 %v6326_v37, %v18350_v60  ;;  %v6328_v19 = vadd.f32 %v6327_v11, %v6285_v7  ;;  %v6287_v45 = vadd.f32 %v6286_v33, %v5519_v40  ;;  %v6341_v62 = vadd.f32 %v6340_v36, %v18472_v6  ;;  %v15924_v40 = vld [vmem:[%s17586_s17 + $0x1044] ss:$16 sps:$4 sm:$0xff]   ;;  %7238 = vmatpush1.bf16.msra.mxu0 %v15916_v5  ;;  %v15934_v36 = vld [vmem:[%s17586_s17 + $0x1000] ss:$16 sps:$4 sm:$0xff]  }
 0xa77   : > { %7239 = vmatprep.subr.bf16.mxu0 %v15924_v40  ;;  %v15939_v28 = vld [vmem:[%s17586_s17 + $0x1204] ss:$16 sps:$4 sm:$0xff]   ;;  %v15940_v7 = vld [vmem:[%s17586_s17 + $0x11e0] ss:$16 sps:$4 sm:$0xff]  }
 0xa78   : > { %v18484_v55 = vadd.f32 %v6328_v19, %v18360_v25  ;;  %v6330_v46 = vadd.f32 %v6329_v24, %v6287_v45  ;;  %v6342_v60 = vadd.f32 %v6341_v62, %v18478_v31  ;;  %v15895_v25 = vld [vmem:[%s17586_s17 + $0x12e0] ss:$16 sps:$4 sm:$0xff]   ;;  %v15942_v11 = vld [vmem:[%s17586_s17 + $0x11e4] ss:$16 sps:$4 sm:$0xff]  }
 0xa79   : > { %7273 = vmatpush1.bf16.msra.mxu1 %v15895_v25  ;;  %v15945_v37 = vld [vmem:[%s17586_s17 + $0x13e4] ss:$16 sps:$4 sm:$0xff]   ;;  %v15943_v33 = vld [vmem:[%s17586_s17 + $0x13e0] ss:$16 sps:$4 sm:$0xff]  }
 0xa7a   : > { %v18488_v47 = vadd.f32 %v6330_v46, %v18352_v23  ;;  %6343 = vadd.xlane.f32.xlu0 %v6342_v60  ;;  %v6346_v30 = vadd.f32 %v6345_v35, %v18484_v55  ;;  %v15903_v23 = vld [vmem:[%s17586_s17 + $0x12c4] ss:$16 sps:$4 sm:$0xff]   ;;  %7240 = vmatpush1.bf16.msra.mxu0 %v15922_v13  ;;  %v15955_v63 = vld [vmem:[%s17586_s17 + $0x13a0] ss:$16 sps:$4 sm:$0xff]  }
 0xa7b   : > { %7274 = vmatprep.subr.bf16.mxu1 %v15903_v23  ;;  %7241 = vmatprep.subr.bf16.mxu0 %v15930_v14  ;;  %v15960_v5 = vld [vmem:[%s17586_s17 + $0x1184] ss:$16 sps:$4 sm:$0xff]   ;;  %v15967_v14 = vld [vmem:[%s17586_s17 + $0x1360] ss:$16 sps:$4 sm:$0xff]  }
 0xa7c   : > { %v6347_v54 = vadd.f32 %v6346_v30, %v18488_v47  ;;  %v15963_v40 = vld [vmem:[%s17586_s17 + $0x1384] ss:$16 sps:$4 sm:$0xff]  }
 0xa7d   : > { %7275 = vmatpush1.bf16.msra.mxu1 %v15901_v61  ;;  %v15969_v13 = vld [vmem:[%s17586_s17 + $0x1364] ss:$16 sps:$4 sm:$0xff]  }
 0xa7e   : > { %6348 = vadd.xlane.f32.xlu1 %v6347_v54  ;;  %7276 = vmatprep.subr.bf16.mxu1 %v15909_v2  ;;  %v15948_v2 = vld [vmem:[%s17586_s17 + $0x11c4] ss:$16 sps:$4 sm:$0xff]  }
 0xa7f   : > { %7242 = vmatpush1.bf16.msra.mxu0 %v15928_v18  ;;  %v15975_v18 = vld [vmem:[%s17586_s17 + $0x1344] ss:$16 sps:$4 sm:$0xff]  }
 0xa80   : > { %7243 = vmatprep.subr.bf16.mxu0 %v15936_v21  ;;  %v15973_v21 = vld [vmem:[%s17586_s17 + $0x1340] ss:$16 sps:$4 sm:$0xff]  }
 0xa81   : > { %7277 = vmatpush1.bf16.msra.mxu1 %v15907_v41  ;;  %v15946_v41 = vld [vmem:[%s17586_s17 + $0x11c0] ss:$16 sps:$4 sm:$0xff]  }
 0xa82   : > { %7278 = vmatprep.subr.bf16.mxu1 %v15915_v42  ;;  %v15954_v42 = vld [vmem:[%s17586_s17 + $0x11a4] ss:$16 sps:$4 sm:$0xff]  }
 0xa83   : > { %7244 = vmatpush1.bf16.msra.mxu0 %v15934_v36  ;;  %v15981_v36 = vld [vmem:[%s17586_s17 + $0x1324] ss:$16 sps:$4 sm:$0xff]  }
 0xa84   : > { %7245 = vmatprep.subr.bf16.mxu0 %v15942_v11  ;;  %v15979_v11 = vld [vmem:[%s17586_s17 + $0x1320] ss:$16 sps:$4 sm:$0xff]  }
 0xa85   : > { %7279 = vmatpush1.bf16.msra.mxu1 %v15913_v51  ;;  %v15952_v51 = vld [vmem:[%s17586_s17 + $0x11a0] ss:$16 sps:$4 sm:$0xff]  }
 0xa86   : > { %7280 = vmatprep.subr.bf16.mxu1 %v15921_v57  ;;  %v15958_v57 = vld [vmem:[%s17586_s17 + $0x1180] ss:$16 sps:$4 sm:$0xff]  }
 0xa87   : > { %7246 = vmatpush2.bf16.msra.mxu0 %v15940_v7  ;;  %v15987_v7 = vld [vmem:[%s17586_s17 + $0x1304] ss:$16 sps:$4 sm:$0xff]  }
 0xa88   : > { %7247 = vmatprep.subr.bf16.mxu0 %v15948_v2 }
 0xa89   : > { %7281 = vmatpush1.bf16.msra.mxu1 %v15919_v8  ;;  %v15961_v8 = vld [vmem:[%s17586_s17 + $0x1380] ss:$16 sps:$4 sm:$0xff]  }
 0xa8a   : > { %7282 = vmatprep.subr.bf16.mxu1 %v15927_v10  ;;  %v15966_v10 = vld [vmem:[%s17586_s17 + $0x1164] ss:$16 sps:$4 sm:$0xff]  }
 0xa8b   : > { %7248 = vmatpush2.bf16.msra.mxu0 %v15946_v41 }
 0xa8c   : > { %7249 = vmatprep.subr.bf16.mxu0 %v15954_v42 }
 0xa8d   : > { %7283 = vmatpush1.bf16.msra.mxu1 %v15925_v12  ;;  %v15964_v12 = vld [vmem:[%s17586_s17 + $0x1160] ss:$16 sps:$4 sm:$0xff]  }
 0xa8e   : > { %7284 = vmatprep.subr.bf16.mxu1 %v15933_v17  ;;  %v15972_v17 = vld [vmem:[%s17586_s17 + $0x1144] ss:$16 sps:$4 sm:$0xff]  }
 0xa8f   : > { %7250 = vmatpush2.bf16.msra.mxu0 %v15952_v51 }
 0xa90   : > { %7251 = vmatprep.subr.bf16.mxu0 %v15960_v5 }
 0xa91   : > { %7285 = vmatpush1.bf16.msra.mxu1 %v15931_v20  ;;  %v15970_v20 = vld [vmem:[%s17586_s17 + $0x1140] ss:$16 sps:$4 sm:$0xff]  }
 0xa92   : > { %7286 = vmatprep.subr.bf16.mxu1 %v15939_v28  ;;  %v15978_v28 = vld [vmem:[%s17586_s17 + $0x1124] ss:$16 sps:$4 sm:$0xff]  }
 0xa93   : > { %7252 = vmatpush2.bf16.msra.mxu0 %v15958_v57 }
 0xa94   : > { %7253 = vmatprep.subr.bf16.mxu0 %v15966_v10 }
 0xa95   : > { %7287 = vmatpush1.bf16.msra.mxu1 %v15937_v39  ;;  %v15976_v39 = vld [vmem:[%s17586_s17 + $0x1120] ss:$16 sps:$4 sm:$0xff]  }
 0xa96   : > { %7288 = vmatprep.subr.bf16.mxu1 %v15945_v37  ;;  %v15984_v37 = vld [vmem:[%s17586_s17 + $0x1104] ss:$16 sps:$4 sm:$0xff]  }
 0xa97   : > { %7254 = vmatpush2.bf16.msra.mxu0 %v15964_v12 }
 0xa98   : > { %7255 = vmatprep.subr.bf16.mxu0 %v15972_v17  ;;  %v15991_v17 = vld [vmem:[%s17586_s17 + $0x12e8] ss:$16 sps:$4 sm:$0xff]  }
 0xa99   : > { %7289 = vmatpush2.bf16.msra.mxu1 %v15943_v33  ;;  %v15982_v33 = vld [vmem:[%s17586_s17 + $0x1100] ss:$16 sps:$4 sm:$0xff]  }
 0xa9a   : > { %7290 = vmatprep.subr.bf16.mxu1 %v15951_v44  ;;  %v6419_v44 = vrot.slane %v18444_v53, %v17892_v34 }
 0xa9b   : > { %7256 = vmatpush2.bf16.msra.mxu0 %v15970_v20 }
 0xa9c   : > { %7257 = vmatprep.subr.bf16.mxu0 %v15978_v28  ;;  %v15999_v28 = vld [vmem:[%s17586_s17 + $0x12cc] ss:$16 sps:$4 sm:$0xff]  }
 0xa9d   : > { %7291 = vmatpush2.bf16.msra.mxu1 %v15949_v1 }
 0xa9e   : > { %7292 = vmatprep.subr.bf16.mxu1 %v15957_v52 }
 0xa9f   : > { %7258 = vmatpush2.bf16.msra.mxu0 %v15976_v39  ;;  %v15997_v39 = vld [vmem:[%s17586_s17 + $0x12c8] ss:$16 sps:$4 sm:$0xff]  }
 0xaa0   : > { %7259 = vmatprep.subr.bf16.mxu0 %v15984_v37  ;;  %v16005_v37 = vld [vmem:[%s17586_s17 + $0x12ac] ss:$16 sps:$4 sm:$0xff]  }
 0xaa1   : > { %7293 = vmatpush2.bf16.msra.mxu1 %v15955_v63 }
 0xaa2   : > { %7294 = vmatprep.subr.bf16.mxu1 %v15963_v40 }
 0xaa3   : > { %7260 = vmatpush2.bf16.msra.mxu0 %v15982_v33  ;;  %v16003_v33 = vld [vmem:[%s17586_s17 + $0x12a8] ss:$16 sps:$4 sm:$0xff]  }
 0xaa5   : > { %7295 = vmatpush2.bf16.msra.mxu1 %v15961_v8 }
 0xaa6   : > { %7296 = vmatprep.subr.bf16.mxu1 %v15969_v13 }
 0xaa9   : > { %7297 = vmatpush2.bf16.msra.mxu1 %v15967_v14  ;;  %v15988_v14 = vld [vmem:[%s17586_s17 + $0x10e8] ss:$16 sps:$4 sm:$0xff]  }
 0xaaa   : > { %7298 = vmatprep.subr.bf16.mxu1 %v15975_v18 }
 0xaad   : > { %7299 = vmatpush2.bf16.msra.mxu1 %v15973_v21  ;;  %v15996_v21 = vld [vmem:[%s17586_s17 + $0x10cc] ss:$16 sps:$4 sm:$0xff]  }
 0xaae   : > { %7300 = vmatprep.subr.bf16.mxu1 %v15981_v36  ;;  %v15994_v36 = vld [vmem:[%s17586_s17 + $0x10c8] ss:$16 sps:$4 sm:$0xff]  }
 0xab1   : > { %7301 = vmatpush2.bf16.msra.mxu1 %v15979_v11  ;;  %v16002_v11 = vld [vmem:[%s17586_s17 + $0x10ac] ss:$16 sps:$4 sm:$0xff]  }
 0xab2   : > { %7302 = vmatprep.subr.bf16.mxu1 %v15987_v7  ;;  %v16000_v7 = vld [vmem:[%s17586_s17 + $0x10a8] ss:$16 sps:$4 sm:$0xff]  }
 0xb03   : > { %v6344_v19 = vpop.xlane.xlu0 %6343 }
 0xb04   : > { %v6350_v45 = vmul.f32 0.001953125, %v6344_v19  ;;  %v15985_v19 = vld [vmem:[%s17586_s17 + $0x1300] ss:$16 sps:$4 sm:$0xff]  }
 0xb05   : > { %7303 = vmatpush2.bf16.msra.mxu1 %v15985_v19  ;;  %v16008_v19 = vld [vmem:[%s17586_s17 + $0x108c] ss:$16 sps:$4 sm:$0xff]  }
 0xb06   : > { %v18529_v62 = vsub.f32 %v18464_v16, %v6350_v45  ;;  %v18532_v24 = vsub.f32 %v18461_v9, %v6350_v45  ;;  %v18535_v35 = vsub.f32 %v18472_v6, %v6350_v45  ;;  %v18538_v60 = vsub.f32 %v18478_v31, %v6350_v45  ;;  %v15990_v45 = vld [vmem:[%s17586_s17 + $0x10ec] ss:$16 sps:$4 sm:$0xff]  }
 0xb07   : > { %v6349_v46 = vpop.xlane.xlu1 %6348  ;;  %7315 = vmatprep.subr.bf16.mxu0 %v15990_v45  ;;  %v16011_v45 = vld [vmem:[%s17586_s17 + $0x128c] ss:$16 sps:$4 sm:$0xff]  }
 0xb08   : > { %v6351_v30 = vmul.f32 0.001953125, %v6349_v46  ;;  %v6360_v54 = vmul.f32 %v18529_v62, %v18529_v62  ;;  %v6361_v29 = vmul.f32 %v18532_v24, %v18532_v24  ;;  %v6362_v16 = vmul.f32 %v18535_v35, %v18535_v35  ;;  %v15993_v46 = vld [vmem:[%s17586_s17 + $0x12ec] ss:$16 sps:$4 sm:$0xff]  }
 0xb09   : > { %v6363_v25 = vmul.f32 %v18538_v60, %v18538_v60  ;;  %7358 = vmatprep.subr.bf16.mxu1 %v15993_v46  ;;  %v16006_v46 = vld [vmem:[%s17586_s17 + $0x1088] ss:$16 sps:$4 sm:$0xff]  }
 0xb0a   : > { %v18547_v9 = vsub.f32 %v18475_v27, %v6351_v30  ;;  %v18550_v6 = vsub.f32 %v18469_v22, %v6351_v30  ;;  %v6368_v0 = vadd.f32 %v6361_v29, %v6360_v54  ;;  %v18553_v31 = vsub.f32 %v18484_v55, %v6351_v30 }
 0xb0b   : > { %v18558_v59 = vsub.f32 %v18488_v47, %v6351_v30 }
 0xb0c   : > { %v6369_v58 = vadd.f32 %v6368_v0, %v6362_v16  ;;  %v6364_v27 = vmul.f32 %v18547_v9, %v18547_v9  ;;  %v6365_v22 = vmul.f32 %v18550_v6, %v18550_v6  ;;  %v6366_v55 = vmul.f32 %v18553_v31, %v18553_v31 }
 0xb0d   : > { %v6367_v47 = vmul.f32 %v18558_v59, %v18558_v59 }
 0xb0e   : > { %v6370_v23 = vadd.f32 %v6369_v58, %v6363_v25  ;;  %v6373_v48 = vadd.f32 %v6365_v22, %v6364_v27  ;;  %v6399_v22 = vrot.slane %v18441_v50, %v17889_v26 }
 0xb10   : > { %6371 = vadd.xlane.f32.xlu0 %v6370_v23  ;;  %v6374_v61 = vadd.f32 %v6373_v48, %v6366_v55  ;;  %v6407_v55 = vrot.slane %v18454_v4, %v17889_v26 }
 0xb12   : > { %v6375_v38 = vadd.f32 %v6374_v61, %v6367_v47  ;;  %v6395_v47 = vrot.slane %v18444_v53, %v17889_v26 }
 0xb14   : > { %6376 = vadd.xlane.f32.xlu1 %v6375_v38  ;;  %v6403_v38 = vrot.slane %v18451_v3, %v17889_v26 }
 0xb99   : > { %v6372_v30 = vpop.xlane.xlu0 %6371 }
 0xb9a   : > { %v6378_v54 = vmul.f32 0.001953125, %v6372_v30  ;;  %v16009_v30 = vld [vmem:[%s17586_s17 + $0x1288] ss:$16 sps:$4 sm:$0xff]  }
 0xb9c   : > { %v6380_v29 = vadd.f32 1e-05, %v6378_v54  ;;  %v16014_v54 = vld [vmem:[%s17586_s17 + $0x106c] ss:$16 sps:$4 sm:$0xff]  }
 0xb9d   : > { %v6377_v16 = vpop.xlane.xlu1 %6376 }
 0xb9e   : > { %16860 = vrsqrt.f32 %v6380_v29  ;;  %v6379_v0 = vmul.f32 0.001953125, %v6377_v16  ;;  %v16017_v29 = vld [vmem:[%s17586_s17 + $0x126c] ss:$16 sps:$4 sm:$0xff]   ;;  %v16012_v16 = vld [vmem:[%s17586_s17 + $0x1068] ss:$16 sps:$4 sm:$0xff]  }
 0xba0   : > { %v6381_v25 = vadd.f32 1e-05, %v6379_v0  ;;  %v16015_v0 = vld [vmem:[%s17586_s17 + $0x1268] ss:$16 sps:$4 sm:$0xff]  }
 0xba2   : > { %16862 = vrsqrt.f32 %v6381_v25  ;;  %v16020_v25 = vld [vmem:[%s17586_s17 + $0x104c] ss:$16 sps:$4 sm:$0xff]  }
 0xbab   : > { %v16861_v58 = vpop.eup %16860 }
 0xbac   : > { %v6385_v27 = vmul.f32 %v16861_v58, %v18532_v24  ;;  %v6387_v23 = vmul.f32 %v16861_v58, %v18538_v60  ;;  %v6384_v48 = vmul.f32 %v16861_v58, %v18529_v62  ;;  %v6386_v61 = vmul.f32 %v16861_v58, %v18535_v35  ;;  %v16023_v58 = vld [vmem:[%s17586_s17 + $0x124c] ss:$16 sps:$4 sm:$0xff]  }
 0xbad   : > { %v6423_v24 = vrot.slane %v18441_v50, %v17892_v34  ;;  %v6431_v60 = vrot.slane %v18454_v4, %v17892_v34  ;;  %v6427_v62 = vrot.slane %v18451_v3, %v17892_v34 }
 0xbae   : > { %v6409_v1 = vmul.f32 %v6399_v22, %v6385_v27  ;;  %v6411_v42 = vmul.f32 %v6407_v55, %v6387_v23  ;;  %v6408_v51 = vmul.f32 %v6395_v47, %v6384_v48  ;;  %v6410_v63 = vmul.f32 %v6403_v38, %v6386_v61  ;;  %v16018_v27 = vld [vmem:[%s17586_s17 + $0x1048] ss:$16 sps:$4 sm:$0xff]   ;;  %v16026_v23 = vld [vmem:[%s17586_s17 + $0x102c] ss:$16 sps:$4 sm:$0xff]  }
 0xbaf   : > { %v16863_v2 = vpop.eup %16862  ;;  %v16024_v48 = vld [vmem:[%s17586_s17 + $0x1028] ss:$16 sps:$4 sm:$0xff]   ;;  %v16032_v61 = vld [vmem:[%s17586_s17 + $0x100c] ss:$16 sps:$4 sm:$0xff]  }
 0xbb0   : > { %v6389_v41 = vmul.f32 %v16863_v2, %v18550_v6  ;;  %v6391_v35 = vmul.f32 %v16863_v2, %v18558_v59  ;;  %v6388_v52 = vmul.f32 %v16863_v2, %v18547_v9  ;;  %v6390_v50 = vmul.f32 %v16863_v2, %v18553_v31  ;;  %v16030_v2 = vld [vmem:[%s17586_s17 + $0x1008] ss:$16 sps:$4 sm:$0xff]  }
 0xbb1   : > { %v18622_v8 = vadd.f32 %v6423_v24, %v6409_v1  ;;  %v18626_v6 = vadd.f32 %v6431_v60, %v6411_v42  ;;  %v18630_v9 = vadd.f32 %v6419_v44, %v6408_v51  ;;  %v18634_v40 = vadd.f32 %v6427_v62, %v6410_v63  ;;  %v16044_v1 = vld [vmem:[%s17586_s17 + $0x11cc] ss:$16 sps:$4 sm:$0xff]   ;;  %v16042_v42 = vld [vmem:[%s17586_s17 + $0x11c8] ss:$16 sps:$4 sm:$0xff]  }
 0xbb2   : > { %v6413_v4 = vmul.f32 %v6399_v22, %v6389_v41  ;;  %v6415_v57 = vmul.f32 %v6407_v55, %v6391_v35  ;;  %v6412_v53 = vmul.f32 %v6395_v47, %v6388_v52  ;;  %v6414_v5 = vmul.f32 %v6403_v38, %v6390_v50  ;;  %v16021_v22 = vld [vmem:[%s17586_s17 + $0x1248] ss:$16 sps:$4 sm:$0xff]   ;;  %v16029_v55 = vld [vmem:[%s17586_s17 + $0x122c] ss:$16 sps:$4 sm:$0xff]  }
 0xbb3   : > { %v16027_v47 = vld [vmem:[%s17586_s17 + $0x1228] ss:$16 sps:$4 sm:$0xff]   ;;  %v16035_v38 = vld [vmem:[%s17586_s17 + $0x120c] ss:$16 sps:$4 sm:$0xff]  }
 0xbb4   : > { %v18624_v3 = vadd.f32 %v6423_v24, %v6413_v4  ;;  %v18628_v59 = vadd.f32 %v6431_v60, %v6415_v57  ;;  %v18632_v31 = vadd.f32 %v6419_v44, %v6412_v53  ;;  %v18636_v10 = vadd.f32 %v6427_v62, %v6414_v5  ;;  %v16033_v24 = vld [vmem:[%s17586_s17 + $0x1208] ss:$16 sps:$4 sm:$0xff]   ;;  %v16038_v60 = vld [vmem:[%s17586_s17 + $0x11ec] ss:$16 sps:$4 sm:$0xff]  }
 0xbb5   : > { %v16041_v44 = vld [vmem:[%s17586_s17 + $0x13ec] ss:$16 sps:$4 sm:$0xff]   ;;  %v16036_v62 = vld [vmem:[%s17586_s17 + $0x11e8] ss:$16 sps:$4 sm:$0xff]  }
 0xbb6   : > { %v6570_v13 = vpack.c.bf16 %v18624_v3, %v18622_v8  ;;  %v6572_v12 = vpack.c.bf16 %v18628_v59, %v18626_v6  ;;  %v18646_v18 = vpack.c.bf16 %v18632_v31, %v18630_v9  ;;  %v18650_v20 = vpack.c.bf16 %v18636_v10, %v18634_v40  ;;  %v16039_v41 = vld [vmem:[%s17586_s17 + $0x13e8] ss:$16 sps:$4 sm:$0xff]   ;;  %v16047_v35 = vld [vmem:[%s17586_s17 + $0x13cc] ss:$16 sps:$4 sm:$0xff]  }
 0xbb7   : > { %v16045_v52 = vld [vmem:[%s17586_s17 + $0x13c8] ss:$16 sps:$4 sm:$0xff]   ;;  %v16050_v51 = vld [vmem:[%s17586_s17 + $0x11ac] ss:$16 sps:$4 sm:$0xff]  }
 0xbb8   : > { %7261 = vmatprep.mubr.bf16.mxu0 %v6570_v13  ;;  %7304 = vmatprep.mubr.bf16.mxu1 %v6572_v12  ;;  %v16053_v50 = vld [vmem:[%s17586_s17 + $0x13ac] ss:$16 sps:$4 sm:$0xff]   ;;  %v16048_v63 = vld [vmem:[%s17586_s17 + $0x11a8] ss:$16 sps:$4 sm:$0xff]  }
 0xbb9   : > { %7262 = vmatmul.mubr.bf16.vlgmr.msra.gmra.mxu0 %v18646_v18  ;;  %7305 = vmatmul.mubr.bf16.vlgmr.msra.gmra.mxu1 %v18650_v20  ;;  %v16051_v4 = vld [vmem:[%s17586_s17 + $0x13a8] ss:$16 sps:$4 sm:$0xff]   ;;  %v16056_v57 = vld [vmem:[%s17586_s17 + $0x118c] ss:$16 sps:$4 sm:$0xff]  }
 0xbba   : > { %7316 = vmatpush1.bf16.msra.mxu0 %v15988_v14  ;;  %7359 = vmatpush1.bf16.msra.mxu1 %v15991_v17  ;;  %v16059_v53 = vld [vmem:[%s17586_s17 + $0x138c] ss:$16 sps:$4 sm:$0xff]   ;;  %v16054_v5 = vld [vmem:[%s17586_s17 + $0x1188] ss:$16 sps:$4 sm:$0xff]  }
 0xbbb   : > { %7347 = vmatprep.mubr.bf16.mxu0 %v6570_v13  ;;  %7390 = vmatprep.mubr.bf16.mxu1 %v6572_v12  ;;  %v16057_v13 = vld [vmem:[%s17586_s17 + $0x1388] ss:$16 sps:$4 sm:$0xff]   ;;  %v16062_v12 = vld [vmem:[%s17586_s17 + $0x116c] ss:$16 sps:$4 sm:$0xff]  }
 0xbbc   : > { %7317 = vmatprep.subr.bf16.mxu0 %v15996_v21  ;;  %7360 = vmatprep.subr.bf16.mxu1 %v15999_v28  ;;  %v16065_v14 = vld [vmem:[%s17586_s17 + $0x136c] ss:$16 sps:$4 sm:$0xff]   ;;  %v16060_v17 = vld [vmem:[%s17586_s17 + $0x1168] ss:$16 sps:$4 sm:$0xff]  }
 0xbbd   : > { %v16063_v21 = vld [vmem:[%s17586_s17 + $0x1368] ss:$16 sps:$4 sm:$0xff]   ;;  %v16068_v28 = vld [vmem:[%s17586_s17 + $0x114c] ss:$16 sps:$4 sm:$0xff]  }
 0xbbe   : > { %7318 = vmatpush1.bf16.msra.mxu0 %v15994_v36  ;;  %7361 = vmatpush1.bf16.msra.mxu1 %v15997_v39  ;;  %v16071_v36 = vld [vmem:[%s17586_s17 + $0x134c] ss:$16 sps:$4 sm:$0xff]   ;;  %v16066_v39 = vld [vmem:[%s17586_s17 + $0x1148] ss:$16 sps:$4 sm:$0xff]  }
 0xbbf   : > { %7319 = vmatprep.subr.bf16.mxu0 %v16002_v11  ;;  %7362 = vmatprep.subr.bf16.mxu1 %v16005_v37  ;;  %v16069_v11 = vld [vmem:[%s17586_s17 + $0x1348] ss:$16 sps:$4 sm:$0xff]   ;;  %v16074_v37 = vld [vmem:[%s17586_s17 + $0x112c] ss:$16 sps:$4 sm:$0xff]  }
 0xbc2   : > { %7320 = vmatpush1.bf16.msra.mxu0 %v16000_v7  ;;  %7363 = vmatpush1.bf16.msra.mxu1 %v16003_v33  ;;  %v16077_v7 = vld [vmem:[%s17586_s17 + $0x132c] ss:$16 sps:$4 sm:$0xff]   ;;  %v16072_v33 = vld [vmem:[%s17586_s17 + $0x1128] ss:$16 sps:$4 sm:$0xff]  }
 0xbc3   : > { %7321 = vmatprep.subr.bf16.mxu0 %v16008_v19  ;;  %7364 = vmatprep.subr.bf16.mxu1 %v16011_v45  ;;  %v16075_v19 = vld [vmem:[%s17586_s17 + $0x1328] ss:$16 sps:$4 sm:$0xff]   ;;  %v16080_v45 = vld [vmem:[%s17586_s17 + $0x110c] ss:$16 sps:$4 sm:$0xff]  }
 0xbc6   : > { %7322 = vmatpush1.bf16.msra.mxu0 %v16006_v46  ;;  %7365 = vmatpush1.bf16.msra.mxu1 %v16009_v30  ;;  %v16083_v46 = vld [vmem:[%s17586_s17 + $0x130c] ss:$16 sps:$4 sm:$0xff]   ;;  %v16078_v30 = vld [vmem:[%s17586_s17 + $0x1108] ss:$16 sps:$4 sm:$0xff]  }
 0xbc7   : > { %7323 = vmatprep.subr.bf16.mxu0 %v16014_v54  ;;  %7366 = vmatprep.subr.bf16.mxu1 %v16017_v29  ;;  %v16081_v54 = vld [vmem:[%s17586_s17 + $0x1308] ss:$16 sps:$4 sm:$0xff]   ;;  %v16086_v29 = vld [vmem:[%s17586_s17 + $0x14e4] ss:$16 sps:$4 sm:$0xff]  }
 0xbca   : > { %7324 = vmatpush1.bf16.msra.mxu0 %v16012_v16  ;;  %7367 = vmatpush1.bf16.msra.mxu1 %v16015_v0  ;;  %v16084_v16 = vld [vmem:[%s17586_s17 + $0x14e0] ss:$16 sps:$4 sm:$0xff]   ;;  %v16089_v0 = vld [vmem:[%s17586_s17 + $0x14c4] ss:$16 sps:$4 sm:$0xff]  }
 0xbcb   : > { %7325 = vmatprep.subr.bf16.mxu0 %v16020_v25  ;;  %7368 = vmatprep.subr.bf16.mxu1 %v16023_v58  ;;  %v16087_v25 = vld [vmem:[%s17586_s17 + $0x14c0] ss:$16 sps:$4 sm:$0xff]   ;;  %v16092_v58 = vld [vmem:[%s17586_s17 + $0x14a4] ss:$16 sps:$4 sm:$0xff]  }
 0xbce   : > { %7326 = vmatpush1.bf16.msra.mxu0 %v16018_v27  ;;  %7369 = vmatpush1.bf16.msra.mxu1 %v16021_v22  ;;  %v16090_v27 = vld [vmem:[%s17586_s17 + $0x14a0] ss:$16 sps:$4 sm:$0xff]   ;;  %v16095_v22 = vld [vmem:[%s17586_s17 + $0x1484] ss:$16 sps:$4 sm:$0xff]  }
 0xbcf   : > { %7327 = vmatprep.subr.bf16.mxu0 %v16026_v23  ;;  %7370 = vmatprep.subr.bf16.mxu1 %v16029_v55  ;;  %v16093_v23 = vld [vmem:[%s17586_s17 + $0x1480] ss:$16 sps:$4 sm:$0xff]  }
 0xbd0   : > { %v16132_v55 = vld [vmem:[%s17586_s17 + $0x16e0] ss:$16 sps:$4 sm:$0xff]  }
 0xbd2   : > { %7328 = vmatpush1.bf16.msra.mxu0 %v16024_v48  ;;  %7371 = vmatpush1.bf16.msra.mxu1 %v16027_v47  ;;  %v16134_v48 = vld [vmem:[%s17586_s17 + $0x16e4] ss:$16 sps:$4 sm:$0xff]  }
 0xbd3   : > { %7329 = vmatprep.subr.bf16.mxu0 %v16032_v61  ;;  %7372 = vmatprep.subr.bf16.mxu1 %v16035_v38  ;;  %v16101_v47 = vld [vmem:[%s17586_s17 + $0x1444] ss:$16 sps:$4 sm:$0xff]   ;;  %v16099_v61 = vld [vmem:[%s17586_s17 + $0x1440] ss:$16 sps:$4 sm:$0xff]  }
 0xbd4   : > { %v16138_v38 = vld [vmem:[%s17586_s17 + $0x16c0] ss:$16 sps:$4 sm:$0xff]  }
 0xbd6   : > { %7330 = vmatpush1.bf16.msra.mxu0 %v16030_v2  ;;  %7373 = vmatpush1.bf16.msra.mxu1 %v16033_v24  ;;  %v16140_v2 = vld [vmem:[%s17586_s17 + $0x16c4] ss:$16 sps:$4 sm:$0xff]  }
 0xbd7   : > { %7331 = vmatprep.subr.bf16.mxu0 %v16038_v60  ;;  %7374 = vmatprep.subr.bf16.mxu1 %v16041_v44  ;;  %v16104_v24 = vld [vmem:[%s17586_s17 + $0x1424] ss:$16 sps:$4 sm:$0xff]   ;;  %v16102_v60 = vld [vmem:[%s17586_s17 + $0x1420] ss:$16 sps:$4 sm:$0xff]  }
 0xbd8   : > { %v16144_v44 = vld [vmem:[%s17586_s17 + $0x16a0] ss:$16 sps:$4 sm:$0xff]  }
 0xbda   : > { %7332 = vmatpush2.bf16.msra.mxu0 %v16036_v62  ;;  %7375 = vmatpush2.bf16.msra.mxu1 %v16039_v41  ;;  %v16146_v62 = vld [vmem:[%s17586_s17 + $0x16a4] ss:$16 sps:$4 sm:$0xff]  }
 0xbdb   : > { %7333 = vmatprep.subr.bf16.mxu0 %v16044_v1  ;;  %7376 = vmatprep.subr.bf16.mxu1 %v16047_v35  ;;  %v16107_v41 = vld [vmem:[%s17586_s17 + $0x1404] ss:$16 sps:$4 sm:$0xff]   ;;  %v16105_v1 = vld [vmem:[%s17586_s17 + $0x1400] ss:$16 sps:$4 sm:$0xff]  }
 0xbdc   : > { %v16150_v35 = vld [vmem:[%s17586_s17 + $0x1680] ss:$16 sps:$4 sm:$0xff]  }
 0xbde   : > { %7334 = vmatpush2.bf16.msra.mxu0 %v16042_v42  ;;  %7377 = vmatpush2.bf16.msra.mxu1 %v16045_v52  ;;  %v16152_v42 = vld [vmem:[%s17586_s17 + $0x1684] ss:$16 sps:$4 sm:$0xff]  }
 0xbdf   : > { %7335 = vmatprep.subr.bf16.mxu0 %v16050_v51  ;;  %7378 = vmatprep.subr.bf16.mxu1 %v16053_v50  ;;  %v16110_v52 = vld [vmem:[%s17586_s17 + $0x15e4] ss:$16 sps:$4 sm:$0xff]   ;;  %v16108_v51 = vld [vmem:[%s17586_s17 + $0x15e0] ss:$16 sps:$4 sm:$0xff]  }
 0xbe0   : > { %v16156_v50 = vld [vmem:[%s17586_s17 + $0x1660] ss:$16 sps:$4 sm:$0xff]  }
 0xbe2   : > { %7336 = vmatpush2.bf16.msra.mxu0 %v16048_v63  ;;  %7379 = vmatpush2.bf16.msra.mxu1 %v16051_v4  ;;  %v16158_v63 = vld [vmem:[%s17586_s17 + $0x1664] ss:$16 sps:$4 sm:$0xff]  }
 0xbe3   : > { %7337 = vmatprep.subr.bf16.mxu0 %v16056_v57  ;;  %7380 = vmatprep.subr.bf16.mxu1 %v16059_v53  ;;  %v16113_v4 = vld [vmem:[%s17586_s17 + $0x15c4] ss:$16 sps:$4 sm:$0xff]   ;;  %v16111_v57 = vld [vmem:[%s17586_s17 + $0x15c0] ss:$16 sps:$4 sm:$0xff]  }
 0xbe4   : > { %v16162_v53 = vld [vmem:[%s17586_s17 + $0x1640] ss:$16 sps:$4 sm:$0xff]  }
 0xbe6   : > { %7338 = vmatpush2.bf16.msra.mxu0 %v16054_v5  ;;  %7381 = vmatpush2.bf16.msra.mxu1 %v16057_v13  ;;  %v16164_v5 = vld [vmem:[%s17586_s17 + $0x1644] ss:$16 sps:$4 sm:$0xff]  }
 0xbe7   : > { %7339 = vmatprep.subr.bf16.mxu0 %v16062_v12  ;;  %7382 = vmatprep.subr.bf16.mxu1 %v16065_v14  ;;  %v16116_v13 = vld [vmem:[%s17586_s17 + $0x15a4] ss:$16 sps:$4 sm:$0xff]   ;;  %v16114_v12 = vld [vmem:[%s17586_s17 + $0x15a0] ss:$16 sps:$4 sm:$0xff]  }
 0xbe8   : > { %v16168_v14 = vld [vmem:[%s17586_s17 + $0x1620] ss:$16 sps:$4 sm:$0xff]  }
 0xbea   : > { %7340 = vmatpush2.bf16.msra.mxu0 %v16060_v17  ;;  %7383 = vmatpush2.bf16.msra.mxu1 %v16063_v21  ;;  %v16170_v17 = vld [vmem:[%s17586_s17 + $0x1624] ss:$16 sps:$4 sm:$0xff]  }
 0xbeb   : > { %7341 = vmatprep.subr.bf16.mxu0 %v16068_v28  ;;  %7384 = vmatprep.subr.bf16.mxu1 %v16071_v36  ;;  %v16119_v21 = vld [vmem:[%s17586_s17 + $0x1584] ss:$16 sps:$4 sm:$0xff]   ;;  %v16117_v28 = vld [vmem:[%s17586_s17 + $0x1580] ss:$16 sps:$4 sm:$0xff]  }
 0xbec   : > { %v16174_v36 = vld [vmem:[%s17586_s17 + $0x1600] ss:$16 sps:$4 sm:$0xff]  }
 0xbee   : > { %7342 = vmatpush2.bf16.msra.mxu0 %v16066_v39  ;;  %7385 = vmatpush2.bf16.msra.mxu1 %v16069_v11  ;;  %v16176_v39 = vld [vmem:[%s17586_s17 + $0x1604] ss:$16 sps:$4 sm:$0xff]  }
 0xbef   : > { %7343 = vmatprep.subr.bf16.mxu0 %v16074_v37  ;;  %7386 = vmatprep.subr.bf16.mxu1 %v16077_v7  ;;  %v16122_v11 = vld [vmem:[%s17586_s17 + $0x1564] ss:$16 sps:$4 sm:$0xff]   ;;  %v16120_v37 = vld [vmem:[%s17586_s17 + $0x1560] ss:$16 sps:$4 sm:$0xff]  }
 0xbf0   : > { %v16180_v7 = vld [vmem:[%s17586_s17 + $0x17e0] ss:$16 sps:$4 sm:$0xff]  }
 0xbf2   : > { %7344 = vmatpush2.bf16.msra.mxu0 %v16072_v33  ;;  %7387 = vmatpush2.bf16.msra.mxu1 %v16075_v19  ;;  %v16182_v33 = vld [vmem:[%s17586_s17 + $0x17e4] ss:$16 sps:$4 sm:$0xff]  }
 0xbf3   : > { %7345 = vmatprep.subr.bf16.mxu0 %v16080_v45  ;;  %7388 = vmatprep.subr.bf16.mxu1 %v16083_v46  ;;  %v16125_v19 = vld [vmem:[%s17586_s17 + $0x1544] ss:$16 sps:$4 sm:$0xff]   ;;  %v16123_v45 = vld [vmem:[%s17586_s17 + $0x1540] ss:$16 sps:$4 sm:$0xff]  }
 0xbf4   : > { %v16186_v46 = vld [vmem:[%s17586_s17 + $0x17c0] ss:$16 sps:$4 sm:$0xff]  }
 0xbf6   : > { %7346 = vmatpush2.bf16.msra.mxu0 %v16078_v30  ;;  %7389 = vmatpush2.bf16.msra.mxu1 %v16081_v54  ;;  %v16188_v30 = vld [vmem:[%s17586_s17 + $0x17c4] ss:$16 sps:$4 sm:$0xff]  }
 0xbf7   : > { %8198 = vmatprep.subr.bf16.mxu0 %v16086_v29  ;;  %8241 = vmatprep.subr.bf16.mxu1 %v16134_v48  ;;  %v16128_v54 = vld [vmem:[%s17586_s17 + $0x1524] ss:$16 sps:$4 sm:$0xff]   ;;  %v16126_v29 = vld [vmem:[%s17586_s17 + $0x1520] ss:$16 sps:$4 sm:$0xff]  }
 0xbf8   : > { %v16210_v48 = vld [vmem:[%s17586_s17 + $0x1740] ss:$16 sps:$4 sm:$0xff]  }
 0xbf9   : > { %7348 = vmatmul.mubr.bf16.vlgmr.msra.gmra.mxu0 %v18646_v18  ;;  %7391 = vmatmul.mubr.bf16.vlgmr.msra.gmra.mxu1 %v18650_v20  ;;  %v16098_v18 = vld [vmem:[%s17586_s17 + $0x1464] ss:$16 sps:$4 sm:$0xff]   ;;  %v16096_v20 = vld [vmem:[%s17586_s17 + $0x1460] ss:$16 sps:$4 sm:$0xff]  }
 0xbfa   : > { %8199 = vmatpush1.bf16.msra.mxu0 %v16084_v16  ;;  %8242 = vmatpush1.bf16.msra.mxu1 %v16132_v55  ;;  %v16192_v16 = vld [vmem:[%s17586_s17 + $0x17a0] ss:$16 sps:$4 sm:$0xff]   ;;  %v16212_v55 = vld [vmem:[%s17586_s17 + $0x1744] ss:$16 sps:$4 sm:$0xff]  }
 0xbfb   : > { %8200 = vmatprep.subr.bf16.mxu0 %v16089_v0  ;;  %8243 = vmatprep.subr.bf16.mxu1 %v16140_v2  ;;  %v16194_v0 = vld [vmem:[%s17586_s17 + $0x17a4] ss:$16 sps:$4 sm:$0xff]   ;;  %v16222_v2 = vld [vmem:[%s17586_s17 + $0x1700] ss:$16 sps:$4 sm:$0xff]  }
 0xbfe   : > { %8201 = vmatpush1.bf16.msra.mxu0 %v16087_v25  ;;  %8244 = vmatpush1.bf16.msra.mxu1 %v16138_v38  ;;  %v16131_v25 = vld [vmem:[%s17586_s17 + $0x1504] ss:$16 sps:$4 sm:$0xff]  }
 0xbff   : > { %8202 = vmatprep.subr.bf16.mxu0 %v16092_v58  ;;  %8245 = vmatprep.subr.bf16.mxu1 %v16146_v62  ;;  %v16129_v58 = vld [vmem:[%s17586_s17 + $0x1500] ss:$16 sps:$4 sm:$0xff]   ;;  %v16224_v38 = vld [vmem:[%s17586_s17 + $0x1704] ss:$16 sps:$4 sm:$0xff]   ;;  %v18788_v62 = vld [vmem:[%s17745_s28 + $0x20] sm:$0xff] }
 0xc02   : > { %8203 = vmatpush1.bf16.msra.mxu0 %v16090_v27  ;;  %8246 = vmatpush1.bf16.msra.mxu1 %v16144_v44  ;;  %v16198_v27 = vld [vmem:[%s17586_s17 + $0x1780] ss:$16 sps:$4 sm:$0xff]  }
 0xc03   : > { %8204 = vmatprep.subr.bf16.mxu0 %v16095_v22  ;;  %8247 = vmatprep.subr.bf16.mxu1 %v16152_v42  ;;  %v16200_v22 = vld [vmem:[%s17586_s17 + $0x1784] ss:$16 sps:$4 sm:$0xff]  }
 0xc06   : > { %8205 = vmatpush1.bf16.msra.mxu0 %v16093_v23  ;;  %8248 = vmatpush1.bf16.msra.mxu1 %v16150_v35  ;;  %v16137_v23 = vld [vmem:[%s17586_s17 + $0x14ec] ss:$16 sps:$4 sm:$0xff]  }
 0xc07   : > { %8206 = vmatprep.subr.bf16.mxu0 %v16098_v18  ;;  %8249 = vmatprep.subr.bf16.mxu1 %v16158_v63  ;;  %v16204_v18 = vld [vmem:[%s17586_s17 + $0x1760] ss:$16 sps:$4 sm:$0xff]  }
 0xc0a   : > { %8207 = vmatpush1.bf16.msra.mxu0 %v16096_v20  ;;  %8250 = vmatpush1.bf16.msra.mxu1 %v16156_v50  ;;  %v16206_v20 = vld [vmem:[%s17586_s17 + $0x1764] ss:$16 sps:$4 sm:$0xff]  }
 0xc0b   : > { %8208 = vmatprep.subr.bf16.mxu0 %v16101_v47  ;;  %8251 = vmatprep.subr.bf16.mxu1 %v16164_v5  ;;  %v16218_v47 = vld [vmem:[%s17586_s17 + $0x1724] ss:$16 sps:$4 sm:$0xff]  }
 0xc0e   : > { %8209 = vmatpush1.bf16.msra.mxu0 %v16099_v61  ;;  %8252 = vmatpush1.bf16.msra.mxu1 %v16162_v53  ;;  %v16216_v61 = vld [vmem:[%s17586_s17 + $0x1720] ss:$16 sps:$4 sm:$0xff]  }
 0xc0f   : > { %8210 = vmatprep.subr.bf16.mxu0 %v16104_v24  ;;  %8253 = vmatprep.subr.bf16.mxu1 %v16170_v17  ;;  %v16230_v24 = vld [vmem:[%s17586_s17 + $0x16ec] ss:$16 sps:$4 sm:$0xff]  }
 0xc12   : > { %8211 = vmatpush1.bf16.msra.mxu0 %v16102_v60  ;;  %8254 = vmatpush1.bf16.msra.mxu1 %v16168_v14  ;;  %v18783_v60 = vld [vmem:[%s17745_s28 + $0x28] sm:$0xff] }
 0xc13   : > { %8212 = vmatprep.subr.bf16.mxu0 %v16107_v41  ;;  %8255 = vmatprep.subr.bf16.mxu1 %v16176_v39  ;;  %v6580_v44 = vrot.slane %v18783_v60, %v18091_v32  ;;  %v6576_v41 = vrot.slane %v18788_v62, %v18091_v32 }
 0xc16   : > { %8213 = vmatpush1.bf16.msra.mxu0 %v16105_v1  ;;  %8256 = vmatpush1.bf16.msra.mxu1 %v16174_v36 }
 0xc17   : > { %8214 = vmatprep.subr.bf16.mxu0 %v16110_v52  ;;  %8257 = vmatprep.subr.bf16.mxu1 %v16182_v33 }
 0xc1a   : > { %8215 = vmatpush2.bf16.msra.mxu0 %v16108_v51  ;;  %8258 = vmatpush2.bf16.msra.mxu1 %v16180_v7  ;;  %v16135_v7 = vld [vmem:[%s17586_s17 + $0x14e8] ss:$16 sps:$4 sm:$0xff]  }
 0xc1b   : > { %8216 = vmatprep.subr.bf16.mxu0 %v16113_v4  ;;  %8259 = vmatprep.subr.bf16.mxu1 %v16188_v30  ;;  %v16147_v30 = vld [vmem:[%s17586_s17 + $0x14a8] ss:$16 sps:$4 sm:$0xff]  }
 0xc1e   : > { %8217 = vmatpush2.bf16.msra.mxu0 %v16111_v57  ;;  %8260 = vmatpush2.bf16.msra.mxu1 %v16186_v46  ;;  %v16149_v46 = vld [vmem:[%s17586_s17 + $0x14ac] ss:$16 sps:$4 sm:$0xff]  }
 0xc1f   : > { %8218 = vmatprep.subr.bf16.mxu0 %v16116_v13  ;;  %8261 = vmatprep.subr.bf16.mxu1 %v16194_v0  ;;  %v16159_v0 = vld [vmem:[%s17586_s17 + $0x1468] ss:$16 sps:$4 sm:$0xff]  }
 0xc22   : > { %8219 = vmatpush2.bf16.msra.mxu0 %v16114_v12  ;;  %8262 = vmatpush2.bf16.msra.mxu1 %v16192_v16  ;;  %v16161_v16 = vld [vmem:[%s17586_s17 + $0x146c] ss:$16 sps:$4 sm:$0xff]  }
 0xc23   : > { %8220 = vmatprep.subr.bf16.mxu0 %v16119_v21  ;;  %8263 = vmatprep.subr.bf16.mxu1 %v16200_v22  ;;  %v16171_v22 = vld [vmem:[%s17586_s17 + $0x1428] ss:$16 sps:$4 sm:$0xff]  }
 0xc26   : > { %8221 = vmatpush2.bf16.msra.mxu0 %v16117_v28  ;;  %8264 = vmatpush2.bf16.msra.mxu1 %v16198_v27  ;;  %v16173_v27 = vld [vmem:[%s17586_s17 + $0x142c] ss:$16 sps:$4 sm:$0xff]  }
 0xc27   : > { %8222 = vmatprep.subr.bf16.mxu0 %v16122_v11  ;;  %8265 = vmatprep.subr.bf16.mxu1 %v16206_v20  ;;  %v16185_v20 = vld [vmem:[%s17586_s17 + $0x15ec] ss:$16 sps:$4 sm:$0xff]  }
 0xc2a   : > { %8223 = vmatpush2.bf16.msra.mxu0 %v16120_v37  ;;  %8266 = vmatpush2.bf16.msra.mxu1 %v16204_v18  ;;  %v16177_v18 = vld [vmem:[%s17586_s17 + $0x1408] ss:$16 sps:$4 sm:$0xff]  }
 0xc2b   : > { %8224 = vmatprep.subr.bf16.mxu0 %v16125_v19  ;;  %8267 = vmatprep.subr.bf16.mxu1 %v16212_v55  ;;  %v16143_v19 = vld [vmem:[%s17586_s17 + $0x14cc] ss:$16 sps:$4 sm:$0xff]   ;;  %v16183_v55 = vld [vmem:[%s17586_s17 + $0x15e8] ss:$16 sps:$4 sm:$0xff]  }
 0xc2e   : > { %8225 = vmatpush2.bf16.msra.mxu0 %v16123_v45  ;;  %8268 = vmatpush2.bf16.msra.mxu1 %v16210_v48  ;;  %v16141_v45 = vld [vmem:[%s17586_s17 + $0x14c8] ss:$16 sps:$4 sm:$0xff]   ;;  %v16191_v48 = vld [vmem:[%s17586_s17 + $0x15cc] ss:$16 sps:$4 sm:$0xff]  }
 0xc2f   : > { %8226 = vmatprep.subr.bf16.mxu0 %v16128_v54  ;;  %8269 = vmatprep.subr.bf16.mxu1 %v16218_v47  ;;  %v16155_v54 = vld [vmem:[%s17586_s17 + $0x148c] ss:$16 sps:$4 sm:$0xff]   ;;  %v16189_v47 = vld [vmem:[%s17586_s17 + $0x15c8] ss:$16 sps:$4 sm:$0xff]  }
 0xc32   : > { %8227 = vmatpush2.bf16.msra.mxu0 %v16126_v29  ;;  %8270 = vmatpush2.bf16.msra.mxu1 %v16216_v61  ;;  %v16153_v29 = vld [vmem:[%s17586_s17 + $0x1488] ss:$16 sps:$4 sm:$0xff]   ;;  %v16197_v61 = vld [vmem:[%s17586_s17 + $0x15ac] ss:$16 sps:$4 sm:$0xff]  }
 0xc33   : > { %8228 = vmatprep.subr.bf16.mxu0 %v16131_v25  ;;  %8271 = vmatprep.subr.bf16.mxu1 %v16224_v38  ;;  %v16167_v25 = vld [vmem:[%s17586_s17 + $0x144c] ss:$16 sps:$4 sm:$0xff]   ;;  %v16195_v38 = vld [vmem:[%s17586_s17 + $0x15a8] ss:$16 sps:$4 sm:$0xff]  }
 0xc36   : > { %8229 = vmatpush2.bf16.msra.mxu0 %v16129_v58  ;;  %8272 = vmatpush2.bf16.msra.mxu1 %v16222_v2  ;;  %v16165_v58 = vld [vmem:[%s17586_s17 + $0x1448] ss:$16 sps:$4 sm:$0xff]   ;;  %v16203_v2 = vld [vmem:[%s17586_s17 + $0x158c] ss:$16 sps:$4 sm:$0xff]  }
 0xc37   : > { %8284 = vmatprep.subr.bf16.mxu0 %v16137_v23  ;;  %8327 = vmatprep.subr.bf16.mxu1 %v16230_v24  ;;  %v16179_v23 = vld [vmem:[%s17586_s17 + $0x140c] ss:$16 sps:$4 sm:$0xff]   ;;  %v16201_v24 = vld [vmem:[%s17586_s17 + $0x1588] ss:$16 sps:$4 sm:$0xff]  }
 0xc79   : > { %v7263_v1 = vpop.f32.mrf.mxu0  ;;  %v7306_v35 = vpop.f32.mrf.mxu1 }
 0xc7a   : > { %v7264_v50 = vadd.f32 %v7263_v1, %v6576_v41  ;;  %v16215_v1 = vld [vmem:[%s17586_s17 + $0x154c] ss:$16 sps:$4 sm:$0xff]  }
 0xc7b   : > { %v7265_v42 = vpop.f32.mrf.mxu0  ;;  %v7308_v52 = vpop.f32.mrf.mxu1 }
 0xc7c   : > { %v7266_v51 = vadd.f32 %v7265_v42, %v6580_v44  ;;  %v7307_v14 = vadd.f32 %v7306_v35, %v7264_v50  ;;  %v18822_v35 = vld [vmem:[%s17745_s28 + $0x38] sm:$0xff] }
 0xc7d   : > { %v7267_v63 = vpop.f32.mrf.mxu0  ;;  %v7310_v4 = vpop.f32.mrf.mxu1  ;;  %v6588_v42 = vrot.slane %v18822_v35, %v18091_v32 }
 0xc7e   : > { %v7268_v57 = vadd.f32 %v7267_v63, %v6576_v41  ;;  %v7309_v5 = vadd.f32 %v7308_v52, %v7266_v51  ;;  %v7401_v11 = vmax.f32 %v7307_v14, 0.0  ;;  %v16207_v41 = vld [vmem:[%s17586_s17 + $0x1568] ss:$16 sps:$4 sm:$0xff]  }
 0xc7f   : > { %v7269_v53 = vpop.f32.mrf.mxu0  ;;  %v7312_v17 = vpop.f32.mrf.mxu1  ;;  %v18827_v52 = vld [vmem:[%s17745_s28 + $0x30] sm:$0xff] }
 0xc80   : > { %v7311_v13 = vadd.f32 %v7310_v4, %v7268_v57  ;;  %v7270_v12 = vadd.f32 %v7269_v53, %v6580_v44  ;;  %v7402_v36 = vmax.f32 %v7309_v5, 0.0  ;;  %v16209_v44 = vld [vmem:[%s17586_s17 + $0x156c] ss:$16 sps:$4 sm:$0xff]   ;;  %v6584_v51 = vrot.slane %v18827_v52, %v18091_v32  ;;  %v16213_v4 = vld [vmem:[%s17586_s17 + $0x1548] ss:$16 sps:$4 sm:$0xff]  }
 0xc81   : > { %v16221_v5 = vld [vmem:[%s17586_s17 + $0x152c] ss:$16 sps:$4 sm:$0xff]  }
 0xc82   : > { %v7313_v21 = vadd.f32 %v7312_v17, %v7270_v12  ;;  %v7405_v28 = vmax.f32 %v7311_v13, 0.0 }
 0xc84   : > { %v7406_v39 = vmax.f32 %v7313_v21, 0.0  ;;  %v18793_v33 = vpack.c.bf16 %v7405_v28, %v7401_v11  ;;  %v16219_v28 = vld [vmem:[%s17586_s17 + $0x1528] ss:$16 sps:$4 sm:$0xff]  }
 0xc86   : > { %v7539_v37 = vpack.c.bf16 %v7406_v39, %v7402_v36  ;;  %v16227_v39 = vld [vmem:[%s17586_s17 + $0x150c] ss:$16 sps:$4 sm:$0xff]  }
 0xc88   : > { %8230 = vmatprep.mubr.bf16.mxu0 %v7539_v37 }
 0xc89   : > { %8231 = vmatmul.mubr.bf16.vlgmr.msra.gmra.mxu0 %v18793_v33 }
 0xc8a   : > { %8285 = vmatpush1.bf16.msra.mxu0 %v16135_v7  ;;  %8316 = vmatprep.mubr.bf16.mxu0 %v7539_v37 }
 0xc8b   : > { %8286 = vmatprep.subr.bf16.mxu0 %v16143_v19 }
 0xc8e   : > { %8287 = vmatpush1.bf16.msra.mxu0 %v16141_v45 }
 0xc8f   : > { %8288 = vmatprep.subr.bf16.mxu0 %v16149_v46 }
 0xc92   : > { %8289 = vmatpush1.bf16.msra.mxu0 %v16147_v30  ;;  %v16225_v30 = vld [vmem:[%s17586_s17 + $0x1508] ss:$16 sps:$4 sm:$0xff]  }
 0xc93   : > { %8290 = vmatprep.subr.bf16.mxu0 %v16155_v54 }
 0xc96   : > { %8291 = vmatpush1.bf16.msra.mxu0 %v16153_v29 }
 0xc97   : > { %8292 = vmatprep.subr.bf16.mxu0 %v16161_v16 }
 0xc9a   : > { %8293 = vmatpush1.bf16.msra.mxu0 %v16159_v0 }
 0xc9b   : > { %8294 = vmatprep.subr.bf16.mxu0 %v16167_v25 }
 0xc9e   : > { %8295 = vmatpush1.bf16.msra.mxu0 %v16165_v58  ;;  %v16228_v58 = vld [vmem:[%s17586_s17 + $0x16e8] ss:$16 sps:$4 sm:$0xff]  }
 0xc9f   : > { %8296 = vmatprep.subr.bf16.mxu0 %v16173_v27 }
 0xca2   : > { %8297 = vmatpush1.bf16.msra.mxu0 %v16171_v22  ;;  %v16233_v22 = vld [vmem:[%s17586_s17 + $0x16cc] ss:$16 sps:$4 sm:$0xff]  }
 0xca3   : > { %8298 = vmatprep.subr.bf16.mxu0 %v16179_v23  ;;  %v16231_v23 = vld [vmem:[%s17586_s17 + $0x16c8] ss:$16 sps:$4 sm:$0xff]  }
 0xca6   : > { %8299 = vmatpush1.bf16.msra.mxu0 %v16177_v18  ;;  %v16236_v18 = vld [vmem:[%s17586_s17 + $0x16ac] ss:$16 sps:$4 sm:$0xff]  }
 0xca7   : > { %8300 = vmatprep.subr.bf16.mxu0 %v16185_v20  ;;  %v16234_v20 = vld [vmem:[%s17586_s17 + $0x16a8] ss:$16 sps:$4 sm:$0xff]  }
 0xcaa   : > { %8301 = vmatpush2.bf16.msra.mxu0 %v16183_v55  ;;  %v16239_v55 = vld [vmem:[%s17586_s17 + $0x168c] ss:$16 sps:$4 sm:$0xff]  }
 0xcab   : > { %8302 = vmatprep.subr.bf16.mxu0 %v16191_v48  ;;  %v16237_v48 = vld [vmem:[%s17586_s17 + $0x1688] ss:$16 sps:$4 sm:$0xff]  }
 0xcae   : > { %8303 = vmatpush2.bf16.msra.mxu0 %v16189_v47  ;;  %v16242_v47 = vld [vmem:[%s17586_s17 + $0x166c] ss:$16 sps:$4 sm:$0xff]  }
 0xcaf   : > { %8304 = vmatprep.subr.bf16.mxu0 %v16197_v61  ;;  %v16245_v61 = vld [vmem:[%s17586_s17 + $0x164c] ss:$16 sps:$4 sm:$0xff]  }
 0xcb2   : > { %8305 = vmatpush2.bf16.msra.mxu0 %v16195_v38  ;;  %v16243_v38 = vld [vmem:[%s17586_s17 + $0x1648] ss:$16 sps:$4 sm:$0xff]  }
 0xcb3   : > { %8306 = vmatprep.subr.bf16.mxu0 %v16203_v2  ;;  %v16248_v2 = vld [vmem:[%s17586_s17 + $0x162c] ss:$16 sps:$4 sm:$0xff]  }
 0xcb6   : > { %8307 = vmatpush2.bf16.msra.mxu0 %v16201_v24  ;;  %v16246_v24 = vld [vmem:[%s17586_s17 + $0x1628] ss:$16 sps:$4 sm:$0xff]  }
 0xcb7   : > { %8308 = vmatprep.subr.bf16.mxu0 %v16209_v44  ;;  %v16251_v44 = vld [vmem:[%s17586_s17 + $0x160c] ss:$16 sps:$4 sm:$0xff]  }
 0xcb9   : > { %v7349_v50 = vpop.f32.mrf.mxu0  ;;  %v7392_v63 = vpop.f32.mrf.mxu1 }
 0xcba   : > { %8309 = vmatpush2.bf16.msra.mxu0 %v16207_v41  ;;  %v7350_v12 = vadd.f32 %v7349_v50, %v6584_v51  ;;  %v16249_v41 = vld [vmem:[%s17586_s17 + $0x1608] ss:$16 sps:$4 sm:$0xff]  }
 0xcbb   : > { %v7351_v57 = vpop.f32.mrf.mxu0  ;;  %v7394_v53 = vpop.f32.mrf.mxu1  ;;  %8310 = vmatprep.subr.bf16.mxu0 %v16215_v1  ;;  %v16254_v1 = vld [vmem:[%s17586_s17 + $0x17ec] ss:$16 sps:$4 sm:$0xff]   ;;  %v16255_v50 = vld [vmem:[%s17586_s17 + $0x17c8] ss:$16 sps:$4 sm:$0xff]  }
 0xcbc   : > { %v7352_v13 = vadd.f32 %v7351_v57, %v6588_v42  ;;  %v7393_v19 = vadd.f32 %v7392_v63, %v7350_v12  ;;  %v16260_v63 = vld [vmem:[%s17586_s17 + $0x17ac] ss:$16 sps:$4 sm:$0xff]  }
 0xcbd   : > { %v7353_v14 = vpop.f32.mrf.mxu0  ;;  %v7396_v17 = vpop.f32.mrf.mxu1  ;;  %v16263_v57 = vld [vmem:[%s17586_s17 + $0x178c] ss:$16 sps:$4 sm:$0xff]  }
 0xcbe   : > { %v7354_v21 = vadd.f32 %v7353_v14, %v6584_v51  ;;  %8311 = vmatpush2.bf16.msra.mxu0 %v16213_v4  ;;  %v7395_v11 = vadd.f32 %v7394_v53, %v7352_v13  ;;  %v7403_v0 = vmax.f32 %v7393_v19, 0.0  ;;  %v16257_v51 = vld [vmem:[%s17586_s17 + $0x17cc] ss:$16 sps:$4 sm:$0xff]   ;;  %v16258_v4 = vld [vmem:[%s17586_s17 + $0x17a8] ss:$16 sps:$4 sm:$0xff]  }
 0xcbf   : > { %v7355_v36 = vpop.f32.mrf.mxu0  ;;  %8312 = vmatprep.subr.bf16.mxu0 %v16221_v5  ;;  %v7398_v45 = vpop.f32.mrf.mxu1  ;;  %v16261_v53 = vld [vmem:[%s17586_s17 + $0x1788] ss:$16 sps:$4 sm:$0xff]   ;;  %v16266_v5 = vld [vmem:[%s17586_s17 + $0x176c] ss:$16 sps:$4 sm:$0xff]  }
 0xcc0   : > { %v7397_v37 = vadd.f32 %v7396_v17, %v7354_v21  ;;  %v7356_v7 = vadd.f32 %v7355_v36, %v6588_v42  ;;  %v7404_v29 = vmax.f32 %v7395_v11, 0.0  ;;  %v16252_v42 = vld [vmem:[%s17586_s17 + $0x17e8] ss:$16 sps:$4 sm:$0xff]   ;;  %v16269_v12 = vld [vmem:[%s17586_s17 + $0x174c] ss:$16 sps:$4 sm:$0xff]  }
 0xcc1   : > { %v16264_v13 = vld [vmem:[%s17586_s17 + $0x1768] ss:$16 sps:$4 sm:$0xff]   ;;  %v16272_v17 = vld [vmem:[%s17586_s17 + $0x172c] ss:$16 sps:$4 sm:$0xff]  }
 0xcc2   : > { %v7399_v46 = vadd.f32 %v7398_v45, %v7356_v7  ;;  %8313 = vmatpush2.bf16.msra.mxu0 %v16219_v28  ;;  %v7407_v54 = vmax.f32 %v7397_v37, 0.0  ;;  %v16267_v14 = vld [vmem:[%s17586_s17 + $0x1748] ss:$16 sps:$4 sm:$0xff]   ;;  %v16275_v28 = vld [vmem:[%s17586_s17 + $0x170c] ss:$16 sps:$4 sm:$0xff]  }
 0xcc3   : > { %8314 = vmatprep.subr.bf16.mxu0 %v16227_v39  ;;  %v16270_v21 = vld [vmem:[%s17586_s17 + $0x1728] ss:$16 sps:$4 sm:$0xff]  }
 0xcc4   : > { %v7408_v16 = vmax.f32 %v7399_v46, 0.0  ;;  %v18837_v27 = vpack.c.bf16 %v7407_v54, %v7403_v0  ;;  %v16273_v36 = vld [vmem:[%s17586_s17 + $0x1708] ss:$16 sps:$4 sm:$0xff]   ;;  %v7549_v46 = vrot.slane %v18783_v60, %v18172_v15  ;;  %v7545_v54 = vrot.slane %v18788_v62, %v18172_v15 }
 0xcc6   : > { %v7541_v25 = vpack.c.bf16 %v7408_v16, %v7404_v29  ;;  %8315 = vmatpush2.bf16.msra.mxu0 %v16225_v30 }
 0xcc8   : > { %8273 = vmatprep.mubr.bf16.mxu1 %v7541_v25 }
 0xcc9   : > { %8274 = vmatmul.mubr.bf16.vlgmr.msra.gmra.mxu1 %v18837_v27  ;;  %8317 = vmatmul.mubr.bf16.vlgmr.msra.gmra.mxu0 %v18793_v33  ;;  %v16240_v33 = vld [vmem:[%s17586_s17 + $0x1668] ss:$16 sps:$4 sm:$0xff]  }
 0xcca   : > { %8328 = vmatpush1.bf16.msra.mxu1 %v16228_v58  ;;  %8359 = vmatprep.mubr.bf16.mxu1 %v7541_v25  ;;  %v7553_v58 = vrot.slane %v18827_v52, %v18172_v15 }
 0xccb   : > { %8329 = vmatprep.subr.bf16.mxu1 %v16233_v22 }
 0xcce   : > { %8330 = vmatpush1.bf16.msra.mxu1 %v16231_v23 }
 0xccf   : > { %8331 = vmatprep.subr.bf16.mxu1 %v16236_v18 }
 0xcd2   : > { %8332 = vmatpush1.bf16.msra.mxu1 %v16234_v20  ;;  %v7557_v20 = vrot.slane %v18822_v35, %v18172_v15 }
 0xcd3   : > { %8333 = vmatprep.subr.bf16.mxu1 %v16239_v55 }
 0xcd6   : > { %8334 = vmatpush1.bf16.msra.mxu1 %v16237_v48 }
 0xcd7   : > { %8335 = vmatprep.subr.bf16.mxu1 %v16242_v47 }
 0xcda   : > { %8336 = vmatpush1.bf16.msra.mxu1 %v16240_v33 }
 0xcdb   : > { %8337 = vmatprep.subr.bf16.mxu1 %v16245_v61 }
 0xcde   : > { %8338 = vmatpush1.bf16.msra.mxu1 %v16243_v38 }
 0xcdf   : > { %8339 = vmatprep.subr.bf16.mxu1 %v16248_v2 }
 0xce2   : > { %8340 = vmatpush1.bf16.msra.mxu1 %v16246_v24 }
 0xce3   : > { %8341 = vmatprep.subr.bf16.mxu1 %v16251_v44 }
 0xce6   : > { %8342 = vmatpush1.bf16.msra.mxu1 %v16249_v41 }
 0xce7   : > { %8343 = vmatprep.subr.bf16.mxu1 %v16254_v1 }
 0xcea   : > { %8344 = vmatpush2.bf16.msra.mxu1 %v16252_v42 }
 0xceb   : > { %8345 = vmatprep.subr.bf16.mxu1 %v16257_v51 }
 0xcee   : > { %8346 = vmatpush2.bf16.msra.mxu1 %v16255_v50 }
 0xcef   : > { %8347 = vmatprep.subr.bf16.mxu1 %v16260_v63 }
 0xcf2   : > { %8348 = vmatpush2.bf16.msra.mxu1 %v16258_v4 }
 0xcf3   : > { %8349 = vmatprep.subr.bf16.mxu1 %v16263_v57 }
 0xcf6   : > { %8350 = vmatpush2.bf16.msra.mxu1 %v16261_v53 }
 0xcf7   : > { %8351 = vmatprep.subr.bf16.mxu1 %v16266_v5 }
 0xcfa   : > { %8352 = vmatpush2.bf16.msra.mxu1 %v16264_v13 }
 0xcfb   : > { %8353 = vmatprep.subr.bf16.mxu1 %v16269_v12 }
 0xcfe   : > { %8354 = vmatpush2.bf16.msra.mxu1 %v16267_v14 }
 0xcff   : > { %8355 = vmatprep.subr.bf16.mxu1 %v16272_v17 }
 0xd02   : > { %8356 = vmatpush2.bf16.msra.mxu1 %v16270_v21 }
 0xd03   : > { %8357 = vmatprep.subr.bf16.mxu1 %v16275_v28 }
 0xd06   : > { %8358 = vmatpush2.bf16.msra.mxu1 %v16273_v36  ;;  %v16276_v36 = vld [vmem:[%s17586_s17 + $0x18e0] ss:$16 sps:$4 sm:$0xff]  }
 0xd09   : > { %8360 = vmatmul.mubr.bf16.vlgmr.msra.gmra.mxu1 %v18837_v27 }
 0xd49   : > { %v8232_v39 = vpop.f32.mrf.mxu0 }
 0xd4a   : > { %v8233_v25 = vadd.f32 %v8232_v39, %v7545_v54  ;;  %v16278_v39 = vld [vmem:[%s17586_s17 + $0x18e4] ss:$16 sps:$4 sm:$0xff]  }
 0xd4b   : > { %v8234_v11 = vpop.f32.mrf.mxu0  ;;  %9275 = vmatprep.subr.bf16.mxu0 %v16278_v39 }
 0xd4c   : > { %v8235_v16 = vadd.f32 %v8234_v11, %v7549_v46  ;;  %v16281_v11 = vld [vmem:[%s17586_s17 + $0x1ae4] ss:$16 sps:$4 sm:$0xff]   ;;  %9276 = vmatpush1.bf16.msra.mxu0 %v16276_v36 }
 0xd4d   : > { %v8236_v37 = vpop.f32.mrf.mxu0  ;;  %9318 = vmatprep.subr.bf16.mxu1 %v16281_v11 }
 0xd4e   : > { %v8237_v55 = vadd.f32 %v8236_v37, %v7545_v54  ;;  %v16284_v37 = vld [vmem:[%s17586_s17 + $0x18c4] ss:$16 sps:$4 sm:$0xff]   ;;  %v16291_v54 = vld [vmem:[%s17586_s17 + $0x1aa0] ss:$16 sps:$4 sm:$0xff]  }
 0xd4f   : > { %v8238_v19 = vpop.f32.mrf.mxu0  ;;  %9277 = vmatprep.subr.bf16.mxu0 %v16284_v37 }
 0xd50   : > { %v8239_v23 = vadd.f32 %v8238_v19, %v7549_v46  ;;  %v16285_v19 = vld [vmem:[%s17586_s17 + $0x1ac0] ss:$16 sps:$4 sm:$0xff]   ;;  %v16293_v46 = vld [vmem:[%s17586_s17 + $0x1aa4] ss:$16 sps:$4 sm:$0xff]  }
 0xd89   : > { %v8275_v7 = vpop.f32.mrf.mxu1  ;;  %v8318_v30 = vpop.f32.mrf.mxu0 }
 0xd8a   : > { %v8276_v18 = vadd.f32 %v8275_v7, %v8233_v25  ;;  %v8319_v47 = vadd.f32 %v8318_v30, %v7553_v58  ;;  %v16282_v7 = vld [vmem:[%s17586_s17 + $0x18c0] ss:$16 sps:$4 sm:$0xff]  }
 0xd8b   : > { %v8277_v45 = vpop.f32.mrf.mxu1  ;;  %v8320_v0 = vpop.f32.mrf.mxu0  ;;  %9278 = vmatpush1.bf16.msra.mxu0 %v16282_v7  ;;  %v16288_v30 = vld [vmem:[%s17586_s17 + $0x18a0] ss:$16 sps:$4 sm:$0xff]  }
 0xd8c   : > { %v8278_v27 = vadd.f32 %v8277_v45, %v8235_v16  ;;  %v18884_v24 = vadd.f32 %v8276_v18, %v18630_v9  ;;  %v8321_v44 = vadd.f32 %v8320_v0, %v7557_v20  ;;  %v16290_v45 = vld [vmem:[%s17586_s17 + $0x18a4] ss:$16 sps:$4 sm:$0xff]   ;;  %v16294_v0 = vld [vmem:[%s17586_s17 + $0x1880] ss:$16 sps:$4 sm:$0xff]  }
 0xd8d   : > { %v8279_v29 = vpop.f32.mrf.mxu1  ;;  %v8322_v48 = vpop.f32.mrf.mxu0  ;;  %9279 = vmatprep.subr.bf16.mxu0 %v16290_v45  ;;  %v16299_v16 = vld [vmem:[%s17586_s17 + $0x1a84] ss:$16 sps:$4 sm:$0xff]   ;;  %v16297_v25 = vld [vmem:[%s17586_s17 + $0x1a80] ss:$16 sps:$4 sm:$0xff]  }
 0xd8e   : > { %v18881_v33 = vadd.f32 %v8278_v27, %v18622_v8  ;;  %v8280_v38 = vadd.f32 %v8279_v29, %v8237_v55  ;;  %v8323_v1 = vadd.f32 %v8322_v48, %v7553_v58  ;;  %v16296_v29 = vld [vmem:[%s17586_s17 + $0x1884] ss:$16 sps:$4 sm:$0xff]   ;;  %v16306_v55 = vld [vmem:[%s17586_s17 + $0x1840] ss:$16 sps:$4 sm:$0xff]  }
 0xd8f   : > { %v8281_v22 = vpop.f32.mrf.mxu1  ;;  %v8324_v42 = vpop.f32.mrf.mxu0  ;;  %9280 = vmatpush1.bf16.msra.mxu0 %v16288_v30  ;;  %v16302_v58 = vld [vmem:[%s17586_s17 + $0x1864] ss:$16 sps:$4 sm:$0xff]   ;;  %v16309_v48 = vld [vmem:[%s17586_s17 + $0x1a40] ss:$16 sps:$4 sm:$0xff]  }
 0xd90   : > { %v8282_v61 = vadd.f32 %v8281_v22, %v8239_v23  ;;  %v8378_v50 = vadd.f32 %v18881_v33, %v18884_v24  ;;  %v18895_v57 = vadd.f32 %v8280_v38, %v18632_v31  ;;  %v8325_v53 = vadd.f32 %v8324_v42, %v7557_v20  ;;  %9281 = vmatprep.subr.bf16.mxu0 %v16296_v29  ;;  %v16305_v27 = vld [vmem:[%s17586_s17 + $0x1a64] ss:$16 sps:$4 sm:$0xff]   ;;  %v16300_v22 = vld [vmem:[%s17586_s17 + $0x1860] ss:$16 sps:$4 sm:$0xff]  }
 0xd91   : > { %v16303_v23 = vld [vmem:[%s17586_s17 + $0x1a60] ss:$16 sps:$4 sm:$0xff]   ;;  %v16308_v18 = vld [vmem:[%s17586_s17 + $0x1844] ss:$16 sps:$4 sm:$0xff]  }
 0xd92   : > { %v18889_v63 = vadd.f32 %v8282_v61, %v18624_v3  ;;  %v16311_v20 = vld [vmem:[%s17586_s17 + $0x1a44] ss:$16 sps:$4 sm:$0xff]   ;;  %v16312_v38 = vld [vmem:[%s17586_s17 + $0x1820] ss:$16 sps:$4 sm:$0xff]  }
 0xd93   : > { %9282 = vmatpush1.bf16.msra.mxu0 %v16294_v0  ;;  %v16317_v61 = vld [vmem:[%s17586_s17 + $0x1a24] ss:$16 sps:$4 sm:$0xff]   ;;  %v16321_v42 = vld [vmem:[%s17586_s17 + $0x1a00] ss:$16 sps:$4 sm:$0xff]  }
 0xd94   : > { %9283 = vmatprep.subr.bf16.mxu0 %v16302_v58  ;;  %v16335_v30 = vld [vmem:[%s17586_s17 + $0x1bc4] ss:$16 sps:$4 sm:$0xff]   ;;  %v16333_v29 = vld [vmem:[%s17586_s17 + $0x1bc0] ss:$16 sps:$4 sm:$0xff]  }
 0xd95   : > { %v16341_v0 = vld [vmem:[%s17586_s17 + $0x1ba4] ss:$16 sps:$4 sm:$0xff]   ;;  %v16339_v58 = vld [vmem:[%s17586_s17 + $0x1ba0] ss:$16 sps:$4 sm:$0xff]  }
 0xd97   : > { %9284 = vmatpush1.bf16.msra.mxu0 %v16300_v22  ;;  %v16344_v22 = vld [vmem:[%s17586_s17 + $0x1984] ss:$16 sps:$4 sm:$0xff]  }
 0xd98   : > { %9285 = vmatprep.subr.bf16.mxu0 %v16308_v18  ;;  %v16347_v18 = vld [vmem:[%s17586_s17 + $0x1b84] ss:$16 sps:$4 sm:$0xff]  }
 0xd9b   : > { %9286 = vmatpush1.bf16.msra.mxu0 %v16306_v55  ;;  %v16353_v55 = vld [vmem:[%s17586_s17 + $0x1b64] ss:$16 sps:$4 sm:$0xff]  }
 0xdc9   : > { %v8361_v2 = vpop.f32.mrf.mxu1 }
 0xdca   : > { %v8362_v41 = vadd.f32 %v8361_v2, %v8319_v47  ;;  %v16314_v47 = vld [vmem:[%s17586_s17 + $0x1824] ss:$16 sps:$4 sm:$0xff]   ;;  %v16315_v2 = vld [vmem:[%s17586_s17 + $0x1a20] ss:$16 sps:$4 sm:$0xff]  }
 0xdcb   : > { %v8363_v51 = vpop.f32.mrf.mxu1  ;;  %9287 = vmatprep.subr.bf16.mxu0 %v16314_v47  ;;  %v16351_v47 = vld [vmem:[%s17586_s17 + $0x1b60] ss:$16 sps:$4 sm:$0xff]  }
 0xdcc   : > { %v18892_v8 = vadd.f32 %v8362_v41, %v18634_v40  ;;  %v8364_v4 = vadd.f32 %v8363_v51, %v8321_v44  ;;  %v8383_v40 = vadd.f32 %v18889_v63, %v18895_v57  ;;  %v16320_v44 = vld [vmem:[%s17586_s17 + $0x1804] ss:$16 sps:$4 sm:$0xff]   ;;  %9288 = vmatpush1.bf16.msra.mxu0 %v16312_v38 }
 0xdcd   : > { %v8365_v9 = vpop.f32.mrf.mxu1  ;;  %v16323_v41 = vld [vmem:[%s17586_s17 + $0x1a04] ss:$16 sps:$4 sm:$0xff]   ;;  %9289 = vmatprep.subr.bf16.mxu0 %v16320_v44  ;;  %v16357_v44 = vld [vmem:[%s17586_s17 + $0x1b40] ss:$16 sps:$4 sm:$0xff]  }
 0xdce   : > { %v18898_v5 = vadd.f32 %v8364_v4, %v18626_v6  ;;  %v8366_v13 = vadd.f32 %v8365_v9, %v8323_v1  ;;  %v8379_v3 = vadd.f32 %v8378_v50, %v18892_v8  ;;  %v16318_v1 = vld [vmem:[%s17586_s17 + $0x1800] ss:$16 sps:$4 sm:$0xff]   ;;  %v16326_v51 = vld [vmem:[%s17586_s17 + $0x19e4] ss:$16 sps:$4 sm:$0xff]  }
 0xdcf   : > { %v8367_v12 = vpop.f32.mrf.mxu1  ;;  %v16329_v50 = vld [vmem:[%s17586_s17 + $0x1be4] ss:$16 sps:$4 sm:$0xff]   ;;  %v16324_v4 = vld [vmem:[%s17586_s17 + $0x19e0] ss:$16 sps:$4 sm:$0xff]  }
 0xdd0   : > { %v18904_v31 = vadd.f32 %v8366_v13, %v18636_v10  ;;  %v8368_v14 = vadd.f32 %v8367_v12, %v8325_v53  ;;  %v8380_v17 = vadd.f32 %v8379_v3, %v18898_v5  ;;  %v16279_v10 = vld [vmem:[%s17586_s17 + $0x1ae0] ss:$16 sps:$4 sm:$0xff]   ;;  %9290 = vmatpush1.bf16.msra.mxu0 %v16318_v1  ;;  %v16359_v38 = vld [vmem:[%s17586_s17 + $0x1b44] ss:$16 sps:$4 sm:$0xff]  }
 0xdd1   : > { %9319 = vmatpush1.bf16.msra.mxu1 %v16279_v10  ;;  %9291 = vmatprep.subr.bf16.mxu0 %v16326_v51  ;;  %v16327_v9 = vld [vmem:[%s17586_s17 + $0x1be0] ss:$16 sps:$4 sm:$0xff]   ;;  %v16365_v1 = vld [vmem:[%s17586_s17 + $0x1b24] ss:$16 sps:$4 sm:$0xff]  }
 0xdd2   : > { %v18908_v6 = vadd.f32 %v8368_v14, %v18628_v59  ;;  %8381 = vadd.xlane.f32.xlu0 %v8380_v17  ;;  %v8384_v21 = vadd.f32 %v8383_v40, %v18904_v31  ;;  %v16287_v59 = vld [vmem:[%s17586_s17 + $0x1ac4] ss:$16 sps:$4 sm:$0xff]   ;;  %v16363_v51 = vld [vmem:[%s17586_s17 + $0x1b20] ss:$16 sps:$4 sm:$0xff]  }
 0xdd3   : > { %9320 = vmatprep.subr.bf16.mxu1 %v16287_v59 }
 0xdd4   : > { %v8385_v28 = vadd.f32 %v8384_v21, %v18908_v6  ;;  %9292 = vmatpush2.bf16.msra.mxu0 %v16324_v4  ;;  %v16371_v4 = vld [vmem:[%s17586_s17 + $0x1b04] ss:$16 sps:$4 sm:$0xff]  }
 0xdd5   : > { %9321 = vmatpush1.bf16.msra.mxu1 %v16285_v19 }
 0xdd6   : > { %8386 = vadd.xlane.f32.xlu1 %v8385_v28  ;;  %9322 = vmatprep.subr.bf16.mxu1 %v16293_v46  ;;  %v16332_v46 = vld [vmem:[%s17586_s17 + $0x19c4] ss:$16 sps:$4 sm:$0xff]  }
 0xdd7   : > { %9293 = vmatprep.subr.bf16.mxu0 %v16332_v46 }
 0xdd9   : > { %9323 = vmatpush1.bf16.msra.mxu1 %v16291_v54  ;;  %v16330_v54 = vld [vmem:[%s17586_s17 + $0x19c0] ss:$16 sps:$4 sm:$0xff]  }
 0xdda   : > { %9324 = vmatprep.subr.bf16.mxu1 %v16299_v16  ;;  %9294 = vmatpush2.bf16.msra.mxu0 %v16330_v54  ;;  %v16338_v16 = vld [vmem:[%s17586_s17 + $0x19a4] ss:$16 sps:$4 sm:$0xff]  }
 0xddb   : > { %9295 = vmatprep.subr.bf16.mxu0 %v16338_v16 }
 0xddd   : > { %9325 = vmatpush1.bf16.msra.mxu1 %v16297_v25  ;;  %v16336_v25 = vld [vmem:[%s17586_s17 + $0x19a0] ss:$16 sps:$4 sm:$0xff]  }
 0xdde   : > { %9326 = vmatprep.subr.bf16.mxu1 %v16305_v27  ;;  %9296 = vmatpush2.bf16.msra.mxu0 %v16336_v25  ;;  %v16342_v27 = vld [vmem:[%s17586_s17 + $0x1980] ss:$16 sps:$4 sm:$0xff]  }
 0xddf   : > { %9297 = vmatprep.subr.bf16.mxu0 %v16344_v22 }
 0xde1   : > { %9327 = vmatpush1.bf16.msra.mxu1 %v16303_v23  ;;  %v16345_v23 = vld [vmem:[%s17586_s17 + $0x1b80] ss:$16 sps:$4 sm:$0xff]  }
 0xde2   : > { %9328 = vmatprep.subr.bf16.mxu1 %v16311_v20  ;;  %v16350_v20 = vld [vmem:[%s17586_s17 + $0x1964] ss:$16 sps:$4 sm:$0xff]   ;;  %9298 = vmatpush2.bf16.msra.mxu0 %v16342_v27 }
 0xde3   : > { %9299 = vmatprep.subr.bf16.mxu0 %v16350_v20 }
 0xde5   : > { %9329 = vmatpush1.bf16.msra.mxu1 %v16309_v48  ;;  %v16348_v48 = vld [vmem:[%s17586_s17 + $0x1960] ss:$16 sps:$4 sm:$0xff]  }
 0xde6   : > { %9330 = vmatprep.subr.bf16.mxu1 %v16317_v61  ;;  %v16356_v61 = vld [vmem:[%s17586_s17 + $0x1944] ss:$16 sps:$4 sm:$0xff]   ;;  %9300 = vmatpush2.bf16.msra.mxu0 %v16348_v48 }
 0xde7   : > { %9301 = vmatprep.subr.bf16.mxu0 %v16356_v61  ;;  %v16375_v61 = vld [vmem:[%s17586_s17 + $0x1ae8] ss:$16 sps:$4 sm:$0xff]  }
 0xde9   : > { %9331 = vmatpush1.bf16.msra.mxu1 %v16315_v2  ;;  %v16354_v2 = vld [vmem:[%s17586_s17 + $0x1940] ss:$16 sps:$4 sm:$0xff]  }
 0xdea   : > { %9332 = vmatprep.subr.bf16.mxu1 %v16323_v41  ;;  %v16362_v41 = vld [vmem:[%s17586_s17 + $0x1924] ss:$16 sps:$4 sm:$0xff]   ;;  %9302 = vmatpush2.bf16.msra.mxu0 %v16354_v2 }
 0xdeb   : > { %9303 = vmatprep.subr.bf16.mxu0 %v16362_v41  ;;  %v16383_v41 = vld [vmem:[%s17586_s17 + $0x1acc] ss:$16 sps:$4 sm:$0xff]  }
 0xded   : > { %9333 = vmatpush1.bf16.msra.mxu1 %v16321_v42  ;;  %v16360_v42 = vld [vmem:[%s17586_s17 + $0x1920] ss:$16 sps:$4 sm:$0xff]  }
 0xdee   : > { %9334 = vmatprep.subr.bf16.mxu1 %v16329_v50  ;;  %v16368_v50 = vld [vmem:[%s17586_s17 + $0x1904] ss:$16 sps:$4 sm:$0xff]   ;;  %9304 = vmatpush2.bf16.msra.mxu0 %v16360_v42  ;;  %v16381_v42 = vld [vmem:[%s17586_s17 + $0x1ac8] ss:$16 sps:$4 sm:$0xff]  }
 0xdef   : > { %9305 = vmatprep.subr.bf16.mxu0 %v16368_v50  ;;  %v16389_v50 = vld [vmem:[%s17586_s17 + $0x1aac] ss:$16 sps:$4 sm:$0xff]  }
 0xdf1   : > { %9335 = vmatpush2.bf16.msra.mxu1 %v16327_v9  ;;  %v16366_v9 = vld [vmem:[%s17586_s17 + $0x1900] ss:$16 sps:$4 sm:$0xff]  }
 0xdf2   : > { %9336 = vmatprep.subr.bf16.mxu1 %v16335_v30  ;;  %9306 = vmatpush2.bf16.msra.mxu0 %v16366_v9  ;;  %v8457_v30 = vrot.slane %v18788_v62, %v18324_v43  ;;  %v16387_v9 = vld [vmem:[%s17586_s17 + $0x1aa8] ss:$16 sps:$4 sm:$0xff]  }
 0xdf5   : > { %9337 = vmatpush2.bf16.msra.mxu1 %v16333_v29 }
 0xdf6   : > { %9338 = vmatprep.subr.bf16.mxu1 %v16341_v0 }
 0xdf9   : > { %9339 = vmatpush2.bf16.msra.mxu1 %v16339_v58 }
 0xdfa   : > { %9340 = vmatprep.subr.bf16.mxu1 %v16347_v18 }
 0xdfd   : > { %9341 = vmatpush2.bf16.msra.mxu1 %v16345_v23 }
 0xdfe   : > { %9342 = vmatprep.subr.bf16.mxu1 %v16353_v55 }
 0xe01   : > { %9343 = vmatpush2.bf16.msra.mxu1 %v16351_v47  ;;  %v16372_v47 = vld [vmem:[%s17586_s17 + $0x18e8] ss:$16 sps:$4 sm:$0xff]  }
 0xe02   : > { %9344 = vmatprep.subr.bf16.mxu1 %v16359_v38 }
 0xe05   : > { %9345 = vmatpush2.bf16.msra.mxu1 %v16357_v44  ;;  %v16380_v44 = vld [vmem:[%s17586_s17 + $0x18cc] ss:$16 sps:$4 sm:$0xff]  }
 0xe06   : > { %9346 = vmatprep.subr.bf16.mxu1 %v16365_v1  ;;  %v16378_v1 = vld [vmem:[%s17586_s17 + $0x18c8] ss:$16 sps:$4 sm:$0xff]  }
 0xe09   : > { %9347 = vmatpush2.bf16.msra.mxu1 %v16363_v51  ;;  %v16386_v51 = vld [vmem:[%s17586_s17 + $0x18ac] ss:$16 sps:$4 sm:$0xff]  }
 0xe0a   : > { %9348 = vmatprep.subr.bf16.mxu1 %v16371_v4  ;;  %v16384_v4 = vld [vmem:[%s17586_s17 + $0x18a8] ss:$16 sps:$4 sm:$0xff]  }
 0xe5b   : > { %v8382_v53 = vpop.xlane.xlu0 %8381 }
 0xe5c   : > { %v8388_v13 = vmul.f32 0.001953125, %v8382_v53  ;;  %v16369_v53 = vld [vmem:[%s17586_s17 + $0x1b00] ss:$16 sps:$4 sm:$0xff]  }
 0xe5d   : > { %9349 = vmatpush2.bf16.msra.mxu1 %v16369_v53  ;;  %v16392_v53 = vld [vmem:[%s17586_s17 + $0x188c] ss:$16 sps:$4 sm:$0xff]  }
 0xe5e   : > { %v18949_v3 = vsub.f32 %v18884_v24, %v8388_v13  ;;  %v18952_v12 = vsub.f32 %v18881_v33, %v8388_v13  ;;  %v18955_v40 = vsub.f32 %v18892_v8, %v8388_v13  ;;  %v18958_v17 = vsub.f32 %v18898_v5, %v8388_v13  ;;  %v16374_v13 = vld [vmem:[%s17586_s17 + $0x18ec] ss:$16 sps:$4 sm:$0xff]  }
 0xe5f   : > { %v8387_v14 = vpop.xlane.xlu1 %8386  ;;  %9361 = vmatprep.subr.bf16.mxu0 %v16374_v13  ;;  %v16395_v13 = vld [vmem:[%s17586_s17 + $0x1a8c] ss:$16 sps:$4 sm:$0xff]  }
 0xe60   : > { %v8389_v21 = vmul.f32 0.001953125, %v8387_v14  ;;  %v8398_v28 = vmul.f32 %v18949_v3, %v18949_v3  ;;  %v8399_v36 = vmul.f32 %v18952_v12, %v18952_v12  ;;  %v8400_v24 = vmul.f32 %v18955_v40, %v18955_v40  ;;  %v16377_v14 = vld [vmem:[%s17586_s17 + $0x1aec] ss:$16 sps:$4 sm:$0xff]  }
 0xe61   : > { %v8401_v10 = vmul.f32 %v18958_v17, %v18958_v17  ;;  %9404 = vmatprep.subr.bf16.mxu1 %v16377_v14  ;;  %v16390_v14 = vld [vmem:[%s17586_s17 + $0x1888] ss:$16 sps:$4 sm:$0xff]  }
 0xe62   : > { %v18967_v33 = vsub.f32 %v18895_v57, %v8389_v21  ;;  %v18970_v8 = vsub.f32 %v18889_v63, %v8389_v21  ;;  %v8406_v39 = vadd.f32 %v8399_v36, %v8398_v28  ;;  %v18973_v5 = vsub.f32 %v18904_v31, %v8389_v21 }
 0xe63   : > { %v18978_v37 = vsub.f32 %v18908_v6, %v8389_v21 }
 0xe64   : > { %v8407_v11 = vadd.f32 %v8406_v39, %v8400_v24  ;;  %v8402_v57 = vmul.f32 %v18967_v33, %v18967_v33  ;;  %v8403_v63 = vmul.f32 %v18970_v8, %v18970_v8  ;;  %v8404_v31 = vmul.f32 %v18973_v5, %v18973_v5 }
 0xe65   : > { %v8405_v6 = vmul.f32 %v18978_v37, %v18978_v37 }
 0xe66   : > { %v8408_v59 = vadd.f32 %v8407_v11, %v8401_v10  ;;  %v8411_v7 = vadd.f32 %v8403_v63, %v8402_v57  ;;  %v8437_v63 = vrot.slane %v18783_v60, %v18321_v49 }
 0xe68   : > { %8409 = vadd.xlane.f32.xlu0 %v8408_v59  ;;  %v8412_v19 = vadd.f32 %v8411_v7, %v8404_v31  ;;  %v8445_v31 = vrot.slane %v18822_v35, %v18321_v49 }
 0xe6a   : > { %v8413_v45 = vadd.f32 %v8412_v19, %v8405_v6  ;;  %v8433_v6 = vrot.slane %v18788_v62, %v18321_v49 }
 0xe6c   : > { %8414 = vadd.xlane.f32.xlu1 %v8413_v45  ;;  %v8441_v45 = vrot.slane %v18827_v52, %v18321_v49 }
 0xef1   : > { %v8410_v21 = vpop.xlane.xlu0 %8409 }
 0xef2   : > { %v8416_v28 = vmul.f32 0.001953125, %v8410_v21  ;;  %v16393_v21 = vld [vmem:[%s17586_s17 + $0x1a88] ss:$16 sps:$4 sm:$0xff]  }
 0xef4   : > { %v8418_v36 = vadd.f32 1e-05, %v8416_v28  ;;  %v16398_v28 = vld [vmem:[%s17586_s17 + $0x186c] ss:$16 sps:$4 sm:$0xff]  }
 0xef5   : > { %v8415_v24 = vpop.xlane.xlu1 %8414 }
 0xef6   : > { %16864 = vrsqrt.f32 %v8418_v36  ;;  %v8417_v39 = vmul.f32 0.001953125, %v8415_v24  ;;  %v16401_v36 = vld [vmem:[%s17586_s17 + $0x1a6c] ss:$16 sps:$4 sm:$0xff]   ;;  %v16396_v24 = vld [vmem:[%s17586_s17 + $0x1868] ss:$16 sps:$4 sm:$0xff]  }
 0xef8   : > { %v8419_v10 = vadd.f32 1e-05, %v8417_v39  ;;  %v16399_v39 = vld [vmem:[%s17586_s17 + $0x1a68] ss:$16 sps:$4 sm:$0xff]  }
 0xefa   : > { %16866 = vrsqrt.f32 %v8419_v10  ;;  %v16404_v10 = vld [vmem:[%s17586_s17 + $0x184c] ss:$16 sps:$4 sm:$0xff]  }
 0xf03   : > { %v16865_v11 = vpop.eup %16864 }
 0xf04   : > { %v8423_v57 = vmul.f32 %v16865_v11, %v18952_v12  ;;  %v8425_v59 = vmul.f32 %v16865_v11, %v18958_v17  ;;  %v8422_v7 = vmul.f32 %v16865_v11, %v18949_v3  ;;  %v8424_v19 = vmul.f32 %v16865_v11, %v18955_v40  ;;  %v16407_v11 = vld [vmem:[%s17586_s17 + $0x1a4c] ss:$16 sps:$4 sm:$0xff]  }
 0xf05   : > { %v8461_v12 = vrot.slane %v18783_v60, %v18324_v43  ;;  %v8469_v17 = vrot.slane %v18822_v35, %v18324_v43  ;;  %v8465_v3 = vrot.slane %v18827_v52, %v18324_v43 }
 0xf06   : > { %v8447_v29 = vmul.f32 %v8437_v63, %v8423_v57  ;;  %v8449_v16 = vmul.f32 %v8445_v31, %v8425_v59  ;;  %v8446_v25 = vmul.f32 %v8433_v6, %v8422_v7  ;;  %v8448_v58 = vmul.f32 %v8441_v45, %v8424_v19  ;;  %v16402_v57 = vld [vmem:[%s17586_s17 + $0x1848] ss:$16 sps:$4 sm:$0xff]   ;;  %v16410_v59 = vld [vmem:[%s17586_s17 + $0x182c] ss:$16 sps:$4 sm:$0xff]  }
 0xf07   : > { %v16867_v46 = vpop.eup %16866  ;;  %v16408_v7 = vld [vmem:[%s17586_s17 + $0x1828] ss:$16 sps:$4 sm:$0xff]   ;;  %v16416_v19 = vld [vmem:[%s17586_s17 + $0x180c] ss:$16 sps:$4 sm:$0xff]  }
 0xf08   : > { %v8427_v54 = vmul.f32 %v16867_v46, %v18970_v8  ;;  %v8429_v40 = vmul.f32 %v16867_v46, %v18978_v37  ;;  %v8426_v0 = vmul.f32 %v16867_v46, %v18967_v33  ;;  %v8428_v60 = vmul.f32 %v16867_v46, %v18973_v5  ;;  %v16414_v46 = vld [vmem:[%s17586_s17 + $0x1808] ss:$16 sps:$4 sm:$0xff]  }
 0xf09   : > { %v19042_v23 = vadd.f32 %v8461_v12, %v8447_v29  ;;  %v19046_v8 = vadd.f32 %v8469_v17, %v8449_v16  ;;  %v19050_v33 = vadd.f32 %v8457_v30, %v8446_v25  ;;  %v19054_v18 = vadd.f32 %v8465_v3, %v8448_v58  ;;  %v16428_v29 = vld [vmem:[%s17586_s17 + $0x19cc] ss:$16 sps:$4 sm:$0xff]   ;;  %v16426_v16 = vld [vmem:[%s17586_s17 + $0x19c8] ss:$16 sps:$4 sm:$0xff]  }
 0xf0a   : > { %v8451_v35 = vmul.f32 %v8437_v63, %v8427_v54  ;;  %v8453_v27 = vmul.f32 %v8445_v31, %v8429_v40  ;;  %v8450_v62 = vmul.f32 %v8433_v6, %v8426_v0  ;;  %v8452_v22 = vmul.f32 %v8441_v45, %v8428_v60  ;;  %v16405_v63 = vld [vmem:[%s17586_s17 + $0x1a48] ss:$16 sps:$4 sm:$0xff]   ;;  %v16413_v31 = vld [vmem:[%s17586_s17 + $0x1a2c] ss:$16 sps:$4 sm:$0xff]  }
 0xf0b   : > { %v16411_v6 = vld [vmem:[%s17586_s17 + $0x1a28] ss:$16 sps:$4 sm:$0xff]   ;;  %v16419_v45 = vld [vmem:[%s17586_s17 + $0x1a0c] ss:$16 sps:$4 sm:$0xff]  }
 0xf0c   : > { %v19044_v52 = vadd.f32 %v8461_v12, %v8451_v35  ;;  %v19048_v37 = vadd.f32 %v8469_v17, %v8453_v27  ;;  %v19052_v5 = vadd.f32 %v8457_v30, %v8450_v62  ;;  %v19056_v20 = vadd.f32 %v8465_v3, %v8452_v22  ;;  %v16417_v12 = vld [vmem:[%s17586_s17 + $0x1a08] ss:$16 sps:$4 sm:$0xff]   ;;  %v16422_v17 = vld [vmem:[%s17586_s17 + $0x19ec] ss:$16 sps:$4 sm:$0xff]  }
 0xf0d   : > { %v16425_v30 = vld [vmem:[%s17586_s17 + $0x1bec] ss:$16 sps:$4 sm:$0xff]   ;;  %v16420_v3 = vld [vmem:[%s17586_s17 + $0x19e8] ss:$16 sps:$4 sm:$0xff]  }
 0xf0e   : > { %v8616_v55 = vpack.c.bf16 %v19044_v52, %v19042_v23  ;;  %v8618_v48 = vpack.c.bf16 %v19048_v37, %v19046_v8  ;;  %v19066_v38 = vpack.c.bf16 %v19052_v5, %v19050_v33  ;;  %v19070_v2 = vpack.c.bf16 %v19056_v20, %v19054_v18  ;;  %v16423_v54 = vld [vmem:[%s17586_s17 + $0x1be8] ss:$16 sps:$4 sm:$0xff]   ;;  %v16431_v40 = vld [vmem:[%s17586_s17 + $0x1bcc] ss:$16 sps:$4 sm:$0xff]  }
 0xf0f   : > { %v16429_v0 = vld [vmem:[%s17586_s17 + $0x1bc8] ss:$16 sps:$4 sm:$0xff]   ;;  %v16434_v25 = vld [vmem:[%s17586_s17 + $0x19ac] ss:$16 sps:$4 sm:$0xff]  }
 0xf10   : > { %9307 = vmatprep.mubr.bf16.mxu0 %v8616_v55  ;;  %9350 = vmatprep.mubr.bf16.mxu1 %v8618_v48  ;;  %v16437_v60 = vld [vmem:[%s17586_s17 + $0x1bac] ss:$16 sps:$4 sm:$0xff]   ;;  %v16432_v58 = vld [vmem:[%s17586_s17 + $0x19a8] ss:$16 sps:$4 sm:$0xff]  }
 0xf11   : > { %9308 = vmatmul.mubr.bf16.vlgmr.msra.gmra.mxu0 %v19066_v38  ;;  %9351 = vmatmul.mubr.bf16.vlgmr.msra.gmra.mxu1 %v19070_v2  ;;  %v16435_v35 = vld [vmem:[%s17586_s17 + $0x1ba8] ss:$16 sps:$4 sm:$0xff]   ;;  %v16440_v27 = vld [vmem:[%s17586_s17 + $0x198c] ss:$16 sps:$4 sm:$0xff]  }
 0xf12   : > { %9362 = vmatpush1.bf16.msra.mxu0 %v16372_v47  ;;  %9405 = vmatpush1.bf16.msra.mxu1 %v16375_v61  ;;  %v16443_v62 = vld [vmem:[%s17586_s17 + $0x1b8c] ss:$16 sps:$4 sm:$0xff]   ;;  %v16438_v22 = vld [vmem:[%s17586_s17 + $0x1988] ss:$16 sps:$4 sm:$0xff]  }
 0xf13   : > { %9393 = vmatprep.mubr.bf16.mxu0 %v8616_v55  ;;  %9436 = vmatprep.mubr.bf16.mxu1 %v8618_v48  ;;  %v16441_v55 = vld [vmem:[%s17586_s17 + $0x1b88] ss:$16 sps:$4 sm:$0xff]   ;;  %v16446_v48 = vld [vmem:[%s17586_s17 + $0x196c] ss:$16 sps:$4 sm:$0xff]  }
 0xf14   : > { %9363 = vmatprep.subr.bf16.mxu0 %v16380_v44  ;;  %9406 = vmatprep.subr.bf16.mxu1 %v16383_v41  ;;  %v16449_v47 = vld [vmem:[%s17586_s17 + $0x1b6c] ss:$16 sps:$4 sm:$0xff]   ;;  %v16444_v61 = vld [vmem:[%s17586_s17 + $0x1968] ss:$16 sps:$4 sm:$0xff]  }
 0xf15   : > { %v16447_v44 = vld [vmem:[%s17586_s17 + $0x1b68] ss:$16 sps:$4 sm:$0xff]   ;;  %v16452_v41 = vld [vmem:[%s17586_s17 + $0x194c] ss:$16 sps:$4 sm:$0xff]  }
 0xf16   : > { %9364 = vmatpush1.bf16.msra.mxu0 %v16378_v1  ;;  %9407 = vmatpush1.bf16.msra.mxu1 %v16381_v42  ;;  %v16455_v1 = vld [vmem:[%s17586_s17 + $0x1b4c] ss:$16 sps:$4 sm:$0xff]   ;;  %v16450_v42 = vld [vmem:[%s17586_s17 + $0x1948] ss:$16 sps:$4 sm:$0xff]  }
 0xf17   : > { %9365 = vmatprep.subr.bf16.mxu0 %v16386_v51  ;;  %9408 = vmatprep.subr.bf16.mxu1 %v16389_v50  ;;  %v16453_v51 = vld [vmem:[%s17586_s17 + $0x1b48] ss:$16 sps:$4 sm:$0xff]   ;;  %v16458_v50 = vld [vmem:[%s17586_s17 + $0x192c] ss:$16 sps:$4 sm:$0xff]  }
 0xf1a   : > { %9366 = vmatpush1.bf16.msra.mxu0 %v16384_v4  ;;  %9409 = vmatpush1.bf16.msra.mxu1 %v16387_v9  ;;  %v16461_v4 = vld [vmem:[%s17586_s17 + $0x1b2c] ss:$16 sps:$4 sm:$0xff]   ;;  %v16456_v9 = vld [vmem:[%s17586_s17 + $0x1928] ss:$16 sps:$4 sm:$0xff]  }
 0xf1b   : > { %9367 = vmatprep.subr.bf16.mxu0 %v16392_v53  ;;  %9410 = vmatprep.subr.bf16.mxu1 %v16395_v13  ;;  %v16459_v53 = vld [vmem:[%s17586_s17 + $0x1b28] ss:$16 sps:$4 sm:$0xff]   ;;  %v16464_v13 = vld [vmem:[%s17586_s17 + $0x190c] ss:$16 sps:$4 sm:$0xff]  }
 0xf1e   : > { %9368 = vmatpush1.bf16.msra.mxu0 %v16390_v14  ;;  %9411 = vmatpush1.bf16.msra.mxu1 %v16393_v21  ;;  %v16467_v14 = vld [vmem:[%s17586_s17 + $0x1b0c] ss:$16 sps:$4 sm:$0xff]   ;;  %v16462_v21 = vld [vmem:[%s17586_s17 + $0x1908] ss:$16 sps:$4 sm:$0xff]  }
 0xf1f   : > { %9369 = vmatprep.subr.bf16.mxu0 %v16398_v28  ;;  %9412 = vmatprep.subr.bf16.mxu1 %v16401_v36  ;;  %v16465_v28 = vld [vmem:[%s17586_s17 + $0x1b08] ss:$16 sps:$4 sm:$0xff]  }
 0xf22   : > { %9370 = vmatpush1.bf16.msra.mxu0 %v16396_v24  ;;  %9413 = vmatpush1.bf16.msra.mxu1 %v16399_v39  ;;  %v19137_v24 = vld [vmem:[%s17745_s28 + $0x48] sm:$0xff] }
 0xf23   : > { %9371 = vmatprep.subr.bf16.mxu0 %v16404_v10  ;;  %9414 = vmatprep.subr.bf16.mxu1 %v16407_v11  ;;  %v19140_v11 = vld [vmem:[%s17745_s28 + $0x40] sm:$0xff] }
 0xf26   : > { %9372 = vmatpush1.bf16.msra.mxu0 %v16402_v57  ;;  %9415 = vmatpush1.bf16.msra.mxu1 %v16405_v63  ;;  %v8626_v57 = vrot.slane %v19137_v24, %v17750_v56  ;;  %v8622_v63 = vrot.slane %v19140_v11, %v17750_v56 }
 0xf27   : > { %9373 = vmatprep.subr.bf16.mxu0 %v16410_v59  ;;  %9416 = vmatprep.subr.bf16.mxu1 %v16413_v31 }
 0xf2a   : > { %9374 = vmatpush1.bf16.msra.mxu0 %v16408_v7  ;;  %9417 = vmatpush1.bf16.msra.mxu1 %v16411_v6 }
 0xf2b   : > { %9375 = vmatprep.subr.bf16.mxu0 %v16416_v19  ;;  %9418 = vmatprep.subr.bf16.mxu1 %v16419_v45  ;;  %v19147_v19 = vld [vmem:[%s17745_s28 + $0x50] sm:$0xff] }
 0xf2e   : > { %9376 = vmatpush1.bf16.msra.mxu0 %v16414_v46  ;;  %9419 = vmatpush1.bf16.msra.mxu1 %v16417_v12  ;;  %v19150_v46 = vld [vmem:[%s17745_s28 + $0x58] sm:$0xff] }
 0xf2f   : > { %9377 = vmatprep.subr.bf16.mxu0 %v16422_v17  ;;  %9420 = vmatprep.subr.bf16.mxu1 %v16425_v30  ;;  %v8630_v17 = vrot.slane %v19147_v19, %v17750_v56 }
 0xf32   : > { %9378 = vmatpush2.bf16.msra.mxu0 %v16420_v3  ;;  %9421 = vmatpush2.bf16.msra.mxu1 %v16423_v54 }
 0xf33   : > { %9379 = vmatprep.subr.bf16.mxu0 %v16428_v29  ;;  %9422 = vmatprep.subr.bf16.mxu1 %v16431_v40  ;;  %v8634_v29 = vrot.slane %v19150_v46, %v17750_v56 }
 0xf36   : > { %9380 = vmatpush2.bf16.msra.mxu0 %v16426_v16  ;;  %9423 = vmatpush2.bf16.msra.mxu1 %v16429_v0 }
 0xf37   : > { %9381 = vmatprep.subr.bf16.mxu0 %v16434_v25  ;;  %9424 = vmatprep.subr.bf16.mxu1 %v16437_v60 }
 0xf3a   : > { %9382 = vmatpush2.bf16.msra.mxu0 %v16432_v58  ;;  %9425 = vmatpush2.bf16.msra.mxu1 %v16435_v35 }
 0xf3b   : > { %9383 = vmatprep.subr.bf16.mxu0 %v16440_v27  ;;  %9426 = vmatprep.subr.bf16.mxu1 %v16443_v62 }
 0xf3e   : > { %9384 = vmatpush2.bf16.msra.mxu0 %v16438_v22  ;;  %9427 = vmatpush2.bf16.msra.mxu1 %v16441_v55 }
 0xf3f   : > { %9385 = vmatprep.subr.bf16.mxu0 %v16446_v48  ;;  %9428 = vmatprep.subr.bf16.mxu1 %v16449_v47 }
 0xf42   : > { %9386 = vmatpush2.bf16.msra.mxu0 %v16444_v61  ;;  %9429 = vmatpush2.bf16.msra.mxu1 %v16447_v44 }
 0xf43   : > { %9387 = vmatprep.subr.bf16.mxu0 %v16452_v41  ;;  %9430 = vmatprep.subr.bf16.mxu1 %v16455_v1 }
 0xf46   : > { %9388 = vmatpush2.bf16.msra.mxu0 %v16450_v42  ;;  %9431 = vmatpush2.bf16.msra.mxu1 %v16453_v51 }
 0xf47   : > { %9389 = vmatprep.subr.bf16.mxu0 %v16458_v50  ;;  %9432 = vmatprep.subr.bf16.mxu1 %v16461_v4 }
 0xf4a   : > { %9390 = vmatpush2.bf16.msra.mxu0 %v16456_v9  ;;  %9433 = vmatpush2.bf16.msra.mxu1 %v16459_v53 }
 0xf4b   : > { %9391 = vmatprep.subr.bf16.mxu0 %v16464_v13  ;;  %9434 = vmatprep.subr.bf16.mxu1 %v16467_v14 }
 0xf4e   : > { %9392 = vmatpush2.bf16.msra.mxu0 %v16462_v21  ;;  %9435 = vmatpush2.bf16.msra.mxu1 %v16465_v28  ;;  %v16468_v21 = vld [vmem:[%s17586_s17 + $0x1ce0] ss:$16 sps:$4 sm:$0xff]   ;;  %v16470_v28 = vld [vmem:[%s17586_s17 + $0x1ce4] ss:$16 sps:$4 sm:$0xff]  }
 0xf4f   : > { %10344 = vmatprep.subr.bf16.mxu0 %v16470_v28 }
 0xf51   : > { %9394 = vmatmul.mubr.bf16.vlgmr.msra.gmra.mxu0 %v19066_v38  ;;  %9437 = vmatmul.mubr.bf16.vlgmr.msra.gmra.mxu1 %v19070_v2 }
 0xf52   : > { %10345 = vmatpush1.bf16.msra.mxu0 %v16468_v21 }
 0xfd1   : > { %v9309_v36 = vpop.f32.mrf.mxu0  ;;  %v9352_v39 = vpop.f32.mrf.mxu1 }
 0xfd2   : > { %v9310_v38 = vadd.f32 %v9309_v36, %v8622_v63  ;;  %v16473_v36 = vld [vmem:[%s17586_s17 + $0x1ee4] ss:$16 sps:$4 sm:$0xff]  }
 0xfd3   : > { %v9311_v10 = vpop.f32.mrf.mxu0  ;;  %v9354_v59 = vpop.f32.mrf.mxu1  ;;  %10387 = vmatprep.subr.bf16.mxu1 %v16473_v36 }
 0xfd4   : > { %v9312_v7 = vadd.f32 %v9311_v10, %v8626_v57  ;;  %v9353_v30 = vadd.f32 %v9352_v39, %v9310_v38  ;;  %v16476_v39 = vld [vmem:[%s17586_s17 + $0x1cc4] ss:$16 sps:$4 sm:$0xff]   ;;  %v16474_v10 = vld [vmem:[%s17586_s17 + $0x1cc0] ss:$16 sps:$4 sm:$0xff]  }
 0xfd5   : > { %v9313_v31 = vpop.f32.mrf.mxu0  ;;  %v9356_v6 = vpop.f32.mrf.mxu1  ;;  %10346 = vmatprep.subr.bf16.mxu0 %v16476_v39  ;;  %v16488_v38 = vld [vmem:[%s17586_s17 + $0x1c84] ss:$16 sps:$4 sm:$0xff]  }
 0xfd6   : > { %v9355_v45 = vadd.f32 %v9354_v59, %v9312_v7  ;;  %v9314_v3 = vadd.f32 %v9313_v31, %v8622_v63  ;;  %v19160_v58 = vadd.f32 %v9353_v30, %v19050_v33  ;;  %v16482_v63 = vld [vmem:[%s17586_s17 + $0x1ca4] ss:$16 sps:$4 sm:$0xff]   ;;  %10347 = vmatpush1.bf16.msra.mxu0 %v16474_v10  ;;  %v16480_v31 = vld [vmem:[%s17586_s17 + $0x1ca0] ss:$16 sps:$4 sm:$0xff]  }
 0xfd7   : > { %v9315_v2 = vpop.f32.mrf.mxu0  ;;  %v9358_v54 = vpop.f32.mrf.mxu1  ;;  %v16485_v59 = vld [vmem:[%s17586_s17 + $0x1ea4] ss:$16 sps:$4 sm:$0xff]   ;;  %10348 = vmatprep.subr.bf16.mxu0 %v16482_v63  ;;  %v16483_v7 = vld [vmem:[%s17586_s17 + $0x1ea0] ss:$16 sps:$4 sm:$0xff]  }
 0xfd8   : > { %v9316_v12 = vadd.f32 %v9315_v2, %v8626_v57  ;;  %v19157_v40 = vadd.f32 %v9355_v45, %v19042_v23  ;;  %v9357_v35 = vadd.f32 %v9356_v6, %v9314_v3  ;;  %v16477_v57 = vld [vmem:[%s17586_s17 + $0x1ec0] ss:$16 sps:$4 sm:$0xff]   ;;  %v16491_v6 = vld [vmem:[%s17586_s17 + $0x1e84] ss:$16 sps:$4 sm:$0xff]  }
 0xfd9   : > { %v16486_v2 = vld [vmem:[%s17586_s17 + $0x1c80] ss:$16 sps:$4 sm:$0xff]   ;;  %v16524_v63 = vld [vmem:[%s17586_s17 + $0x1dc4] ss:$16 sps:$4 sm:$0xff]  }
 0xfda   : > { %v9359_v25 = vadd.f32 %v9358_v54, %v9316_v12  ;;  %v9455_v48 = vadd.f32 %v19157_v40, %v19160_v58  ;;  %v19171_v33 = vadd.f32 %v9357_v35, %v19052_v5  ;;  %10349 = vmatpush1.bf16.msra.mxu0 %v16480_v31  ;;  %v16489_v45 = vld [vmem:[%s17586_s17 + $0x1e80] ss:$16 sps:$4 sm:$0xff]   ;;  %v16494_v12 = vld [vmem:[%s17586_s17 + $0x1c64] ss:$16 sps:$4 sm:$0xff]  }
 0xfdb   : > { %10350 = vmatprep.subr.bf16.mxu0 %v16488_v38  ;;  %v16492_v30 = vld [vmem:[%s17586_s17 + $0x1c60] ss:$16 sps:$4 sm:$0xff]   ;;  %v16500_v54 = vld [vmem:[%s17586_s17 + $0x1c44] ss:$16 sps:$4 sm:$0xff]  }
 0xfdc   : > { %v19165_v23 = vadd.f32 %v9359_v25, %v19044_v52  ;;  %v16495_v3 = vld [vmem:[%s17586_s17 + $0x1e60] ss:$16 sps:$4 sm:$0xff]   ;;  %v16506_v25 = vld [vmem:[%s17586_s17 + $0x1c24] ss:$16 sps:$4 sm:$0xff]  }
 0xfdd   : > { %v16504_v35 = vld [vmem:[%s17586_s17 + $0x1c20] ss:$16 sps:$4 sm:$0xff]   ;;  %v16530_v38 = vld [vmem:[%s17586_s17 + $0x1da4] ss:$16 sps:$4 sm:$0xff]  }
 0xfde   : > { %v9460_v4 = vadd.f32 %v19165_v23, %v19171_v33  ;;  %10351 = vmatpush1.bf16.msra.mxu0 %v16486_v2  ;;  %v16522_v31 = vld [vmem:[%s17586_s17 + $0x1dc0] ss:$16 sps:$4 sm:$0xff]  }
 0xfdf   : > { %10352 = vmatprep.subr.bf16.mxu0 %v16494_v12  ;;  %v16528_v2 = vld [vmem:[%s17586_s17 + $0x1da0] ss:$16 sps:$4 sm:$0xff]  }
 0xfe0   : > { %v16534_v12 = vld [vmem:[%s17586_s17 + $0x1d80] ss:$16 sps:$4 sm:$0xff]  }
 0xfe2   : > { %10353 = vmatpush1.bf16.msra.mxu0 %v16492_v30  ;;  %v16537_v30 = vld [vmem:[%s17586_s17 + $0x1f80] ss:$16 sps:$4 sm:$0xff]  }
 0xfe3   : > { %10354 = vmatprep.subr.bf16.mxu0 %v16500_v54  ;;  %v16542_v54 = vld [vmem:[%s17586_s17 + $0x1d64] ss:$16 sps:$4 sm:$0xff]  }
0x1011   : > { %v9395_v16 = vpop.f32.mrf.mxu0  ;;  %v9438_v0 = vpop.f32.mrf.mxu1 }
0x1012   : > { %v9396_v60 = vadd.f32 %v9395_v16, %v8630_v17  ;;  %v16498_v16 = vld [vmem:[%s17586_s17 + $0x1c40] ss:$16 sps:$4 sm:$0xff]  }
0x1013   : > { %v9397_v27 = vpop.f32.mrf.mxu0  ;;  %v9440_v62 = vpop.f32.mrf.mxu1  ;;  %10355 = vmatpush1.bf16.msra.mxu0 %v16498_v16  ;;  %v16540_v16 = vld [vmem:[%s17586_s17 + $0x1d60] ss:$16 sps:$4 sm:$0xff]  }
0x1014   : > { %v9439_v22 = vadd.f32 %v9438_v0, %v9396_v60  ;;  %v9398_v55 = vadd.f32 %v9397_v27, %v8634_v29  ;;  %v16501_v0 = vld [vmem:[%s17586_s17 + $0x1e40] ss:$16 sps:$4 sm:$0xff]   ;;  %v16509_v60 = vld [vmem:[%s17586_s17 + $0x1e24] ss:$16 sps:$4 sm:$0xff]   ;;  %10356 = vmatprep.subr.bf16.mxu0 %v16506_v25 }
0x1015   : > { %v9399_v47 = vpop.f32.mrf.mxu0  ;;  %v9442_v56 = vpop.f32.mrf.mxu1  ;;  %v16507_v27 = vld [vmem:[%s17586_s17 + $0x1e20] ss:$16 sps:$4 sm:$0xff]   ;;  %v16548_v25 = vld [vmem:[%s17586_s17 + $0x1d44] ss:$16 sps:$4 sm:$0xff]  }
0x1016   : > { %v19168_v61 = vadd.f32 %v9439_v22, %v19054_v18  ;;  %v9441_v44 = vadd.f32 %v9440_v62, %v9398_v55  ;;  %v9400_v41 = vadd.f32 %v9399_v47, %v8630_v17  ;;  %v16497_v17 = vld [vmem:[%s17586_s17 + $0x1e64] ss:$16 sps:$4 sm:$0xff]   ;;  %v16510_v55 = vld [vmem:[%s17586_s17 + $0x1c00] ss:$16 sps:$4 sm:$0xff]  }
0x1017   : > { %v9401_v1 = vpop.f32.mrf.mxu0  ;;  %v9444_v18 = vpop.f32.mrf.mxu1  ;;  %v16512_v62 = vld [vmem:[%s17586_s17 + $0x1c04] ss:$16 sps:$4 sm:$0xff]   ;;  %10357 = vmatpush1.bf16.msra.mxu0 %v16504_v35  ;;  %v16546_v35 = vld [vmem:[%s17586_s17 + $0x1d40] ss:$16 sps:$4 sm:$0xff]  }
0x1018   : > { %v19174_v42 = vadd.f32 %v9441_v44, %v19046_v8  ;;  %v9443_v51 = vadd.f32 %v9442_v56, %v9400_v41  ;;  %v9402_v50 = vadd.f32 %v9401_v1, %v8634_v29  ;;  %v9456_v52 = vadd.f32 %v9455_v48, %v19168_v61  ;;  %v16503_v29 = vld [vmem:[%s17586_s17 + $0x1e44] ss:$16 sps:$4 sm:$0xff]   ;;  %10358 = vmatprep.subr.bf16.mxu0 %v16512_v62  ;;  %v16513_v48 = vld [vmem:[%s17586_s17 + $0x1e00] ss:$16 sps:$4 sm:$0xff]  }
0x1019   : > { %v16515_v22 = vld [vmem:[%s17586_s17 + $0x1e04] ss:$16 sps:$4 sm:$0xff]   ;;  %v16516_v44 = vld [vmem:[%s17586_s17 + $0x1de0] ss:$16 sps:$4 sm:$0xff]  }
0x101a   : > { %v19180_v5 = vadd.f32 %v9443_v51, %v19056_v20  ;;  %v9445_v9 = vadd.f32 %v9444_v18, %v9402_v50  ;;  %v9457_v8 = vadd.f32 %v9456_v52, %v19174_v42  ;;  %v16471_v20 = vld [vmem:[%s17586_s17 + $0x1ee0] ss:$16 sps:$4 sm:$0xff]   ;;  %v16518_v47 = vld [vmem:[%s17586_s17 + $0x1de4] ss:$16 sps:$4 sm:$0xff]  }
0x101b   : > { %10388 = vmatpush1.bf16.msra.mxu1 %v16471_v20  ;;  %v16521_v56 = vld [vmem:[%s17586_s17 + $0x1fe4] ss:$16 sps:$4 sm:$0xff]   ;;  %10359 = vmatpush1.bf16.msra.mxu0 %v16510_v55  ;;  %v16519_v41 = vld [vmem:[%s17586_s17 + $0x1fe0] ss:$16 sps:$4 sm:$0xff]  }
0x101c   : > { %v19184_v53 = vadd.f32 %v9445_v9, %v19048_v37  ;;  %9458 = vadd.xlane.f32.xlu0 %v9457_v8  ;;  %v9461_v13 = vadd.f32 %v9460_v4, %v19180_v5  ;;  %v16479_v37 = vld [vmem:[%s17586_s17 + $0x1ec4] ss:$16 sps:$4 sm:$0xff]   ;;  %10360 = vmatprep.subr.bf16.mxu0 %v16518_v47  ;;  %v16552_v55 = vld [vmem:[%s17586_s17 + $0x1d20] ss:$16 sps:$4 sm:$0xff]  }
0x101d   : > { %10389 = vmatprep.subr.bf16.mxu1 %v16479_v37  ;;  %v16554_v62 = vld [vmem:[%s17586_s17 + $0x1d24] ss:$16 sps:$4 sm:$0xff]  }
0x101e   : > { %v9462_v14 = vadd.f32 %v9461_v13, %v19184_v53  ;;  %v16560_v47 = vld [vmem:[%s17586_s17 + $0x1d04] ss:$16 sps:$4 sm:$0xff]  }
0x101f   : > { %10390 = vmatpush1.bf16.msra.mxu1 %v16477_v57  ;;  %10361 = vmatpush2.bf16.msra.mxu0 %v16516_v44  ;;  %v16558_v44 = vld [vmem:[%s17586_s17 + $0x1d00] ss:$16 sps:$4 sm:$0xff]  }
0x1020   : > { %9463 = vadd.xlane.f32.xlu1 %v9462_v14  ;;  %10391 = vmatprep.subr.bf16.mxu1 %v16485_v59  ;;  %v16527_v59 = vld [vmem:[%s17586_s17 + $0x1fc4] ss:$16 sps:$4 sm:$0xff]  }
0x1021   : > { %10362 = vmatprep.subr.bf16.mxu0 %v16524_v63  ;;  %v9534_v63 = vrot.slane %v19140_v11, %v17892_v34 }
0x1023   : > { %10392 = vmatpush1.bf16.msra.mxu1 %v16483_v7  ;;  %v16525_v7 = vld [vmem:[%s17586_s17 + $0x1fc0] ss:$16 sps:$4 sm:$0xff]   ;;  %10363 = vmatpush2.bf16.msra.mxu0 %v16522_v31 }
0x1024   : > { %10393 = vmatprep.subr.bf16.mxu1 %v16491_v6  ;;  %v16533_v6 = vld [vmem:[%s17586_s17 + $0x1fa4] ss:$16 sps:$4 sm:$0xff]   ;;  %10364 = vmatprep.subr.bf16.mxu0 %v16530_v38 }
0x1027   : > { %10394 = vmatpush1.bf16.msra.mxu1 %v16489_v45  ;;  %v16531_v45 = vld [vmem:[%s17586_s17 + $0x1fa0] ss:$16 sps:$4 sm:$0xff]   ;;  %10365 = vmatpush2.bf16.msra.mxu0 %v16528_v2 }
0x1028   : > { %10395 = vmatprep.subr.bf16.mxu1 %v16497_v17  ;;  %v16536_v17 = vld [vmem:[%s17586_s17 + $0x1d84] ss:$16 sps:$4 sm:$0xff]  }
0x1029   : > { %10366 = vmatprep.subr.bf16.mxu0 %v16536_v17 }
0x102b   : > { %10396 = vmatpush1.bf16.msra.mxu1 %v16495_v3  ;;  %v16539_v3 = vld [vmem:[%s17586_s17 + $0x1f84] ss:$16 sps:$4 sm:$0xff]   ;;  %10367 = vmatpush2.bf16.msra.mxu0 %v16534_v12 }
0x102c   : > { %10397 = vmatprep.subr.bf16.mxu1 %v16503_v29  ;;  %v16545_v29 = vld [vmem:[%s17586_s17 + $0x1f64] ss:$16 sps:$4 sm:$0xff]   ;;  %10368 = vmatprep.subr.bf16.mxu0 %v16542_v54  ;;  %v16564_v54 = vld [vmem:[%s17586_s17 + $0x1ce8] ss:$16 sps:$4 sm:$0xff]  }
0x102f   : > { %10398 = vmatpush1.bf16.msra.mxu1 %v16501_v0  ;;  %v16543_v0 = vld [vmem:[%s17586_s17 + $0x1f60] ss:$16 sps:$4 sm:$0xff]   ;;  %10369 = vmatpush2.bf16.msra.mxu0 %v16540_v16 }
0x1030   : > { %10399 = vmatprep.subr.bf16.mxu1 %v16509_v60  ;;  %v16551_v60 = vld [vmem:[%s17586_s17 + $0x1f44] ss:$16 sps:$4 sm:$0xff]   ;;  %10370 = vmatprep.subr.bf16.mxu0 %v16548_v25  ;;  %v16572_v25 = vld [vmem:[%s17586_s17 + $0x1ccc] ss:$16 sps:$4 sm:$0xff]  }
0x1033   : > { %10400 = vmatpush1.bf16.msra.mxu1 %v16507_v27  ;;  %v16549_v27 = vld [vmem:[%s17586_s17 + $0x1f40] ss:$16 sps:$4 sm:$0xff]   ;;  %10371 = vmatpush2.bf16.msra.mxu0 %v16546_v35  ;;  %v16570_v35 = vld [vmem:[%s17586_s17 + $0x1cc8] ss:$16 sps:$4 sm:$0xff]  }
0x1034   : > { %10401 = vmatprep.subr.bf16.mxu1 %v16515_v22  ;;  %v16557_v22 = vld [vmem:[%s17586_s17 + $0x1f24] ss:$16 sps:$4 sm:$0xff]   ;;  %10372 = vmatprep.subr.bf16.mxu0 %v16554_v62  ;;  %v16578_v62 = vld [vmem:[%s17586_s17 + $0x1cac] ss:$16 sps:$4 sm:$0xff]  }
0x1037   : > { %10402 = vmatpush1.bf16.msra.mxu1 %v16513_v48  ;;  %v16555_v48 = vld [vmem:[%s17586_s17 + $0x1f20] ss:$16 sps:$4 sm:$0xff]   ;;  %10373 = vmatpush2.bf16.msra.mxu0 %v16552_v55  ;;  %v16576_v55 = vld [vmem:[%s17586_s17 + $0x1ca8] ss:$16 sps:$4 sm:$0xff]  }
0x1038   : > { %10403 = vmatprep.subr.bf16.mxu1 %v16521_v56  ;;  %v16563_v56 = vld [vmem:[%s17586_s17 + $0x1f04] ss:$16 sps:$4 sm:$0xff]   ;;  %10374 = vmatprep.subr.bf16.mxu0 %v16560_v47  ;;  %v16584_v47 = vld [vmem:[%s17586_s17 + $0x1c8c] ss:$16 sps:$4 sm:$0xff]  }
0x103b   : > { %10404 = vmatpush2.bf16.msra.mxu1 %v16519_v41  ;;  %v16561_v41 = vld [vmem:[%s17586_s17 + $0x1f00] ss:$16 sps:$4 sm:$0xff]   ;;  %10375 = vmatpush2.bf16.msra.mxu0 %v16558_v44  ;;  %v16582_v44 = vld [vmem:[%s17586_s17 + $0x1c88] ss:$16 sps:$4 sm:$0xff]  }
0x103c   : > { %10405 = vmatprep.subr.bf16.mxu1 %v16527_v59 }
0x103f   : > { %10406 = vmatpush2.bf16.msra.mxu1 %v16525_v7 }
0x1040   : > { %10407 = vmatprep.subr.bf16.mxu1 %v16533_v6 }
0x1043   : > { %10408 = vmatpush2.bf16.msra.mxu1 %v16531_v45 }
0x1044   : > { %10409 = vmatprep.subr.bf16.mxu1 %v16539_v3 }
0x1047   : > { %10410 = vmatpush2.bf16.msra.mxu1 %v16537_v30 }
0x1048   : > { %10411 = vmatprep.subr.bf16.mxu1 %v16545_v29  ;;  %v16567_v29 = vld [vmem:[%s17586_s17 + $0x1ee8] ss:$16 sps:$4 sm:$0xff]  }
0x104b   : > { %10412 = vmatpush2.bf16.msra.mxu1 %v16543_v0 }
0x104c   : > { %10413 = vmatprep.subr.bf16.mxu1 %v16551_v60  ;;  %v16575_v60 = vld [vmem:[%s17586_s17 + $0x1ecc] ss:$16 sps:$4 sm:$0xff]  }
0x104f   : > { %10414 = vmatpush2.bf16.msra.mxu1 %v16549_v27  ;;  %v16573_v27 = vld [vmem:[%s17586_s17 + $0x1ec8] ss:$16 sps:$4 sm:$0xff]  }
0x1050   : > { %10415 = vmatprep.subr.bf16.mxu1 %v16557_v22  ;;  %v16581_v22 = vld [vmem:[%s17586_s17 + $0x1eac] ss:$16 sps:$4 sm:$0xff]  }
0x1053   : > { %10416 = vmatpush2.bf16.msra.mxu1 %v16555_v48  ;;  %v16579_v48 = vld [vmem:[%s17586_s17 + $0x1ea8] ss:$16 sps:$4 sm:$0xff]  }
0x1054   : > { %10417 = vmatprep.subr.bf16.mxu1 %v16563_v56  ;;  %v16587_v56 = vld [vmem:[%s17586_s17 + $0x1e8c] ss:$16 sps:$4 sm:$0xff]  }
0x1057   : > { %10418 = vmatpush2.bf16.msra.mxu1 %v16561_v41  ;;  %v16585_v41 = vld [vmem:[%s17586_s17 + $0x1e88] ss:$16 sps:$4 sm:$0xff]  }
0x10a5   : > { %v9459_v1 = vpop.xlane.xlu0 %9458 }
0x10a6   : > { %v9465_v51 = vmul.f32 0.001953125, %v9459_v1  ;;  %v16566_v1 = vld [vmem:[%s17586_s17 + $0x1cec] ss:$16 sps:$4 sm:$0xff]  }
0x10a7   : > { %10430 = vmatprep.subr.bf16.mxu0 %v16566_v1  ;;  %v16590_v1 = vld [vmem:[%s17586_s17 + $0x1c6c] ss:$16 sps:$4 sm:$0xff]  }
0x10a8   : > { %v19225_v50 = vsub.f32 %v19160_v58, %v9465_v51  ;;  %v19228_v52 = vsub.f32 %v19157_v40, %v9465_v51  ;;  %v19231_v18 = vsub.f32 %v19168_v61, %v9465_v51  ;;  %v19234_v9 = vsub.f32 %v19174_v42, %v9465_v51  ;;  %v16569_v51 = vld [vmem:[%s17586_s17 + $0x1eec] ss:$16 sps:$4 sm:$0xff]  }
0x10a9   : > { %v9464_v4 = vpop.xlane.xlu1 %9463  ;;  %10473 = vmatprep.subr.bf16.mxu1 %v16569_v51  ;;  %v16593_v51 = vld [vmem:[%s17586_s17 + $0x1e6c] ss:$16 sps:$4 sm:$0xff]  }
0x10aa   : > { %v9466_v8 = vmul.f32 0.001953125, %v9464_v4  ;;  %v9475_v13 = vmul.f32 %v19225_v50, %v19225_v50  ;;  %v9476_v14 = vmul.f32 %v19228_v52, %v19228_v52  ;;  %v9477_v58 = vmul.f32 %v19231_v18, %v19231_v18 }
0x10ab   : > { %v9478_v28 = vmul.f32 %v19234_v9, %v19234_v9 }
0x10ac   : > { %v19243_v40 = vsub.f32 %v19171_v33, %v9466_v8  ;;  %v19246_v61 = vsub.f32 %v19165_v23, %v9466_v8  ;;  %v9483_v21 = vadd.f32 %v9476_v14, %v9475_v13  ;;  %v19249_v42 = vsub.f32 %v19180_v5, %v9466_v8 }
0x10ad   : > { %v19254_v36 = vsub.f32 %v19184_v53, %v9466_v8 }
0x10ae   : > { %v9484_v20 = vadd.f32 %v9483_v21, %v9477_v58  ;;  %v9479_v33 = vmul.f32 %v19243_v40, %v19243_v40  ;;  %v9480_v23 = vmul.f32 %v19246_v61, %v19246_v61  ;;  %v9481_v5 = vmul.f32 %v19249_v42, %v19249_v42 }
0x10af   : > { %v9482_v53 = vmul.f32 %v19254_v36, %v19254_v36 }
0x10b0   : > { %v9485_v39 = vadd.f32 %v9484_v20, %v9478_v28  ;;  %v9488_v37 = vadd.f32 %v9480_v23, %v9479_v33  ;;  %v9514_v33 = vrot.slane %v19137_v24, %v17889_v26 }
0x10b2   : > { %9486 = vadd.xlane.f32.xlu0 %v9485_v39  ;;  %v9489_v10 = vadd.f32 %v9488_v37, %v9481_v5  ;;  %v9522_v39 = vrot.slane %v19150_v46, %v17889_v26  ;;  %v9510_v37 = vrot.slane %v19140_v11, %v17889_v26 }
0x10b4   : > { %v9490_v57 = vadd.f32 %v9489_v10, %v9482_v53  ;;  %v9518_v10 = vrot.slane %v19147_v19, %v17889_v26 }
0x10b6   : > { %9491 = vadd.xlane.f32.xlu1 %v9490_v57 }
0x113b   : > { %v9487_v4 = vpop.xlane.xlu0 %9486 }
0x113c   : > { %v9493_v8 = vmul.f32 0.001953125, %v9487_v4  ;;  %v16588_v4 = vld [vmem:[%s17586_s17 + $0x1c68] ss:$16 sps:$4 sm:$0xff]  }
0x113e   : > { %v9495_v13 = vadd.f32 1e-05, %v9493_v8  ;;  %v16591_v8 = vld [vmem:[%s17586_s17 + $0x1e68] ss:$16 sps:$4 sm:$0xff]  }
0x113f   : > { %v9492_v14 = vpop.xlane.xlu1 %9491 }
0x1140   : > { %16868 = vrsqrt.f32 %v9495_v13  ;;  %v9494_v58 = vmul.f32 0.001953125, %v9492_v14  ;;  %v16596_v13 = vld [vmem:[%s17586_s17 + $0x1c4c] ss:$16 sps:$4 sm:$0xff]  }
0x1141   : > { %v16599_v14 = vld [vmem:[%s17586_s17 + $0x1e4c] ss:$16 sps:$4 sm:$0xff]  }
0x1142   : > { %v9496_v21 = vadd.f32 1e-05, %v9494_v58  ;;  %v16594_v58 = vld [vmem:[%s17586_s17 + $0x1c48] ss:$16 sps:$4 sm:$0xff]  }
0x1144   : > { %16870 = vrsqrt.f32 %v9496_v21  ;;  %v16597_v21 = vld [vmem:[%s17586_s17 + $0x1e48] ss:$16 sps:$4 sm:$0xff]  }
0x114d   : > { %v16869_v28 = vpop.eup %16868 }
0x114e   : > { %v9500_v20 = vmul.f32 %v16869_v28, %v19228_v52  ;;  %v9502_v23 = vmul.f32 %v16869_v28, %v19234_v9  ;;  %v9499_v5 = vmul.f32 %v16869_v28, %v19225_v50  ;;  %v9501_v53 = vmul.f32 %v16869_v28, %v19231_v18  ;;  %v16602_v28 = vld [vmem:[%s17586_s17 + $0x1c2c] ss:$16 sps:$4 sm:$0xff]  }
0x114f   : > { %v9538_v52 = vrot.slane %v19137_v24, %v17892_v34  ;;  %v9546_v9 = vrot.slane %v19150_v46, %v17892_v34  ;;  %v9542_v50 = vrot.slane %v19147_v19, %v17892_v34 }
0x1150   : > { %v9524_v31 = vmul.f32 %v9514_v33, %v9500_v20  ;;  %v9526_v7 = vmul.f32 %v9522_v39, %v9502_v23  ;;  %v9523_v38 = vmul.f32 %v9510_v37, %v9499_v5  ;;  %v9525_v6 = vmul.f32 %v9518_v10, %v9501_v53  ;;  %v16605_v20 = vld [vmem:[%s17586_s17 + $0x1e2c] ss:$16 sps:$4 sm:$0xff]   ;;  %v16603_v23 = vld [vmem:[%s17586_s17 + $0x1e28] ss:$16 sps:$4 sm:$0xff]  }
0x1151   : > { %v16871_v57 = vpop.eup %16870  ;;  %v16611_v5 = vld [vmem:[%s17586_s17 + $0x1e0c] ss:$16 sps:$4 sm:$0xff]   ;;  %v16609_v53 = vld [vmem:[%s17586_s17 + $0x1e08] ss:$16 sps:$4 sm:$0xff]  }
0x1152   : > { %v9504_v59 = vmul.f32 %v16871_v57, %v19246_v61  ;;  %v9506_v18 = vmul.f32 %v16871_v57, %v19254_v36  ;;  %v9503_v26 = vmul.f32 %v16871_v57, %v19243_v40  ;;  %v9505_v24 = vmul.f32 %v16871_v57, %v19249_v42  ;;  %v16617_v57 = vld [vmem:[%s17586_s17 + $0x1fec] ss:$16 sps:$4 sm:$0xff]  }
0x1153   : > { %v19318_v12 = vadd.f32 %v9538_v52, %v9524_v31  ;;  %v19322_v19 = vadd.f32 %v9546_v9, %v9526_v7  ;;  %v19326_v40 = vadd.f32 %v9534_v63, %v9523_v38  ;;  %v19330_v36 = vadd.f32 %v9542_v50, %v9525_v6  ;;  %v16621_v31 = vld [vmem:[%s17586_s17 + $0x1fc8] ss:$16 sps:$4 sm:$0xff]   ;;  %v16629_v7 = vld [vmem:[%s17586_s17 + $0x1fac] ss:$16 sps:$4 sm:$0xff]  }
0x1154   : > { %v9528_v46 = vmul.f32 %v9514_v33, %v9504_v59  ;;  %v9530_v2 = vmul.f32 %v9522_v39, %v9506_v18  ;;  %v9527_v11 = vmul.f32 %v9510_v37, %v9503_v26  ;;  %v9529_v45 = vmul.f32 %v9518_v10, %v9505_v24  ;;  %v16600_v33 = vld [vmem:[%s17586_s17 + $0x1c28] ss:$16 sps:$4 sm:$0xff]   ;;  %v16608_v39 = vld [vmem:[%s17586_s17 + $0x1c0c] ss:$16 sps:$4 sm:$0xff]  }
0x1155   : > { %v16606_v37 = vld [vmem:[%s17586_s17 + $0x1c08] ss:$16 sps:$4 sm:$0xff]   ;;  %v16614_v10 = vld [vmem:[%s17586_s17 + $0x1dec] ss:$16 sps:$4 sm:$0xff]  }
0x1156   : > { %v19320_v34 = vadd.f32 %v9538_v52, %v9528_v46  ;;  %v19324_v61 = vadd.f32 %v9546_v9, %v9530_v2  ;;  %v19328_v42 = vadd.f32 %v9534_v63, %v9527_v11  ;;  %v19332_v17 = vadd.f32 %v9542_v50, %v9529_v45  ;;  %v16612_v52 = vld [vmem:[%s17586_s17 + $0x1de8] ss:$16 sps:$4 sm:$0xff]   ;;  %v16620_v63 = vld [vmem:[%s17586_s17 + $0x1dcc] ss:$16 sps:$4 sm:$0xff]  }
0x1157   : > { %v16615_v9 = vld [vmem:[%s17586_s17 + $0x1fe8] ss:$16 sps:$4 sm:$0xff]   ;;  %v16623_v50 = vld [vmem:[%s17586_s17 + $0x1fcc] ss:$16 sps:$4 sm:$0xff]  }
0x1158   : > { %v9685_v30 = vpack.c.bf16 %v19320_v34, %v19318_v12  ;;  %v9687_v3 = vpack.c.bf16 %v19324_v61, %v19322_v19  ;;  %v19342_v16 = vpack.c.bf16 %v19328_v42, %v19326_v40  ;;  %v19346_v0 = vpack.c.bf16 %v19332_v17, %v19330_v36  ;;  %v16618_v59 = vld [vmem:[%s17586_s17 + $0x1dc8] ss:$16 sps:$4 sm:$0xff]   ;;  %v16626_v18 = vld [vmem:[%s17586_s17 + $0x1dac] ss:$16 sps:$4 sm:$0xff]  }
0x1159   : > { %v16624_v26 = vld [vmem:[%s17586_s17 + $0x1da8] ss:$16 sps:$4 sm:$0xff]   ;;  %v16632_v24 = vld [vmem:[%s17586_s17 + $0x1d8c] ss:$16 sps:$4 sm:$0xff]  }
0x115a   : > { %10376 = vmatprep.mubr.bf16.mxu0 %v9685_v30  ;;  %10419 = vmatprep.mubr.bf16.mxu1 %v9687_v3  ;;  %v16627_v38 = vld [vmem:[%s17586_s17 + $0x1fa8] ss:$16 sps:$4 sm:$0xff]   ;;  %v16635_v6 = vld [vmem:[%s17586_s17 + $0x1f8c] ss:$16 sps:$4 sm:$0xff]  }
0x115b   : > { %10377 = vmatmul.mubr.bf16.vlgmr.msra.gmra.mxu0 %v19342_v16  ;;  %10420 = vmatmul.mubr.bf16.vlgmr.msra.gmra.mxu1 %v19346_v0  ;;  %v16630_v46 = vld [vmem:[%s17586_s17 + $0x1d88] ss:$16 sps:$4 sm:$0xff]   ;;  %v16638_v11 = vld [vmem:[%s17586_s17 + $0x1d6c] ss:$16 sps:$4 sm:$0xff]  }
0x115c   : > { %10431 = vmatpush1.bf16.msra.mxu0 %v16564_v54  ;;  %10474 = vmatpush1.bf16.msra.mxu1 %v16567_v29  ;;  %v16633_v2 = vld [vmem:[%s17586_s17 + $0x1f88] ss:$16 sps:$4 sm:$0xff]   ;;  %v16641_v45 = vld [vmem:[%s17586_s17 + $0x1f6c] ss:$16 sps:$4 sm:$0xff]  }
0x115d   : > { %10462 = vmatprep.mubr.bf16.mxu0 %v9685_v30  ;;  %10505 = vmatprep.mubr.bf16.mxu1 %v9687_v3  ;;  %v16636_v30 = vld [vmem:[%s17586_s17 + $0x1d68] ss:$16 sps:$4 sm:$0xff]   ;;  %v16644_v54 = vld [vmem:[%s17586_s17 + $0x1d4c] ss:$16 sps:$4 sm:$0xff]  }
0x115e   : > { %10432 = vmatprep.subr.bf16.mxu0 %v16572_v25  ;;  %10475 = vmatprep.subr.bf16.mxu1 %v16575_v60  ;;  %v16639_v3 = vld [vmem:[%s17586_s17 + $0x1f68] ss:$16 sps:$4 sm:$0xff]   ;;  %v16647_v29 = vld [vmem:[%s17586_s17 + $0x1f4c] ss:$16 sps:$4 sm:$0xff]  }
0x115f   : > { %v16642_v25 = vld [vmem:[%s17586_s17 + $0x1d48] ss:$16 sps:$4 sm:$0xff]  }
0x1160   : > { %10433 = vmatpush1.bf16.msra.mxu0 %v16570_v35  ;;  %10476 = vmatpush1.bf16.msra.mxu1 %v16573_v27  ;;  %v16645_v60 = vld [vmem:[%s17586_s17 + $0x1f48] ss:$16 sps:$4 sm:$0xff]   ;;  %v16650_v35 = vld [vmem:[%s17586_s17 + $0x1d2c] ss:$16 sps:$4 sm:$0xff]  }
0x1161   : > { %10434 = vmatprep.subr.bf16.mxu0 %v16578_v62  ;;  %10477 = vmatprep.subr.bf16.mxu1 %v16581_v22  ;;  %v16653_v27 = vld [vmem:[%s17586_s17 + $0x1f2c] ss:$16 sps:$4 sm:$0xff]   ;;  %v16648_v62 = vld [vmem:[%s17586_s17 + $0x1d28] ss:$16 sps:$4 sm:$0xff]  }
0x1162   : > { %v16651_v22 = vld [vmem:[%s17586_s17 + $0x1f28] ss:$16 sps:$4 sm:$0xff]  }
0x1164   : > { %10435 = vmatpush1.bf16.msra.mxu0 %v16576_v55  ;;  %10478 = vmatpush1.bf16.msra.mxu1 %v16579_v48  ;;  %v16656_v55 = vld [vmem:[%s17586_s17 + $0x1d0c] ss:$16 sps:$4 sm:$0xff]  }
0x1165   : > { %10436 = vmatprep.subr.bf16.mxu0 %v16584_v47  ;;  %10479 = vmatprep.subr.bf16.mxu1 %v16587_v56  ;;  %v16659_v48 = vld [vmem:[%s17586_s17 + $0x1f0c] ss:$16 sps:$4 sm:$0xff]   ;;  %v16654_v47 = vld [vmem:[%s17586_s17 + $0x1d08] ss:$16 sps:$4 sm:$0xff]  }
0x1166   : > { %v16657_v56 = vld [vmem:[%s17586_s17 + $0x1f08] ss:$16 sps:$4 sm:$0xff]  }
0x1168   : > { %10437 = vmatpush1.bf16.msra.mxu0 %v16582_v44  ;;  %10480 = vmatpush1.bf16.msra.mxu1 %v16585_v41  ;;  %v16662_v44 = vld [vmem:[%s17586_s17 + $0x20e4] ss:$16 sps:$4 sm:$0xff]   ;;  %v16660_v41 = vld [vmem:[%s17586_s17 + $0x20e0] ss:$16 sps:$4 sm:$0xff]  }
0x1169   : > { %10438 = vmatprep.subr.bf16.mxu0 %v16590_v1  ;;  %10481 = vmatprep.subr.bf16.mxu1 %v16593_v51  ;;  %v16665_v1 = vld [vmem:[%s17586_s17 + $0x20c4] ss:$16 sps:$4 sm:$0xff]   ;;  %v16663_v51 = vld [vmem:[%s17586_s17 + $0x20c0] ss:$16 sps:$4 sm:$0xff]  }
0x116c   : > { %10439 = vmatpush1.bf16.msra.mxu0 %v16588_v4  ;;  %10482 = vmatpush1.bf16.msra.mxu1 %v16591_v8  ;;  %v16668_v4 = vld [vmem:[%s17586_s17 + $0x20a4] ss:$16 sps:$4 sm:$0xff]   ;;  %v16666_v8 = vld [vmem:[%s17586_s17 + $0x20a0] ss:$16 sps:$4 sm:$0xff]  }
0x116d   : > { %10440 = vmatprep.subr.bf16.mxu0 %v16596_v13  ;;  %10483 = vmatprep.subr.bf16.mxu1 %v16599_v14  ;;  %v16671_v13 = vld [vmem:[%s17586_s17 + $0x2084] ss:$16 sps:$4 sm:$0xff]   ;;  %v16669_v14 = vld [vmem:[%s17586_s17 + $0x2080] ss:$16 sps:$4 sm:$0xff]  }
0x1170   : > { %10441 = vmatpush1.bf16.msra.mxu0 %v16594_v58  ;;  %10484 = vmatpush1.bf16.msra.mxu1 %v16597_v21  ;;  %v16708_v58 = vld [vmem:[%s17586_s17 + $0x22e0] ss:$16 sps:$4 sm:$0xff]   ;;  %v16710_v21 = vld [vmem:[%s17586_s17 + $0x22e4] ss:$16 sps:$4 sm:$0xff]  }
0x1171   : > { %10442 = vmatprep.subr.bf16.mxu0 %v16602_v28  ;;  %10485 = vmatprep.subr.bf16.mxu1 %v16605_v20  ;;  %v16677_v28 = vld [vmem:[%s17586_s17 + $0x2044] ss:$16 sps:$4 sm:$0xff]   ;;  %v16675_v20 = vld [vmem:[%s17586_s17 + $0x2040] ss:$16 sps:$4 sm:$0xff]  }
0x1174   : > { %10443 = vmatpush1.bf16.msra.mxu0 %v16600_v33  ;;  %10486 = vmatpush1.bf16.msra.mxu1 %v16603_v23  ;;  %v16714_v33 = vld [vmem:[%s17586_s17 + $0x22c0] ss:$16 sps:$4 sm:$0xff]   ;;  %v16716_v23 = vld [vmem:[%s17586_s17 + $0x22c4] ss:$16 sps:$4 sm:$0xff]  }
0x1175   : > { %10444 = vmatprep.subr.bf16.mxu0 %v16608_v39  ;;  %10487 = vmatprep.subr.bf16.mxu1 %v16611_v5  ;;  %v16680_v39 = vld [vmem:[%s17586_s17 + $0x2024] ss:$16 sps:$4 sm:$0xff]   ;;  %v16678_v5 = vld [vmem:[%s17586_s17 + $0x2020] ss:$16 sps:$4 sm:$0xff]  }
0x1178   : > { %10445 = vmatpush1.bf16.msra.mxu0 %v16606_v37  ;;  %10488 = vmatpush1.bf16.msra.mxu1 %v16609_v53  ;;  %v16720_v37 = vld [vmem:[%s17586_s17 + $0x22a0] ss:$16 sps:$4 sm:$0xff]   ;;  %v16722_v53 = vld [vmem:[%s17586_s17 + $0x22a4] ss:$16 sps:$4 sm:$0xff]  }
0x1179   : > { %10446 = vmatprep.subr.bf16.mxu0 %v16614_v10  ;;  %10489 = vmatprep.subr.bf16.mxu1 %v16617_v57  ;;  %v16683_v10 = vld [vmem:[%s17586_s17 + $0x2004] ss:$16 sps:$4 sm:$0xff]   ;;  %v16681_v57 = vld [vmem:[%s17586_s17 + $0x2000] ss:$16 sps:$4 sm:$0xff]  }
0x117c   : > { %10447 = vmatpush2.bf16.msra.mxu0 %v16612_v52  ;;  %10490 = vmatpush2.bf16.msra.mxu1 %v16615_v9  ;;  %v16726_v52 = vld [vmem:[%s17586_s17 + $0x2280] ss:$16 sps:$4 sm:$0xff]   ;;  %v16728_v9 = vld [vmem:[%s17586_s17 + $0x2284] ss:$16 sps:$4 sm:$0xff]  }
0x117d   : > { %10448 = vmatprep.subr.bf16.mxu0 %v16620_v63  ;;  %10491 = vmatprep.subr.bf16.mxu1 %v16623_v50  ;;  %v16686_v63 = vld [vmem:[%s17586_s17 + $0x21e4] ss:$16 sps:$4 sm:$0xff]   ;;  %v16684_v50 = vld [vmem:[%s17586_s17 + $0x21e0] ss:$16 sps:$4 sm:$0xff]  }
0x1180   : > { %10449 = vmatpush2.bf16.msra.mxu0 %v16618_v59  ;;  %10492 = vmatpush2.bf16.msra.mxu1 %v16621_v31  ;;  %v16732_v59 = vld [vmem:[%s17586_s17 + $0x2260] ss:$16 sps:$4 sm:$0xff]   ;;  %v16734_v31 = vld [vmem:[%s17586_s17 + $0x2264] ss:$16 sps:$4 sm:$0xff]  }
0x1181   : > { %10450 = vmatprep.subr.bf16.mxu0 %v16626_v18  ;;  %10493 = vmatprep.subr.bf16.mxu1 %v16629_v7  ;;  %v16689_v18 = vld [vmem:[%s17586_s17 + $0x21c4] ss:$16 sps:$4 sm:$0xff]   ;;  %v16687_v7 = vld [vmem:[%s17586_s17 + $0x21c0] ss:$16 sps:$4 sm:$0xff]  }
0x1184   : > { %10451 = vmatpush2.bf16.msra.mxu0 %v16624_v26  ;;  %10494 = vmatpush2.bf16.msra.mxu1 %v16627_v38  ;;  %v16738_v26 = vld [vmem:[%s17586_s17 + $0x2240] ss:$16 sps:$4 sm:$0xff]   ;;  %v16740_v38 = vld [vmem:[%s17586_s17 + $0x2244] ss:$16 sps:$4 sm:$0xff]  }
0x1185   : > { %10452 = vmatprep.subr.bf16.mxu0 %v16632_v24  ;;  %10495 = vmatprep.subr.bf16.mxu1 %v16635_v6  ;;  %v16692_v24 = vld [vmem:[%s17586_s17 + $0x21a4] ss:$16 sps:$4 sm:$0xff]   ;;  %v16690_v6 = vld [vmem:[%s17586_s17 + $0x21a0] ss:$16 sps:$4 sm:$0xff]  }
0x1188   : > { %10453 = vmatpush2.bf16.msra.mxu0 %v16630_v46  ;;  %10496 = vmatpush2.bf16.msra.mxu1 %v16633_v2  ;;  %v16744_v46 = vld [vmem:[%s17586_s17 + $0x2220] ss:$16 sps:$4 sm:$0xff]   ;;  %v16746_v2 = vld [vmem:[%s17586_s17 + $0x2224] ss:$16 sps:$4 sm:$0xff]  }
0x1189   : > { %10454 = vmatprep.subr.bf16.mxu0 %v16638_v11  ;;  %10497 = vmatprep.subr.bf16.mxu1 %v16641_v45  ;;  %v16695_v11 = vld [vmem:[%s17586_s17 + $0x2184] ss:$16 sps:$4 sm:$0xff]   ;;  %v16693_v45 = vld [vmem:[%s17586_s17 + $0x2180] ss:$16 sps:$4 sm:$0xff]  }
0x118c   : > { %10455 = vmatpush2.bf16.msra.mxu0 %v16636_v30  ;;  %10498 = vmatpush2.bf16.msra.mxu1 %v16639_v3  ;;  %v16750_v30 = vld [vmem:[%s17586_s17 + $0x2200] ss:$16 sps:$4 sm:$0xff]   ;;  %v16752_v3 = vld [vmem:[%s17586_s17 + $0x2204] ss:$16 sps:$4 sm:$0xff]  }
0x118d   : > { %10456 = vmatprep.subr.bf16.mxu0 %v16644_v54  ;;  %10499 = vmatprep.subr.bf16.mxu1 %v16647_v29  ;;  %v16698_v54 = vld [vmem:[%s17586_s17 + $0x2164] ss:$16 sps:$4 sm:$0xff]   ;;  %v16696_v29 = vld [vmem:[%s17586_s17 + $0x2160] ss:$16 sps:$4 sm:$0xff]  }
0x1190   : > { %10457 = vmatpush2.bf16.msra.mxu0 %v16642_v25  ;;  %10500 = vmatpush2.bf16.msra.mxu1 %v16645_v60  ;;  %v16756_v25 = vld [vmem:[%s17586_s17 + $0x23e0] ss:$16 sps:$4 sm:$0xff]   ;;  %v16758_v60 = vld [vmem:[%s17586_s17 + $0x23e4] ss:$16 sps:$4 sm:$0xff]  }
0x1191   : > { %10458 = vmatprep.subr.bf16.mxu0 %v16650_v35  ;;  %10501 = vmatprep.subr.bf16.mxu1 %v16653_v27  ;;  %v16701_v35 = vld [vmem:[%s17586_s17 + $0x2144] ss:$16 sps:$4 sm:$0xff]   ;;  %v16699_v27 = vld [vmem:[%s17586_s17 + $0x2140] ss:$16 sps:$4 sm:$0xff]  }
0x1194   : > { %10459 = vmatpush2.bf16.msra.mxu0 %v16648_v62  ;;  %10502 = vmatpush2.bf16.msra.mxu1 %v16651_v22  ;;  %v16762_v62 = vld [vmem:[%s17586_s17 + $0x23c0] ss:$16 sps:$4 sm:$0xff]   ;;  %v16764_v22 = vld [vmem:[%s17586_s17 + $0x23c4] ss:$16 sps:$4 sm:$0xff]  }
0x1195   : > { %10460 = vmatprep.subr.bf16.mxu0 %v16656_v55  ;;  %10503 = vmatprep.subr.bf16.mxu1 %v16659_v48  ;;  %v16704_v55 = vld [vmem:[%s17586_s17 + $0x2124] ss:$16 sps:$4 sm:$0xff]   ;;  %v16702_v48 = vld [vmem:[%s17586_s17 + $0x2120] ss:$16 sps:$4 sm:$0xff]  }
0x1198   : > { %10461 = vmatpush2.bf16.msra.mxu0 %v16654_v47  ;;  %10504 = vmatpush2.bf16.msra.mxu1 %v16657_v56  ;;  %v16768_v47 = vld [vmem:[%s17586_s17 + $0x23a0] ss:$16 sps:$4 sm:$0xff]   ;;  %v16770_v56 = vld [vmem:[%s17586_s17 + $0x23a4] ss:$16 sps:$4 sm:$0xff]  }
0x1199   : > { %11313 = vmatprep.subr.bf16.mxu0 %v16662_v44  ;;  %11356 = vmatprep.subr.bf16.mxu1 %v16710_v21  ;;  %v16707_v44 = vld [vmem:[%s17586_s17 + $0x2104] ss:$16 sps:$4 sm:$0xff]  }
0x119a   : > { %v16800_v21 = vld [vmem:[%s17586_s17 + $0x2304] ss:$16 sps:$4 sm:$0xff]  }
0x119b   : > { %10463 = vmatmul.mubr.bf16.vlgmr.msra.gmra.mxu0 %v19342_v16  ;;  %10506 = vmatmul.mubr.bf16.vlgmr.msra.gmra.mxu1 %v19346_v0  ;;  %v16674_v16 = vld [vmem:[%s17586_s17 + $0x2064] ss:$16 sps:$4 sm:$0xff]   ;;  %v16672_v0 = vld [vmem:[%s17586_s17 + $0x2060] ss:$16 sps:$4 sm:$0xff]  }
0x119c   : > { %11314 = vmatpush1.bf16.msra.mxu0 %v16660_v41  ;;  %11357 = vmatpush1.bf16.msra.mxu1 %v16708_v58  ;;  %v16705_v41 = vld [vmem:[%s17586_s17 + $0x2100] ss:$16 sps:$4 sm:$0xff]  }
0x119d   : > { %11315 = vmatprep.subr.bf16.mxu0 %v16665_v1  ;;  %11358 = vmatprep.subr.bf16.mxu1 %v16716_v23  ;;  %v16774_v1 = vld [vmem:[%s17586_s17 + $0x2380] ss:$16 sps:$4 sm:$0xff]  }
0x119e   : > { %v16792_v58 = vld [vmem:[%s17586_s17 + $0x2320] ss:$16 sps:$4 sm:$0xff]  }
0x11a0   : > { %11316 = vmatpush1.bf16.msra.mxu0 %v16663_v51  ;;  %11359 = vmatpush1.bf16.msra.mxu1 %v16714_v33  ;;  %v16776_v51 = vld [vmem:[%s17586_s17 + $0x2384] ss:$16 sps:$4 sm:$0xff]  }
0x11a1   : > { %11317 = vmatprep.subr.bf16.mxu0 %v16668_v4  ;;  %11360 = vmatprep.subr.bf16.mxu1 %v16722_v53  ;;  %v16713_v4 = vld [vmem:[%s17586_s17 + $0x20ec] ss:$16 sps:$4 sm:$0xff]   ;;  %v19479_v33 = vld [vmem:[%s17745_s28 + $0x48] sm:$0xff] }
0x11a2   : > { %v9695_v23 = vrot.slane %v19479_v33, %v18091_v32 }
0x11a4   : > { %11318 = vmatpush1.bf16.msra.mxu0 %v16666_v8  ;;  %11361 = vmatpush1.bf16.msra.mxu1 %v16720_v37  ;;  %v16780_v8 = vld [vmem:[%s17586_s17 + $0x2360] ss:$16 sps:$4 sm:$0xff]  }
0x11a5   : > { %11319 = vmatprep.subr.bf16.mxu0 %v16671_v13  ;;  %11362 = vmatprep.subr.bf16.mxu1 %v16728_v9  ;;  %v16782_v13 = vld [vmem:[%s17586_s17 + $0x2364] ss:$16 sps:$4 sm:$0xff]  }
0x11a8   : > { %11320 = vmatpush1.bf16.msra.mxu0 %v16669_v14  ;;  %11363 = vmatpush1.bf16.msra.mxu1 %v16726_v52  ;;  %v16788_v14 = vld [vmem:[%s17586_s17 + $0x2344] ss:$16 sps:$4 sm:$0xff]  }
0x11a9   : > { %11321 = vmatprep.subr.bf16.mxu0 %v16674_v16  ;;  %11364 = vmatprep.subr.bf16.mxu1 %v16734_v31  ;;  %v16786_v16 = vld [vmem:[%s17586_s17 + $0x2340] ss:$16 sps:$4 sm:$0xff]  }
0x11ac   : > { %11322 = vmatpush1.bf16.msra.mxu0 %v16672_v0  ;;  %11365 = vmatpush1.bf16.msra.mxu1 %v16732_v59  ;;  %v16794_v0 = vld [vmem:[%s17586_s17 + $0x2324] ss:$16 sps:$4 sm:$0xff]  }
0x11ad   : > { %11323 = vmatprep.subr.bf16.mxu0 %v16677_v28  ;;  %11366 = vmatprep.subr.bf16.mxu1 %v16740_v38  ;;  %v16798_v28 = vld [vmem:[%s17586_s17 + $0x2300] ss:$16 sps:$4 sm:$0xff]  }
0x11b0   : > { %11324 = vmatpush1.bf16.msra.mxu0 %v16675_v20  ;;  %11367 = vmatpush1.bf16.msra.mxu1 %v16738_v26  ;;  %v16806_v20 = vld [vmem:[%s17586_s17 + $0x22ec] ss:$16 sps:$4 sm:$0xff]  }
0x11b1   : > { %11325 = vmatprep.subr.bf16.mxu0 %v16680_v39  ;;  %11368 = vmatprep.subr.bf16.mxu1 %v16746_v2  ;;  %v19484_v39 = vld [vmem:[%s17745_s28 + $0x40] sm:$0xff] }
0x11b4   : > { %11326 = vmatpush1.bf16.msra.mxu0 %v16678_v5  ;;  %11369 = vmatpush1.bf16.msra.mxu1 %v16744_v46  ;;  %v9691_v5 = vrot.slane %v19484_v39, %v18091_v32 }
0x11b5   : > { %11327 = vmatprep.subr.bf16.mxu0 %v16683_v10  ;;  %11370 = vmatprep.subr.bf16.mxu1 %v16752_v3  ;;  %v16711_v3 = vld [vmem:[%s17586_s17 + $0x20e8] ss:$16 sps:$4 sm:$0xff]  }
0x11b8   : > { %11328 = vmatpush1.bf16.msra.mxu0 %v16681_v57  ;;  %11371 = vmatpush1.bf16.msra.mxu1 %v16750_v30 }
0x11b9   : > { %11329 = vmatprep.subr.bf16.mxu0 %v16686_v63  ;;  %11372 = vmatprep.subr.bf16.mxu1 %v16758_v60  ;;  %v16725_v60 = vld [vmem:[%s17586_s17 + $0x20ac] ss:$16 sps:$4 sm:$0xff]  }
0x11bc   : > { %11330 = vmatpush2.bf16.msra.mxu0 %v16684_v50  ;;  %11373 = vmatpush2.bf16.msra.mxu1 %v16756_v25  ;;  %v16717_v25 = vld [vmem:[%s17586_s17 + $0x20c8] ss:$16 sps:$4 sm:$0xff]  }
0x11bd   : > { %11331 = vmatprep.subr.bf16.mxu0 %v16689_v18  ;;  %11374 = vmatprep.subr.bf16.mxu1 %v16764_v22  ;;  %v16737_v22 = vld [vmem:[%s17586_s17 + $0x206c] ss:$16 sps:$4 sm:$0xff]  }
0x11c0   : > { %11332 = vmatpush2.bf16.msra.mxu0 %v16687_v7  ;;  %11375 = vmatpush2.bf16.msra.mxu1 %v16762_v62  ;;  %v16729_v62 = vld [vmem:[%s17586_s17 + $0x2088] ss:$16 sps:$4 sm:$0xff]  }
0x11c1   : > { %11333 = vmatprep.subr.bf16.mxu0 %v16692_v24  ;;  %11376 = vmatprep.subr.bf16.mxu1 %v16770_v56  ;;  %v16749_v56 = vld [vmem:[%s17586_s17 + $0x202c] ss:$16 sps:$4 sm:$0xff]  }
0x11c4   : > { %11334 = vmatpush2.bf16.msra.mxu0 %v16690_v6  ;;  %11377 = vmatpush2.bf16.msra.mxu1 %v16768_v47  ;;  %v16741_v47 = vld [vmem:[%s17586_s17 + $0x2048] ss:$16 sps:$4 sm:$0xff]  }
0x11c5   : > { %11335 = vmatprep.subr.bf16.mxu0 %v16695_v11  ;;  %11378 = vmatprep.subr.bf16.mxu1 %v16776_v51  ;;  %v16761_v51 = vld [vmem:[%s17586_s17 + $0x21ec] ss:$16 sps:$4 sm:$0xff]  }
0x11c8   : > { %11336 = vmatpush2.bf16.msra.mxu0 %v16693_v45  ;;  %11379 = vmatpush2.bf16.msra.mxu1 %v16774_v1  ;;  %v16753_v1 = vld [vmem:[%s17586_s17 + $0x2008] ss:$16 sps:$4 sm:$0xff]  }
0x11c9   : > { %11337 = vmatprep.subr.bf16.mxu0 %v16698_v54  ;;  %11380 = vmatprep.subr.bf16.mxu1 %v16782_v13  ;;  %v16765_v13 = vld [vmem:[%s17586_s17 + $0x21c8] ss:$16 sps:$4 sm:$0xff]  }
0x11cc   : > { %11338 = vmatpush2.bf16.msra.mxu0 %v16696_v29  ;;  %11381 = vmatpush2.bf16.msra.mxu1 %v16780_v8  ;;  %v16719_v29 = vld [vmem:[%s17586_s17 + $0x20cc] ss:$16 sps:$4 sm:$0xff]  }
0x11cd   : > { %11339 = vmatprep.subr.bf16.mxu0 %v16701_v35  ;;  %11382 = vmatprep.subr.bf16.mxu1 %v16788_v14  ;;  %v16723_v35 = vld [vmem:[%s17586_s17 + $0x20a8] ss:$16 sps:$4 sm:$0xff]   ;;  %v16767_v8 = vld [vmem:[%s17586_s17 + $0x21cc] ss:$16 sps:$4 sm:$0xff]  }
0x11ce   : > { %v16773_v14 = vld [vmem:[%s17586_s17 + $0x21ac] ss:$16 sps:$4 sm:$0xff]  }
0x11d0   : > { %11340 = vmatpush2.bf16.msra.mxu0 %v16699_v27  ;;  %11383 = vmatpush2.bf16.msra.mxu1 %v16786_v16  ;;  %v16731_v27 = vld [vmem:[%s17586_s17 + $0x208c] ss:$16 sps:$4 sm:$0xff]   ;;  %v16771_v16 = vld [vmem:[%s17586_s17 + $0x21a8] ss:$16 sps:$4 sm:$0xff]  }
0x11d1   : > { %11341 = vmatprep.subr.bf16.mxu0 %v16704_v55  ;;  %11384 = vmatprep.subr.bf16.mxu1 %v16794_v0  ;;  %v16735_v55 = vld [vmem:[%s17586_s17 + $0x2068] ss:$16 sps:$4 sm:$0xff]   ;;  %v16779_v0 = vld [vmem:[%s17586_s17 + $0x218c] ss:$16 sps:$4 sm:$0xff]  }
0x11d4   : > { %11342 = vmatpush2.bf16.msra.mxu0 %v16702_v48  ;;  %11385 = vmatpush2.bf16.msra.mxu1 %v16792_v58  ;;  %v16743_v48 = vld [vmem:[%s17586_s17 + $0x204c] ss:$16 sps:$4 sm:$0xff]   ;;  %v16777_v58 = vld [vmem:[%s17586_s17 + $0x2188] ss:$16 sps:$4 sm:$0xff]  }
0x11d5   : > { %11343 = vmatprep.subr.bf16.mxu0 %v16707_v44  ;;  %11386 = vmatprep.subr.bf16.mxu1 %v16800_v21  ;;  %v16747_v44 = vld [vmem:[%s17586_s17 + $0x2028] ss:$16 sps:$4 sm:$0xff]   ;;  %v16785_v21 = vld [vmem:[%s17586_s17 + $0x216c] ss:$16 sps:$4 sm:$0xff]  }
0x11d8   : > { %11344 = vmatpush2.bf16.msra.mxu0 %v16705_v41  ;;  %11387 = vmatpush2.bf16.msra.mxu1 %v16798_v28  ;;  %v16755_v41 = vld [vmem:[%s17586_s17 + $0x200c] ss:$16 sps:$4 sm:$0xff]   ;;  %v16783_v28 = vld [vmem:[%s17586_s17 + $0x2168] ss:$16 sps:$4 sm:$0xff]  }
0x11d9   : > { %11399 = vmatprep.subr.bf16.mxu0 %v16713_v4  ;;  %11442 = vmatprep.subr.bf16.mxu1 %v16806_v20  ;;  %v16759_v4 = vld [vmem:[%s17586_s17 + $0x21e8] ss:$16 sps:$4 sm:$0xff]   ;;  %v16791_v20 = vld [vmem:[%s17586_s17 + $0x214c] ss:$16 sps:$4 sm:$0xff]  }
0x121b   : > { %v10378_v37 = vpop.f32.mrf.mxu0  ;;  %v10421_v53 = vpop.f32.mrf.mxu1 }
0x121c   : > { %v10379_v9 = vadd.f32 %v10378_v37, %v9691_v5  ;;  %v19523_v37 = vld [vmem:[%s17745_s28 + $0x50] sm:$0xff] }
0x121d   : > { %v10380_v10 = vpop.f32.mrf.mxu0  ;;  %v10423_v57 = vpop.f32.mrf.mxu1 }
0x121e   : > { %v10381_v52 = vadd.f32 %v10380_v10, %v9695_v23  ;;  %v10422_v38 = vadd.f32 %v10421_v53, %v10379_v9  ;;  %v9699_v53 = vrot.slane %v19523_v37, %v18091_v32 }
0x121f   : > { %v10382_v63 = vpop.f32.mrf.mxu0  ;;  %v10425_v50 = vpop.f32.mrf.mxu1 }
0x1220   : > { %v10383_v59 = vadd.f32 %v10382_v63, %v9691_v5  ;;  %v10424_v18 = vadd.f32 %v10423_v57, %v10381_v52  ;;  %v10516_v45 = vmax.f32 %v10422_v38, 0.0  ;;  %v16789_v52 = vld [vmem:[%s17586_s17 + $0x2148] ss:$16 sps:$4 sm:$0xff]  }
0x1221   : > { %v10384_v31 = vpop.f32.mrf.mxu0  ;;  %v10427_v24 = vpop.f32.mrf.mxu1  ;;  %v16795_v38 = vld [vmem:[%s17586_s17 + $0x2128] ss:$16 sps:$4 sm:$0xff]  }
0x1222   : > { %v10426_v7 = vadd.f32 %v10425_v50, %v10383_v59  ;;  %v10385_v26 = vadd.f32 %v10384_v31, %v9695_v23  ;;  %v10517_v2 = vmax.f32 %v10424_v18, 0.0  ;;  %v19518_v23 = vld [vmem:[%s17745_s28 + $0x58] sm:$0xff]  ;;  %v16797_v50 = vld [vmem:[%s17586_s17 + $0x212c] ss:$16 sps:$4 sm:$0xff]  }
0x1223   : > { %v9703_v5 = vrot.slane %v19518_v23, %v18091_v32  ;;  %v16803_v32 = vld [vmem:[%s17586_s17 + $0x210c] ss:$16 sps:$4 sm:$0xff]  }
0x1224   : > { %v10428_v6 = vadd.f32 %v10427_v24, %v10385_v26  ;;  %v10520_v46 = vmax.f32 %v10426_v7, 0.0 }
0x1226   : > { %v10521_v11 = vmax.f32 %v10428_v6, 0.0  ;;  %v19489_v54 = vpack.c.bf16 %v10520_v46, %v10516_v45 }
0x1228   : > { %v10654_v30 = vpack.c.bf16 %v10521_v11, %v10517_v2 }
0x122a   : > { %11345 = vmatprep.mubr.bf16.mxu0 %v10654_v30 }
0x122b   : > { %11346 = vmatmul.mubr.bf16.vlgmr.msra.gmra.mxu0 %v19489_v54 }
0x122c   : > { %11400 = vmatpush1.bf16.msra.mxu0 %v16711_v3  ;;  %11431 = vmatprep.mubr.bf16.mxu0 %v10654_v30  ;;  %v16801_v3 = vld [vmem:[%s17586_s17 + $0x2108] ss:$16 sps:$4 sm:$0xff]  }
0x122d   : > { %11401 = vmatprep.subr.bf16.mxu0 %v16719_v29 }
0x1230   : > { %11402 = vmatpush1.bf16.msra.mxu0 %v16717_v25 }
0x1231   : > { %11403 = vmatprep.subr.bf16.mxu0 %v16725_v60 }
0x1234   : > { %11404 = vmatpush1.bf16.msra.mxu0 %v16723_v35 }
0x1235   : > { %11405 = vmatprep.subr.bf16.mxu0 %v16731_v27 }
0x1238   : > { %11406 = vmatpush1.bf16.msra.mxu0 %v16729_v62  ;;  %v16804_v62 = vld [vmem:[%s17586_s17 + $0x22e8] ss:$16 sps:$4 sm:$0xff]  }
0x1239   : > { %11407 = vmatprep.subr.bf16.mxu0 %v16737_v22 }
0x123c   : > { %11408 = vmatpush1.bf16.msra.mxu0 %v16735_v55  ;;  %v16809_v55 = vld [vmem:[%s17586_s17 + $0x22cc] ss:$16 sps:$4 sm:$0xff]  }
0x123d   : > { %11409 = vmatprep.subr.bf16.mxu0 %v16743_v48  ;;  %v16807_v48 = vld [vmem:[%s17586_s17 + $0x22c8] ss:$16 sps:$4 sm:$0xff]  }
0x1240   : > { %11410 = vmatpush1.bf16.msra.mxu0 %v16741_v47  ;;  %v16812_v47 = vld [vmem:[%s17586_s17 + $0x22ac] ss:$16 sps:$4 sm:$0xff]  }
0x1241   : > { %11411 = vmatprep.subr.bf16.mxu0 %v16749_v56  ;;  %v16810_v56 = vld [vmem:[%s17586_s17 + $0x22a8] ss:$16 sps:$4 sm:$0xff]  }
0x1244   : > { %11412 = vmatpush1.bf16.msra.mxu0 %v16747_v44  ;;  %v16815_v44 = vld [vmem:[%s17586_s17 + $0x228c] ss:$16 sps:$4 sm:$0xff]  }
0x1245   : > { %11413 = vmatprep.subr.bf16.mxu0 %v16755_v41  ;;  %v16813_v41 = vld [vmem:[%s17586_s17 + $0x2288] ss:$16 sps:$4 sm:$0xff]  }
0x1248   : > { %11414 = vmatpush1.bf16.msra.mxu0 %v16753_v1  ;;  %v16818_v1 = vld [vmem:[%s17586_s17 + $0x226c] ss:$16 sps:$4 sm:$0xff]  }
0x1249   : > { %11415 = vmatprep.subr.bf16.mxu0 %v16761_v51  ;;  %v16821_v51 = vld [vmem:[%s17586_s17 + $0x224c] ss:$16 sps:$4 sm:$0xff]  }
0x124c   : > { %11416 = vmatpush2.bf16.msra.mxu0 %v16759_v4  ;;  %v16819_v4 = vld [vmem:[%s17586_s17 + $0x2248] ss:$16 sps:$4 sm:$0xff]  }
0x124d   : > { %11417 = vmatprep.subr.bf16.mxu0 %v16767_v8  ;;  %v16824_v8 = vld [vmem:[%s17586_s17 + $0x222c] ss:$16 sps:$4 sm:$0xff]  }
0x1250   : > { %11418 = vmatpush2.bf16.msra.mxu0 %v16765_v13  ;;  %v16822_v13 = vld [vmem:[%s17586_s17 + $0x2228] ss:$16 sps:$4 sm:$0xff]  }
0x1251   : > { %11419 = vmatprep.subr.bf16.mxu0 %v16773_v14  ;;  %v16827_v14 = vld [vmem:[%s17586_s17 + $0x220c] ss:$16 sps:$4 sm:$0xff]  }
0x1254   : > { %11420 = vmatpush2.bf16.msra.mxu0 %v16771_v16  ;;  %v16825_v16 = vld [vmem:[%s17586_s17 + $0x2208] ss:$16 sps:$4 sm:$0xff]  }
0x1255   : > { %11421 = vmatprep.subr.bf16.mxu0 %v16779_v0  ;;  %v16830_v0 = vld [vmem:[%s17586_s17 + $0x23ec] ss:$16 sps:$4 sm:$0xff]  }
0x1258   : > { %11422 = vmatpush2.bf16.msra.mxu0 %v16777_v58  ;;  %v16828_v58 = vld [vmem:[%s17586_s17 + $0x23e8] ss:$16 sps:$4 sm:$0xff]  }
0x1259   : > { %11423 = vmatprep.subr.bf16.mxu0 %v16785_v21  ;;  %v16833_v21 = vld [vmem:[%s17586_s17 + $0x23cc] ss:$16 sps:$4 sm:$0xff]  }
0x125b   : > { %v10464_v10 = vpop.f32.mrf.mxu0  ;;  %v10507_v57 = vpop.f32.mrf.mxu1 }
0x125c   : > { %11424 = vmatpush2.bf16.msra.mxu0 %v16783_v28  ;;  %v10465_v31 = vadd.f32 %v10464_v10, %v9699_v53  ;;  %v16831_v28 = vld [vmem:[%s17586_s17 + $0x23c8] ss:$16 sps:$4 sm:$0xff]  }
0x125d   : > { %v10466_v9 = vpop.f32.mrf.mxu0  ;;  %v10509_v63 = vpop.f32.mrf.mxu1  ;;  %11425 = vmatprep.subr.bf16.mxu0 %v16791_v20  ;;  %v16836_v20 = vld [vmem:[%s17586_s17 + $0x23ac] ss:$16 sps:$4 sm:$0xff]   ;;  %v16837_v10 = vld [vmem:[%s17586_s17 + $0x2388] ss:$16 sps:$4 sm:$0xff]  }
0x125e   : > { %v10467_v59 = vadd.f32 %v10466_v9, %v9703_v5  ;;  %v10508_v11 = vadd.f32 %v10507_v57, %v10465_v31  ;;  %v16842_v57 = vld [vmem:[%s17586_s17 + $0x236c] ss:$16 sps:$4 sm:$0xff]  }
0x125f   : > { %v10468_v18 = vpop.f32.mrf.mxu0  ;;  %v10511_v7 = vpop.f32.mrf.mxu1  ;;  %v16845_v9 = vld [vmem:[%s17586_s17 + $0x234c] ss:$16 sps:$4 sm:$0xff]  }
0x1260   : > { %v10469_v26 = vadd.f32 %v10468_v18, %v9699_v53  ;;  %11426 = vmatpush2.bf16.msra.mxu0 %v16789_v52  ;;  %v10510_v6 = vadd.f32 %v10509_v63, %v10467_v59  ;;  %v10518_v35 = vmax.f32 %v10508_v11, 0.0  ;;  %v16839_v53 = vld [vmem:[%s17586_s17 + $0x238c] ss:$16 sps:$4 sm:$0xff]   ;;  %v16840_v52 = vld [vmem:[%s17586_s17 + $0x2368] ss:$16 sps:$4 sm:$0xff]   ;;  %v10660_v11 = vrot.slane %v19484_v39, %v18172_v15 }
0x1261   : > { %v10470_v24 = vpop.f32.mrf.mxu0  ;;  %11427 = vmatprep.subr.bf16.mxu0 %v16797_v50  ;;  %v10513_v45 = vpop.f32.mrf.mxu1  ;;  %v16843_v63 = vld [vmem:[%s17586_s17 + $0x2348] ss:$16 sps:$4 sm:$0xff]   ;;  %v16848_v50 = vld [vmem:[%s17586_s17 + $0x232c] ss:$16 sps:$4 sm:$0xff]  }
0x1262   : > { %v10512_v46 = vadd.f32 %v10511_v7, %v10469_v26  ;;  %v10471_v2 = vadd.f32 %v10470_v24, %v9703_v5  ;;  %v10519_v25 = vmax.f32 %v10510_v6, 0.0  ;;  %v16834_v5 = vld [vmem:[%s17586_s17 + $0x23a8] ss:$16 sps:$4 sm:$0xff]   ;;  %v16851_v31 = vld [vmem:[%s17586_s17 + $0x230c] ss:$16 sps:$4 sm:$0xff]  }
0x1263   : > { %v16846_v59 = vld [vmem:[%s17586_s17 + $0x2328] ss:$16 sps:$4 sm:$0xff]  }
0x1264   : > { %v10514_v30 = vadd.f32 %v10513_v45, %v10471_v2  ;;  %11428 = vmatpush2.bf16.msra.mxu0 %v16795_v38  ;;  %v10522_v29 = vmax.f32 %v10512_v46, 0.0  ;;  %v16849_v18 = vld [vmem:[%s17586_s17 + $0x2308] ss:$16 sps:$4 sm:$0xff]   ;;  %v10664_v46 = vrot.slane %v19479_v33, %v18172_v15 }
0x1265   : > { %11429 = vmatprep.subr.bf16.mxu0 %v16803_v32 }
0x1266   : > { %v10523_v60 = vmax.f32 %v10514_v30, 0.0  ;;  %v19533_v22 = vpack.c.bf16 %v10522_v29, %v10518_v35 }
0x1268   : > { %v10656_v27 = vpack.c.bf16 %v10523_v60, %v10519_v25  ;;  %11430 = vmatpush2.bf16.msra.mxu0 %v16801_v3  ;;  %v10668_v25 = vrot.slane %v19523_v37, %v18172_v15 }
0x126a   : > { %11388 = vmatprep.mubr.bf16.mxu1 %v10656_v27 }
0x126b   : > { %11389 = vmatmul.mubr.bf16.vlgmr.msra.gmra.mxu1 %v19533_v22  ;;  %11432 = vmatmul.mubr.bf16.vlgmr.msra.gmra.mxu0 %v19489_v54  ;;  %v16816_v54 = vld [vmem:[%s17586_s17 + $0x2268] ss:$16 sps:$4 sm:$0xff]  }
0x126c   : > { %11443 = vmatpush1.bf16.msra.mxu1 %v16804_v62  ;;  %11474 = vmatprep.mubr.bf16.mxu1 %v10656_v27 }
0x126d   : > { %11444 = vmatprep.subr.bf16.mxu1 %v16809_v55 }
0x1270   : > { %11445 = vmatpush1.bf16.msra.mxu1 %v16807_v48 }
0x1271   : > { %11446 = vmatprep.subr.bf16.mxu1 %v16812_v47 }
0x1274   : > { %11447 = vmatpush1.bf16.msra.mxu1 %v16810_v56 }
0x1275   : > { %11448 = vmatprep.subr.bf16.mxu1 %v16815_v44 }
0x1278   : > { %11449 = vmatpush1.bf16.msra.mxu1 %v16813_v41 }
0x1279   : > { %11450 = vmatprep.subr.bf16.mxu1 %v16818_v1 }
0x127c   : > { %11451 = vmatpush1.bf16.msra.mxu1 %v16816_v54 }
0x127d   : > { %11452 = vmatprep.subr.bf16.mxu1 %v16821_v51 }
0x1280   : > { %11453 = vmatpush1.bf16.msra.mxu1 %v16819_v4 }
0x1281   : > { %11454 = vmatprep.subr.bf16.mxu1 %v16824_v8 }
0x1284   : > { %11455 = vmatpush1.bf16.msra.mxu1 %v16822_v13 }
0x1285   : > { %11456 = vmatprep.subr.bf16.mxu1 %v16827_v14 }
0x1288   : > { %11457 = vmatpush1.bf16.msra.mxu1 %v16825_v16 }
0x1289   : > { %11458 = vmatprep.subr.bf16.mxu1 %v16830_v0 }
0x128c   : > { %11459 = vmatpush2.bf16.msra.mxu1 %v16828_v58 }
0x128d   : > { %11460 = vmatprep.subr.bf16.mxu1 %v16833_v21 }
0x1290   : > { %11461 = vmatpush2.bf16.msra.mxu1 %v16831_v28 }
0x1291   : > { %11462 = vmatprep.subr.bf16.mxu1 %v16836_v20 }
0x1294   : > { %11463 = vmatpush2.bf16.msra.mxu1 %v16834_v5 }
0x1295   : > { %11464 = vmatprep.subr.bf16.mxu1 %v16839_v53 }
0x1298   : > { %11465 = vmatpush2.bf16.msra.mxu1 %v16837_v10 }
0x1299   : > { %11466 = vmatprep.subr.bf16.mxu1 %v16842_v57 }
0x129c   : > { %11467 = vmatpush2.bf16.msra.mxu1 %v16840_v52 }
0x129d   : > { %11468 = vmatprep.subr.bf16.mxu1 %v16845_v9 }
0x12a0   : > { %11469 = vmatpush2.bf16.msra.mxu1 %v16843_v63 }
0x12a1   : > { %11470 = vmatprep.subr.bf16.mxu1 %v16848_v50 }
0x12a4   : > { %11471 = vmatpush2.bf16.msra.mxu1 %v16846_v59 }
0x12a5   : > { %11472 = vmatprep.subr.bf16.mxu1 %v16851_v31 }
0x12a8   : > { %11473 = vmatpush2.bf16.msra.mxu1 %v16849_v18 }
0x12ab   : > { %11475 = vmatmul.mubr.bf16.vlgmr.msra.gmra.mxu1 %v19533_v22  ;;  %v10672_v22 = vrot.slane %v19518_v23, %v18172_v15 }
0x12eb   : > { %v11347_v7 = vpop.f32.mrf.mxu0 }
0x12ec   : > { %v11348_v29 = vadd.f32 %v11347_v7, %v10660_v11 }
0x12ed   : > { %v11349_v26 = vpop.f32.mrf.mxu0 }
0x12ee   : > { %v11350_v30 = vadd.f32 %v11349_v26, %v10664_v46 }
0x12ef   : > { %v11351_v38 = vpop.f32.mrf.mxu0 }
0x12f0   : > { %v11352_v55 = vadd.f32 %v11351_v38, %v10660_v11 }
0x12f1   : > { %v11353_v32 = vpop.f32.mrf.mxu0 }
0x12f2   : > { %v11354_v27 = vadd.f32 %v11353_v32, %v10664_v46 }
0x132b   : > { %v11390_v24 = vpop.f32.mrf.mxu1  ;;  %v11433_v2 = vpop.f32.mrf.mxu0 }
0x132c   : > { %v11391_v62 = vadd.f32 %v11390_v24, %v11348_v29  ;;  %v11434_v47 = vadd.f32 %v11433_v2, %v10668_v25 }
0x132d   : > { %v11392_v6 = vpop.f32.mrf.mxu1  ;;  %v11435_v3 = vpop.f32.mrf.mxu0 }
0x132e   : > { %v11393_v60 = vadd.f32 %v11392_v6, %v11350_v30  ;;  %v11485_v54 = vadd.f32 %v11391_v62, %v19326_v40  ;;  %v11436_v51 = vadd.f32 %v11435_v3, %v10672_v22 }
0x132f   : > { %v11394_v45 = vpop.f32.mrf.mxu1  ;;  %v11437_v48 = vpop.f32.mrf.mxu0 }
0x1330   : > { %v11486_v56 = vadd.f32 %v11393_v60, %v19318_v12  ;;  %v11395_v41 = vadd.f32 %v11394_v45, %v11352_v55  ;;  %v11438_v8 = vadd.f32 %v11437_v48, %v10668_v25 }
0x1331   : > { %v11396_v35 = vpop.f32.mrf.mxu1  ;;  %v11439_v13 = vpop.f32.mrf.mxu0 }
0x1332   : > { %v11397_v44 = vadd.f32 %v11396_v35, %v11354_v27  ;;  %v11493_v16 = vadd.f32 %v11486_v56, %v11485_v54  ;;  %v11489_v21 = vadd.f32 %v11395_v41, %v19328_v42  ;;  %v11440_v12 = vadd.f32 %v11439_v13, %v10672_v22 }
0x1333   : > { %v11548_v41 = vrot.slane %v19484_v39, %v18321_v49  ;;  %v11576_v13 = vrot.slane %v19479_v33, %v18324_v43 }
0x1334   : > { %v11490_v0 = vadd.f32 %v11397_v44, %v19320_v34 }
0x1336   : > { %v11498_v10 = vadd.f32 %v11490_v0, %v11489_v21 }
0x136b   : > { %v11476_v1 = vpop.f32.mrf.mxu1 }
0x136c   : > { %v11477_v4 = vadd.f32 %v11476_v1, %v11434_v47  ;;  %v11552_v1 = vrot.slane %v19479_v33, %v18321_v49 }
0x136d   : > { %v11478_v14 = vpop.f32.mrf.mxu1 }
0x136e   : > { %v11487_v15 = vadd.f32 %v11477_v4, %v19330_v36  ;;  %v11479_v58 = vadd.f32 %v11478_v14, %v11436_v51  ;;  %v11560_v51 = vrot.slane %v19518_v23, %v18321_v49  ;;  %v11580_v14 = vrot.slane %v19523_v37, %v18324_v43 }
0x136f   : > { %v11480_v28 = vpop.f32.mrf.mxu1 }
0x1370   : > { %v11488_v20 = vadd.f32 %v11479_v58, %v19322_v19  ;;  %v11481_v5 = vadd.f32 %v11480_v28, %v11438_v8  ;;  %v11494_v53 = vadd.f32 %v11493_v16, %v11487_v15  ;;  %v11572_v8 = vrot.slane %v19484_v39, %v18324_v43 }
0x1371   : > { %v11482_v40 = vpop.f32.mrf.mxu1  ;;  %v11584_v16 = vrot.slane %v19518_v23, %v18324_v43 }
0x1372   : > { %v11491_v57 = vadd.f32 %v11481_v5, %v19332_v17  ;;  %v11483_v52 = vadd.f32 %v11482_v40, %v11440_v12  ;;  %v11495_v9 = vadd.f32 %v11494_v53, %v11488_v20 }
0x1374   : > { %v11492_v63 = vadd.f32 %v11483_v52, %v19324_v61  ;;  %11496 = vadd.xlane.f32.xlu0 %v11495_v9  ;;  %v11499_v34 = vadd.f32 %v11498_v10, %v11491_v57 }
0x1376   : > { %v11500_v36 = vadd.f32 %v11499_v34, %v11492_v63 }
0x1378   : > { %11501 = vadd.xlane.f32.xlu1 %v11500_v36 }
0x13fd   : > { %v11497_v50 = vpop.xlane.xlu0 %11496 }
0x13fe   : > { %v11503_v42 = vmul.f32 0.001953125, %v11497_v50 }
0x1400   : > { %v11505_v59 = vsub.f32 %v11485_v54, %v11503_v42  ;;  %v11506_v31 = vsub.f32 %v11486_v56, %v11503_v42  ;;  %v11507_v18 = vsub.f32 %v11487_v15, %v11503_v42  ;;  %v11508_v7 = vsub.f32 %v11488_v20, %v11503_v42 }
0x1401   : > { %v11502_v19 = vpop.xlane.xlu1 %11501  ;;  %v11556_v54 = vrot.slane %v19523_v37, %v18321_v49 }
0x1402   : > { %v11504_v26 = vmul.f32 0.001953125, %v11502_v19  ;;  %v11513_v38 = vmul.f32 %v11505_v59, %v11505_v59  ;;  %v11514_v24 = vmul.f32 %v11506_v31, %v11506_v31  ;;  %v11515_v32 = vmul.f32 %v11507_v18, %v11507_v18 }
0x1403   : > { %v11516_v61 = vmul.f32 %v11508_v7, %v11508_v7 }
0x1404   : > { %v11509_v17 = vsub.f32 %v11489_v21, %v11504_v26  ;;  %v11510_v6 = vsub.f32 %v11490_v0, %v11504_v26  ;;  %v11521_v46 = vadd.f32 %v11514_v24, %v11513_v38  ;;  %v11511_v2 = vsub.f32 %v11491_v57, %v11504_v26 }
0x1405   : > { %v11512_v45 = vsub.f32 %v11492_v63, %v11504_v26 }
0x1406   : > { %v11522_v11 = vadd.f32 %v11521_v46, %v11515_v32  ;;  %v11517_v30 = vmul.f32 %v11509_v17, %v11509_v17  ;;  %v11518_v3 = vmul.f32 %v11510_v6, %v11510_v6  ;;  %v11519_v25 = vmul.f32 %v11511_v2, %v11511_v2 }
0x1407   : > { %v11520_v35 = vmul.f32 %v11512_v45, %v11512_v45 }
0x1408   : > { %v11523_v29 = vadd.f32 %v11522_v11, %v11516_v61  ;;  %v11526_v60 = vadd.f32 %v11518_v3, %v11517_v30 }
0x140a   : > { %11524 = vadd.xlane.f32.xlu0 %v11523_v29  ;;  %v11527_v27 = vadd.f32 %v11526_v60, %v11519_v25 }
0x140c   : > { %v11528_v62 = vadd.f32 %v11527_v27, %v11520_v35 }
0x140e   : > { %11529 = vadd.xlane.f32.xlu1 %v11528_v62 }
0x1493   : > { %v11525_v22 = vpop.xlane.xlu0 %11524 }
0x1494   : > { %v11531_v55 = vmul.f32 0.001953125, %v11525_v22 }
0x1496   : > { %v11533_v48 = vadd.f32 1e-05, %v11531_v55 }
0x1497   : > { %v11530_v47 = vpop.xlane.xlu1 %11529 }
0x1498   : > { %16872 = vrsqrt.f32 %v11533_v48  ;;  %v11532_v56 = vmul.f32 0.001953125, %v11530_v47 }
0x149a   : > { %v11534_v44 = vadd.f32 1e-05, %v11532_v56 }
0x149c   : > { %16874 = vrsqrt.f32 %v11534_v44 }
0x14a5   : > { %v16873_v4 = vpop.eup %16872 }
0x14a6   : > { %v11537_v0 = vmul.f32 %v16873_v4, %v11505_v59  ;;  %v11538_v15 = vmul.f32 %v16873_v4, %v11506_v31  ;;  %v11539_v58 = vmul.f32 %v16873_v4, %v11507_v18  ;;  %v11540_v21 = vmul.f32 %v16873_v4, %v11508_v7 }
0x14a8   : > { %v11561_v28 = vmul.f32 %v11548_v41, %v11537_v0  ;;  %v11562_v12 = vmul.f32 %v11552_v1, %v11538_v15  ;;  %v11563_v49 = vmul.f32 %v11556_v54, %v11539_v58  ;;  %v11564_v20 = vmul.f32 %v11560_v51, %v11540_v21 }
0x14a9   : > { %v16875_v5 = vpop.eup %16874 }
0x14aa   : > { %v19600_v53 = vadd.f32 %v11572_v8, %v11561_v28  ;;  %v11586_v39 = vadd.f32 %v11576_v13, %v11562_v12  ;;  %v19602_v40 = vadd.f32 %v11580_v14, %v11563_v49  ;;  %v11588_v33 = vadd.f32 %v11584_v16, %v11564_v20 }
0x14ab   : > { %v11541_v10 = vmul.f32 %v16875_v5, %v11509_v17  ;;  %v11542_v37 = vmul.f32 %v16875_v5, %v11510_v6  ;;  %v11543_v57 = vmul.f32 %v16875_v5, %v11511_v2  ;;  %v11544_v52 = vmul.f32 %v16875_v5, %v11512_v45 }
0x14ac   : > { %11593 = vst [vmem:[#allocation2 + $0x30] sm:$0xff] %v19600_v53  ;;  %11594 = vst [vmem:[#allocation2] sm:$0xff] %v11586_v39 }
0x14ad   : > { %11595 = vst [vmem:[#allocation2 + $0x8] sm:$0xff] %v19602_v40  ;;  %11596 = vst [vmem:[#allocation2 + $0x10] sm:$0xff] %v11588_v33  ;;  %v11565_v43 = vmul.f32 %v11548_v41, %v11541_v10  ;;  %v11566_v23 = vmul.f32 %v11552_v1, %v11542_v37  ;;  %v11567_v9 = vmul.f32 %v11556_v54, %v11543_v57 }
0x14ae   : > { %v11568_v63 = vmul.f32 %v11560_v51, %v11544_v52  ;;  %11604 = sbr.rel (%p14548_p1) target bundleno = 5539 (0x15a3), region = 108 }
0x14af   : > { %v19606_v34 = vadd.f32 %v11572_v8, %v11565_v43  ;;  %v11590_v36 = vadd.f32 %v11576_v13, %v11566_v23  ;;  %v19608_v50 = vadd.f32 %v11580_v14, %v11567_v9 }
0x14b0   : > { %v11592_v42 = vadd.f32 %v11584_v16, %v11568_v63 }
0x14b1   : > { %11597 = vst [vmem:[#allocation2 + $0x28] sm:$0xff] %v19606_v34  ;;  %11598 = vst [vmem:[#allocation2 + $0x20] sm:$0xff] %v11590_v36 }
0x14b2   : > { %11599 = vst [vmem:[#allocation2 + $0x18] sm:$0xff] %v19608_v50  ;;  %11600 = vst [vmem:[#allocation2 + $0x38] sm:$0xff] %v11592_v42 }
0x14b3   : > { %v16900_v59 = vld [vmem:[#allocation16 + $0x78] sm:$0xff]   ;;  %v11670_v31 = vpack.c.bf16 %v11590_v36, %v11586_v39  ;;  %v11672_v18 = vpack.c.bf16 %v11592_v42, %v11588_v33  ;;  %v16904_v38 = vld [vmem:[#allocation16 + $0x70] sm:$0xff]   ;;  %v16908_v6 = vld [vmem:[#allocation16 + $0x68] sm:$0xff]   ;;  %v11669_v4 = vpack.c.bf16 %v19606_v34, %v19600_v53  ;;  %v11671_v8 = vpack.c.bf16 %v19608_v50, %v19602_v40 }
0x14b4   : > { %v16901_v19 = vld [vmem:[#allocation16 + $0xf8] sm:$0xff]   ;;  %14587 = vmatprep.subr.bf16.mxu0 %v16900_v59  ;;  %v16905_v24 = vld [vmem:[#allocation16 + $0xf0] sm:$0xff]   ;;  %v16909_v46 = vld [vmem:[#allocation16 + $0xe8] sm:$0xff]  }
0x14b5   : > { %v16902_v7 = vld [vmem:[#allocation16 + $0x38] sm:$0xff]   ;;  %11904 = vmatprep.mubr.bf16.mxu0 %v11670_v31  ;;  %14609 = vmatprep.subr.bf16.mxu1 %v16901_v19  ;;  %v16906_v32 = vld [vmem:[#allocation16 + $0x30] sm:$0xff]   ;;  %v16910_v2 = vld [vmem:[#allocation16 + $0x28] sm:$0xff]  }
0x14b6   : > { %v16903_v26 = vld [vmem:[#allocation16 + $0xb8] sm:$0xff]   ;;  %11945 = vmatprep.mubr.bf16.mxu1 %v11672_v18  ;;  %14588 = vmatpush3.bf16.msra.mxu0 %v16902_v7  ;;  %v16907_v17 = vld [vmem:[#allocation16 + $0xb0] sm:$0xff]   ;;  %v16911_v61 = vld [vmem:[#allocation16 + $0xa8] sm:$0xff]  }
0x14b7   : > { %14610 = vmatpush3.bf16.msra.mxu1 %v16903_v26  ;;  %14589 = vmatprep.subr.bf16.mxu0 %v16904_v38  ;;  %v16912_v11 = vld [vmem:[#allocation16 + $0x60] sm:$0xff]   ;;  %v16916_v29 = vld [vmem:[#allocation16 + $0x58] sm:$0xff]   ;;  %v16920_v27 = vld [vmem:[#allocation16 + $0x50] sm:$0xff]  }
0x14b8   : > { %14611 = vmatprep.subr.bf16.mxu1 %v16905_v24  ;;  %v16913_v45 = vld [vmem:[#allocation16 + $0xe0] sm:$0xff]   ;;  %v16917_v25 = vld [vmem:[#allocation16 + $0xd8] sm:$0xff]   ;;  %v16921_v62 = vld [vmem:[#allocation16 + $0xd0] sm:$0xff]  }
0x14b9   : > { %v16914_v30 = vld [vmem:[#allocation16 + $0x20] sm:$0xff]   ;;  %v16918_v60 = vld [vmem:[#allocation16 + $0x18] sm:$0xff]   ;;  %v16922_v22 = vld [vmem:[#allocation16 + $0x10] sm:$0xff]  }
0x14ba   : > { %14590 = vmatpush3.bf16.msra.mxu0 %v16906_v32  ;;  %v16915_v3 = vld [vmem:[#allocation16 + $0xa0] sm:$0xff]   ;;  %v16919_v35 = vld [vmem:[#allocation16 + $0x98] sm:$0xff]   ;;  %v16923_v55 = vld [vmem:[#allocation16 + $0x90] sm:$0xff]  }
0x14bb   : > { %14612 = vmatpush3.bf16.msra.mxu1 %v16907_v17  ;;  %14591 = vmatprep.subr.bf16.mxu0 %v16908_v6  ;;  %v16924_v48 = vld [vmem:[#allocation16 + $0x48] sm:$0xff]   ;;  %v16928_v41 = vld [vmem:[#allocation16 + $0x40] sm:$0xff]  }
0x14bc   : > { %14613 = vmatprep.subr.bf16.mxu1 %v16909_v46  ;;  %v16925_v47 = vld [vmem:[#allocation16 + $0xc8] sm:$0xff]   ;;  %v16929_v1 = vld [vmem:[#allocation16 + $0xc0] sm:$0xff]  }
0x14bd   : > { %v16926_v56 = vld [vmem:[#allocation16 + $0x8] sm:$0xff]   ;;  %v16930_v54 = vld [vmem:[#allocation16] sm:$0xff]  }
0x14be   : > { %14592 = vmatpush3.bf16.msra.mxu0 %v16910_v2  ;;  %v16927_v44 = vld [vmem:[#allocation16 + $0x88] sm:$0xff]   ;;  %v16931_v51 = vld [vmem:[#allocation16 + $0x80] sm:$0xff]  }
0x14bf   : > { %14614 = vmatpush3.bf16.msra.mxu1 %v16911_v61  ;;  %14593 = vmatprep.subr.bf16.mxu0 %v16912_v11  ;;  %v14549_v16 = vld [vmem:[#allocation17] ss:$0 sm:$0xff] }
0x14c0   : > { %14615 = vmatprep.subr.bf16.mxu1 %v16913_v45 }
0x14c2   : > { %14594 = vmatpush3.bf16.msra.mxu0 %v16914_v30 }
0x14c3   : > { %14616 = vmatpush3.bf16.msra.mxu1 %v16915_v3  ;;  %14595 = vmatprep.subr.bf16.mxu0 %v16916_v29 }
0x14c4   : > { %14617 = vmatprep.subr.bf16.mxu1 %v16917_v25 }
0x14c6   : > { %14596 = vmatpush3.bf16.msra.mxu0 %v16918_v60 }
0x14c7   : > { %14618 = vmatpush3.bf16.msra.mxu1 %v16919_v35  ;;  %14597 = vmatprep.subr.bf16.mxu0 %v16920_v27 }
0x14c8   : > { %14619 = vmatprep.subr.bf16.mxu1 %v16921_v62 }
0x14ca   : > { %14598 = vmatpush3.bf16.msra.mxu0 %v16922_v22 }
0x14cb   : > { %14620 = vmatpush3.bf16.msra.mxu1 %v16923_v55  ;;  %14599 = vmatprep.subr.bf16.mxu0 %v16924_v48 }
0x14cc   : > { %14621 = vmatprep.subr.bf16.mxu1 %v16925_v47 }
0x14ce   : > { %14600 = vmatpush3.bf16.msra.mxu0 %v16926_v56 }
0x14cf   : > { %14622 = vmatpush3.bf16.msra.mxu1 %v16927_v44  ;;  %14601 = vmatprep.subr.bf16.mxu0 %v16928_v41 }
0x14d0   : > { %14623 = vmatprep.subr.bf16.mxu1 %v16929_v1 }
0x14d2   : > { %14602 = vmatpush3.bf16.msra.mxu0 %v16930_v54 }
0x14d3   : > { %14624 = vmatpush3.bf16.msra.mxu1 %v16931_v51 }
0x14d5   : > { %11905 = vmatmul.mubr.bf16.vlgmr.msra.gmra.mxu0 %v11669_v4 }
0x14d6   : > { %11946 = vmatmul.mubr.bf16.vlgmr.msra.gmra.mxu1 %v11671_v8 }
0x1595   : > { %v14603_v13 = vpop.f32.mrf.mxu0 }
0x1596   : > { %v14625_v14 = vpop.f32.mrf.mxu1 }
0x1597   : > { %v14604_v0 = vpop.f32.mrf.mxu0 }
0x1598   : > { %v14605_v15 = vadd.f32 %v14604_v0, %v14603_v13  ;;  %v14626_v58 = vpop.f32.mrf.mxu1 }
0x1599   : > { %v14606_v21 = vpop.f32.mrf.mxu0  ;;  %v14627_v12 = vadd.f32 %v14626_v58, %v14625_v14 }
0x159a   : > { %v11907_v28 = vadd.f32 %v14605_v15, %v14549_v16  ;;  %v14628_v49 = vpop.f32.mrf.mxu1 }
0x159b   : > { %v14607_v20 = vpop.f32.mrf.mxu0 }
0x159c   : > { %v11948_v5 = vadd.f32 %v14627_v12, %v11907_v28  ;;  %v14608_v53 = vadd.f32 %v14607_v20, %v14606_v21  ;;  %v14629_v39 = vpop.f32.mrf.mxu1 }
0x159d   : > { %v14630_v40 = vadd.f32 %v14629_v39, %v14628_v49 }
0x159e   : > { %11954 = vst [vmem:[#allocation18] sm:$0xff] %v11948_v5  ;;  %v11910_v33 = vadd.f32 %v14608_v53, %v14549_v16 }
0x15a0   : > { %v11951_v10 = vadd.f32 %v14630_v40, %v11910_v33 }
0x15a2   : > { %11955 = vst [vmem:[#allocation18 + $0x8] sm:$0xff] %v11951_v10 }
0x15a3 PF: > { %p14728_p4 = scmp.eq.s32.totalorder %s17385_s19, 1  ;;  %s17306_s24 = smov [#allocation18]  }
0x15a4   : > { %s11962_s22 = sshll.u32 %s17306_s24, 4  ;;  %s11963_s22 = int_to_ptr.vmem [resolvable:$true] %s11962_s22 }
0x15a5   : > { %s17194_s11 = scalar_lea.vmem %s11963_s22, 256  ;;  %p17201_p9 = scmp.lt.s32.totalorder %s11963_s22, %s11963_s22 }
0x15a6   : > { %p17195_p13 = scmp.ne.s32.totalorder %s11963_s22, %s17194_s11  ;;  %p17202_p10 = scmp.lt.s32.totalorder %s17194_s11, %s17194_s11 }
0x15a8   : > { %p17196_p6 = pnand %p17195_p13, %p14728_p4  ;;  %p17203_p12 = por %p17202_p10, %p17201_p9 }
0x15aa   : > { %p17197_p8 = pneg %p17196_p6 }
0x15ac   : > { %p17204_p11 = pnand %p17203_p12, %p17197_p8 }
0x15ae   : > { %17207 = shalt.err (!%p17204_p11)
}
0x15af   : > { %s17307_s25 = smov 128   ;;  %s17308_s29 = smov 8  }
0x15b0   : > { %14673 = dma.vmem_to_hbm [thread:$0]  (%p14728_p4), %s11963_s22, 256, %s19652_s10, [#allocation5], %s17307_s25, %s17307_s25, %s17308_s29  }
0x15b1   : > { %17267 = dma.done.wait (%p14728_p4), [#allocation5], 256  }
0x15b2   : > { %17269 = vsyncadd (%p14728_p4), [#allocation5], 4294967040 }
0x15b3 PF: > { %p22_p2 = scmp.ge.s32.totalorder %s17508_s26, 4   ;;  %s19685_s13 = smov %s17276_s14 }
0x15b4   : > { %s19686_s14 = smov %s17280_s15  ;;  %s19687_s15 = smov %s17520_s23 }
0x15b5   : > { %s19688_s16 = smov %s17508_s26  ;;  %24 = sbr.rel (!%p22_p2) target bundleno = 6 (0x6), region = 151 }
0x15ba   :  { %11978 = vsyncpa [#allocation4], 1 }
0x15bb   :  { %11980 = vsyncpa [#allocation4 + $0x1], 1 }
0x15bc   :  { %11981 = vsyncpa [#allocation7], 1 }
0x15bd   :  { %11982 = vsyncpa [#allocation10], 1 }
0x15be   :  { %11983 = vsyncpa [#allocation13], 1 }
0x15bf   :  { %11984 = vsyncpa [#allocation5], 1 }
0x15c0   :  { %11986 = vsyncpa [#allocation5 + $0x1], 1 }

</bundles_post_ra>
